<compile_context>
chip_gen: v7x
topology: tpu7x:2x2x1
jax: 0.10.0
libtpu: 0.0.40
codegen_flags: <defaults>
</compile_context>

<pallas_src>
import functools

import jax
import jax.numpy as jnp
from jax.experimental import pallas as pl
from jax.experimental.pallas import tpu as pltpu


def _sigmoid(x):
    # Single EUP transcendental per element; rescale lands in spare VALU slots.
    return 0.5 * jnp.tanh(0.5 * x) + 0.5


def _ddqn_model_kernel(
    dist_ref,                       # (tm, R)   VMEM  distance tile
    state_ref,                      # (R, n_in) VMEM  resource states (resident)
    dw1_ref, db1_ref, dw2_ref, db2_ref,          # SMEM 1-D distance-MLP params
    rw1_ref, rb1_ref, rw2_ref, rb2_ref, rw3_ref, rb3_ref,   # VMEM resource-MLP params
    fw1_ref, fb1_ref, fw2_ref, fb2_ref,          # VMEM final-MLP params
    q_ref,                          # (tm, 1)   VMEM  output q-values
):
    f32 = jnp.float32
    dist = dist_ref[...].astype(f32)                              # (tm, R)

    # ---- distance module: per-element 1 -> H_d -> 1 sigmoid MLP (VPU + EUP) ----
    # Deliberately NOT a matmul: K=1 / N=1 would waste the MXU.
    n_hidden_d = dw1_ref.shape[0]
    acc = jnp.zeros_like(dist)
    for h in range(n_hidden_d):                                   # static unroll
        z = dist * dw1_ref[h] + db1_ref[h]
        acc = acc + dw2_ref[h] * _sigmoid(z)
    sim = _sigmoid(acc + db2_ref[0])                              # (tm, R)

    # ---- row-normalize over the resource (lane) axis ----
    denom = jnp.sum(sim, axis=-1, keepdims=True)                  # (tm, 1)
    sim = sim / denom

    # ---- resource representation module: (R, n_in) -> (R, n_out), ReLU MLP ----
    s = state_ref[...].astype(f32)
    r = jnp.maximum(
        jnp.dot(s, rw1_ref[...], preferred_element_type=f32) + rb1_ref[...], 0.0)
    r = jnp.maximum(
        jnp.dot(r, rw2_ref[...], preferred_element_type=f32) + rb2_ref[...], 0.0)
    r = jnp.dot(r, rw3_ref[...], preferred_element_type=f32) + rb3_ref[...]   # (R, n_out)

    # ---- similarity @ resource representation ----
    m = jnp.dot(sim, r, preferred_element_type=f32)               # (tm, n_out)

    # ---- final MLP: n_out -> H_f -> 1 (ReLU then linear) ----
    hf = jnp.maximum(
        jnp.dot(m, fw1_ref[...], preferred_element_type=f32) + fb1_ref[...], 0.0)
    q = jnp.dot(hf, fw2_ref[...], preferred_element_type=f32) + fb2_ref[...]  # (tm, 1)
    q_ref[...] = q.astype(q_ref.dtype)


def _round_up(x, m):
    return ((x + m - 1) // m) * m


@functools.partial(jax.jit, static_argnames=("tm",))
def ddqn_model_forward(state_mat, dist_mat, params, *, tm=256):
    """Fused Pallas forward of DDQNModel.

    state_mat : (n_resource, n_in)           resource encodings
    dist_mat  : (n_actions, n_resource)      distance matrix
    params    : tuple of torch-convention weights/biases (see _init_params)
    returns   : (n_actions,) q-values
    """
    (dw1, db1, dw2, db2,
     rw1, rb1, rw2, rb2, rw3, rb3,
     fw1, fb1, fw2, fb2) = params

    f32 = jnp.float32
    dist = dist_mat.astype(f32)
    state = state_mat.astype(f32)

    n_actions, n_resource = dist.shape
    n_in = state.shape[1]

    # --- reshape parameters into kernel-friendly layouts ---
    dw1_v = dw1.reshape(-1).astype(f32)          # (H_d,)   SMEM scalars
    db1_v = db1.reshape(-1).astype(f32)          # (H_d,)
    dw2_v = dw2.reshape(-1).astype(f32)          # (H_d,)
    db2_v = db2.reshape(-1).astype(f32)          # (1,)

    rw1_v = rw1.T.astype(f32)                    # (n_in, H_r)
    rb1_v = rb1.reshape(1, -1).astype(f32)
    rw2_v = rw2.T.astype(f32)                    # (H_r, H_r)
    rb2_v = rb2.reshape(1, -1).astype(f32)
    rw3_v = rw3.T.astype(f32)                    # (H_r, n_out)
    rb3_v = rb3.reshape(1, -1).astype(f32)

    fw1_v = fw1.T.astype(f32)                    # (n_out, H_f)
    fb1_v = fb1.reshape(1, -1).astype(f32)
    fw2_v = fw2.T.astype(f32)                    # (H_f, 1)
    fb2_v = fb2.reshape(1, 1).astype(f32)

    h_d = dw1_v.shape[0]
    h_r = rw1_v.shape[1]
    n_out = rw3_v.shape[1]
    h_f = fw1_v.shape[1]

    # --- row tiling of the action axis ---
    tm_eff = min(tm, _round_up(n_actions, 8))
    m_pad = _round_up(n_actions, tm_eff)
    if m_pad != n_actions:
        # Cheap fallback (padded rows stay finite and are sliced off below);
        # the example shapes divide evenly so this copy is not triggered.
        dist = jnp.pad(dist, ((0, m_pad - n_actions), (0, 0)))
    grid = (m_pad // tm_eff,)

    # --- advisory cost estimate: transcendental/EUP-heavy, light on HBM ---
    flops = (m_pad * n_resource * (4 * h_d + 6)
             + 2 * m_pad * n_resource * n_out
             + 2 * m_pad * (n_out * h_f + h_f)
             + grid[0] * 2 * n_resource * (n_in * h_r + h_r * h_r + h_r * n_out))
    transcendentals = m_pad * n_resource * (h_d + 1)
    bytes_accessed = 4 * (m_pad * n_resource + m_pad + n_resource * n_in + 4096)
    cost = pl.CostEstimate(flops=flops,
                           transcendentals=transcendentals,
                           bytes_accessed=bytes_accessed)

    smem_spec = pl.BlockSpec(memory_space=pltpu.MemorySpace.SMEM)

    out = pl.pallas_call(
        _ddqn_model_kernel,
        out_shape=jax.ShapeDtypeStruct((m_pad, 1), f32),
        grid_spec=pltpu.PrefetchScalarGridSpec(
            num_scalar_prefetch=0,
            grid=grid,
            in_specs=[
                pl.BlockSpec((tm_eff, n_resource), lambda i: (i, 0)),   # dist tile
                pl.BlockSpec((n_resource, n_in), lambda i: (0, 0)),     # state (resident)
                smem_spec, smem_spec, smem_spec, smem_spec,             # distance params
                pl.BlockSpec((n_in, h_r), lambda i: (0, 0)),            # rw1
                pl.BlockSpec((1, h_r), lambda i: (0, 0)),               # rb1
                pl.BlockSpec((h_r, h_r), lambda i: (0, 0)),             # rw2
                pl.BlockSpec((1, h_r), lambda i: (0, 0)),               # rb2
                pl.BlockSpec((h_r, n_out), lambda i: (0, 0)),           # rw3
                pl.BlockSpec((1, n_out), lambda i: (0, 0)),             # rb3
                pl.BlockSpec((n_out, h_f), lambda i: (0, 0)),           # fw1
                pl.BlockSpec((1, h_f), lambda i: (0, 0)),               # fb1
                pl.BlockSpec((h_f, 1), lambda i: (0, 0)),               # fw2
                pl.BlockSpec((1, 1), lambda i: (0, 0)),                 # fb2
            ],
            out_specs=pl.BlockSpec((tm_eff, 1), lambda i: (i, 0)),
        ),
        compiler_params=pltpu.CompilerParams(
            dimension_semantics=("parallel",),
        ),
        cost_estimate=cost,
    )(dist, state,
      dw1_v, db1_v, dw2_v, db2_v,
      rw1_v, rb1_v, rw2_v, rb2_v, rw3_v, rb3_v,
      fw1_v, fb1_v, fw2_v, fb2_v)

    return out[:n_actions, 0]


# --------------------------------------------------------------------------
# Parameter init (torch.nn.Linear default: uniform +/- 1/sqrt(fan_in)),
# stored in torch convention: weight (out, in), bias (out,).
# --------------------------------------------------------------------------
def _linear_init(key, n_in, n_out):
    kw, kb = jax.random.split(key)
    bound = 1.0 / jnp.sqrt(jnp.float32(n_in))
    w = jax.random.uniform(kw, (n_out, n_in), jnp.float32, -bound, bound)
    b = jax.random.uniform(kb, (n_out,), jnp.float32, -bound, bound)
    return w, b


def _init_params(key, n_hidden_distance, n_in_resource, n_hidden_resource,
                 n_out_resource, n_hidden_final):
    keys = jax.random.split(key, 6)
    dw1, db1 = _linear_init(keys[0], 1, n_hidden_distance)
    dw2, db2 = _linear_init(keys[1], n_hidden_distance, 1)
    rw1, rb1 = _linear_init(keys[2], n_in_resource, n_hidden_resource)
    rw2, rb2 = _linear_init(keys[3], n_hidden_resource, n_hidden_resource)
    rw3, rb3 = _linear_init(keys[4], n_hidden_resource, n_out_resource)
    fw1, fb1 = _linear_init(keys[5], n_out_resource, n_hidden_final)
    kf = jax.random.fold_in(key, 99)
    fw2, fb2 = _linear_init(kf, n_hidden_final, 1)
    return (dw1, db1, dw2, db2, rw1, rb1, rw2, rb2, rw3, rb3, fw1, fb1, fw2, fb2)


def _reference_forward(state_mat, dist_mat, params):
    """Pure-JAX replica of DDQNModel.forward (torch conventions)."""
    (dw1, db1, dw2, db2,
     rw1, rb1, rw2, rb2, rw3, rb3,
     fw1, fb1, fw2, fb2) = params
    x = state_mat.astype(jnp.float32)
    r = jax.nn.relu(x @ rw1.T + rb1)
    r = jax.nn.relu(r @ rw2.T + rb2)
    r = r @ rw3.T + rb3                                           # (R, n_out)

    d = dist_mat.astype(jnp.float32)[..., None]                   # (A, R, 1)
    s = jax.nn.sigmoid(d @ dw1.T + db1)                           # (A, R, H_d)
    s = jax.nn.sigmoid(s @ dw2.T + db2)[..., 0]                   # (A, R)
    s = s / jnp.sum(s, axis=1, keepdims=True)

    m = s @ r                                                     # (A, n_out)
    h = jax.nn.relu(m @ fw1.T + fb1)
    q = (h @ fw2.T + fb2)[..., 0]                                 # (A,)
    return q


if __name__ == "__main__":
    key = jax.random.PRNGKey(0)
    k_params, k_dist, k_state = jax.random.split(key, 3)

    # Small-but-lane-dense example: 512 actions x 128 resources, 8 state features.
    n_actions, n_resource = 512, 128
    n_hidden_distance, n_in_resource = 20, 8
    n_hidden_resource, n_out_resource, n_hidden_final = 20, 8, 20

    dist_mat = jax.random.uniform(k_dist, (n_actions, n_resource),
                                  jnp.float32, 0.0, 10.0)
    state_mat = jax.random.normal(k_state, (n_resource, n_in_resource), jnp.float32)

    params = _init_params(k_params, n_hidden_distance, n_in_resource,
                          n_hidden_resource, n_out_resource, n_hidden_final)

    q = ddqn_model_forward(state_mat, dist_mat, params)
    q = jax.block_until_ready(q)

    q_ref = _reference_forward(state_mat, dist_mat, params)
    assert q.shape == (n_actions,), f"bad output shape {q.shape}"
    assert jnp.allclose(q, q_ref, atol=1e-4, rtol=1e-4), "mismatch vs reference"

    print("KERNEL_OK")
</pallas_src>

<mosaic_0001>
module attributes {stable_mosaic.version = 11 : i64} {
  func.func @_ddqn_model_kernel(%arg0: i32, %arg1: memref<256x128xf32, #tpu.memory_space<vmem>>, %arg2: memref<128x8xf32, #tpu.memory_space<vmem>>, %arg3: memref<20xf32, #tpu.memory_space<smem>>, %arg4: memref<20xf32, #tpu.memory_space<smem>>, %arg5: memref<20xf32, #tpu.memory_space<smem>>, %arg6: memref<1xf32, #tpu.memory_space<smem>>, %arg7: memref<8x20xf32, #tpu.memory_space<vmem>>, %arg8: memref<1x20xf32, #tpu.memory_space<vmem>>, %arg9: memref<20x20xf32, #tpu.memory_space<vmem>>, %arg10: memref<1x20xf32, #tpu.memory_space<vmem>>, %arg11: memref<20x8xf32, #tpu.memory_space<vmem>>, %arg12: memref<1x8xf32, #tpu.memory_space<vmem>>, %arg13: memref<8x20xf32, #tpu.memory_space<vmem>>, %arg14: memref<1x20xf32, #tpu.memory_space<vmem>>, %arg15: memref<20x1xf32, #tpu.memory_space<vmem>>, %arg16: memref<1x1xf32, #tpu.memory_space<vmem>>, %arg17: memref<256x1xf32, #tpu.memory_space<vmem>>) attributes {dimension_semantics = [#tpu.dimension_semantics<parallel>], iteration_bounds = array<i64: 2>, scalar_prefetch = 0 : i64, scratch_operands = 0 : i64, tpu.core_type = #tpu.core_type<tc>, window_params = [{transform_indices = @transform_0, window_bounds = array<i64: 256, 128>}, {pipeline_mode = #tpu.pipeline_mode<synchronous>, transform_indices = @transform_1, window_bounds = array<i64: 128, 8>}, {transform_indices = @transform_2, window_bounds = array<i64: 20>}, {transform_indices = @transform_3, window_bounds = array<i64: 20>}, {transform_indices = @transform_4, window_bounds = array<i64: 20>}, {transform_indices = @transform_5, window_bounds = array<i64: 1>}, {pipeline_mode = #tpu.pipeline_mode<synchronous>, transform_indices = @transform_6, window_bounds = array<i64: 8, 20>}, {pipeline_mode = #tpu.pipeline_mode<synchronous>, transform_indices = @transform_7, window_bounds = array<i64: 1, 20>}, {pipeline_mode = #tpu.pipeline_mode<synchronous>, transform_indices = @transform_8, window_bounds = array<i64: 20, 20>}, {pipeline_mode = #tpu.pipeline_mode<synchronous>, transform_indices = @transform_9, window_bounds = array<i64: 1, 20>}, {pipeline_mode = #tpu.pipeline_mode<synchronous>, transform_indices = @transform_10, window_bounds = array<i64: 20, 8>}, {pipeline_mode = #tpu.pipeline_mode<synchronous>, transform_indices = @transform_11, window_bounds = array<i64: 1, 8>}, {pipeline_mode = #tpu.pipeline_mode<synchronous>, transform_indices = @transform_12, window_bounds = array<i64: 8, 20>}, {pipeline_mode = #tpu.pipeline_mode<synchronous>, transform_indices = @transform_13, window_bounds = array<i64: 1, 20>}, {pipeline_mode = #tpu.pipeline_mode<synchronous>, transform_indices = @transform_14, window_bounds = array<i64: 20, 1>}, {pipeline_mode = #tpu.pipeline_mode<synchronous>, transform_indices = @transform_15, window_bounds = array<i64: 1, 1>}, {transform_indices = @transform_16, window_bounds = array<i64: 256, 1>}]} {
    %c0 = arith.constant 0 : index
    %c0_0 = arith.constant 0 : index
    %0 = vector.load %arg1[%c0, %c0_0] : memref<256x128xf32, #tpu.memory_space<vmem>>, vector<256x128xf32>
    %cst = arith.constant 0.000000e+00 : f32
    %1 = vector.broadcast %cst : f32 to vector<256x128xf32>
    %c0_1 = arith.constant 0 : index
    %2 = memref.load %arg3[%c0_1] : memref<20xf32, #tpu.memory_space<smem>>
    %3 = vector.broadcast %2 : f32 to vector<256x128xf32>
    %4 = arith.mulf %0, %3 : vector<256x128xf32>
    %c0_2 = arith.constant 0 : index
    %5 = memref.load %arg4[%c0_2] : memref<20xf32, #tpu.memory_space<smem>>
    %6 = vector.broadcast %5 : f32 to vector<256x128xf32>
    %7 = arith.addf %4, %6 : vector<256x128xf32>
    %c0_3 = arith.constant 0 : index
    %8 = memref.load %arg5[%c0_3] : memref<20xf32, #tpu.memory_space<smem>>
    %cst_4 = arith.constant 5.000000e-01 : f32
    %9 = vector.broadcast %cst_4 : f32 to vector<256x128xf32>
    %10 = arith.mulf %9, %7 : vector<256x128xf32>
    %11 = math.tanh %10 : vector<256x128xf32>
    %cst_5 = arith.constant 5.000000e-01 : f32
    %12 = vector.broadcast %cst_5 : f32 to vector<256x128xf32>
    %13 = arith.mulf %12, %11 : vector<256x128xf32>
    %cst_6 = arith.constant 5.000000e-01 : f32
    %14 = vector.broadcast %cst_6 : f32 to vector<256x128xf32>
    %15 = arith.addf %13, %14 : vector<256x128xf32>
    %16 = vector.broadcast %8 : f32 to vector<256x128xf32>
    %17 = arith.mulf %16, %15 : vector<256x128xf32>
    %18 = arith.addf %1, %17 : vector<256x128xf32>
    %c1 = arith.constant 1 : index
    %19 = memref.load %arg3[%c1] : memref<20xf32, #tpu.memory_space<smem>>
    %20 = vector.broadcast %19 : f32 to vector<256x128xf32>
    %21 = arith.mulf %0, %20 : vector<256x128xf32>
    %c1_7 = arith.constant 1 : index
    %22 = memref.load %arg4[%c1_7] : memref<20xf32, #tpu.memory_space<smem>>
    %23 = vector.broadcast %22 : f32 to vector<256x128xf32>
    %24 = arith.addf %21, %23 : vector<256x128xf32>
    %c1_8 = arith.constant 1 : index
    %25 = memref.load %arg5[%c1_8] : memref<20xf32, #tpu.memory_space<smem>>
    %cst_9 = arith.constant 5.000000e-01 : f32
    %26 = vector.broadcast %cst_9 : f32 to vector<256x128xf32>
    %27 = arith.mulf %26, %24 : vector<256x128xf32>
    %28 = math.tanh %27 : vector<256x128xf32>
    %cst_10 = arith.constant 5.000000e-01 : f32
    %29 = vector.broadcast %cst_10 : f32 to vector<256x128xf32>
    %30 = arith.mulf %29, %28 : vector<256x128xf32>
    %cst_11 = arith.constant 5.000000e-01 : f32
    %31 = vector.broadcast %cst_11 : f32 to vector<256x128xf32>
    %32 = arith.addf %30, %31 : vector<256x128xf32>
    %33 = vector.broadcast %25 : f32 to vector<256x128xf32>
    %34 = arith.mulf %33, %32 : vector<256x128xf32>
    %35 = arith.addf %18, %34 : vector<256x128xf32>
    %c2 = arith.constant 2 : index
    %36 = memref.load %arg3[%c2] : memref<20xf32, #tpu.memory_space<smem>>
    %37 = vector.broadcast %36 : f32 to vector<256x128xf32>
    %38 = arith.mulf %0, %37 : vector<256x128xf32>
    %c2_12 = arith.constant 2 : index
    %39 = memref.load %arg4[%c2_12] : memref<20xf32, #tpu.memory_space<smem>>
    %40 = vector.broadcast %39 : f32 to vector<256x128xf32>
    %41 = arith.addf %38, %40 : vector<256x128xf32>
    %c2_13 = arith.constant 2 : index
    %42 = memref.load %arg5[%c2_13] : memref<20xf32, #tpu.memory_space<smem>>
    %cst_14 = arith.constant 5.000000e-01 : f32
    %43 = vector.broadcast %cst_14 : f32 to vector<256x128xf32>
    %44 = arith.mulf %43, %41 : vector<256x128xf32>
    %45 = math.tanh %44 : vector<256x128xf32>
    %cst_15 = arith.constant 5.000000e-01 : f32
    %46 = vector.broadcast %cst_15 : f32 to vector<256x128xf32>
    %47 = arith.mulf %46, %45 : vector<256x128xf32>
    %cst_16 = arith.constant 5.000000e-01 : f32
    %48 = vector.broadcast %cst_16 : f32 to vector<256x128xf32>
    %49 = arith.addf %47, %48 : vector<256x128xf32>
    %50 = vector.broadcast %42 : f32 to vector<256x128xf32>
    %51 = arith.mulf %50, %49 : vector<256x128xf32>
    %52 = arith.addf %35, %51 : vector<256x128xf32>
    %c3 = arith.constant 3 : index
    %53 = memref.load %arg3[%c3] : memref<20xf32, #tpu.memory_space<smem>>
    %54 = vector.broadcast %53 : f32 to vector<256x128xf32>
    %55 = arith.mulf %0, %54 : vector<256x128xf32>
    %c3_17 = arith.constant 3 : index
    %56 = memref.load %arg4[%c3_17] : memref<20xf32, #tpu.memory_space<smem>>
    %57 = vector.broadcast %56 : f32 to vector<256x128xf32>
    %58 = arith.addf %55, %57 : vector<256x128xf32>
    %c3_18 = arith.constant 3 : index
    %59 = memref.load %arg5[%c3_18] : memref<20xf32, #tpu.memory_space<smem>>
    %cst_19 = arith.constant 5.000000e-01 : f32
    %60 = vector.broadcast %cst_19 : f32 to vector<256x128xf32>
    %61 = arith.mulf %60, %58 : vector<256x128xf32>
    %62 = math.tanh %61 : vector<256x128xf32>
    %cst_20 = arith.constant 5.000000e-01 : f32
    %63 = vector.broadcast %cst_20 : f32 to vector<256x128xf32>
    %64 = arith.mulf %63, %62 : vector<256x128xf32>
    %cst_21 = arith.constant 5.000000e-01 : f32
    %65 = vector.broadcast %cst_21 : f32 to vector<256x128xf32>
    %66 = arith.addf %64, %65 : vector<256x128xf32>
    %67 = vector.broadcast %59 : f32 to vector<256x128xf32>
    %68 = arith.mulf %67, %66 : vector<256x128xf32>
    %69 = arith.addf %52, %68 : vector<256x128xf32>
    %c4 = arith.constant 4 : index
    %70 = memref.load %arg3[%c4] : memref<20xf32, #tpu.memory_space<smem>>
    %71 = vector.broadcast %70 : f32 to vector<256x128xf32>
    %72 = arith.mulf %0, %71 : vector<256x128xf32>
    %c4_22 = arith.constant 4 : index
    %73 = memref.load %arg4[%c4_22] : memref<20xf32, #tpu.memory_space<smem>>
    %74 = vector.broadcast %73 : f32 to vector<256x128xf32>
    %75 = arith.addf %72, %74 : vector<256x128xf32>
    %c4_23 = arith.constant 4 : index
    %76 = memref.load %arg5[%c4_23] : memref<20xf32, #tpu.memory_space<smem>>
    %cst_24 = arith.constant 5.000000e-01 : f32
    %77 = vector.broadcast %cst_24 : f32 to vector<256x128xf32>
    %78 = arith.mulf %77, %75 : vector<256x128xf32>
    %79 = math.tanh %78 : vector<256x128xf32>
    %cst_25 = arith.constant 5.000000e-01 : f32
    %80 = vector.broadcast %cst_25 : f32 to vector<256x128xf32>
    %81 = arith.mulf %80, %79 : vector<256x128xf32>
    %cst_26 = arith.constant 5.000000e-01 : f32
    %82 = vector.broadcast %cst_26 : f32 to vector<256x128xf32>
    %83 = arith.addf %81, %82 : vector<256x128xf32>
    %84 = vector.broadcast %76 : f32 to vector<256x128xf32>
    %85 = arith.mulf %84, %83 : vector<256x128xf32>
    %86 = arith.addf %69, %85 : vector<256x128xf32>
    %c5 = arith.constant 5 : index
    %87 = memref.load %arg3[%c5] : memref<20xf32, #tpu.memory_space<smem>>
    %88 = vector.broadcast %87 : f32 to vector<256x128xf32>
    %89 = arith.mulf %0, %88 : vector<256x128xf32>
    %c5_27 = arith.constant 5 : index
    %90 = memref.load %arg4[%c5_27] : memref<20xf32, #tpu.memory_space<smem>>
    %91 = vector.broadcast %90 : f32 to vector<256x128xf32>
    %92 = arith.addf %89, %91 : vector<256x128xf32>
    %c5_28 = arith.constant 5 : index
    %93 = memref.load %arg5[%c5_28] : memref<20xf32, #tpu.memory_space<smem>>
    %cst_29 = arith.constant 5.000000e-01 : f32
    %94 = vector.broadcast %cst_29 : f32 to vector<256x128xf32>
    %95 = arith.mulf %94, %92 : vector<256x128xf32>
    %96 = math.tanh %95 : vector<256x128xf32>
    %cst_30 = arith.constant 5.000000e-01 : f32
    %97 = vector.broadcast %cst_30 : f32 to vector<256x128xf32>
    %98 = arith.mulf %97, %96 : vector<256x128xf32>
    %cst_31 = arith.constant 5.000000e-01 : f32
    %99 = vector.broadcast %cst_31 : f32 to vector<256x128xf32>
    %100 = arith.addf %98, %99 : vector<256x128xf32>
    %101 = vector.broadcast %93 : f32 to vector<256x128xf32>
    %102 = arith.mulf %101, %100 : vector<256x128xf32>
    %103 = arith.addf %86, %102 : vector<256x128xf32>
    %c6 = arith.constant 6 : index
    %104 = memref.load %arg3[%c6] : memref<20xf32, #tpu.memory_space<smem>>
    %105 = vector.broadcast %104 : f32 to vector<256x128xf32>
    %106 = arith.mulf %0, %105 : vector<256x128xf32>
    %c6_32 = arith.constant 6 : index
    %107 = memref.load %arg4[%c6_32] : memref<20xf32, #tpu.memory_space<smem>>
    %108 = vector.broadcast %107 : f32 to vector<256x128xf32>
    %109 = arith.addf %106, %108 : vector<256x128xf32>
    %c6_33 = arith.constant 6 : index
    %110 = memref.load %arg5[%c6_33] : memref<20xf32, #tpu.memory_space<smem>>
    %cst_34 = arith.constant 5.000000e-01 : f32
    %111 = vector.broadcast %cst_34 : f32 to vector<256x128xf32>
    %112 = arith.mulf %111, %109 : vector<256x128xf32>
    %113 = math.tanh %112 : vector<256x128xf32>
    %cst_35 = arith.constant 5.000000e-01 : f32
    %114 = vector.broadcast %cst_35 : f32 to vector<256x128xf32>
    %115 = arith.mulf %114, %113 : vector<256x128xf32>
    %cst_36 = arith.constant 5.000000e-01 : f32
    %116 = vector.broadcast %cst_36 : f32 to vector<256x128xf32>
    %117 = arith.addf %115, %116 : vector<256x128xf32>
    %118 = vector.broadcast %110 : f32 to vector<256x128xf32>
    %119 = arith.mulf %118, %117 : vector<256x128xf32>
    %120 = arith.addf %103, %119 : vector<256x128xf32>
    %c7 = arith.constant 7 : index
    %121 = memref.load %arg3[%c7] : memref<20xf32, #tpu.memory_space<smem>>
    %122 = vector.broadcast %121 : f32 to vector<256x128xf32>
    %123 = arith.mulf %0, %122 : vector<256x128xf32>
    %c7_37 = arith.constant 7 : index
    %124 = memref.load %arg4[%c7_37] : memref<20xf32, #tpu.memory_space<smem>>
    %125 = vector.broadcast %124 : f32 to vector<256x128xf32>
    %126 = arith.addf %123, %125 : vector<256x128xf32>
    %c7_38 = arith.constant 7 : index
    %127 = memref.load %arg5[%c7_38] : memref<20xf32, #tpu.memory_space<smem>>
    %cst_39 = arith.constant 5.000000e-01 : f32
    %128 = vector.broadcast %cst_39 : f32 to vector<256x128xf32>
    %129 = arith.mulf %128, %126 : vector<256x128xf32>
    %130 = math.tanh %129 : vector<256x128xf32>
    %cst_40 = arith.constant 5.000000e-01 : f32
    %131 = vector.broadcast %cst_40 : f32 to vector<256x128xf32>
    %132 = arith.mulf %131, %130 : vector<256x128xf32>
    %cst_41 = arith.constant 5.000000e-01 : f32
    %133 = vector.broadcast %cst_41 : f32 to vector<256x128xf32>
    %134 = arith.addf %132, %133 : vector<256x128xf32>
    %135 = vector.broadcast %127 : f32 to vector<256x128xf32>
    %136 = arith.mulf %135, %134 : vector<256x128xf32>
    %137 = arith.addf %120, %136 : vector<256x128xf32>
    %c8 = arith.constant 8 : index
    %138 = memref.load %arg3[%c8] : memref<20xf32, #tpu.memory_space<smem>>
    %139 = vector.broadcast %138 : f32 to vector<256x128xf32>
    %140 = arith.mulf %0, %139 : vector<256x128xf32>
    %c8_42 = arith.constant 8 : index
    %141 = memref.load %arg4[%c8_42] : memref<20xf32, #tpu.memory_space<smem>>
    %142 = vector.broadcast %141 : f32 to vector<256x128xf32>
    %143 = arith.addf %140, %142 : vector<256x128xf32>
    %c8_43 = arith.constant 8 : index
    %144 = memref.load %arg5[%c8_43] : memref<20xf32, #tpu.memory_space<smem>>
    %cst_44 = arith.constant 5.000000e-01 : f32
    %145 = vector.broadcast %cst_44 : f32 to vector<256x128xf32>
    %146 = arith.mulf %145, %143 : vector<256x128xf32>
    %147 = math.tanh %146 : vector<256x128xf32>
    %cst_45 = arith.constant 5.000000e-01 : f32
    %148 = vector.broadcast %cst_45 : f32 to vector<256x128xf32>
    %149 = arith.mulf %148, %147 : vector<256x128xf32>
    %cst_46 = arith.constant 5.000000e-01 : f32
    %150 = vector.broadcast %cst_46 : f32 to vector<256x128xf32>
    %151 = arith.addf %149, %150 : vector<256x128xf32>
    %152 = vector.broadcast %144 : f32 to vector<256x128xf32>
    %153 = arith.mulf %152, %151 : vector<256x128xf32>
    %154 = arith.addf %137, %153 : vector<256x128xf32>
    %c9 = arith.constant 9 : index
    %155 = memref.load %arg3[%c9] : memref<20xf32, #tpu.memory_space<smem>>
    %156 = vector.broadcast %155 : f32 to vector<256x128xf32>
    %157 = arith.mulf %0, %156 : vector<256x128xf32>
    %c9_47 = arith.constant 9 : index
    %158 = memref.load %arg4[%c9_47] : memref<20xf32, #tpu.memory_space<smem>>
    %159 = vector.broadcast %158 : f32 to vector<256x128xf32>
    %160 = arith.addf %157, %159 : vector<256x128xf32>
    %c9_48 = arith.constant 9 : index
    %161 = memref.load %arg5[%c9_48] : memref<20xf32, #tpu.memory_space<smem>>
    %cst_49 = arith.constant 5.000000e-01 : f32
    %162 = vector.broadcast %cst_49 : f32 to vector<256x128xf32>
    %163 = arith.mulf %162, %160 : vector<256x128xf32>
    %164 = math.tanh %163 : vector<256x128xf32>
    %cst_50 = arith.constant 5.000000e-01 : f32
    %165 = vector.broadcast %cst_50 : f32 to vector<256x128xf32>
    %166 = arith.mulf %165, %164 : vector<256x128xf32>
    %cst_51 = arith.constant 5.000000e-01 : f32
    %167 = vector.broadcast %cst_51 : f32 to vector<256x128xf32>
    %168 = arith.addf %166, %167 : vector<256x128xf32>
    %169 = vector.broadcast %161 : f32 to vector<256x128xf32>
    %170 = arith.mulf %169, %168 : vector<256x128xf32>
    %171 = arith.addf %154, %170 : vector<256x128xf32>
    %c10 = arith.constant 10 : index
    %172 = memref.load %arg3[%c10] : memref<20xf32, #tpu.memory_space<smem>>
    %173 = vector.broadcast %172 : f32 to vector<256x128xf32>
    %174 = arith.mulf %0, %173 : vector<256x128xf32>
    %c10_52 = arith.constant 10 : index
    %175 = memref.load %arg4[%c10_52] : memref<20xf32, #tpu.memory_space<smem>>
    %176 = vector.broadcast %175 : f32 to vector<256x128xf32>
    %177 = arith.addf %174, %176 : vector<256x128xf32>
    %c10_53 = arith.constant 10 : index
    %178 = memref.load %arg5[%c10_53] : memref<20xf32, #tpu.memory_space<smem>>
    %cst_54 = arith.constant 5.000000e-01 : f32
    %179 = vector.broadcast %cst_54 : f32 to vector<256x128xf32>
    %180 = arith.mulf %179, %177 : vector<256x128xf32>
    %181 = math.tanh %180 : vector<256x128xf32>
    %cst_55 = arith.constant 5.000000e-01 : f32
    %182 = vector.broadcast %cst_55 : f32 to vector<256x128xf32>
    %183 = arith.mulf %182, %181 : vector<256x128xf32>
    %cst_56 = arith.constant 5.000000e-01 : f32
    %184 = vector.broadcast %cst_56 : f32 to vector<256x128xf32>
    %185 = arith.addf %183, %184 : vector<256x128xf32>
    %186 = vector.broadcast %178 : f32 to vector<256x128xf32>
    %187 = arith.mulf %186, %185 : vector<256x128xf32>
    %188 = arith.addf %171, %187 : vector<256x128xf32>
    %c11 = arith.constant 11 : index
    %189 = memref.load %arg3[%c11] : memref<20xf32, #tpu.memory_space<smem>>
    %190 = vector.broadcast %189 : f32 to vector<256x128xf32>
    %191 = arith.mulf %0, %190 : vector<256x128xf32>
    %c11_57 = arith.constant 11 : index
    %192 = memref.load %arg4[%c11_57] : memref<20xf32, #tpu.memory_space<smem>>
    %193 = vector.broadcast %192 : f32 to vector<256x128xf32>
    %194 = arith.addf %191, %193 : vector<256x128xf32>
    %c11_58 = arith.constant 11 : index
    %195 = memref.load %arg5[%c11_58] : memref<20xf32, #tpu.memory_space<smem>>
    %cst_59 = arith.constant 5.000000e-01 : f32
    %196 = vector.broadcast %cst_59 : f32 to vector<256x128xf32>
    %197 = arith.mulf %196, %194 : vector<256x128xf32>
    %198 = math.tanh %197 : vector<256x128xf32>
    %cst_60 = arith.constant 5.000000e-01 : f32
    %199 = vector.broadcast %cst_60 : f32 to vector<256x128xf32>
    %200 = arith.mulf %199, %198 : vector<256x128xf32>
    %cst_61 = arith.constant 5.000000e-01 : f32
    %201 = vector.broadcast %cst_61 : f32 to vector<256x128xf32>
    %202 = arith.addf %200, %201 : vector<256x128xf32>
    %203 = vector.broadcast %195 : f32 to vector<256x128xf32>
    %204 = arith.mulf %203, %202 : vector<256x128xf32>
    %205 = arith.addf %188, %204 : vector<256x128xf32>
    %c12 = arith.constant 12 : index
    %206 = memref.load %arg3[%c12] : memref<20xf32, #tpu.memory_space<smem>>
    %207 = vector.broadcast %206 : f32 to vector<256x128xf32>
    %208 = arith.mulf %0, %207 : vector<256x128xf32>
    %c12_62 = arith.constant 12 : index
    %209 = memref.load %arg4[%c12_62] : memref<20xf32, #tpu.memory_space<smem>>
    %210 = vector.broadcast %209 : f32 to vector<256x128xf32>
    %211 = arith.addf %208, %210 : vector<256x128xf32>
    %c12_63 = arith.constant 12 : index
    %212 = memref.load %arg5[%c12_63] : memref<20xf32, #tpu.memory_space<smem>>
    %cst_64 = arith.constant 5.000000e-01 : f32
    %213 = vector.broadcast %cst_64 : f32 to vector<256x128xf32>
    %214 = arith.mulf %213, %211 : vector<256x128xf32>
    %215 = math.tanh %214 : vector<256x128xf32>
    %cst_65 = arith.constant 5.000000e-01 : f32
    %216 = vector.broadcast %cst_65 : f32 to vector<256x128xf32>
    %217 = arith.mulf %216, %215 : vector<256x128xf32>
    %cst_66 = arith.constant 5.000000e-01 : f32
    %218 = vector.broadcast %cst_66 : f32 to vector<256x128xf32>
    %219 = arith.addf %217, %218 : vector<256x128xf32>
    %220 = vector.broadcast %212 : f32 to vector<256x128xf32>
    %221 = arith.mulf %220, %219 : vector<256x128xf32>
    %222 = arith.addf %205, %221 : vector<256x128xf32>
    %c13 = arith.constant 13 : index
    %223 = memref.load %arg3[%c13] : memref<20xf32, #tpu.memory_space<smem>>
    %224 = vector.broadcast %223 : f32 to vector<256x128xf32>
    %225 = arith.mulf %0, %224 : vector<256x128xf32>
    %c13_67 = arith.constant 13 : index
    %226 = memref.load %arg4[%c13_67] : memref<20xf32, #tpu.memory_space<smem>>
    %227 = vector.broadcast %226 : f32 to vector<256x128xf32>
    %228 = arith.addf %225, %227 : vector<256x128xf32>
    %c13_68 = arith.constant 13 : index
    %229 = memref.load %arg5[%c13_68] : memref<20xf32, #tpu.memory_space<smem>>
    %cst_69 = arith.constant 5.000000e-01 : f32
    %230 = vector.broadcast %cst_69 : f32 to vector<256x128xf32>
    %231 = arith.mulf %230, %228 : vector<256x128xf32>
    %232 = math.tanh %231 : vector<256x128xf32>
    %cst_70 = arith.constant 5.000000e-01 : f32
    %233 = vector.broadcast %cst_70 : f32 to vector<256x128xf32>
    %234 = arith.mulf %233, %232 : vector<256x128xf32>
    %cst_71 = arith.constant 5.000000e-01 : f32
    %235 = vector.broadcast %cst_71 : f32 to vector<256x128xf32>
    %236 = arith.addf %234, %235 : vector<256x128xf32>
    %237 = vector.broadcast %229 : f32 to vector<256x128xf32>
    %238 = arith.mulf %237, %236 : vector<256x128xf32>
    %239 = arith.addf %222, %238 : vector<256x128xf32>
    %c14 = arith.constant 14 : index
    %240 = memref.load %arg3[%c14] : memref<20xf32, #tpu.memory_space<smem>>
    %241 = vector.broadcast %240 : f32 to vector<256x128xf32>
    %242 = arith.mulf %0, %241 : vector<256x128xf32>
    %c14_72 = arith.constant 14 : index
    %243 = memref.load %arg4[%c14_72] : memref<20xf32, #tpu.memory_space<smem>>
    %244 = vector.broadcast %243 : f32 to vector<256x128xf32>
    %245 = arith.addf %242, %244 : vector<256x128xf32>
    %c14_73 = arith.constant 14 : index
    %246 = memref.load %arg5[%c14_73] : memref<20xf32, #tpu.memory_space<smem>>
    %cst_74 = arith.constant 5.000000e-01 : f32
    %247 = vector.broadcast %cst_74 : f32 to vector<256x128xf32>
    %248 = arith.mulf %247, %245 : vector<256x128xf32>
    %249 = math.tanh %248 : vector<256x128xf32>
    %cst_75 = arith.constant 5.000000e-01 : f32
    %250 = vector.broadcast %cst_75 : f32 to vector<256x128xf32>
    %251 = arith.mulf %250, %249 : vector<256x128xf32>
    %cst_76 = arith.constant 5.000000e-01 : f32
    %252 = vector.broadcast %cst_76 : f32 to vector<256x128xf32>
    %253 = arith.addf %251, %252 : vector<256x128xf32>
    %254 = vector.broadcast %246 : f32 to vector<256x128xf32>
    %255 = arith.mulf %254, %253 : vector<256x128xf32>
    %256 = arith.addf %239, %255 : vector<256x128xf32>
    %c15 = arith.constant 15 : index
    %257 = memref.load %arg3[%c15] : memref<20xf32, #tpu.memory_space<smem>>
    %258 = vector.broadcast %257 : f32 to vector<256x128xf32>
    %259 = arith.mulf %0, %258 : vector<256x128xf32>
    %c15_77 = arith.constant 15 : index
    %260 = memref.load %arg4[%c15_77] : memref<20xf32, #tpu.memory_space<smem>>
    %261 = vector.broadcast %260 : f32 to vector<256x128xf32>
    %262 = arith.addf %259, %261 : vector<256x128xf32>
    %c15_78 = arith.constant 15 : index
    %263 = memref.load %arg5[%c15_78] : memref<20xf32, #tpu.memory_space<smem>>
    %cst_79 = arith.constant 5.000000e-01 : f32
    %264 = vector.broadcast %cst_79 : f32 to vector<256x128xf32>
    %265 = arith.mulf %264, %262 : vector<256x128xf32>
    %266 = math.tanh %265 : vector<256x128xf32>
    %cst_80 = arith.constant 5.000000e-01 : f32
    %267 = vector.broadcast %cst_80 : f32 to vector<256x128xf32>
    %268 = arith.mulf %267, %266 : vector<256x128xf32>
    %cst_81 = arith.constant 5.000000e-01 : f32
    %269 = vector.broadcast %cst_81 : f32 to vector<256x128xf32>
    %270 = arith.addf %268, %269 : vector<256x128xf32>
    %271 = vector.broadcast %263 : f32 to vector<256x128xf32>
    %272 = arith.mulf %271, %270 : vector<256x128xf32>
    %273 = arith.addf %256, %272 : vector<256x128xf32>
    %c16 = arith.constant 16 : index
    %274 = memref.load %arg3[%c16] : memref<20xf32, #tpu.memory_space<smem>>
    %275 = vector.broadcast %274 : f32 to vector<256x128xf32>
    %276 = arith.mulf %0, %275 : vector<256x128xf32>
    %c16_82 = arith.constant 16 : index
    %277 = memref.load %arg4[%c16_82] : memref<20xf32, #tpu.memory_space<smem>>
    %278 = vector.broadcast %277 : f32 to vector<256x128xf32>
    %279 = arith.addf %276, %278 : vector<256x128xf32>
    %c16_83 = arith.constant 16 : index
    %280 = memref.load %arg5[%c16_83] : memref<20xf32, #tpu.memory_space<smem>>
    %cst_84 = arith.constant 5.000000e-01 : f32
    %281 = vector.broadcast %cst_84 : f32 to vector<256x128xf32>
    %282 = arith.mulf %281, %279 : vector<256x128xf32>
    %283 = math.tanh %282 : vector<256x128xf32>
    %cst_85 = arith.constant 5.000000e-01 : f32
    %284 = vector.broadcast %cst_85 : f32 to vector<256x128xf32>
    %285 = arith.mulf %284, %283 : vector<256x128xf32>
    %cst_86 = arith.constant 5.000000e-01 : f32
    %286 = vector.broadcast %cst_86 : f32 to vector<256x128xf32>
    %287 = arith.addf %285, %286 : vector<256x128xf32>
    %288 = vector.broadcast %280 : f32 to vector<256x128xf32>
    %289 = arith.mulf %288, %287 : vector<256x128xf32>
    %290 = arith.addf %273, %289 : vector<256x128xf32>
    %c17 = arith.constant 17 : index
    %291 = memref.load %arg3[%c17] : memref<20xf32, #tpu.memory_space<smem>>
    %292 = vector.broadcast %291 : f32 to vector<256x128xf32>
    %293 = arith.mulf %0, %292 : vector<256x128xf32>
    %c17_87 = arith.constant 17 : index
    %294 = memref.load %arg4[%c17_87] : memref<20xf32, #tpu.memory_space<smem>>
    %295 = vector.broadcast %294 : f32 to vector<256x128xf32>
    %296 = arith.addf %293, %295 : vector<256x128xf32>
    %c17_88 = arith.constant 17 : index
    %297 = memref.load %arg5[%c17_88] : memref<20xf32, #tpu.memory_space<smem>>
    %cst_89 = arith.constant 5.000000e-01 : f32
    %298 = vector.broadcast %cst_89 : f32 to vector<256x128xf32>
    %299 = arith.mulf %298, %296 : vector<256x128xf32>
    %300 = math.tanh %299 : vector<256x128xf32>
    %cst_90 = arith.constant 5.000000e-01 : f32
    %301 = vector.broadcast %cst_90 : f32 to vector<256x128xf32>
    %302 = arith.mulf %301, %300 : vector<256x128xf32>
    %cst_91 = arith.constant 5.000000e-01 : f32
    %303 = vector.broadcast %cst_91 : f32 to vector<256x128xf32>
    %304 = arith.addf %302, %303 : vector<256x128xf32>
    %305 = vector.broadcast %297 : f32 to vector<256x128xf32>
    %306 = arith.mulf %305, %304 : vector<256x128xf32>
    %307 = arith.addf %290, %306 : vector<256x128xf32>
    %c18 = arith.constant 18 : index
    %308 = memref.load %arg3[%c18] : memref<20xf32, #tpu.memory_space<smem>>
    %309 = vector.broadcast %308 : f32 to vector<256x128xf32>
    %310 = arith.mulf %0, %309 : vector<256x128xf32>
    %c18_92 = arith.constant 18 : index
    %311 = memref.load %arg4[%c18_92] : memref<20xf32, #tpu.memory_space<smem>>
    %312 = vector.broadcast %311 : f32 to vector<256x128xf32>
    %313 = arith.addf %310, %312 : vector<256x128xf32>
    %c18_93 = arith.constant 18 : index
    %314 = memref.load %arg5[%c18_93] : memref<20xf32, #tpu.memory_space<smem>>
    %cst_94 = arith.constant 5.000000e-01 : f32
    %315 = vector.broadcast %cst_94 : f32 to vector<256x128xf32>
    %316 = arith.mulf %315, %313 : vector<256x128xf32>
    %317 = math.tanh %316 : vector<256x128xf32>
    %cst_95 = arith.constant 5.000000e-01 : f32
    %318 = vector.broadcast %cst_95 : f32 to vector<256x128xf32>
    %319 = arith.mulf %318, %317 : vector<256x128xf32>
    %cst_96 = arith.constant 5.000000e-01 : f32
    %320 = vector.broadcast %cst_96 : f32 to vector<256x128xf32>
    %321 = arith.addf %319, %320 : vector<256x128xf32>
    %322 = vector.broadcast %314 : f32 to vector<256x128xf32>
    %323 = arith.mulf %322, %321 : vector<256x128xf32>
    %324 = arith.addf %307, %323 : vector<256x128xf32>
    %c19 = arith.constant 19 : index
    %325 = memref.load %arg3[%c19] : memref<20xf32, #tpu.memory_space<smem>>
    %326 = vector.broadcast %325 : f32 to vector<256x128xf32>
    %327 = arith.mulf %0, %326 : vector<256x128xf32>
    %c19_97 = arith.constant 19 : index
    %328 = memref.load %arg4[%c19_97] : memref<20xf32, #tpu.memory_space<smem>>
    %329 = vector.broadcast %328 : f32 to vector<256x128xf32>
    %330 = arith.addf %327, %329 : vector<256x128xf32>
    %c19_98 = arith.constant 19 : index
    %331 = memref.load %arg5[%c19_98] : memref<20xf32, #tpu.memory_space<smem>>
    %cst_99 = arith.constant 5.000000e-01 : f32
    %332 = vector.broadcast %cst_99 : f32 to vector<256x128xf32>
    %333 = arith.mulf %332, %330 : vector<256x128xf32>
    %334 = math.tanh %333 : vector<256x128xf32>
    %cst_100 = arith.constant 5.000000e-01 : f32
    %335 = vector.broadcast %cst_100 : f32 to vector<256x128xf32>
    %336 = arith.mulf %335, %334 : vector<256x128xf32>
    %cst_101 = arith.constant 5.000000e-01 : f32
    %337 = vector.broadcast %cst_101 : f32 to vector<256x128xf32>
    %338 = arith.addf %336, %337 : vector<256x128xf32>
    %339 = vector.broadcast %331 : f32 to vector<256x128xf32>
    %340 = arith.mulf %339, %338 : vector<256x128xf32>
    %341 = arith.addf %324, %340 : vector<256x128xf32>
    %c0_102 = arith.constant 0 : index
    %342 = memref.load %arg6[%c0_102] : memref<1xf32, #tpu.memory_space<smem>>
    %343 = vector.broadcast %342 : f32 to vector<256x128xf32>
    %344 = arith.addf %341, %343 : vector<256x128xf32>
    %cst_103 = arith.constant 5.000000e-01 : f32
    %345 = vector.broadcast %cst_103 : f32 to vector<256x128xf32>
    %346 = arith.mulf %345, %344 : vector<256x128xf32>
    %347 = math.tanh %346 : vector<256x128xf32>
    %cst_104 = arith.constant 5.000000e-01 : f32
    %348 = vector.broadcast %cst_104 : f32 to vector<256x128xf32>
    %349 = arith.mulf %348, %347 : vector<256x128xf32>
    %cst_105 = arith.constant 5.000000e-01 : f32
    %350 = vector.broadcast %cst_105 : f32 to vector<256x128xf32>
    %351 = arith.addf %349, %350 : vector<256x128xf32>
    %cst_106 = arith.constant dense<0.000000e+00> : vector<256xf32>
    %352 = vector.multi_reduction <add>, %351, %cst_106 [1] : vector<256x128xf32> to vector<256xf32>
    %353 = vector.shape_cast %352 : vector<256xf32> to vector<256x1xf32>
    %354 = vector.broadcast %353 : vector<256x1xf32> to vector<256x128xf32>
    %355 = arith.divf %351, %354 : vector<256x128xf32>
    %c0_107 = arith.constant 0 : index
    %c0_108 = arith.constant 0 : index
    %356 = vector.load %arg2[%c0_107, %c0_108] : memref<128x8xf32, #tpu.memory_space<vmem>>, vector<128x8xf32>
    %c0_109 = arith.constant 0 : index
    %c0_110 = arith.constant 0 : index
    %357 = vector.load %arg7[%c0_109, %c0_110] : memref<8x20xf32, #tpu.memory_space<vmem>>, vector<8x20xf32>
    %cst_111 = arith.constant dense<0.000000e+00> : vector<128x20xf32>
    %358 = tpu.matmul %356, %357, %cst_111 {dimension_numbers = #tpu.dot_dimension_numbers<[1], [0], [0], [1], [0, 0, 1, 1], [], []>} : vector<128x8xf32>, vector<8x20xf32>, vector<128x20xf32> -> vector<128x20xf32>
    %c0_112 = arith.constant 0 : index
    %c0_113 = arith.constant 0 : index
    %359 = vector.load %arg8[%c0_112, %c0_113] : memref<1x20xf32, #tpu.memory_space<vmem>>, vector<1x20xf32>
    %360 = vector.broadcast %359 : vector<1x20xf32> to vector<128x20xf32>
    %361 = arith.addf %358, %360 : vector<128x20xf32>
    %cst_114 = arith.constant 0.000000e+00 : f32
    %362 = vector.broadcast %cst_114 : f32 to vector<128x20xf32>
    %363 = arith.maximumf %361, %362 : vector<128x20xf32>
    %c0_115 = arith.constant 0 : index
    %c0_116 = arith.constant 0 : index
    %364 = vector.load %arg9[%c0_115, %c0_116] : memref<20x20xf32, #tpu.memory_space<vmem>>, vector<20x20xf32>
    %cst_117 = arith.constant dense<0.000000e+00> : vector<128x20xf32>
    %365 = tpu.matmul %363, %364, %cst_117 {dimension_numbers = #tpu.dot_dimension_numbers<[1], [0], [0], [1], [0, 0, 1, 1], [], []>} : vector<128x20xf32>, vector<20x20xf32>, vector<128x20xf32> -> vector<128x20xf32>
    %c0_118 = arith.constant 0 : index
    %c0_119 = arith.constant 0 : index
    %366 = vector.load %arg10[%c0_118, %c0_119] : memref<1x20xf32, #tpu.memory_space<vmem>>, vector<1x20xf32>
    %367 = vector.broadcast %366 : vector<1x20xf32> to vector<128x20xf32>
    %368 = arith.addf %365, %367 : vector<128x20xf32>
    %cst_120 = arith.constant 0.000000e+00 : f32
    %369 = vector.broadcast %cst_120 : f32 to vector<128x20xf32>
    %370 = arith.maximumf %368, %369 : vector<128x20xf32>
    %c0_121 = arith.constant 0 : index
    %c0_122 = arith.constant 0 : index
    %371 = vector.load %arg11[%c0_121, %c0_122] : memref<20x8xf32, #tpu.memory_space<vmem>>, vector<20x8xf32>
    %cst_123 = arith.constant dense<0.000000e+00> : vector<128x8xf32>
    %372 = tpu.matmul %370, %371, %cst_123 {dimension_numbers = #tpu.dot_dimension_numbers<[1], [0], [0], [1], [0, 0, 1, 1], [], []>} : vector<128x20xf32>, vector<20x8xf32>, vector<128x8xf32> -> vector<128x8xf32>
    %c0_124 = arith.constant 0 : index
    %c0_125 = arith.constant 0 : index
    %373 = vector.load %arg12[%c0_124, %c0_125] : memref<1x8xf32, #tpu.memory_space<vmem>>, vector<1x8xf32>
    %374 = vector.broadcast %373 : vector<1x8xf32> to vector<128x8xf32>
    %375 = arith.addf %372, %374 : vector<128x8xf32>
    %cst_126 = arith.constant dense<0.000000e+00> : vector<256x8xf32>
    %376 = tpu.matmul %355, %375, %cst_126 {dimension_numbers = #tpu.dot_dimension_numbers<[1], [0], [0], [1], [0, 0, 1, 1], [], []>} : vector<256x128xf32>, vector<128x8xf32>, vector<256x8xf32> -> vector<256x8xf32>
    %c0_127 = arith.constant 0 : index
    %c0_128 = arith.constant 0 : index
    %377 = vector.load %arg13[%c0_127, %c0_128] : memref<8x20xf32, #tpu.memory_space<vmem>>, vector<8x20xf32>
    %cst_129 = arith.constant dense<0.000000e+00> : vector<256x20xf32>
    %378 = tpu.matmul %376, %377, %cst_129 {dimension_numbers = #tpu.dot_dimension_numbers<[1], [0], [0], [1], [0, 0, 1, 1], [], []>} : vector<256x8xf32>, vector<8x20xf32>, vector<256x20xf32> -> vector<256x20xf32>
    %c0_130 = arith.constant 0 : index
    %c0_131 = arith.constant 0 : index
    %379 = vector.load %arg14[%c0_130, %c0_131] : memref<1x20xf32, #tpu.memory_space<vmem>>, vector<1x20xf32>
    %380 = vector.broadcast %379 : vector<1x20xf32> to vector<256x20xf32>
    %381 = arith.addf %378, %380 : vector<256x20xf32>
    %cst_132 = arith.constant 0.000000e+00 : f32
    %382 = vector.broadcast %cst_132 : f32 to vector<256x20xf32>
    %383 = arith.maximumf %381, %382 : vector<256x20xf32>
    %c0_133 = arith.constant 0 : index
    %c0_134 = arith.constant 0 : index
    %384 = vector.load %arg15[%c0_133, %c0_134] : memref<20x1xf32, #tpu.memory_space<vmem>>, vector<20x1xf32>
    %cst_135 = arith.constant dense<0.000000e+00> : vector<256x1xf32>
    %385 = tpu.matmul %383, %384, %cst_135 {dimension_numbers = #tpu.dot_dimension_numbers<[1], [0], [0], [1], [0, 0, 1, 1], [], []>} : vector<256x20xf32>, vector<20x1xf32>, vector<256x1xf32> -> vector<256x1xf32>
    %c0_136 = arith.constant 0 : index
    %c0_137 = arith.constant 0 : index
    %386 = vector.load %arg16[%c0_136, %c0_137] : memref<1x1xf32, #tpu.memory_space<vmem>>, vector<1x1xf32>
    %387 = vector.broadcast %386 : vector<1x1xf32> to vector<256x1xf32>
    %388 = arith.addf %385, %387 : vector<256x1xf32>
    %c0_138 = arith.constant 0 : index
    %c0_139 = arith.constant 0 : index
    %389 = vector.load %arg17[%c0_138, %c0_139] : memref<256x1xf32, #tpu.memory_space<vmem>>, vector<256x1xf32>
    tpu.vector_store %arg17[%c0_138, %c0_139], %388 {strides = array<i32>} : memref<256x1xf32, #tpu.memory_space<vmem>>, vector<256x1xf32>,
    return
  }
  func.func @transform_0(%arg0: i32) -> (i32, i32) {
    %c0_i32 = arith.constant 0 : i32
    %c0_i32_0 = arith.constant 0 : i32
    return %arg0, %c0_i32 : i32, i32
  }
  func.func @transform_1(%arg0: i32) -> (i32, i32) {
    %c0_i32 = arith.constant 0 : i32
    %c0_i32_0 = arith.constant 0 : i32
    %c0_i32_1 = arith.constant 0 : i32
    return %c0_i32, %c0_i32_0 : i32, i32
  }
  func.func @transform_2(%arg0: i32) -> i32 {
    %c0_i32 = arith.constant 0 : i32
    %c0_i32_0 = arith.constant 0 : i32
    return %c0_i32 : i32
  }
  func.func @transform_3(%arg0: i32) -> i32 {
    %c0_i32 = arith.constant 0 : i32
    %c0_i32_0 = arith.constant 0 : i32
    return %c0_i32 : i32
  }
  func.func @transform_4(%arg0: i32) -> i32 {
    %c0_i32 = arith.constant 0 : i32
    %c0_i32_0 = arith.constant 0 : i32
    return %c0_i32 : i32
  }
  func.func @transform_5(%arg0: i32) -> i32 {
    %c0_i32 = arith.constant 0 : i32
    %c0_i32_0 = arith.constant 0 : i32
    return %c0_i32 : i32
  }
  func.func @transform_6(%arg0: i32) -> (i32, i32) {
    %c0_i32 = arith.constant 0 : i32
    %c0_i32_0 = arith.constant 0 : i32
    %c0_i32_1 = arith.constant 0 : i32
    return %c0_i32, %c0_i32_0 : i32, i32
  }
  func.func @transform_7(%arg0: i32) -> (i32, i32) {
    %c0_i32 = arith.constant 0 : i32
    %c0_i32_0 = arith.constant 0 : i32
    %c0_i32_1 = arith.constant 0 : i32
    return %c0_i32, %c0_i32_0 : i32, i32
  }
  func.func @transform_8(%arg0: i32) -> (i32, i32) {
    %c0_i32 = arith.constant 0 : i32
    %c0_i32_0 = arith.constant 0 : i32
    %c0_i32_1 = arith.constant 0 : i32
    return %c0_i32, %c0_i32_0 : i32, i32
  }
  func.func @transform_9(%arg0: i32) -> (i32, i32) {
    %c0_i32 = arith.constant 0 : i32
    %c0_i32_0 = arith.constant 0 : i32
    %c0_i32_1 = arith.constant 0 : i32
    return %c0_i32, %c0_i32_0 : i32, i32
  }
  func.func @transform_10(%arg0: i32) -> (i32, i32) {
    %c0_i32 = arith.constant 0 : i32
    %c0_i32_0 = arith.constant 0 : i32
    %c0_i32_1 = arith.constant 0 : i32
    return %c0_i32, %c0_i32_0 : i32, i32
  }
  func.func @transform_11(%arg0: i32) -> (i32, i32) {
    %c0_i32 = arith.constant 0 : i32
    %c0_i32_0 = arith.constant 0 : i32
    %c0_i32_1 = arith.constant 0 : i32
    return %c0_i32, %c0_i32_0 : i32, i32
  }
  func.func @transform_12(%arg0: i32) -> (i32, i32) {
    %c0_i32 = arith.constant 0 : i32
    %c0_i32_0 = arith.constant 0 : i32
    %c0_i32_1 = arith.constant 0 : i32
    return %c0_i32, %c0_i32_0 : i32, i32
  }
  func.func @transform_13(%arg0: i32) -> (i32, i32) {
    %c0_i32 = arith.constant 0 : i32
    %c0_i32_0 = arith.constant 0 : i32
    %c0_i32_1 = arith.constant 0 : i32
    return %c0_i32, %c0_i32_0 : i32, i32
  }
  func.func @transform_14(%arg0: i32) -> (i32, i32) {
    %c0_i32 = arith.constant 0 : i32
    %c0_i32_0 = arith.constant 0 : i32
    %c0_i32_1 = arith.constant 0 : i32
    return %c0_i32, %c0_i32_0 : i32, i32
  }
  func.func @transform_15(%arg0: i32) -> (i32, i32) {
    %c0_i32 = arith.constant 0 : i32
    %c0_i32_0 = arith.constant 0 : i32
    %c0_i32_1 = arith.constant 0 : i32
    return %c0_i32, %c0_i32_0 : i32, i32
  }
  func.func @transform_16(%arg0: i32) -> (i32, i32) {
    %c0_i32 = arith.constant 0 : i32
    %c0_i32_0 = arith.constant 0 : i32
    return %arg0, %c0_i32 : i32, i32
  }
}

</mosaic_0001>

<bundles_post_ra>
// kernel: ddqn_model_forward.1
= control target key start
LH: loop header
LB: loop body
LE: loop exit
PB: predicated region body
PF: predicated region fallthrough
CT: control target
= control target key end

     0   :  { %s13978_s0 = inlined_call_operand.hbm [shape: f32[512,128], index: 0, kind: input, shape index: {}]   ;;  %s13979_s1 = inlined_call_operand.vmem [shape: f32[128,8], index: 1, kind: input, shape index: {}]   ;;  %s13980_s2 = inlined_call_operand.vmem [shape: f32[20], index: 2, kind: input, shape index: {}]   ;;  %s13981_s3 = inlined_call_operand.vmem [shape: f32[20], index: 3, kind: input, shape index: {}]   ;;  %s13982_s4 = inlined_call_operand.vmem [shape: f32[20], index: 4, kind: input, shape index: {}]   ;;  %s13983_s5 = inlined_call_operand.<no memory space> [shape: f32[1], index: 5, kind: input, shape index: {}]   ;;  %s13984_s6 = inlined_call_operand.vmem [shape: f32[8,20], index: 6, kind: input, shape index: {}]   ;;  %s13985_s7 = inlined_call_operand.vmem [shape: f32[1,20], index: 7, kind: input, shape index: {}]   ;;  %s13986_s8 = inlined_call_operand.vmem [shape: f32[20,20], index: 8, kind: input, shape index: {}]   ;;  %s13987_s9 = inlined_call_operand.vmem [shape: f32[1,20], index: 9, kind: input, shape index: {}]   ;;  %s13988_s10 = inlined_call_operand.vmem [shape: f32[20,8], index: 10, kind: input, shape index: {}]   ;;  %s13989_s11 = inlined_call_operand.vmem [shape: f32[1,8], index: 11, kind: input, shape index: {}]   ;;  %s13990_s12 = inlined_call_operand.vmem [shape: f32[8,20], index: 12, kind: input, shape index: {}]   ;;  %s13991_s13 = inlined_call_operand.vmem [shape: f32[1,20], index: 13, kind: input, shape index: {}]   ;;  %s13992_s14 = inlined_call_operand.vmem [shape: f32[20,1], index: 14, kind: input, shape index: {}]   ;;  %s13993_s15 = inlined_call_operand.<no memory space> [shape: f32[1,1], index: 15, kind: input, shape index: {}]   ;;  %s13994_s16 = inlined_call_operand.vmem [shape: f32[512,1], index: 16, kind: output, shape index: {}]  }
   0x1   :  { %14510 = sst [smem:[#allocation97_spill]] %s13978_s0  ;;  %v22_v0 = vstv %s13993_s15 }
   0x2   :  { %14511 = sst [smem:[#allocation98_spill]] %s13979_s1  ;;  %23 = vst [vmem:[#allocation3] sm:$0x1] %v22_v0 }
   0x3   :  { %14512 = sst [smem:[#allocation99_spill]] %s13980_s2 }
   0x4   :  { %14513 = sst [smem:[#allocation100_spill]] %s13981_s3 }
   0x5   :  { %14514 = sst [smem:[#allocation101_spill]] %s13982_s4 }
   0x6   :  { %14515 = sst [smem:[#allocation102_spill]] %s13984_s6 }
   0x7   :  { %21 = sst [smem:[#allocation2]] %s13983_s5 }
   0x8   :  { %24 = vsyncpa [#allocation5], 0 }
   0x9   :  { %26 = vsyncpa [#allocation5 + $0x1], 0 }
   0xa   :  { %27 = vsyncpa [#allocation6], 0 }
   0xb   :  { %28 = vsyncpa [#allocation9], 0  ;;  %s10257_s25 = smov 0   ;;  %s10259_s26 = smov 0  }
   0xc   :  { %s10261_s27 = smov 0   ;;  %s10263_s28 = smov 0  }
   0xd LB: > { %s14000_s5 = sadd.s32 4294967295, %s10158_s28   ;;  %p54_p0 = scmp.ne.s32.totalorder %s10150_s26, %s10146_s25  ;;  %s10158_s28 = sphi %s10263_s28, %s15366_s28   ;;  %s10154_s27 = sphi %s10261_s27, %s15365_s27   ;;  %s10150_s26 = sphi %s10259_s26, %s15364_s26   ;;  %s10146_s25 = sphi %s10257_s25, %s15363_s25  }
   0xe   : > { %p10279_p1 = scmp.eq.s32.totalorder %s14000_s5, 0  ;;  %p7865_p2 = scmp.ge.s32.totalorder %s10158_s28, 1 }
   0xf   : > { %p406_p3 = scmp.lt.s32.totalorder %s10158_s28, 3  ;;  %s14518_s3 = sld [smem:[#allocation100_spill]] }
  0x10   : > { %s14516_s15 = scalar_select %p10279_p1, 1, 0 }
  0x11   : > { %p10287_p4 = por %p10279_p1, %p54_p0  ;;  %p10294_p5 = pnand %p7865_p2, %p406_p3 }
  0x12   : > { %s14520_s2 = sld [smem:[#allocation99_spill]]  ;;  %s14522_s4 = sld [smem:[#allocation101_spill]] }
  0x13   : > { %s14517_s29 = scalar_select %p10287_p4, 1, 0 }
  0x14   : > { %s14519_s18 = scalar_select %p10294_p5, 1, 0 }
  0x15   : > { %s433_s17 = sshll.u32 %s14518_s3, 4  ;;  %p8575_p6 = pneg %p10294_p5  ;;  %s434_s17 = int_to_ptr.vmem [resolvable:$true] %s433_s17 }
  0x16   : > { %s10041_s30 = scalar_lea.vmem %s434_s17, 16  ;;  %p10049_p12 = scmp.lt.s32.totalorder %s434_s17, %s434_s17 }
  0x17   : > { %p10305_p7 = pnand %p8575_p6, %p10279_p1  ;;  %p10042_p8 = scmp.ne.s32.totalorder %s434_s17, %s10041_s30 }
  0x18   : > { %s422_s21 = sshll.u32 %s14520_s2, 4  ;;  %s444_s25 = sshll.u32 %s14522_s4, 4  ;;  %s423_s21 = int_to_ptr.vmem [resolvable:$true] %s422_s21  ;;  %s10312_s25 = int_to_ptr.vmem [resolvable:$true] %s444_s25 }
  0x19   : > { %p10043_p9 = pneg %p10305_p7  ;;  %p10050_p13 = scmp.lt.s32.totalorder %s10041_s30, %s10041_s30 }
  0x1b   : > { %p10044_p10 = pnand %p10043_p9, %p10042_p8  ;;  %p10051_p0 = por %p10050_p13, %p10049_p12 }
  0x1d   : > { %p10045_p11 = pneg %p10044_p10 }
  0x1f   : > { %p10052_p2 = pnand %p10051_p0, %p10045_p11 }
  0x21   : > { %10055 = shalt.err (!%p10052_p2)
}
  0x22   : > { %s10160_s0 = smov [#allocation8]   ;;  %s10056_s19 = scalar_lea.vmem %s423_s21, 16 }
  0x23   : > { %8581 = dma.vmem_to_smem (!%p10305_p7), %s434_s17, 16, %s10160_s0, [#allocation9]  }
  0x24   : > { %p10057_p3 = scmp.ne.s32.totalorder %s423_s21, %s10056_s19  ;;  %p10064_p4 = scmp.lt.s32.totalorder %s423_s21, %s423_s21 }
  0x25   : > { %p10065_p5 = scmp.lt.s32.totalorder %s10056_s19, %s10056_s19 }
  0x26   : > { %p10059_p6 = pnand %p10057_p3, %p10043_p9 }
  0x27   : > { %p10066_p8 = por %p10065_p5, %p10064_p4 }
  0x28   : > { %p10060_p1 = pneg %p10059_p6 }
  0x2a   : > { %p10067_p10 = pnand %p10066_p8, %p10060_p1 }
  0x2c   : > { %10070 = shalt.err (!%p10067_p10)
}
  0x2d   : > { %s10161_s20 = smov [#allocation7]   ;;  %s10071_s17 = scalar_lea.vmem %s10312_s25, 16 }
  0x2e   : > { %8578 = dma.vmem_to_smem (!%p10305_p7), %s423_s21, 16, %s10161_s20, [#allocation6]  }
  0x2f   : > { %p10072_p11 = scmp.ne.s32.totalorder %s10312_s25, %s10071_s17  ;;  %p10079_p0 = scmp.lt.s32.totalorder %s10312_s25, %s10312_s25 }
  0x30   : > { %p10080_p2 = scmp.lt.s32.totalorder %s10071_s17, %s10071_s17 }
  0x31   : > { %p10074_p12 = pnand %p10072_p11, %p10043_p9 }
  0x32   : > { %p10081_p4 = por %p10080_p2, %p10079_p0 }
  0x33   : > { %p10075_p13 = pneg %p10074_p12 }
  0x35   : > { %p10082_p1 = pnand %p10081_p4, %p10075_p13 }
  0x37   : > { %10085 = shalt.err (!%p10082_p1)
}
  0x38   : > { %s10162_s23 = smov [#allocation10]   ;;  %s10337_s21 = sadd.s32 1, %s10158_s28  }
  0x39   : > { %8584 = dma.vmem_to_smem (!%p10305_p7), %s10312_s25, 16, %s10162_s23, [#allocation9]  }
  0x3a   : > { %s38_s24 = ssub.s32 %s10158_s28, %s10337_s21  ;;  %s41_s30 = sadd.s32 1, %s10154_s27 }
  0x3b   : > { %p39_p5 = scmp.eq.s32.totalorder %s38_s24, 0  ;;  %p48_p9 = scmp.ne.s32.totalorder %s10154_s27, %s10150_s26 }
  0x3c   : > { %p49_p3 = scmp.eq.s32.totalorder %s10158_s28, 0  ;;  %p8592_p6 = scmp.lt.s32.totalorder %s10158_s28, 2 }
  0x3d   : > { %s10347_s22 = scalar_select %p39_p5, %s10154_s27, %s41_s30  }
  0x3e   : > { %p50_p8 = por %p49_p3, %p48_p9  ;;  %s488_s0 = sand.u32 1, %s10154_s27  }
  0x3f   : > { %s7870_s19 = sshll.u32 %s488_s0, 8  ;;  %s8059_s20 = sshll.u32 %s10158_s28, 12 }
  0x40   : > { %s14523_s2 = sld [smem:[#allocation97_spill]]  ;;  %s492_s25 = scalar_lea.vmem [#allocation4], %s7870_s19 }
  0x41   : > { %s499_s23 = sshll.u32 %s492_s25, 4  ;;  %p10358_p7 = pnand %p8592_p6, %p50_p8  ;;  %s10356_s23 = int_to_ptr.vmem [resolvable:$true] %s499_s23 }
  0x42   : > { %s10362_s30 = scalar_lea.sflag [#allocation5], %s488_s0 }
  0x43   : > { %p10088_p11 = pneg %p10358_p7 }
  0x46   : > { %s10354_s3 = scalar_lea.hbm %s14523_s2, %s8059_s20  ;;  %s10091_s20 = scalar_lea.hbm %s14523_s2, 8192 }
  0x47   : > { %s10086_s4 = scalar_lea.hbm %s10354_s3, 4096  ;;  %p10092_p0 = scmp.lt.u32.totalorder %s10354_s3, %s14523_s2 }
  0x48   : > { %p10087_p10 = scmp.ne.s32.totalorder %s10354_s3, %s10086_s4  ;;  %p10093_p2 = scmp.lt.u32.totalorder %s10091_s20, %s10086_s4 }
  0x49   : > { %p10095_p1 = scmp.lt.u32.totalorder %s10086_s4, %s10354_s3 }
  0x4a   : > { %p10089_p12 = pnand %p10088_p11, %p10087_p10  ;;  %p10094_p4 = por %p10093_p2, %p10092_p0 }
  0x4c   : > { %p10090_p13 = pneg %p10089_p12  ;;  %p10096_p5 = por %p10095_p1, %p10094_p4 }
  0x4e   : > { %p10097_p9 = pnand %p10096_p5, %p10090_p13 }
  0x50   : > { %10100 = shalt.err (!%p10097_p9)
}
  0x51   : > { %s10101_s0 = scalar_lea.vmem %s10356_s23, 4096  ;;  %s10163_s5 = smov [#allocation4]  }
  0x52   : > { %p10102_p3 = scmp.ne.s32.totalorder %s10356_s23, %s10101_s0  ;;  %s10106_s19 = sshll.u32 %s10163_s5, 4  ;;  %s10107_s19 = int_to_ptr.vmem [resolvable:$false] %s10106_s19 }
  0x53   : > { %s10108_s17 = scalar_lea.vmem %s10107_s19, 8192  ;;  %p10109_p10 = scmp.lt.s32.totalorder %s10356_s23, %s10107_s19 }
  0x54   : > { %p10104_p6 = pnand %p10102_p3, %p10088_p11  ;;  %p10110_p12 = scmp.lt.s32.totalorder %s10108_s17, %s10101_s0 }
  0x56   : > { %p10105_p8 = pneg %p10104_p6  ;;  %p10111_p0 = por %p10110_p12, %p10109_p10 }
  0x58   : > { %p10112_p2 = pnand %p10111_p0, %p10105_p8 }
  0x5a   : > { %10115 = shalt.err (!%p10112_p2)
}
  0x5b   : > { %s10164_s4 = smov 128   ;;  %s10165_s20 = smov 8  }
  0x5c   : > { %8588 = dma.hbm_to_vmem [thread:$0]  (!%p10358_p7), %s10354_s3, 4096, %s10356_s23, %s10362_s30, %s10164_s4, %s10164_s4, %s10165_s20  }
  0x5d   : > { %p14525_p11 = scmp.ne.s32.totalorder %s14519_s18, 0 }
  0x5f   : > { %511 = sbr.rel (%p14525_p11) target bundleno = 2612 (0xa34), region = 84 }
  0x66   : > { %s513_s25 = sand.u32 1, %s10150_s26   ;;  %p14526_p13 = scmp.ne.s32.totalorder %s14517_s29, 0 }
  0x67   : > { %s7874_s5 = sshll.u32 %s513_s25, 8  ;;  %s514_s19 = scalar_lea.sflag [#allocation5], %s513_s25 }
  0x68   : > { %s10393_s0 = scalar_lea.vmem [#allocation4], %s7874_s5 }
  0x69   : > { %10133 = dma.done.wait (%p14526_p13), %s514_s19, 4096  }
  0x6a   : > { %10135 = vsyncadd (%p14526_p13), %s514_s19, 4294963200  ;;  %p14527_p4 = scmp.ne.s32.totalorder %s14516_s15, 0 }
  0x6c   : > { %10137 = dma.done.wait (%p14527_p4), [#allocation6], 16  }
  0x6d   : > { %10139 = vsyncadd (%p14527_p4), [#allocation6], 4294967280 }
  0x6e   : > { %10141 = dma.done.wait (%p14527_p4), [#allocation9], 32  }
  0x6f   : > { %10143 = vsyncadd (%p14527_p4), [#allocation9], 4294967264 }
  0x70   : > { %534 = sfence }
  0x71   : > { %s14528_s6 = sld [smem:[#allocation102_spill]]  ;;  %s14529_s1 = sld [smem:[#allocation98_spill]]  ;;  %vm6172_vm0 = vcmask 64512   ;;  %v6382_v18 = vld [vmem:[%s13986_s8] sm:$0xff]  ;;  %v6383_v19 = vld [vmem:[%s13986_s8 + $0x8] sm:$0xff]  ;;  %vm6441_vm1 = vcmask 1043456  }
  0x72   : > { %v8501_v20 = vpack.c.bf16 %v6383_v19, %v6382_v18  ;;  %v6384_v21 = vld [vmem:[%s13986_s8 + $0x10] sm:$0xf]  ;;  %v6606_v22 = vld [vmem:[%s13988_s10] sm:$0xff]  ;;  %v6607_v23 = vld [vmem:[%s13988_s10 + $0x8] sm:$0xff]  ;;  %vm6392_vm2 = vcmask 162816   ;;  %s618_s20 = sld [smem:[#allocation7]] }
  0x73   : > { %v8505_v24 = vpack.c.bf16 %v6607_v23, %v6606_v22  ;;  %v6608_v25 = vld [vmem:[%s13988_s10 + $0x10] sm:$0xf]  ;;  %v7937_v26 = vld [vmem:[%s13985_s7] ss:$0 sm:$0xff]  ;;  %s7880_s25 = sld [smem:[#allocation7 + $0x1]]  ;;  %s652_s5 = sld [smem:[#allocation8]] }
  0x74   : > { %8502 = vmatprep.subr.bf16.mxu1 %v8501_v20  ;;  %s7881_s19 = sld [smem:[#allocation8 + $0x1]]  ;;  %s7883_s3 = sld [smem:[#allocation7 + $0x2]]  ;;  %vm7732_vm3 = vcmask 7168  }
  0x75   : > { %8504 = vmatpush3.bf16.msra.mxu1 %v8501_v20  ;;  %s7884_s18 = sld [smem:[#allocation8 + $0x2]]  ;;  %s7886_s23 = sld [smem:[#allocation7 + $0x3]] }
  0x76   : > { %8261 = vmatprep.subr.msk.mxu1 %vm6441_vm1, %v6384_v21  ;;  %s7887_s29 = sld [smem:[#allocation8 + $0x3]]  ;;  %s7889_s24 = sld [smem:[#allocation7 + $0x4]] }
  0x77   : > { %v6164_v1 = vld [vmem:[%s14528_s6] sm:$0xff]  ;;  %v6149_v3 = vld [vmem:[%s14529_s1 + $0x8] sm:$0xff]  ;;  %v6150_v4 = vld [vmem:[%s14529_s1 + $0x10] sm:$0xff]  ;;  %s7890_s30 = sld [smem:[#allocation8 + $0x4]]  ;;  %s7892_s17 = sld [smem:[#allocation7 + $0x5]] }
  0x78   : > { %v6148_v2 = vld [vmem:[%s14529_s1] sm:$0xff]  ;;  %8231 = vmatprep.subr.mxu0 %v6164_v1  ;;  %v6151_v5 = vld [vmem:[%s14529_s1 + $0x18] sm:$0xff]  ;;  %v6153_v7 = vld [vmem:[%s14529_s1 + $0x28] sm:$0xff]  ;;  %s7893_s15 = sld [smem:[#allocation8 + $0x5]]  ;;  %s7895_s4 = sld [smem:[#allocation7 + $0x6]] }
  0x79   : > { %8233 = vmatprep.mubr.msk.f32.mxu0 %vm6172_vm0, %v6148_v2  ;;  %8232 = vmatpush3.msra.mxu0 %v6164_v1  ;;  %v6152_v6 = vld [vmem:[%s14529_s1 + $0x20] sm:$0xff]  ;;  %v6154_v8 = vld [vmem:[%s14529_s1 + $0x30] sm:$0xff]  ;;  %v6155_v9 = vld [vmem:[%s14529_s1 + $0x38] sm:$0xff]  ;;  %s10758_s2 = sld [smem:[#allocation10 + $0x11]]  ;;  %s10773_s6 = sld [smem:[#allocation8 + $0x12]] }
  0x7a   : > { %8234 = vmatmul.mubr.msk.f32.vlgmr.msra.gmra.mrb[0].mxu0 %vm6172_vm0, %v6149_v3  ;;  %v6156_v10 = vld [vmem:[%s14529_s1 + $0x40] sm:$0xff]  ;;  %v6157_v11 = vld [vmem:[%s14529_s1 + $0x48] sm:$0xff]  ;;  %v6158_v12 = vld [vmem:[%s14529_s1 + $0x50] sm:$0xff]  ;;  %8262 = vmatpush3.msk.msra.mxu1 %vm6441_vm1, %v6384_v21  ;;  %v10532_v20 = vstv %s7883_s3  ;;  %s7902_s3 = sld [smem:[#allocation8 + $0x8]] }
  0x7b   : > { %8236 = vmatprep.mubr.msk.f32.mxu0 %vm6172_vm0, %v6150_v4  ;;  %v6159_v13 = vld [vmem:[%s14529_s1 + $0x58] sm:$0xff]  ;;  %v6160_v14 = vld [vmem:[%s14529_s1 + $0x60] sm:$0xff]  ;;  %v6161_v15 = vld [vmem:[%s14529_s1 + $0x68] sm:$0xff]  ;;  %8506 = vmatprep.subr.bf16.mxu0 %v8505_v24  ;;  %14534 = vst [vmem:[#allocation18_spill] sm:$0xff] %v10532_v20  ;;  %v10539_v23 = vstv %s7884_s18  ;;  %s7904_s18 = sld [smem:[#allocation7 + $0x9]] }
  0x7c   : > { %v6162_v16 = vld [vmem:[%s14529_s1 + $0x70] sm:$0xff]  ;;  %v6163_v17 = vld [vmem:[%s14529_s1 + $0x78] sm:$0xff]  ;;  %8508 = vmatpush3.bf16.msra.mxu0 %v8505_v24  ;;  %14535 = vst [vmem:[#allocation19_spill] sm:$0xff] %v10539_v23  ;;  %v10541_v24 = vstv %s7886_s23  ;;  %s10577_s23 = sld [smem:[#allocation8 + $0x9]]  ;;  %s10685_s1 = sld [smem:[#allocation7 + $0xd]] }
  0x7d   : > { %8291 = vmatprep.subr.msk.mxu0 %vm6441_vm1, %v6608_v25  ;;  %v10535_v21 = vld [vmem:[%s10393_s0 + $0x10] sm:$0xff]  ;;  %14536 = vst [vmem:[#allocation20_spill] sm:$0xff] %v10541_v24 }
  0x7e   : > { %8237 = vmatmul.mubr.msk.f32.gmra.mrb[2].mxu0 %vm6172_vm0, %v6151_v5 }
  0x7f   : > { %8239 = vmatprep.mubr.msk.f32.mxu0 %vm6172_vm0, %v6152_v6 }
  0x80   : > { %8292 = vmatpush3.msk.msra.mxu0 %vm6441_vm1, %v6608_v25 }
  0x82   : > { %8240 = vmatmul.mubr.msk.f32.gmra.mrb[4].mxu0 %vm6172_vm0, %v6153_v7 }
  0x83   : > { %8242 = vmatprep.mubr.msk.f32.mxu0 %vm6172_vm0, %v6154_v8 }
  0x86   : > { %8243 = vmatmul.mubr.msk.f32.gmra.mrb[6].mxu0 %vm6172_vm0, %v6155_v9 }
  0x87   : > { %8245 = vmatprep.mubr.msk.f32.mxu0 %vm6172_vm0, %v6156_v10 }
  0x8a   : > { %8246 = vmatmul.mubr.msk.f32.gmra.mrb[8].mxu0 %vm6172_vm0, %v6157_v11  ;;  %v10516_v11 = vld [vmem:[%s10393_s0] sm:$0xff] }
  0x8b   : > { %8248 = vmatprep.mubr.msk.f32.mxu0 %vm6172_vm0, %v6158_v12  ;;  %v10518_v12 = vstv %s618_s20  ;;  %v1144_v22 = vmul.f32 %v10532_v20, %v10516_v11  ;;  %s7896_s20 = sld [smem:[#allocation8 + $0x6]] }
  0x8c   : > { %14530 = vst [vmem:[#allocation14_spill] sm:$0xff] %v10518_v12  ;;  %v622_v25 = vmul.f32 %v10518_v12, %v10535_v21 }
  0x8e   : > { %8249 = vmatmul.mubr.msk.f32.gmra.mrb[10].mxu0 %vm6172_vm0, %v6159_v13  ;;  %v10520_v13 = vstv %s7880_s25  ;;  %s7898_s25 = sld [smem:[#allocation7 + $0x7]] }
  0x8f   : > { %8251 = vmatprep.mubr.msk.f32.mxu0 %vm6172_vm0, %v6160_v14  ;;  %14531 = vst [vmem:[#allocation15_spill] sm:$0xff] %v10520_v13  ;;  %v620_v14 = vmul.f32 %v10518_v12, %v10516_v11 }
  0x92   : > { %8252 = vmatmul.mubr.msk.f32.gmra.mrb[12].mxu0 %vm6172_vm0, %v6161_v15  ;;  %v882_v15 = vmul.f32 %v10520_v13, %v10516_v11 }
  0x93   : > { %8254 = vmatprep.mubr.msk.f32.mxu0 %vm6172_vm0, %v6162_v16  ;;  %v10526_v16 = vstv %s652_s5  ;;  %s7899_s5 = sld [smem:[#allocation8 + $0x7]] }
  0x94   : > { %14532 = vst [vmem:[#allocation16_spill] sm:$0xff] %v10526_v16  ;;  %v654_v18 = vadd.f32 %v10526_v16, %v620_v14 }
  0x96   : > { %8255 = vmatmul.mubr.msk.f32.gmra.mrb[14].mxu0 %vm6172_vm0, %v6163_v17  ;;  %v10528_v17 = vstv %s7881_s19  ;;  %s7901_s19 = sld [smem:[#allocation7 + $0x8]] }
  0x97   : > { %14533 = vst [vmem:[#allocation17_spill] sm:$0xff] %v10528_v17  ;;  %v916_v19 = vadd.f32 %v10528_v17, %v882_v15 }
 0x14d   : > { %v8235_v27 = vpop.f32.mrb[0].mxu0 }
 0x14e   : > { %v6293_v28 = vadd.f32 %v8235_v27, %v7937_v26  ;;  %v6287_v29 = vpop.f32.mrb[1].mxu0  ;;  %v949_v27 = vmul.f32 0.5, %v916_v19 }
 0x14f   : > { %v6288_v30 = vadd.f32 %v7937_v26, %v6287_v29  ;;  %v884_v29 = vmul.f32 %v10520_v13, %v10535_v21 }
 0x150   : > { %v6367_v33 = vmax.f32 %v6293_v28, 0.0  ;;  %v1406_v28 = vmul.f32 %v10541_v24, %v10516_v11 }
 0x151   : > { %v6366_v31 = vmax.f32 %v6288_v30, 0.0  ;;  %v8238_v32 = vpop.f32.mrb[2].mxu0  ;;  %v1178_v30 = vadd.f32 %v10539_v23, %v1144_v22 }
 0x152   : > { %v6303_v34 = vadd.f32 %v8238_v32, %v7937_v26  ;;  %v6297_v35 = vpop.f32.mrb[3].mxu0  ;;  %v10552_v32 = vstv %s7889_s24  ;;  %s10590_s24 = sld [smem:[#allocation8 + $0xa]] }
 0x153   : > { %v6298_v36 = vadd.f32 %v7937_v26, %v6297_v35  ;;  %8263 = vmatprep.mubr.msk.f32.mxu1 %vm6392_vm2, %v6366_v31  ;;  %v10550_v31 = vstv %s7887_s29  ;;  %14538 = vst [vmem:[#allocation22_spill] sm:$0xff] %v10552_v32  ;;  %v1668_v35 = vmul.f32 %v10552_v32, %v10516_v11  ;;  %s10579_s29 = sld [smem:[#allocation7 + $0xa]] }
 0x154   : > { %8264 = vmatmul.mubr.msk.f32.vlgmr.msra.gmra.mrb[0].mxu1 %vm6392_vm2, %v6367_v33  ;;  %v6369_v39 = vmax.f32 %v6303_v34, 0.0  ;;  %14537 = vst [vmem:[#allocation21_spill] sm:$0xff] %v10550_v31  ;;  %v656_v33 = vadd.f32 %v10526_v16, %v622_v25  ;;  %v1440_v34 = vadd.f32 %v10550_v31, %v1406_v28 }
 0x155   : > { %v6368_v37 = vmax.f32 %v6298_v36, 0.0  ;;  %v8241_v38 = vpop.f32.mrb[4].mxu0  ;;  %v918_v36 = vadd.f32 %v10528_v17, %v884_v29 }
 0x156   : > { %v6313_v40 = vadd.f32 %v8241_v38, %v7937_v26  ;;  %v6307_v41 = vpop.f32.mrb[5].mxu0  ;;  %v10559_v38 = vstv %s7890_s30  ;;  %s10592_s30 = sld [smem:[#allocation7 + $0xb]] }
 0x157   : > { %v6308_v42 = vadd.f32 %v7937_v26, %v6307_v41  ;;  %8266 = vmatprep.mubr.msk.f32.mxu1 %vm6392_vm2, %v6368_v37  ;;  %v1211_v37 = vmul.f32 0.5, %v1178_v30  ;;  %14539 = vst [vmem:[#allocation23_spill] sm:$0xff] %v10559_v38  ;;  %v1702_v41 = vadd.f32 %v10559_v38, %v1668_v35 }
 0x158   : > { %8267 = vmatmul.mubr.msk.f32.gmra.mrb[2].mxu1 %vm6392_vm2, %v6369_v39  ;;  %v6371_v45 = vmax.f32 %v6313_v40, 0.0  ;;  %v10561_v39 = vstv %s7892_s17  ;;  %v1473_v40 = vmul.f32 0.5, %v1440_v34  ;;  %s10595_s17 = sld [smem:[#allocation10]]  ;;  %v10635_v25 = vstv %s10590_s24  ;;  %s10655_s24 = sld [smem:[#allocation10 + $0xa]] }
 0x159   : > { %v6370_v43 = vmax.f32 %v6308_v42, 0.0  ;;  %v8244_v44 = vpop.f32.mrb[6].mxu0  ;;  %14540 = vst [vmem:[#allocation24_spill] sm:$0xff] %v10561_v39  ;;  %v1930_v42 = vmul.f32 %v10561_v39, %v10516_v11  ;;  %14551 = vst [vmem:[#allocation35_spill] sm:$0xff] %v10635_v25 }
 0x15a   : > { %v6323_v46 = vadd.f32 %v8244_v44, %v7937_v26  ;;  %v6317_v47 = vpop.f32.mrb[7].mxu0  ;;  %v10566_v44 = vstv %s7893_s15  ;;  %s10597_s15 = sld [smem:[#allocation10 + $0x1]] }
 0x15b   : > { %v6318_v48 = vadd.f32 %v7937_v26, %v6317_v47  ;;  %8269 = vmatprep.mubr.msk.f32.mxu1 %vm6392_vm2, %v6370_v43  ;;  %v689_v43 = vmul.f32 0.5, %v656_v33  ;;  %14541 = vst [vmem:[#allocation25_spill] sm:$0xff] %v10566_v44  ;;  %v1735_v47 = vmul.f32 0.5, %v1702_v41 }
 0x15c   : > { %8270 = vmatmul.mubr.msk.f32.gmra.mrb[4].mxu1 %vm6392_vm2, %v6371_v45  ;;  %v6373_v51 = vmax.f32 %v6323_v46, 0.0  ;;  %v10568_v45 = vstv %s7895_s4  ;;  %v951_v46 = vmul.f32 0.5, %v918_v36  ;;  %s10610_s4 = sld [smem:[#allocation10 + $0x2]] }
 0x15d   : > { %v6372_v49 = vmax.f32 %v6318_v48, 0.0  ;;  %v8247_v50 = vpop.f32.mrb[8].mxu0  ;;  %14542 = vst [vmem:[#allocation26_spill] sm:$0xff] %v10568_v45  ;;  %v1964_v48 = vadd.f32 %v10566_v44, %v1930_v42 }
 0x15e   : > { %v6333_v52 = vadd.f32 %v8247_v50, %v7937_v26  ;;  %v6327_v53 = vpop.f32.mrb[9].mxu0  ;;  %v10573_v50 = vstv %s7896_s20  ;;  %s10621_s20 = sld [smem:[#allocation8 + $0xb]]  ;;  %v10641_v28 = vstv %s10595_s17  ;;  %s10664_s17 = sld [smem:[#allocation7 + $0xc]] }
 0x15f   : > { %v6328_v54 = vadd.f32 %v7937_v26, %v6327_v53  ;;  %8272 = vmatprep.mubr.msk.f32.mxu1 %vm6392_vm2, %v6372_v49  ;;  %v2192_v49 = vmul.f32 %v10568_v45, %v10516_v11  ;;  %14543 = vst [vmem:[#allocation27_spill] sm:$0xff] %v10573_v50  ;;  %v1997_v53 = vmul.f32 0.5, %v1964_v48  ;;  %14553 = vst [vmem:[#allocation37_spill] sm:$0xff] %v10641_v28 }
 0x160   : > { %8273 = vmatmul.mubr.msk.f32.gmra.mrb[6].mxu1 %vm6392_vm2, %v6373_v51  ;;  %v6375_v57 = vmax.f32 %v6333_v52, 0.0  ;;  %v10575_v51 = vstv %s7898_s25  ;;  %v1146_v52 = vmul.f32 %v10532_v20, %v10535_v21  ;;  %s10623_s25 = sld [smem:[#allocation10 + $0x3]]  ;;  %v10644_v30 = vstv %s10597_s15  ;;  %s10677_s15 = sld [smem:[#allocation8 + $0xc]] }
 0x161   : > { %v6374_v55 = vmax.f32 %v6328_v54, 0.0  ;;  %v8250_v56 = vpop.f32.mrb[10].mxu0  ;;  %14544 = vst [vmem:[#allocation28_spill] sm:$0xff] %v10575_v51  ;;  %v2226_v54 = vadd.f32 %v10573_v50, %v2192_v49  ;;  %14554 = vst [vmem:[#allocation38_spill] sm:$0xff] %v10644_v30  ;;  %v10825_v20 = vstv %s10758_s2 }
 0x162   : > { %v6343_v58 = vadd.f32 %v8250_v56, %v7937_v26  ;;  %v6337_v59 = vpop.f32.mrb[11].mxu0  ;;  %v10586_v56 = vstv %s7899_s5  ;;  %s10625_s5 = sld [smem:[#allocation10 + $0x4]]  ;;  %14583 = vst [vmem:[#allocation67_spill] sm:$0xff] %v10825_v20 }
 0x163   : > { %v6338_v60 = vadd.f32 %v7937_v26, %v6337_v59  ;;  %8275 = vmatprep.mubr.msk.f32.mxu1 %vm6392_vm2, %v6374_v55  ;;  %v2454_v55 = vmul.f32 %v10575_v51, %v10516_v11  ;;  %14545 = vst [vmem:[#allocation29_spill] sm:$0xff] %v10586_v56  ;;  %v2259_v59 = vmul.f32 0.5, %v2226_v54 }
 0x164   : > { %8276 = vmatmul.mubr.msk.f32.gmra.mrb[8].mxu1 %vm6392_vm2, %v6375_v57  ;;  %v6377_v63 = vmax.f32 %v6343_v58, 0.0  ;;  %v10588_v57 = vstv %s7901_s19  ;;  %v1180_v58 = vadd.f32 %v10539_v23, %v1146_v52  ;;  %s10628_s19 = sld [smem:[#allocation10 + $0x5]] }
 0x165   : > { %v6376_v61 = vmax.f32 %v6338_v60, 0.0  ;;  %v8253_v62 = vpop.f32.mrb[12].mxu0  ;;  %14546 = vst [vmem:[#allocation30_spill] sm:$0xff] %v10588_v57  ;;  %v2488_v60 = vadd.f32 %v10586_v56, %v2454_v55 }
 0x166   : > { %v6353_v0 = vadd.f32 %v8253_v62, %v7937_v26  ;;  %v6347_v1 = vpop.f32.mrb[13].mxu0  ;;  %v10602_v62 = vstv %s7902_s3  ;;  %s10630_s3 = sld [smem:[#allocation10 + $0x6]] }
 0x167   : > { %v6348_v2 = vadd.f32 %v7937_v26, %v6347_v1  ;;  %8278 = vmatprep.mubr.msk.f32.mxu1 %vm6392_vm2, %v6376_v61  ;;  %v2716_v61 = vmul.f32 %v10588_v57, %v10516_v11  ;;  %14547 = vst [vmem:[#allocation31_spill] sm:$0xff] %v10602_v62  ;;  %v10608_v1 = vmul.f32 %v10541_v24, %v10535_v21 }
 0x168   : > { %8279 = vmatmul.mubr.msk.f32.gmra.mrb[10].mxu1 %vm6392_vm2, %v6377_v63  ;;  %v6379_v5 = vmax.f32 %v6353_v0, 0.0  ;;  %v10604_v63 = vstv %s7904_s18  ;;  %v1213_v0 = vmul.f32 0.5, %v1180_v58  ;;  %s10646_s18 = sld [smem:[#allocation10 + $0x7]]  ;;  %v10672_v58 = vstv %s10623_s25  ;;  %s10696_s25 = sld [smem:[#allocation8 + $0xd]] }
 0x169   : > { %v6378_v3 = vmax.f32 %v6348_v2, 0.0  ;;  %v8256_v4 = vpop.f32.mrb[14].mxu0  ;;  %14548 = vst [vmem:[#allocation32_spill] sm:$0xff] %v10604_v63  ;;  %14556 = vst [vmem:[#allocation40_spill] sm:$0xff] %v10672_v58 }
 0x16a   : > { %v6363_v6 = vadd.f32 %v8256_v4, %v7937_v26  ;;  %v6357_v7 = vpop.f32.mrb[15].mxu0  ;;  %v2750_v4 = vadd.f32 %v10602_v62, %v2716_v61 }
 0x16b   : > { %v6358_v8 = vadd.f32 %v7937_v26, %v6357_v7  ;;  %8281 = vmatprep.mubr.msk.f32.mxu1 %vm6392_vm2, %v6378_v3  ;;  %v687_v26 = vmul.f32 0.5, %v654_v18  ;;  %v2521_v3 = vmul.f32 0.5, %v2488_v60 }
 0x16c   : > { %8282 = vmatmul.mubr.msk.f32.gmra.mrb[12].mxu1 %vm6392_vm2, %v6379_v5  ;;  %v6381_v10 = vmax.f32 %v6363_v6, 0.0  ;;  %v2978_v5 = vmul.f32 %v10604_v63, %v10516_v11  ;;  %v2783_v14 = vmul.f32 0.5, %v2750_v4 }
 0x16d   : > { %v6380_v9 = vmax.f32 %v6358_v8, 0.0  ;;  %8633 = vtanh.f32 %v687_v26  ;;  %v10616_v8 = vstv %s10577_s23  ;;  %v10638_v26 = vstv %s10592_s30  ;;  %s10648_s23 = sld [smem:[#allocation10 + $0x8]]  ;;  %s10662_s30 = sld [smem:[#allocation10 + $0xb]] }
 0x16e   : > { %8635 = vtanh.f32 %v949_v27  ;;  %14549 = vst [vmem:[#allocation33_spill] sm:$0xff] %v10616_v8  ;;  %v3012_v15 = vadd.f32 %v10616_v8, %v2978_v5  ;;  %14552 = vst [vmem:[#allocation36_spill] sm:$0xff] %v10638_v26  ;;  %v3502_v52 = vmul.f32 %v10638_v26, %v10516_v11  ;;  %v10688_v5 = vstv %s10630_s3  ;;  %s10716_s3 = sld [smem:[#allocation8 + $0xe]] }
 0x16f   : > { %8284 = vmatprep.mubr.msk.f32.mxu1 %vm6392_vm2, %v6380_v9  ;;  %8637 = vtanh.f32 %v1211_v37  ;;  %v10619_v9 = vstv %s10579_s29  ;;  %s10653_s29 = sld [smem:[#allocation10 + $0x9]]  ;;  %14559 = vst [vmem:[#allocation43_spill] sm:$0xff] %v10688_v5 }
 0x170   : > { %8285 = vmatmul.mubr.msk.f32.gmra.mrb[14].mxu1 %vm6392_vm2, %v6381_v10  ;;  %8639 = vtanh.f32 %v1473_v40  ;;  %14550 = vst [vmem:[#allocation34_spill] sm:$0xff] %v10619_v9  ;;  %v3240_v22 = vmul.f32 %v10619_v9, %v10516_v11  ;;  %v3045_v37 = vmul.f32 0.5, %v3012_v15 }
 0x171   : > { %8641 = vtanh.f32 %v689_v43  ;;  %v10659_v43 = vstv %s10610_s4  ;;  %s10679_s4 = sld [smem:[#allocation10 + $0xc]] }
 0x172   : > { %8643 = vtanh.f32 %v1735_v47  ;;  %14555 = vst [vmem:[#allocation39_spill] sm:$0xff] %v10659_v43 }
 0x173   : > { %8645 = vtanh.f32 %v951_v46  ;;  %v3274_v46 = vadd.f32 %v10635_v25, %v3240_v22 }
 0x174   : > { %8647 = vtanh.f32 %v1997_v53 }
 0x175   : > { %8649 = vtanh.f32 %v2259_v59  ;;  %v10675_v59 = vstv %s10625_s5  ;;  %s10704_s5 = sld [smem:[#allocation10 + $0xd]] }
 0x176   : > { %8651 = vtanh.f32 %v1213_v0  ;;  %14557 = vst [vmem:[#allocation41_spill] sm:$0xff] %v10675_v59 }
 0x177   : > { %v8634_v2 = vpop.eup %8633  ;;  %8653 = vtanh.f32 %v2521_v3 }
 0x178   : > { %v8636_v6 = vpop.eup %8635  ;;  %v751_v7 = vmul.f32 0.5, %v8634_v2  ;;  %8655 = vtanh.f32 %v2783_v14  ;;  %v10683_v2 = vstv %s10628_s19  ;;  %s10706_s19 = sld [smem:[#allocation7 + $0xe]] }
 0x179   : > { %v1013_v10 = vmul.f32 0.5, %v8636_v6  ;;  %v8638_v18 = vpop.eup %8637  ;;  %8657 = vtanh.f32 %v3045_v37  ;;  %14558 = vst [vmem:[#allocation42_spill] sm:$0xff] %v10683_v2  ;;  %v10691_v6 = vstv %s10646_s18  ;;  %s10718_s18 = sld [smem:[#allocation10 + $0xe]] }
 0x17a   : > { %v783_v19 = vadd.f32 0.5, %v751_v7  ;;  %v8640_v27 = vpop.eup %8639  ;;  %v1275_v33 = vmul.f32 0.5, %v8638_v18  ;;  %14560 = vst [vmem:[#allocation44_spill] sm:$0xff] %v10691_v6  ;;  %v10694_v7 = vstv %s10648_s23  ;;  %s10731_s23 = sld [smem:[#allocation8 + $0xf]] }
 0x17b   : > { %v1045_v29 = vadd.f32 0.5, %v1013_v10  ;;  %v10650_v34 = vpop.eup %8641  ;;  %v1537_v36 = vmul.f32 0.5, %v8640_v27  ;;  %14561 = vst [vmem:[#allocation45_spill] sm:$0xff] %v10694_v7 }
 0x17c   : > { %v816_v35 = vmul.f32 %v10641_v28, %v783_v19  ;;  %v8644_v40 = vpop.eup %8643  ;;  %v1307_v42 = vadd.f32 0.5, %v1275_v33  ;;  %v10702_v19 = vstv %s10653_s29  ;;  %v10709_v33 = vstv %s10655_s24  ;;  %s10733_s29 = sld [smem:[#allocation10 + $0xf]]  ;;  %s10741_s24 = sld [smem:[#allocation7 + $0x10]] }
 0x17d   : > { %v1078_v41 = vmul.f32 %v10644_v30, %v1045_v29  ;;  %v10666_v47 = vpop.eup %8645  ;;  %v1569_v48 = vadd.f32 0.5, %v1537_v36  ;;  %v1799_v49 = vmul.f32 0.5, %v8644_v40  ;;  %14562 = vst [vmem:[#allocation46_spill] sm:$0xff] %v10702_v19  ;;  %v3307_v29 = vmul.f32 0.5, %v3274_v46  ;;  %14563 = vst [vmem:[#allocation47_spill] sm:$0xff] %v10709_v33 }
 0x17e   : > { %v8648_v53 = vpop.eup %8647  ;;  %v1340_v55 = vmul.f32 %v10659_v43, %v1307_v42  ;;  %v10724_v46 = vstv %s10664_s17  ;;  %s10750_s17 = sld [smem:[#allocation10 + $0x10]] }
 0x17f   : > { %v1110_v54 = vadd.f32 %v1078_v41, %v816_v35  ;;  %v1602_v60 = vmul.f32 %v10672_v58, %v1569_v48  ;;  %v1831_v61 = vadd.f32 0.5, %v1799_v49  ;;  %v2061_v0 = vmul.f32 0.5, %v8648_v53  ;;  %v8650_v3 = vpop.eup %8649  ;;  %14566 = vst [vmem:[#allocation50_spill] sm:$0xff] %v10724_v46 }
 0x180   : > { %v10698_v10 = vpop.eup %8651  ;;  %v2323_v18 = vmul.f32 0.5, %v8650_v3  ;;  %v10712_v35 = vstv %s10621_s20  ;;  %8659 = vtanh.f32 %v3307_v29  ;;  %v10721_v48 = vstv %s10662_s30  ;;  %s10726_s20 = sld [smem:[#allocation7 + $0xf]]  ;;  %s10743_s30 = sld [smem:[#allocation8 + $0x10]] }
 0x181   : > { %v1372_v4 = vadd.f32 %v1340_v55, %v1110_v54  ;;  %v1864_v14 = vmul.f32 %v10675_v59, %v1831_v61  ;;  %v2093_v15 = vadd.f32 0.5, %v2061_v0  ;;  %v8654_v22 = vpop.eup %8653  ;;  %14564 = vst [vmem:[#allocation48_spill] sm:$0xff] %v10712_v35  ;;  %v3536_v41 = vadd.f32 %v10712_v35, %v3502_v52  ;;  %14565 = vst [vmem:[#allocation49_spill] sm:$0xff] %v10721_v48 }
 0x182   : > { %v2355_v37 = vadd.f32 0.5, %v2323_v18  ;;  %v2585_v40 = vmul.f32 0.5, %v8654_v22  ;;  %v8656_v49 = vpop.eup %8655  ;;  %v3764_v55 = vmul.f32 %v10724_v46, %v10516_v11  ;;  %v10736_v0 = vstv %s10677_s15  ;;  %s10752_s15 = sld [smem:[#allocation7 + $0x11]] }
 0x183   : > { %v1634_v27 = vadd.f32 %v1602_v60, %v1372_v4  ;;  %v2126_v36 = vmul.f32 %v10683_v2, %v2093_v15  ;;  %v3569_v52 = vmul.f32 0.5, %v3536_v41  ;;  %v2847_v61 = vmul.f32 0.5, %v8656_v49  ;;  %14567 = vst [vmem:[#allocation51_spill] sm:$0xff] %v10736_v0  ;;  %v8658_v4 = vpop.eup %8657 }
 0x184   : > { %v2388_v53 = vmul.f32 %v10688_v5, %v2355_v37  ;;  %v2617_v54 = vadd.f32 0.5, %v2585_v40  ;;  %v10739_v3 = vstv %s10679_s4  ;;  %v3798_v15 = vadd.f32 %v10736_v0, %v3764_v55  ;;  %s10756_s4 = sld [smem:[#allocation8 + $0x11]] }
 0x185   : > { %v1896_v42 = vadd.f32 %v1864_v14, %v1634_v27  ;;  %14568 = vst [vmem:[#allocation52_spill] sm:$0xff] %v10739_v3  ;;  %8661 = vtanh.f32 %v3569_v52  ;;  %v10748_v18 = vstv %s10685_s1  ;;  %v2879_v27 = vadd.f32 0.5, %v2847_v61  ;;  %s10771_s1 = sld [smem:[#allocation7 + $0x12]] }
 0x186   : > { %v2650_v14 = vmul.f32 %v10691_v6, %v2617_v54  ;;  %14569 = vst [vmem:[#allocation53_spill] sm:$0xff] %v10748_v18  ;;  %v3109_v29 = vmul.f32 0.5, %v8658_v4  ;;  %v3831_v37 = vmul.f32 0.5, %v3798_v15  ;;  %v10761_v40 = vstv %s10696_s25  ;;  %s10787_s25 = sld [smem:[#allocation10 + $0x12]] }
 0x187   : > { %v2158_v60 = vadd.f32 %v2126_v36, %v1896_v42  ;;  %v4026_v36 = vmul.f32 %v10748_v18, %v10516_v11  ;;  %14570 = vst [vmem:[#allocation54_spill] sm:$0xff] %v10761_v40  ;;  %v10764_v41 = vstv %s10704_s5  ;;  %v10767_v42 = vstv %s10706_s19  ;;  %s10789_s5 = sld [smem:[#allocation7 + $0x13]] }
 0x188   : > { %14571 = vst [vmem:[#allocation55_spill] sm:$0xff] %v10764_v41  ;;  %14572 = vst [vmem:[#allocation56_spill] sm:$0xff] %v10767_v42  ;;  %v3141_v54 = vadd.f32 0.5, %v3109_v29  ;;  %8663 = vtanh.f32 %v3831_v37  ;;  %v4288_v55 = vmul.f32 %v10767_v42, %v10516_v11  ;;  %v10781_v61 = vstv %s10718_s18  ;;  %s10806_s19 = sld [smem:[#allocation8 + $0x13]]  ;;  %s10813_s18 = sld [smem:[#allocation2]] }
 0x189   : > { %v2420_v22 = vadd.f32 %v2388_v53, %v2158_v60  ;;  %v2912_v53 = vmul.f32 %v10694_v7, %v2879_v27  ;;  %v4060_v52 = vadd.f32 %v10761_v40, %v4026_v36  ;;  %v10778_v60 = vstv %s10716_s3  ;;  %14574 = vst [vmem:[#allocation58_spill] sm:$0xff] %v10781_v61  ;;  %s10811_s3 = sld [smem:[#allocation10 + $0x13]] }
 0x18a   : > { %14573 = vst [vmem:[#allocation57_spill] sm:$0xff] %v10778_v60  ;;  %v4322_v27 = vadd.f32 %v10778_v60, %v4288_v55  ;;  %v10795_v36 = vstv %s10731_s23  ;;  %v10798_v37 = vstv %s10733_s29  ;;  %v10834_v7 = vstv %s10773_s6 }
 0x18b   : > { %v2682_v49 = vadd.f32 %v2650_v14, %v2420_v22  ;;  %v3174_v14 = vmul.f32 %v10702_v19, %v3141_v54  ;;  %v4093_v15 = vmul.f32 0.5, %v4060_v52  ;;  %v10785_v22 = vstv %s10726_s20  ;;  %14576 = vst [vmem:[#allocation60_spill] sm:$0xff] %v10795_v36  ;;  %14577 = vst [vmem:[#allocation61_spill] sm:$0xff] %v10798_v37 }
 0x18c   : > { %14575 = vst [vmem:[#allocation59_spill] sm:$0xff] %v10785_v22  ;;  %v4550_v29 = vmul.f32 %v10785_v22, %v10516_v11  ;;  %v10801_v54 = vstv %s10741_s24  ;;  %v10804_v52 = vstv %s10743_s30  ;;  %v4355_v23 = vmul.f32 0.5, %v4322_v27  ;;  %14585 = vst [vmem:[#allocation69_spill] sm:$0xff] %v10834_v7 }
 0x18d   : > { %v2944_v4 = vadd.f32 %v2912_v53, %v2682_v49  ;;  %v8660_v49 = vpop.eup %8659  ;;  %8665 = vtanh.f32 %v4093_v15  ;;  %14578 = vst [vmem:[#allocation62_spill] sm:$0xff] %v10801_v54  ;;  %14579 = vst [vmem:[#allocation63_spill] sm:$0xff] %v10804_v52  ;;  %v4812_v24 = vmul.f32 %v10801_v54, %v10516_v11  ;;  %v10822_v15 = vstv %s10756_s4 }
 0x18e   : > { %v3371_v55 = vmul.f32 0.5, %v8660_v49  ;;  %v4584_v17 = vadd.f32 %v10795_v36, %v4550_v29  ;;  %14582 = vst [vmem:[#allocation66_spill] sm:$0xff] %v10822_v15  ;;  %8667 = vtanh.f32 %v4355_v23  ;;  %v10831_v12 = vstv %s10771_s1 }
 0x18f   : > { %v3206_v53 = vadd.f32 %v3174_v14, %v2944_v4  ;;  %v10816_v4 = vstv %s10750_s17  ;;  %v10819_v14 = vstv %s10752_s15  ;;  %v8662_v27 = vpop.eup %8661  ;;  %v4846_v13 = vadd.f32 %v10804_v52, %v4812_v24  ;;  %14584 = vst [vmem:[#allocation68_spill] sm:$0xff] %v10831_v12 }
 0x190   : > { %14580 = vst [vmem:[#allocation64_spill] sm:$0xff] %v10816_v4  ;;  %14581 = vst [vmem:[#allocation65_spill] sm:$0xff] %v10819_v14  ;;  %v3403_v29 = vadd.f32 0.5, %v3371_v55  ;;  %v4617_v49 = vmul.f32 0.5, %v4584_v17  ;;  %v3633_v16 = vmul.f32 0.5, %v8662_v27  ;;  %v5074_v19 = vmul.f32 %v10819_v14, %v10516_v11 }
 0x191   : > { %v4879_v5 = vmul.f32 0.5, %v4846_v13  ;;  %v5336_v55 = vmul.f32 %v10831_v12, %v10516_v11  ;;  %v10841_v24 = vstv %s10787_s25  ;;  %v10844_v27 = vstv %s10789_s5 }
 0x192   : > { %v3436_v6 = vmul.f32 %v10709_v33, %v3403_v29  ;;  %8669 = vtanh.f32 %v4617_v49  ;;  %v3665_v17 = vadd.f32 0.5, %v3633_v16  ;;  %v5108_v23 = vadd.f32 %v10822_v15, %v5074_v19  ;;  %14586 = vst [vmem:[#allocation70_spill] sm:$0xff] %v10841_v24  ;;  %14587 = vst [vmem:[#allocation71_spill] sm:$0xff] %v10844_v27  ;;  %v8664_v14 = vpop.eup %8663 }
 0x193   : > { %8671 = vtanh.f32 %v4879_v5  ;;  %v5370_v29 = vadd.f32 %v10834_v7, %v5336_v55  ;;  %v5598_v13 = vmul.f32 %v10844_v27, %v10516_v11  ;;  %v3895_v33 = vmul.f32 0.5, %v8664_v14 }
 0x194   : > { %v3468_v52 = vadd.f32 %v3436_v6, %v3206_v53  ;;  %v3698_v49 = vmul.f32 %v10721_v48, %v3665_v17  ;;  %v5141_v12 = vmul.f32 0.5, %v5108_v23  ;;  %v10851_v16 = vstv %s10806_s19  ;;  %s15362_s19 = sadd.s32 4294967295, %s10158_s28  }
 0x195   : > { %14588 = vst [vmem:[#allocation72_spill] sm:$0xff] %v10851_v16  ;;  %v5403_v36 = vmul.f32 0.5, %v5370_v29  ;;  %v5632_v19 = vadd.f32 %v10851_v16, %v5598_v13  ;;  %v10855_v15 = vstv %s10811_s3  ;;  %v10858_v2 = vstv %s10813_s18  ;;  %s7878_s3 = sshll.u32 %s15362_s19, 5 }
 0x196   : > { %14589 = vst [vmem:[#allocation73_spill] sm:$0xff] %v10855_v15  ;;  %14590 = vst [vmem:[#allocation74_spill] sm:$0xff] %v10858_v2  ;;  %v3730_v5 = vadd.f32 %v3698_v49, %v3468_v52  ;;  %v3927_v53 = vadd.f32 0.5, %v3895_v33  ;;  %8673 = vtanh.f32 %v5141_v12  ;;  %v753_v55 = vmul.f32 0.5, %v10650_v34  ;;  %p581_p7 = scmp.lt.s32.totalorder %s7878_s3, 63 }
 0x197   : > { %v8666_v6 = vpop.eup %8665  ;;  %8675 = vtanh.f32 %v5403_v36  ;;  %v5665_v17 = vmul.f32 0.5, %v5632_v19  ;;  %v1015_v14 = vmul.f32 0.5, %v10666_v47  ;;  %v1277_v13 = vmul.f32 0.5, %v10698_v10 }
 0x198   : > { %v4157_v11 = vmul.f32 0.5, %v8666_v6  ;;  %v3960_v23 = vmul.f32 %v10739_v3, %v3927_v53  ;;  %v785_v29 = vadd.f32 0.5, %v753_v55  ;;  %v1442_v48 = vadd.f32 %v10550_v31, %v10608_v1  ;;  %v8668_v16 = vpop.eup %8667  ;;  %s15368_s3 = smov (!%p581_p7, %s7878_s3), 63 }
 0x199   : > { %8677 = vtanh.f32 %v5665_v17  ;;  %v1047_v33 = vadd.f32 0.5, %v1015_v14  ;;  %v1670_v12 = vmul.f32 %v10552_v32, %v10535_v21  ;;  %v4419_v36 = vmul.f32 0.5, %v8668_v16  ;;  %s7879_s18 = sshll.u32 %s15368_s3, 3 }
 0x19a   : > { %v4189_v27 = vadd.f32 0.5, %v4157_v11  ;;  %v3992_v34 = vadd.f32 %v3960_v23, %v3730_v5  ;;  %v818_v52 = vmul.f32 %v10641_v28, %v785_v29  ;;  %v1309_v47 = vadd.f32 0.5, %v1277_v13 }
 0x19b   : > { %v1080_v10 = vmul.f32 %v10644_v30, %v1047_v33  ;;  %v1475_v6 = vmul.f32 0.5, %v1442_v48  ;;  %v1704_v1 = vadd.f32 %v10559_v38, %v1670_v12  ;;  %v4451_v53 = vadd.f32 0.5, %v4419_v36 }
 0x19c   : > { %v8670_v49 = vpop.eup %8669  ;;  %v4222_v19 = vmul.f32 %v10764_v41, %v4189_v27  ;;  %v1342_v11 = vmul.f32 %v10659_v43, %v1309_v47  ;;  %v1932_v17 = vmul.f32 %v10561_v39, %v10535_v21  ;;  %v2194_v12 = vmul.f32 %v10568_v45, %v10535_v21 }
 0x19d   : > { %v4681_v55 = vmul.f32 0.5, %v8670_v49  ;;  %v8672_v5 = vpop.eup %8671  ;;  %v1112_v14 = vadd.f32 %v1080_v10, %v818_v52  ;;  %8679 = vtanh.f32 %v1475_v6  ;;  %v1737_v23 = vmul.f32 0.5, %v1704_v1 }
 0x19e   : > { %v4254_v16 = vadd.f32 %v4222_v19, %v3992_v34  ;;  %v4484_v29 = vmul.f32 %v10781_v61, %v4451_v53  ;;  %v4943_v13 = vmul.f32 0.5, %v8672_v5  ;;  %v1966_v48 = vadd.f32 %v10566_v44, %v1932_v17 }
 0x19f   : > { %v4713_v27 = vadd.f32 0.5, %v4681_v55  ;;  %v10877_v33 = vadd.f32 %v1342_v11, %v1112_v14  ;;  %8681 = vtanh.f32 %v1737_v23  ;;  %v2456_v36 = vmul.f32 %v10575_v51, %v10535_v21 }
 0x1a0   : > { %v8674_v47 = vpop.eup %8673  ;;  %v4516_v34 = vadd.f32 %v4484_v29, %v4254_v16  ;;  %v4975_v49 = vadd.f32 0.5, %v4943_v13  ;;  %v1999_v19 = vmul.f32 0.5, %v1966_v48  ;;  %v2228_v1 = vadd.f32 %v10573_v50, %v2194_v12 }
 0x1a1   : > { %v4746_v52 = vmul.f32 %v10798_v37, %v4713_v27  ;;  %v8676_v10 = vpop.eup %8675  ;;  %v5205_v6 = vmul.f32 0.5, %v8674_v47  ;;  %v2490_v53 = vadd.f32 %v10586_v56, %v2456_v36  ;;  %v2718_v55 = vmul.f32 %v10588_v57, %v10535_v21 }
 0x1a2   : > { %v5008_v17 = vmul.f32 %v10816_v4, %v4975_v49  ;;  %v5467_v5 = vmul.f32 0.5, %v8676_v10  ;;  %8683 = vtanh.f32 %v1999_v19  ;;  %v2261_v23 = vmul.f32 0.5, %v2228_v1 }
 0x1a3   : > { %v4778_v11 = vadd.f32 %v4746_v52, %v4516_v34  ;;  %v8678_v14 = vpop.eup %8677  ;;  %v5237_v16 = vadd.f32 0.5, %v5205_v6  ;;  %v2523_v29 = vmul.f32 0.5, %v2490_v53  ;;  %v2752_v27 = vadd.f32 %v10602_v62, %v2718_v55 }
 0x1a4   : > { %v5499_v48 = vadd.f32 0.5, %v5467_v5  ;;  %v5729_v47 = vmul.f32 0.5, %v8678_v14  ;;  %v2980_v12 = vmul.f32 %v10604_v63, %v10535_v21  ;;  %8685 = vtanh.f32 %v2261_v23 }
 0x1a5   : > { %v5040_v13 = vadd.f32 %v5008_v17, %v4778_v11  ;;  %v5270_v36 = vmul.f32 %v10825_v20, %v5237_v16  ;;  %v2785_v34 = vmul.f32 0.5, %v2752_v27  ;;  %v3242_v52 = vmul.f32 %v10619_v9, %v10535_v21 }
 0x1a6   : > { %v5532_v49 = vmul.f32 %v10841_v24, %v5499_v48  ;;  %v5761_v19 = vadd.f32 0.5, %v5729_v47  ;;  %8687 = vtanh.f32 %v2523_v29  ;;  %v3014_v10 = vadd.f32 %v10616_v8, %v2980_v12 }
 0x1a7   : > { %v8680_v6 = vpop.eup %8679  ;;  %v5302_v1 = vadd.f32 %v5270_v36, %v5040_v13  ;;  %8689 = vtanh.f32 %v2785_v34  ;;  %v3276_v53 = vadd.f32 %v10635_v25, %v3242_v52  ;;  %v3504_v55 = vmul.f32 %v10638_v26, %v10535_v21 }
 0x1a8   : > { %v5794_v11 = vmul.f32 %v10855_v15, %v5761_v19  ;;  %v1539_v17 = vmul.f32 0.5, %v8680_v6  ;;  %v3047_v5 = vmul.f32 0.5, %v3014_v10  ;;  %v3766_v14 = vmul.f32 %v10724_v46, %v10535_v21 }
 0x1a9   : > { %v8682_v16 = vpop.eup %8681  ;;  %v5564_v23 = vadd.f32 %v5532_v49, %v5302_v1  ;;  %v3309_v29 = vmul.f32 0.5, %v3276_v53  ;;  %v3538_v27 = vadd.f32 %v10712_v35, %v3504_v55  ;;  %v4028_v13 = vmul.f32 %v10748_v18, %v10535_v21 }
 0x1aa   : > { %v1571_v48 = vadd.f32 0.5, %v1539_v17  ;;  %v1801_v47 = vmul.f32 0.5, %v8682_v16  ;;  %8691 = vtanh.f32 %v3047_v5  ;;  %v3800_v12 = vadd.f32 %v10736_v0, %v3766_v14 }
 0x1ab   : > { %v5826_v36 = vadd.f32 %v5794_v11, %v5564_v23  ;;  %8693 = vtanh.f32 %v3309_v29  ;;  %v3571_v34 = vmul.f32 0.5, %v3538_v27  ;;  %v4062_v52 = vadd.f32 %v10761_v40, %v4028_v13 }
 0x1ac   : > { %v8684_v19 = vpop.eup %8683  ;;  %v1604_v10 = vmul.f32 %v10672_v58, %v1571_v48  ;;  %v1833_v49 = vadd.f32 0.5, %v1801_v47  ;;  %v3833_v6 = vmul.f32 0.5, %v3800_v12  ;;  %v4290_v1 = vmul.f32 %v10767_v42, %v10535_v21 }
 0x1ad   : > { %v5860_v53 = vadd.f32 %v10858_v2, %v5826_v36  ;;  %v2063_v55 = vmul.f32 0.5, %v8684_v19  ;;  %8695 = vtanh.f32 %v3571_v34  ;;  %v4095_v17 = vmul.f32 0.5, %v4062_v52  ;;  %v14591_v34 = vld [vmem:[#allocation42_spill] sm:$0xff] }
 0x1ae   : > { %v1636_v5 = vadd.f32 %v1604_v10, %v10877_v33  ;;  %v1866_v11 = vmul.f32 %v10675_v59, %v1833_v49  ;;  %8697 = vtanh.f32 %v3833_v6  ;;  %v4324_v14 = vadd.f32 %v10778_v60, %v4290_v1  ;;  %v8686_v16 = vpop.eup %8685  ;;  %v14592_v10 = vld [vmem:[#allocation60_spill] sm:$0xff]  ;;  %v14606_v59 = vld [vmem:[#allocation49_spill] sm:$0xff] }
 0x1af   : > { %v5892_v23 = vmul.f32 0.5, %v5860_v53  ;;  %v2095_v29 = vadd.f32 0.5, %v2063_v55  ;;  %8699 = vtanh.f32 %v4095_v17  ;;  %v4552_v27 = vmul.f32 %v10785_v22, %v10535_v21  ;;  %v14593_v53 = vld [vmem:[#allocation63_spill] sm:$0xff] }
 0x1b0   : > { %v8688_v13 = vpop.eup %8687  ;;  %v1898_v48 = vadd.f32 %v1866_v11, %v1636_v5  ;;  %v2325_v47 = vmul.f32 0.5, %v8686_v16  ;;  %v4357_v12 = vmul.f32 0.5, %v4324_v14  ;;  %v4814_v36 = vmul.f32 %v10801_v54, %v10535_v21  ;;  %v14594_v14 = vld [vmem:[#allocation65_spill] sm:$0xff]  ;;  %v14595_v54 = vld [vmem:[#allocation43_spill] sm:$0xff] }
 0x1b1   : > { %v8690_v33 = vpop.eup %8689  ;;  %8701 = vtanh.f32 %v5892_v23  ;;  %v2128_v52 = vmul.f32 %v14591_v34, %v2095_v29  ;;  %v2587_v19 = vmul.f32 0.5, %v8688_v13  ;;  %v4586_v49 = vadd.f32 %v14592_v10, %v4552_v27  ;;  %v14596_v13 = vld [vmem:[#allocation68_spill] sm:$0xff] }
 0x1b2   : > { %v2357_v6 = vadd.f32 0.5, %v2325_v47  ;;  %v2849_v1 = vmul.f32 0.5, %v8690_v33  ;;  %8703 = vtanh.f32 %v4357_v12  ;;  %v4848_v55 = vadd.f32 %v14593_v53, %v4814_v36  ;;  %v14597_v33 = vld [vmem:[#allocation44_spill] sm:$0xff]  ;;  %v14598_v36 = vld [vmem:[#allocation66_spill] sm:$0xff] }
 0x1b3   : > { %v2160_v17 = vadd.f32 %v2128_v52, %v1898_v48  ;;  %v2619_v5 = vadd.f32 0.5, %v2587_v19  ;;  %v4619_v11 = vmul.f32 0.5, %v4586_v49  ;;  %v5076_v16 = vmul.f32 %v14594_v14, %v10535_v21  ;;  %v10930_v52 = vld [vmem:[%s10393_s0 + $0x8] sm:$0xff]  ;;  %v14599_v49 = vld [vmem:[#allocation45_spill] sm:$0xff] }
 0x1b4   : > { %v8692_v60 = vpop.eup %8691  ;;  %v2390_v23 = vmul.f32 %v14595_v54, %v2357_v6  ;;  %v2881_v22 = vadd.f32 0.5, %v2849_v1  ;;  %v4881_v29 = vmul.f32 0.5, %v4848_v55  ;;  %v5338_v27 = vmul.f32 %v14596_v13, %v10535_v21  ;;  %v14600_v13 = vld [vmem:[#allocation71_spill] sm:$0xff] }
 0x1b5   : > { %v8694_v47 = vpop.eup %8693  ;;  %v2652_v12 = vmul.f32 %v14597_v33, %v2619_v5  ;;  %v3111_v10 = vmul.f32 0.5, %v8692_v60  ;;  %8705 = vtanh.f32 %v4619_v11  ;;  %v5110_v48 = vadd.f32 %v14598_v36, %v5076_v16  ;;  %v14601_v16 = vld [vmem:[#allocation14_spill] sm:$0xff] }
 0x1b6   : > { %v2422_v19 = vadd.f32 %v2390_v23, %v2160_v17  ;;  %v2914_v14 = vmul.f32 %v14599_v49, %v2881_v22  ;;  %v3373_v53 = vmul.f32 0.5, %v8694_v47  ;;  %8707 = vtanh.f32 %v4881_v29  ;;  %v14602_v23 = vld [vmem:[#allocation46_spill] sm:$0xff] }
 0x1b7   : > { %v8696_v6 = vpop.eup %8695  ;;  %v3143_v1 = vadd.f32 0.5, %v3111_v10  ;;  %v5143_v55 = vmul.f32 0.5, %v5110_v48  ;;  %v5372_v42 = vadd.f32 %v10834_v7, %v5338_v27  ;;  %v5600_v54 = vmul.f32 %v14600_v13, %v10535_v21  ;;  %v14603_v48 = vld [vmem:[#allocation47_spill] sm:$0xff] }
 0x1b8   : > { %v8698_v5 = vpop.eup %8697  ;;  %v2684_v60 = vadd.f32 %v2652_v12, %v2422_v19  ;;  %v3405_v11 = vadd.f32 0.5, %v3373_v53  ;;  %v3635_v33 = vmul.f32 0.5, %v8696_v6  ;;  %v621_v36 = vmul.f32 %v14601_v16, %v10930_v52  ;;  %v14604_v12 = vld [vmem:[#allocation72_spill] sm:$0xff] }
 0x1b9   : > { %v8700_v17 = vpop.eup %8699  ;;  %v3176_v22 = vmul.f32 %v14602_v23, %v3143_v1  ;;  %v3897_v47 = vmul.f32 0.5, %v8698_v5  ;;  %8709 = vtanh.f32 %v5143_v55  ;;  %v5405_v29 = vmul.f32 0.5, %v5372_v42  ;;  %v14605_v19 = vld [vmem:[#allocation16_spill] sm:$0xff] }
 0x1ba   : > { %v2946_v10 = vadd.f32 %v2914_v14, %v2684_v60  ;;  %v3438_v49 = vmul.f32 %v14603_v48, %v3405_v11  ;;  %v3667_v27 = vadd.f32 0.5, %v3635_v33  ;;  %v4159_v7 = vmul.f32 0.5, %v8700_v17 }
 0x1bb   : > { %v8702_v40 = vpop.eup %8701  ;;  %v3929_v21 = vadd.f32 0.5, %v3897_v47  ;;  %8711 = vtanh.f32 %v5405_v29  ;;  %v5634_v53 = vadd.f32 %v14604_v12, %v5600_v54  ;;  %v655_v6 = vadd.f32 %v14605_v19, %v621_v36  ;;  %v14608_v54 = vld [vmem:[#allocation15_spill] sm:$0xff] }
 0x1bc   : > { %v8704_v13 = vpop.eup %8703  ;;  %v5956_v16 = vmul.f32 0.5, %v8702_v40  ;;  %v3208_v34 = vadd.f32 %v3176_v22, %v2946_v10  ;;  %v3700_v1 = vmul.f32 %v14606_v59, %v3667_v27  ;;  %v4191_v5 = vadd.f32 0.5, %v4159_v7  ;;  %v14609_v40 = vld [vmem:[#allocation18_spill] sm:$0xff]  ;;  %v14610_v7 = vld [vmem:[#allocation20_spill] sm:$0xff] }
 0x1bd   : > { %v3962_v42 = vmul.f32 %v10739_v3, %v3929_v21  ;;  %v4421_v14 = vmul.f32 0.5, %v8704_v13  ;;  %v5667_v55 = vmul.f32 0.5, %v5634_v53  ;;  %v688_v60 = vmul.f32 0.5, %v655_v6  ;;  %v14612_v6 = vld [vmem:[#allocation19_spill] sm:$0xff] }
 0x1be   : > { %v10944_v33 = vadd.f32 0.5, %v5956_v16  ;;  %v3470_v11 = vadd.f32 %v3438_v49, %v3208_v34  ;;  %v4224_v17 = vmul.f32 %v10764_v41, %v4191_v5  ;;  %v883_v47 = vmul.f32 %v14608_v54, %v10930_v52  ;;  %v14611_v34 = vld [vmem:[#allocation17_spill] sm:$0xff] }
 0x1bf   : > { %v8706_v36 = vpop.eup %8705  ;;  %v4453_v29 = vadd.f32 0.5, %v4421_v14  ;;  %8713 = vtanh.f32 %v5667_v55  ;;  %v1145_v22 = vmul.f32 %v14609_v40, %v10930_v52  ;;  %v1407_v10 = vmul.f32 %v14610_v7, %v10930_v52 }
 0x1c0   : > { %14607 = vst [vmem:[#allocation75_spill] sm:$0xff] %v10944_v33  ;;  %v8708_v13 = vpop.eup %8707  ;;  %6020 = vadd.xlane.f32.xlu0 %v10944_v33  ;;  %v3732_v16 = vadd.f32 %v3700_v1, %v3470_v11  ;;  %v4683_v27 = vmul.f32 0.5, %v8706_v36  ;;  %8715 = vtanh.f32 %v688_v60  ;;  %v917_v49 = vadd.f32 %v14611_v34, %v883_v47 }
 0x1c1   : > { %v4486_v21 = vmul.f32 %v10781_v61, %v4453_v29  ;;  %v4945_v53 = vmul.f32 0.5, %v8708_v13  ;;  %v1179_v5 = vadd.f32 %v14612_v6, %v1145_v22  ;;  %v1441_v14 = vadd.f32 %v10550_v31, %v1407_v10 }
 0x1c2   : > { %v3994_v55 = vadd.f32 %v3962_v42, %v3732_v16  ;;  %v4715_v40 = vadd.f32 0.5, %v4683_v27  ;;  %v950_v19 = vmul.f32 0.5, %v917_v49  ;;  %v1669_v7 = vmul.f32 %v10552_v32, %v10930_v52 }
 0x1c3   : > { %v8710_v54 = vpop.eup %8709  ;;  %v4977_v33 = vadd.f32 0.5, %v4945_v53  ;;  %v1212_v1 = vmul.f32 0.5, %v1179_v5  ;;  %v1474_v11 = vmul.f32 0.5, %v1441_v14  ;;  %v1931_v60 = vmul.f32 %v10561_v39, %v10930_v52 }
 0x1c4   : > { %v4256_v47 = vadd.f32 %v4224_v17, %v3994_v55  ;;  %v4748_v36 = vmul.f32 %v10798_v37, %v4715_v40  ;;  %v5207_v29 = vmul.f32 0.5, %v8710_v54  ;;  %8717 = vtanh.f32 %v950_v19 }
 0x1c5   : > { %v8712_v22 = vpop.eup %8711  ;;  %v5010_v42 = vmul.f32 %v10816_v4, %v4977_v33  ;;  %8719 = vtanh.f32 %v1212_v1  ;;  %v1703_v10 = vadd.f32 %v10559_v38, %v1669_v7  ;;  %v1965_v13 = vadd.f32 %v10566_v44, %v1931_v60 }
 0x1c6   : > { %v4518_v16 = vadd.f32 %v4486_v21, %v4256_v47  ;;  %v5239_v27 = vadd.f32 0.5, %v5207_v29  ;;  %v5469_v49 = vmul.f32 0.5, %v8712_v22  ;;  %8721 = vtanh.f32 %v1474_v11 }
 0x1c7   : > { %v1736_v53 = vmul.f32 0.5, %v1703_v10  ;;  %v1998_v5 = vmul.f32 0.5, %v1965_v13  ;;  %v2193_v17 = vmul.f32 %v10568_v45, %v10930_v52  ;;  %v2455_v19 = vmul.f32 %v10575_v51, %v10930_v52 }
 0x1c8   : > { %v4780_v54 = vadd.f32 %v4748_v36, %v4518_v16  ;;  %v5272_v33 = vmul.f32 %v10825_v20, %v5239_v27  ;;  %v5501_v40 = vadd.f32 0.5, %v5469_v49  ;;  %v2717_v7 = vmul.f32 %v10588_v57, %v10930_v52 }
 0x1c9   : > { %v8714_v14 = vpop.eup %8713  ;;  %8723 = vtanh.f32 %v1736_v53  ;;  %v2227_v21 = vadd.f32 %v10573_v50, %v2193_v17  ;;  %v2489_v55 = vadd.f32 %v10586_v56, %v2455_v19  ;;  %v2979_v1 = vmul.f32 %v10604_v63, %v10930_v52 }
 0x1ca   : > { %v8716_v11 = vpop.eup %8715  ;;  %v5042_v60 = vadd.f32 %v5010_v42, %v4780_v54  ;;  %v5534_v47 = vmul.f32 %v10841_v24, %v5501_v40  ;;  %v5731_v36 = vmul.f32 0.5, %v8714_v14  ;;  %8725 = vtanh.f32 %v1998_v5 }
 0x1cb   : > { %v752_v29 = vmul.f32 0.5, %v8716_v11  ;;  %v2260_v22 = vmul.f32 0.5, %v2227_v21  ;;  %v2522_v10 = vmul.f32 0.5, %v2489_v55  ;;  %v2751_v13 = vadd.f32 %v10602_v62, %v2717_v7 }
 0x1cc   : > { %v5304_v16 = vadd.f32 %v5272_v33, %v5042_v60  ;;  %v5763_v27 = vadd.f32 0.5, %v5731_v36  ;;  %v3013_v49 = vadd.f32 %v10616_v8, %v2979_v1  ;;  %v3241_v53 = vmul.f32 %v10619_v9, %v10930_v52 }
 0x1cd   : > { %v784_v17 = vadd.f32 0.5, %v752_v29  ;;  %8727 = vtanh.f32 %v2260_v22  ;;  %v2784_v19 = vmul.f32 0.5, %v2751_v13  ;;  %v3503_v42 = vmul.f32 %v10638_v26, %v10930_v52 }
 0x1ce   : > { %v8718_v54 = vpop.eup %8717  ;;  %v5566_v5 = vadd.f32 %v5534_v47, %v5304_v16  ;;  %v5796_v40 = vmul.f32 %v10855_v15, %v5763_v27  ;;  %8729 = vtanh.f32 %v2522_v10  ;;  %v3046_v14 = vmul.f32 0.5, %v3013_v49  ;;  %v10991_v47 = vld [vmem:[%s13987_s9] ss:$0 sm:$0xff] }
 0x1cf   : > { %v8720_v7 = vpop.eup %8719  ;;  %v817_v33 = vmul.f32 %v10641_v28, %v784_v17  ;;  %v1014_v21 = vmul.f32 0.5, %v8718_v54  ;;  %8731 = vtanh.f32 %v2784_v19  ;;  %v3275_v55 = vadd.f32 %v10635_v25, %v3241_v53 }
 0x1d0   : > { %v8722_v1 = vpop.eup %8721  ;;  %v5828_v11 = vadd.f32 %v5796_v40, %v5566_v5  ;;  %v1276_v60 = vmul.f32 0.5, %v8720_v7  ;;  %8733 = vtanh.f32 %v3046_v14  ;;  %v3537_v36 = vadd.f32 %v10712_v35, %v3503_v42 }
 0x1d1   : > { %v1046_v29 = vadd.f32 0.5, %v1014_v21  ;;  %v1538_v22 = vmul.f32 0.5, %v8722_v1  ;;  %v3308_v10 = vmul.f32 0.5, %v3275_v55  ;;  %v3765_v13 = vmul.f32 %v10724_v46, %v10930_v52 }
 0x1d2   : > { %v5862_v16 = vadd.f32 %v10858_v2, %v5828_v11  ;;  %v1308_v27 = vadd.f32 0.5, %v1276_v60  ;;  %v3570_v49 = vmul.f32 0.5, %v3537_v36  ;;  %v4027_v53 = vmul.f32 %v10748_v18, %v10930_v52 }
 0x1d3   : > { %v8724_v17 = vpop.eup %8723  ;;  %v1079_v42 = vmul.f32 %v10644_v30, %v1046_v29  ;;  %v1570_v54 = vadd.f32 0.5, %v1538_v22  ;;  %8735 = vtanh.f32 %v3308_v10  ;;  %v3799_v5 = vadd.f32 %v10736_v0, %v3765_v13 }
 0x1d4   : > { %v8726_v40 = vpop.eup %8725  ;;  %v5894_v21 = vmul.f32 0.5, %v5862_v16  ;;  %v1341_v55 = vmul.f32 %v10659_v43, %v1308_v27  ;;  %v1800_v1 = vmul.f32 0.5, %v8724_v17  ;;  %v14613_v43 = vld [vmem:[#allocation41_spill] sm:$0xff] }
 0x1d5   : > { %v1111_v60 = vadd.f32 %v1079_v42, %v817_v33  ;;  %v1603_v36 = vmul.f32 %v10672_v58, %v1570_v54  ;;  %v2062_v18 = vmul.f32 0.5, %v8726_v40  ;;  %v3832_v22 = vmul.f32 0.5, %v3799_v5  ;;  %v14614_v40 = vld [vmem:[#allocation42_spill] sm:$0xff] }
 0x1d6   : > { %8737 = vtanh.f32 %v5894_v21  ;;  %v1832_v29 = vadd.f32 0.5, %v1800_v1  ;;  %v14615_v1 = vld [vmem:[#allocation54_spill] sm:$0xff] }
 0x1d7   : > { %v8728_v10 = vpop.eup %8727  ;;  %v1373_v2 = vadd.f32 %v1341_v55, %v1111_v60  ;;  %8739 = vtanh.f32 %v3570_v49 }
 0x1d8   : > { %v8730_v16 = vpop.eup %8729  ;;  %v2324_v33 = vmul.f32 0.5, %v8728_v10  ;;  %8741 = vtanh.f32 %v3832_v22 }
 0x1d9   : > { %v8732_v42 = vpop.eup %8731  ;;  %v1635_v5 = vadd.f32 %v1603_v36, %v1373_v2  ;;  %v2586_v21 = vmul.f32 0.5, %v8730_v16  ;;  %v14616_v2 = vld [vmem:[#allocation43_spill] sm:$0xff] }
 0x1da   : > { %v8734_v55 = vpop.eup %8733  ;;  %v2356_v49 = vadd.f32 0.5, %v2324_v33  ;;  %v14617_v33 = vld [vmem:[#allocation44_spill] sm:$0xff] }
 0x1db   : > { %v2618_v10 = vadd.f32 0.5, %v2586_v21 }
 0x1dc   : > { %v2389_v36 = vmul.f32 %v14616_v2, %v2356_v49 }
 0x227   : > { %v8265_v19 = vpop.f32.mrb[0].mxu1 }
 0x228   : > { %v6517_v14 = vadd.f32 %v8265_v19, %v10991_v47  ;;  %v6511_v7 = vpop.f32.mrb[1].mxu1  ;;  %v2094_v19 = vadd.f32 0.5, %v2062_v18 }
 0x229   : > { %v6512_v11 = vadd.f32 %v10991_v47, %v6511_v7  ;;  %v1865_v7 = vmul.f32 %v14613_v43, %v1832_v29  ;;  %v3110_v43 = vmul.f32 0.5, %v8734_v55 }
 0x22a   : > { %v6591_v46 = vmax.f32 %v6517_v14, 0.0  ;;  %v2127_v14 = vmul.f32 %v14614_v40, %v2094_v19  ;;  %v8736_v40 = vpop.eup %8735 }
 0x22b   : > { %v6590_v13 = vmax.f32 %v6512_v11, 0.0  ;;  %v8268_v0 = vpop.f32.mrb[2].mxu1  ;;  %v4061_v11 = vadd.f32 %v14615_v1, %v4027_v53  ;;  %v1897_v22 = vadd.f32 %v1865_v7, %v1635_v5  ;;  %v2651_v53 = vmul.f32 %v14617_v33, %v2618_v10  ;;  %v14618_v7 = vld [vmem:[#allocation45_spill] sm:$0xff]  ;;  %v14620_v10 = vld [vmem:[#allocation59_spill] sm:$0xff]  ;;  %v14623_v33 = vld [vmem:[#allocation60_spill] sm:$0xff] }
 0x22c   : > { %v6527_v27 = vadd.f32 %v8268_v0, %v10991_v47  ;;  %v6521_v17 = vpop.f32.mrb[3].mxu1  ;;  %v2848_v0 = vmul.f32 0.5, %v8732_v42  ;;  %v3142_v42 = vadd.f32 0.5, %v3110_v43  ;;  %v3372_v21 = vmul.f32 0.5, %v8736_v40 }
 0x22d   : > { %v6522_v54 = vadd.f32 %v10991_v47, %v6521_v17  ;;  %8293 = vmatprep.mubr.msk.f32.mxu0 %vm6392_vm2, %v6590_v13  ;;  %v4094_v16 = vmul.f32 0.5, %v4061_v11 }
 0x22e   : > { %v6593_v18 = vmax.f32 %v6527_v27, 0.0  ;;  %8294 = vmatmul.mubr.msk.f32.vlgmr.msra.gmra.mrb[16].mxu0 %vm6392_vm2, %v6591_v46  ;;  %v2880_v19 = vadd.f32 0.5, %v2848_v0  ;;  %v2159_v46 = vadd.f32 %v2127_v14, %v1897_v22  ;;  %v3175_v11 = vmul.f32 %v14602_v23, %v3142_v42 }
 0x22f   : > { %v6592_v60 = vmax.f32 %v6522_v54, 0.0  ;;  %v8271_v29 = vpop.f32.mrb[4].mxu1  ;;  %8743 = vtanh.f32 %v4094_v16  ;;  %v3404_v43 = vadd.f32 0.5, %v3372_v21 }
 0x230   : > { %v6537_v17 = vadd.f32 %v8271_v29, %v10991_v47  ;;  %v6531_v13 = vpop.f32.mrb[5].mxu1  ;;  %v2913_v5 = vmul.f32 %v14618_v7, %v2880_v19  ;;  %v2421_v0 = vadd.f32 %v2389_v36, %v2159_v46  ;;  %v14619_v29 = vld [vmem:[#allocation56_spill] sm:$0xff]  ;;  %v14622_v46 = vld [vmem:[#allocation57_spill] sm:$0xff] }
 0x231   : > { %v6532_v27 = vadd.f32 %v10991_v47, %v6531_v13  ;;  %8296 = vmatprep.mubr.msk.f32.mxu0 %vm6392_vm2, %v6592_v60  ;;  %v4289_v13 = vmul.f32 %v14619_v29, %v10930_v52  ;;  %v8738_v60 = vpop.eup %8737  ;;  %v3437_v21 = vmul.f32 %v14603_v48, %v3404_v43 }
 0x232   : > { %v6595_v54 = vmax.f32 %v6537_v17, 0.0  ;;  %8297 = vmatmul.mubr.msk.f32.gmra.mrb[18].mxu0 %vm6392_vm2, %v6593_v18  ;;  %v4551_v18 = vmul.f32 %v14620_v10, %v10930_v52  ;;  %v14621_v17 = vld [vmem:[#allocation62_spill] sm:$0xff]  ;;  %v8740_v19 = vpop.eup %8739  ;;  %v5958_v36 = vmul.f32 0.5, %v8738_v60 }
 0x233   : > { %v6594_v55 = vmax.f32 %v6532_v27, 0.0  ;;  %v8274_v49 = vpop.f32.mrb[6].mxu1  ;;  %v4813_v40 = vmul.f32 %v14621_v17, %v10930_v52  ;;  %v2683_v27 = vadd.f32 %v2651_v53, %v2421_v0  ;;  %v4323_v42 = vadd.f32 %v14622_v46, %v4289_v13  ;;  %v8742_v23 = vpop.eup %8741 }
 0x234   : > { %v6547_v14 = vadd.f32 %v8274_v49, %v10991_v47  ;;  %v6541_v22 = vpop.f32.mrb[7].mxu1  ;;  %v3634_v49 = vmul.f32 0.5, %v8740_v19  ;;  %v4585_v2 = vadd.f32 %v14623_v33, %v4551_v18  ;;  %v11032_v29 = vadd.f32 0.5, %v5958_v36  ;;  %v14625_v18 = vld [vmem:[#allocation63_spill] sm:$0xff] }
 0x235   : > { %v6542_v16 = vadd.f32 %v10991_v47, %v6541_v22  ;;  %8299 = vmatprep.mubr.msk.f32.mxu0 %vm6392_vm2, %v6594_v55  ;;  %v2945_v22 = vadd.f32 %v2913_v5, %v2683_v27  ;;  %v3896_v1 = vmul.f32 0.5, %v8742_v23  ;;  %v4356_v13 = vmul.f32 0.5, %v4323_v42  ;;  %v14626_v5 = vld [vmem:[#allocation65_spill] sm:$0xff] }
 0x236   : > { %v6597_v7 = vmax.f32 %v6547_v14, 0.0  ;;  %8300 = vmatmul.mubr.msk.f32.gmra.mrb[20].mxu0 %vm6392_vm2, %v6595_v54  ;;  %14624 = vst [vmem:[#allocation76_spill] sm:$0xff] %v11032_v29  ;;  %v3666_v0 = vadd.f32 0.5, %v3634_v49  ;;  %v4618_v60 = vmul.f32 0.5, %v4585_v2  ;;  %6024 = vadd.xlane.f32.xlu1 %v11032_v29  ;;  %v4847_v19 = vadd.f32 %v14625_v18, %v4813_v40  ;;  %v14627_v49 = vld [vmem:[#allocation66_spill] sm:$0xff] }
 0x237   : > { %v6596_v10 = vmax.f32 %v6542_v16, 0.0  ;;  %v8277_v17 = vpop.f32.mrb[8].mxu1  ;;  %v3207_v54 = vadd.f32 %v3175_v11, %v2945_v22  ;;  %v3928_v43 = vadd.f32 0.5, %v3896_v1  ;;  %8745 = vtanh.f32 %v4356_v13  ;;  %v14628_v22 = vld [vmem:[#allocation68_spill] sm:$0xff] }
 0x238   : > { %v6557_v55 = vadd.f32 %v8277_v17, %v10991_v47  ;;  %v6551_v53 = vpop.f32.mrb[9].mxu1  ;;  %v3699_v23 = vmul.f32 %v14606_v59, %v3666_v0  ;;  %v5075_v17 = vmul.f32 %v14626_v5, %v10930_v52  ;;  %8747 = vtanh.f32 %v4618_v60  ;;  %v11053_v60 = vld [vmem:[%s10393_s0 + $0x18] sm:$0xff] }
 0x239   : > { %v6552_v14 = vadd.f32 %v10991_v47, %v6551_v53  ;;  %8302 = vmatprep.mubr.msk.f32.mxu0 %vm6392_vm2, %v6596_v10  ;;  %v3469_v27 = vadd.f32 %v3437_v21, %v3207_v54  ;;  %v3961_v10 = vmul.f32 %v10739_v3, %v3928_v43  ;;  %v8744_v11 = vpop.eup %8743  ;;  %v4880_v42 = vmul.f32 0.5, %v4847_v19  ;;  %v14629_v21 = vld [vmem:[#allocation71_spill] sm:$0xff]  ;;  %v14630_v19 = vld [vmem:[#allocation69_spill] sm:$0xff] }
 0x23a   : > { %v6599_v16 = vmax.f32 %v6557_v55, 0.0  ;;  %8303 = vmatmul.mubr.msk.f32.gmra.mrb[22].mxu0 %vm6392_vm2, %v6597_v7  ;;  %v5109_v7 = vadd.f32 %v14627_v49, %v5075_v17  ;;  %v5337_v55 = vmul.f32 %v14628_v22, %v10930_v52  ;;  %v4158_v13 = vmul.f32 0.5, %v8744_v11  ;;  %v14631_v11 = vld [vmem:[#allocation14_spill] sm:$0xff] }
 0x23b   : > { %v6598_v2 = vmax.f32 %v6552_v14, 0.0  ;;  %v8280_v36 = vpop.f32.mrb[10].mxu1  ;;  %v3731_v0 = vadd.f32 %v3699_v23, %v3469_v27  ;;  %v5599_v14 = vmul.f32 %v14629_v21, %v10930_v52  ;;  %8749 = vtanh.f32 %v4880_v42 }
 0x23c   : > { %v6567_v1 = vadd.f32 %v8280_v36, %v10991_v47  ;;  %v6561_v40 = vpop.f32.mrb[11].mxu1  ;;  %v5142_v43 = vmul.f32 0.5, %v5109_v7  ;;  %v5371_v17 = vadd.f32 %v14630_v19, %v5337_v55 }
 0x23d   : > { %v6562_v53 = vadd.f32 %v10991_v47, %v6561_v40  ;;  %8305 = vmatprep.mubr.msk.f32.mxu0 %vm6392_vm2, %v6598_v2  ;;  %v3993_v3 = vadd.f32 %v3961_v10, %v3731_v0  ;;  %v4190_v40 = vadd.f32 0.5, %v4158_v13  ;;  %v5633_v2 = vadd.f32 %v14604_v12, %v5599_v14  ;;  %v14632_v10 = vld [vmem:[#allocation15_spill] sm:$0xff]  ;;  %v14634_v13 = vld [vmem:[#allocation18_spill] sm:$0xff] }
 0x23e   : > { %v6601_v54 = vmax.f32 %v6567_v1, 0.0  ;;  %8306 = vmatmul.mubr.msk.f32.gmra.mrb[24].mxu0 %vm6392_vm2, %v6599_v16  ;;  %8751 = vtanh.f32 %v5142_v43  ;;  %v5404_v52 = vmul.f32 0.5, %v5371_v17  ;;  %v623_v1 = vmul.f32 %v14631_v11, %v11053_v60 }
 0x23f   : > { %v6600_v36 = vmax.f32 %v6562_v53, 0.0  ;;  %v8283_v29 = vpop.f32.mrb[12].mxu1  ;;  %v4223_v42 = vmul.f32 %v10764_v41, %v4190_v40  ;;  %v5666_v7 = vmul.f32 0.5, %v5633_v2  ;;  %v885_v55 = vmul.f32 %v14632_v10, %v11053_v60 }
 0x240   : > { %v6577_v23 = vadd.f32 %v8283_v29, %v10991_v47  ;;  %v6571_v27 = vpop.f32.mrb[13].mxu1  ;;  %8753 = vtanh.f32 %v5404_v52  ;;  %v14633_v29 = vld [vmem:[#allocation16_spill] sm:$0xff]  ;;  %v1147_v14 = vmul.f32 %v14634_v13, %v11053_v60 }
 0x241   : > { %v6572_v16 = vadd.f32 %v10991_v47, %v6571_v27  ;;  %8308 = vmatprep.mubr.msk.f32.mxu0 %vm6392_vm2, %v6600_v36  ;;  %v657_v0 = vadd.f32 %v14633_v29, %v623_v1  ;;  %v4255_v27 = vadd.f32 %v4223_v42, %v3993_v3  ;;  %8755 = vtanh.f32 %v5666_v7  ;;  %v8746_v40 = vpop.eup %8745 }
 0x242   : > { %v6603_v53 = vmax.f32 %v6577_v23, 0.0  ;;  %8309 = vmatmul.mubr.msk.f32.gmra.mrb[26].mxu0 %vm6392_vm2, %v6601_v54  ;;  %v919_v36 = vadd.f32 %v14611_v34, %v885_v55  ;;  %v1181_v23 = vadd.f32 %v14612_v6, %v1147_v14  ;;  %v14635_v54 = vld [vmem:[#allocation20_spill] sm:$0xff]  ;;  %v8748_v1 = vpop.eup %8747  ;;  %v1671_v42 = vmul.f32 %v10552_v32, %v11053_v60 }
 0x243   : > { %v6602_v43 = vmax.f32 %v6572_v16, 0.0  ;;  %v8286_v17 = vpop.f32.mrb[14].mxu1  ;;  %v690_v12 = vmul.f32 0.5, %v657_v0  ;;  %v1409_v52 = vmul.f32 %v14635_v54, %v11053_v60  ;;  %v4420_v16 = vmul.f32 0.5, %v8746_v40 }
 0x244   : > { %v6587_v2 = vadd.f32 %v8286_v17, %v10991_v47  ;;  %v6581_v41 = vpop.f32.mrb[15].mxu1  ;;  %v952_v3 = vmul.f32 0.5, %v919_v36  ;;  %v4682_v55 = vmul.f32 0.5, %v8748_v1  ;;  %v1214_v0 = vmul.f32 0.5, %v1181_v23 }
 0x245   : > { %v6582_v29 = vadd.f32 %v10991_v47, %v6581_v41  ;;  %8311 = vmatprep.mubr.msk.f32.mxu0 %vm6392_vm2, %v6602_v43  ;;  %8757 = vtanh.f32 %v690_v12  ;;  %v4452_v17 = vadd.f32 0.5, %v4420_v16  ;;  %v1443_v6 = vadd.f32 %v10550_v31, %v1409_v52  ;;  %v8750_v34 = vpop.eup %8749 }
 0x246   : > { %v6605_v7 = vmax.f32 %v6587_v2, 0.0  ;;  %8312 = vmatmul.mubr.msk.f32.gmra.mrb[28].mxu0 %vm6392_vm2, %v6603_v53  ;;  %8759 = vtanh.f32 %v952_v3  ;;  %v4714_v41 = vadd.f32 0.5, %v4682_v55  ;;  %v1705_v47 = vadd.f32 %v10559_v38, %v1671_v42 }
 0x247   : > { %v6604_v14 = vmax.f32 %v6582_v29, 0.0  ;;  %8761 = vtanh.f32 %v1214_v0  ;;  %v1933_v43 = vmul.f32 %v10561_v39, %v11053_v60  ;;  %v4485_v53 = vmul.f32 %v10781_v61, %v4452_v17 }
 0x248   : > { %v4944_v36 = vmul.f32 0.5, %v8750_v34  ;;  %v1476_v12 = vmul.f32 0.5, %v1443_v6  ;;  %v2195_v29 = vmul.f32 %v10568_v45, %v11053_v60  ;;  %v8752_v40 = vpop.eup %8751  ;;  %v4747_v2 = vmul.f32 %v10798_v37, %v4714_v41 }
 0x249   : > { %8314 = vmatprep.mubr.msk.f32.mxu0 %vm6392_vm2, %v6604_v14  ;;  %v1738_v23 = vmul.f32 0.5, %v1705_v47  ;;  %v1967_v52 = vadd.f32 %v10566_v44, %v1933_v43  ;;  %v2457_v1 = vmul.f32 %v10575_v51, %v11053_v60  ;;  %v4517_v16 = vadd.f32 %v4485_v53, %v4255_v27 }
 0x24a   : > { %8315 = vmatmul.mubr.msk.f32.gmra.mrb[30].mxu0 %vm6392_vm2, %v6605_v7  ;;  %v4976_v3 = vadd.f32 0.5, %v4944_v36  ;;  %v5206_v42 = vmul.f32 0.5, %v8752_v40  ;;  %8763 = vtanh.f32 %v1476_v12  ;;  %v8754_v34 = vpop.eup %8753  ;;  %v2229_v55 = vadd.f32 %v10573_v50, %v2195_v29 }
 0x24b   : > { %8765 = vtanh.f32 %v1738_v23  ;;  %v2000_v6 = vmul.f32 0.5, %v1967_v52  ;;  %v2491_v0 = vadd.f32 %v10586_v56, %v2457_v1  ;;  %v8756_v7 = vpop.eup %8755  ;;  %v4779_v14 = vadd.f32 %v4747_v2, %v4517_v16 }
 0x24c   : > { %v5009_v17 = vmul.f32 %v10816_v4, %v4976_v3  ;;  %v5238_v41 = vadd.f32 0.5, %v5206_v42  ;;  %v5468_v47 = vmul.f32 0.5, %v8754_v34  ;;  %v5730_v43 = vmul.f32 0.5, %v8756_v7 }
 0x24d   : > { %8767 = vtanh.f32 %v2000_v6  ;;  %v2262_v51 = vmul.f32 0.5, %v2229_v55  ;;  %v2524_v27 = vmul.f32 0.5, %v2491_v0  ;;  %v2719_v40 = vmul.f32 %v10588_v57, %v11053_v60 }
 0x24e   : > { %v5041_v53 = vadd.f32 %v5009_v17, %v4779_v14  ;;  %v5271_v36 = vmul.f32 %v10825_v20, %v5238_v41  ;;  %v5500_v12 = vadd.f32 0.5, %v5468_v47  ;;  %v5762_v23 = vadd.f32 0.5, %v5730_v43 }
 0x24f   : > { %v8758_v29 = vpop.eup %8757  ;;  %8769 = vtanh.f32 %v2262_v51  ;;  %v2981_v2 = vmul.f32 %v10604_v63, %v11053_v60  ;;  %v3243_v52 = vmul.f32 %v10619_v9, %v11053_v60  ;;  %v2753_v0 = vadd.f32 %v10602_v62, %v2719_v40 }
 0x250   : > { %v8760_v1 = vpop.eup %8759  ;;  %v5303_v16 = vadd.f32 %v5271_v36, %v5041_v53  ;;  %v5533_v3 = vmul.f32 %v10841_v24, %v5500_v12  ;;  %v754_v42 = vmul.f32 0.5, %v8758_v29  ;;  %8771 = vtanh.f32 %v2524_v27 }
 0x251   : > { %v8762_v34 = vpop.eup %8761  ;;  %v5795_v6 = vmul.f32 %v10855_v15, %v5762_v23  ;;  %v1016_v55 = vmul.f32 0.5, %v8760_v1  ;;  %v3015_v51 = vadd.f32 %v10616_v8, %v2981_v2  ;;  %v3277_v41 = vadd.f32 %v10635_v25, %v3243_v52  ;;  %v14636_v52 = vld [vmem:[#allocation74_spill] sm:$0xff] }
 0x252   : > { %v5565_v7 = vadd.f32 %v5533_v3, %v5303_v16  ;;  %v786_v14 = vadd.f32 0.5, %v754_v42  ;;  %v1278_v17 = vmul.f32 0.5, %v8762_v34  ;;  %v2786_v43 = vmul.f32 0.5, %v2753_v0  ;;  %v14637_v34 = vld [vmem:[#allocation39_spill] sm:$0xff] }
 0x253   : > { %v1048_v47 = vadd.f32 0.5, %v1016_v55  ;;  %v3048_v53 = vmul.f32 0.5, %v3015_v51  ;;  %v3505_v36 = vmul.f32 %v10638_v26, %v11053_v60  ;;  %v3310_v1 = vmul.f32 0.5, %v3277_v41 }
 0x254   : > { %v8764_v27 = vpop.eup %8763  ;;  %v5827_v12 = vadd.f32 %v5795_v6, %v5565_v7  ;;  %v819_v29 = vmul.f32 %v10641_v28, %v786_v14  ;;  %v1310_v23 = vadd.f32 0.5, %v1278_v17  ;;  %8773 = vtanh.f32 %v2786_v43 }
 0x255   : > { %v8766_v40 = vpop.eup %8765  ;;  %v1081_v2 = vmul.f32 %v10644_v30, %v1048_v47  ;;  %v1540_v16 = vmul.f32 0.5, %v8764_v27  ;;  %v3539_v3 = vadd.f32 %v10712_v35, %v3505_v36  ;;  %8775 = vtanh.f32 %v3048_v53  ;;  %v14638_v47 = vld [vmem:[#allocation50_spill] sm:$0xff] }
 0x256   : > { %v5861_v42 = vadd.f32 %v14636_v52, %v5827_v12  ;;  %v1343_v55 = vmul.f32 %v14637_v34, %v1310_v23  ;;  %v1802_v0 = vmul.f32 0.5, %v8766_v40  ;;  %8777 = vtanh.f32 %v3310_v1  ;;  %v14639_v12 = vld [vmem:[#allocation53_spill] sm:$0xff]  ;;  %v14643_v52 = vld [vmem:[#allocation42_spill] sm:$0xff] }
 0x257   : > { %v8768_v51 = vpop.eup %8767  ;;  %v1113_v26 = vadd.f32 %v1081_v2, %v819_v29  ;;  %v1572_v6 = vadd.f32 0.5, %v1540_v16  ;;  %v3572_v7 = vmul.f32 0.5, %v3539_v3  ;;  %v3767_v27 = vmul.f32 %v14638_v47, %v11053_v60  ;;  %v14640_v29 = vld [vmem:[#allocation41_spill] sm:$0xff] }
 0x258   : > { %v5893_v14 = vmul.f32 0.5, %v5861_v42  ;;  %v1834_v17 = vadd.f32 0.5, %v1802_v0  ;;  %v2064_v41 = vmul.f32 0.5, %v8768_v51  ;;  %v4029_v23 = vmul.f32 %v14639_v12, %v11053_v60  ;;  %v14641_v42 = vld [vmem:[#allocation51_spill] sm:$0xff]  ;;  %v14642_v51 = vld [vmem:[#allocation54_spill] sm:$0xff] }
 0x259   : > { %v8770_v43 = vpop.eup %8769  ;;  %v1375_v30 = vadd.f32 %v1343_v55, %v1113_v26  ;;  %v1605_v36 = vmul.f32 %v10672_v58, %v1572_v6  ;;  %8779 = vtanh.f32 %v3572_v7  ;;  %v3801_v0 = vadd.f32 %v14641_v42, %v3767_v27  ;;  %v14644_v6 = vld [vmem:[#allocation56_spill] sm:$0xff]  ;;  %v14645_v12 = vld [vmem:[#allocation59_spill] sm:$0xff] }
 0x25a   : > { %v8772_v53 = vpop.eup %8771  ;;  %8781 = vtanh.f32 %v5893_v14  ;;  %v1867_v40 = vmul.f32 %v14640_v29, %v1834_v17  ;;  %v2096_v1 = vadd.f32 0.5, %v2064_v41  ;;  %v2326_v2 = vmul.f32 0.5, %v8770_v43  ;;  %v14646_v43 = vld [vmem:[#allocation43_spill] sm:$0xff] }
 0x25b   : > { %v1637_v16 = vadd.f32 %v1605_v36, %v1375_v30  ;;  %v2588_v3 = vmul.f32 0.5, %v8772_v53  ;;  %v4063_v35 = vadd.f32 %v14642_v51, %v4029_v23  ;;  %v4291_v7 = vmul.f32 %v14644_v6, %v11053_v60  ;;  %v14647_v23 = vld [vmem:[#allocation62_spill] sm:$0xff] }
 0x25c   : > { %v2129_v26 = vmul.f32 %v14643_v52, %v2096_v1  ;;  %v2358_v55 = vadd.f32 0.5, %v2326_v2  ;;  %v4553_v58 = vmul.f32 %v14645_v12, %v11053_v60  ;;  %v3834_v17 = vmul.f32 0.5, %v3801_v0  ;;  %v14648_v52 = vld [vmem:[#allocation44_spill] sm:$0xff] }
 0x25d   : > { %v1899_v14 = vadd.f32 %v1867_v40, %v1637_v16  ;;  %v2620_v47 = vadd.f32 0.5, %v2588_v3  ;;  %v4096_v41 = vmul.f32 0.5, %v4063_v35  ;;  %v4325_v36 = vadd.f32 %v14622_v46, %v4291_v7 }
 0x25e   : > { %v2391_v30 = vmul.f32 %v14646_v43, %v2358_v55  ;;  %v4587_v27 = vadd.f32 %v14623_v33, %v4553_v58  ;;  %v4815_v53 = vmul.f32 %v14647_v23, %v11053_v60  ;;  %v8774_v1 = vpop.eup %8773  ;;  %8783 = vtanh.f32 %v3834_v17 }
 0x25f   : > { %v2161_v2 = vadd.f32 %v2129_v26, %v1899_v14  ;;  %v2653_v29 = vmul.f32 %v14648_v52, %v2620_v47  ;;  %v5077_v40 = vmul.f32 %v14626_v5, %v11053_v60  ;;  %v8776_v16 = vpop.eup %8775  ;;  %v2850_v3 = vmul.f32 0.5, %v8774_v1 }
 0x260   : > { %8785 = vtanh.f32 %v4096_v41  ;;  %v4358_v35 = vmul.f32 0.5, %v4325_v36  ;;  %v4620_v0 = vmul.f32 0.5, %v4587_v27  ;;  %v8778_v55 = vpop.eup %8777  ;;  %v3112_v43 = vmul.f32 0.5, %v8776_v16  ;;  %v14649_v27 = vld [vmem:[#allocation45_spill] sm:$0xff] }
 0x261   : > { %v2423_v7 = vadd.f32 %v2391_v30, %v2161_v2  ;;  %v4849_v58 = vadd.f32 %v14625_v18, %v4815_v53  ;;  %v5111_v33 = vadd.f32 %v14627_v49, %v5077_v40  ;;  %v2882_v26 = vadd.f32 0.5, %v2850_v3  ;;  %v11142_v18 = vld [vmem:[%s10393_s0 + $0x20] sm:$0xff] }
 0x262   : > { %v3374_v14 = vmul.f32 0.5, %v8778_v55  ;;  %8787 = vtanh.f32 %v4358_v35  ;;  %v5339_v47 = vmul.f32 %v14628_v22, %v11053_v60  ;;  %v3144_v1 = vadd.f32 0.5, %v3112_v43  ;;  %v14650_v3 = vld [vmem:[#allocation46_spill] sm:$0xff] }
 0x263   : > { %v8780_v17 = vpop.eup %8779  ;;  %v2685_v5 = vadd.f32 %v2653_v29, %v2423_v7  ;;  %8789 = vtanh.f32 %v4620_v0  ;;  %v4882_v41 = vmul.f32 0.5, %v4849_v58  ;;  %v2915_v30 = vmul.f32 %v14649_v27, %v2882_v26 }
 0x264   : > { %v8782_v36 = vpop.eup %8781  ;;  %v3406_v2 = vadd.f32 0.5, %v3374_v14  ;;  %v3636_v16 = vmul.f32 0.5, %v8780_v17  ;;  %v5144_v53 = vmul.f32 0.5, %v5111_v33  ;;  %v3177_v55 = vmul.f32 %v14650_v3, %v3144_v1  ;;  %v14652_v1 = vld [vmem:[#allocation72_spill] sm:$0xff] }
 0x265   : > { %v5957_v40 = vmul.f32 0.5, %v8782_v36  ;;  %8791 = vtanh.f32 %v4882_v41  ;;  %v5373_v35 = vadd.f32 %v14630_v19, %v5339_v47  ;;  %v2947_v49 = vadd.f32 %v2915_v30, %v2685_v5  ;;  %v14653_v36 = vld [vmem:[#allocation16_spill] sm:$0xff] }
 0x266   : > { %v3439_v29 = vmul.f32 %v14603_v48, %v3406_v2  ;;  %v3668_v43 = vadd.f32 0.5, %v3636_v16  ;;  %8793 = vtanh.f32 %v5144_v53  ;;  %v5601_v58 = vmul.f32 %v14629_v21, %v11053_v60  ;;  %v14654_v53 = vld [vmem:[#allocation17_spill] sm:$0xff] }
 0x267   : > { %v11147_v0 = vadd.f32 0.5, %v5957_v40  ;;  %v5406_v7 = vmul.f32 0.5, %v5373_v35  ;;  %v624_v33 = vmul.f32 %v14631_v11, %v11142_v18  ;;  %v3209_v26 = vadd.f32 %v3177_v55, %v2947_v49  ;;  %v14655_v55 = vld [vmem:[#allocation19_spill] sm:$0xff] }
 0x268   : > { %v3701_v14 = vmul.f32 %v14606_v59, %v3668_v43  ;;  %v886_v47 = vmul.f32 %v14632_v10, %v11142_v18  ;;  %v1148_v5 = vmul.f32 %v14634_v13, %v11142_v18  ;;  %v8784_v17 = vpop.eup %8783  ;;  %v5635_v41 = vadd.f32 %v14652_v1, %v5601_v58 }
 0x269   : > { %14651 = vst [vmem:[#allocation77_spill] sm:$0xff] %v11147_v0  ;;  %6022 = vadd.xlane.f32.xlu0 %v11147_v0  ;;  %8795 = vtanh.f32 %v5406_v7  ;;  %v658_v60 = vadd.f32 %v14653_v36, %v624_v33  ;;  %v1410_v30 = vmul.f32 %v14635_v54, %v11142_v18  ;;  %v3471_v2 = vadd.f32 %v3439_v29, %v3209_v26  ;;  %v14656_v26 = vld [vmem:[#allocation52_spill] sm:$0xff] }
 0x26a   : > { %v8786_v49 = vpop.eup %8785  ;;  %v3898_v16 = vmul.f32 0.5, %v8784_v17  ;;  %v920_v40 = vadd.f32 %v14654_v53, %v886_v47  ;;  %v1182_v35 = vadd.f32 %v14655_v55, %v1148_v5  ;;  %v5668_v13 = vmul.f32 0.5, %v5635_v41 }
 0x26b   : > { %v4160_v43 = vmul.f32 0.5, %v8786_v49  ;;  %v691_v59 = vmul.f32 0.5, %v658_v60  ;;  %v1444_v0 = vadd.f32 %v10550_v31, %v1410_v30  ;;  %v3733_v10 = vadd.f32 %v3701_v14, %v3471_v2  ;;  %v14657_v60 = vld [vmem:[#allocation55_spill] sm:$0xff] }
 0x26c   : > { %v8788_v7 = vpop.eup %8787  ;;  %v3930_v58 = vadd.f32 0.5, %v3898_v16  ;;  %v953_v11 = vmul.f32 0.5, %v920_v40  ;;  %v1215_v33 = vmul.f32 0.5, %v1182_v35  ;;  %8797 = vtanh.f32 %v5668_v13 }
 0x26d   : > { %v8790_v36 = vpop.eup %8789  ;;  %v4192_v1 = vadd.f32 0.5, %v4160_v43  ;;  %v4422_v54 = vmul.f32 0.5, %v8788_v7  ;;  %v1477_v29 = vmul.f32 0.5, %v1444_v0  ;;  %8799 = vtanh.f32 %v691_v59 }
 0x26e   : > { %v3963_v17 = vmul.f32 %v14656_v26, %v3930_v58  ;;  %v4684_v47 = vmul.f32 0.5, %v8790_v36  ;;  %v1672_v5 = vmul.f32 %v10552_v32, %v11142_v18  ;;  %8801 = vtanh.f32 %v953_v11 }
 0x26f   : > { %v8792_v41 = vpop.eup %8791  ;;  %v4225_v30 = vmul.f32 %v14657_v60, %v4192_v1  ;;  %v4454_v49 = vadd.f32 0.5, %v4422_v54  ;;  %v1934_v14 = vmul.f32 %v10561_v39, %v11142_v18  ;;  %8803 = vtanh.f32 %v1215_v33  ;;  %v14658_v33 = vld [vmem:[#allocation28_spill] sm:$0xff] }
 0x270   : > { %v8794_v2 = vpop.eup %8793  ;;  %v3995_v16 = vadd.f32 %v3963_v17, %v3733_v10  ;;  %v4716_v40 = vadd.f32 0.5, %v4684_v47  ;;  %v4946_v13 = vmul.f32 0.5, %v8792_v41  ;;  %8805 = vtanh.f32 %v1477_v29 }
 0x271   : > { %v4487_v0 = vmul.f32 %v10781_v61, %v4454_v49  ;;  %v5208_v36 = vmul.f32 0.5, %v8794_v2  ;;  %v1706_v59 = vadd.f32 %v10559_v38, %v1672_v5  ;;  %v1968_v11 = vadd.f32 %v10566_v44, %v1934_v14 }
 0x272   : > { %v4257_v35 = vadd.f32 %v4225_v30, %v3995_v16  ;;  %v4749_v43 = vmul.f32 %v10798_v37, %v4716_v40  ;;  %v4978_v1 = vadd.f32 0.5, %v4946_v13  ;;  %v2196_v10 = vmul.f32 %v10568_v45, %v11142_v18 }
 0x273   : > { %v8796_v54 = vpop.eup %8795  ;;  %v5240_v7 = vadd.f32 0.5, %v5208_v36  ;;  %v1739_v58 = vmul.f32 0.5, %v1706_v59  ;;  %v2458_v17 = vmul.f32 %v14658_v33, %v11142_v18  ;;  %v2001_v5 = vmul.f32 0.5, %v1968_v11 }
 0x274   : > { %v4519_v47 = vadd.f32 %v4487_v0, %v4257_v35  ;;  %v5011_v29 = vmul.f32 %v10816_v4, %v4978_v1  ;;  %v5470_v41 = vmul.f32 0.5, %v8796_v54  ;;  %v2230_v49 = vadd.f32 %v10573_v50, %v2196_v10 }
 0x275   : > { %v5273_v30 = vmul.f32 %v10825_v20, %v5240_v7  ;;  %8807 = vtanh.f32 %v1739_v58  ;;  %v2492_v14 = vadd.f32 %v10586_v56, %v2458_v17  ;;  %v2720_v40 = vmul.f32 %v10588_v57, %v11142_v18 }
 0x276   : > { %v4781_v2 = vadd.f32 %v4749_v43, %v4519_v47  ;;  %v5502_v16 = vadd.f32 0.5, %v5470_v41  ;;  %8809 = vtanh.f32 %v2001_v5  ;;  %v8798_v13 = vpop.eup %8797  ;;  %v2263_v36 = vmul.f32 0.5, %v2230_v49 }
 0x277   : > { %v2525_v0 = vmul.f32 0.5, %v2492_v14  ;;  %v2982_v59 = vmul.f32 %v10604_v63, %v11142_v18  ;;  %v3244_v35 = vmul.f32 %v10619_v9, %v11142_v18  ;;  %v8800_v1 = vpop.eup %8799  ;;  %v5732_v7 = vmul.f32 0.5, %v8798_v13 }
 0x278   : > { %v5043_v11 = vadd.f32 %v5011_v29, %v4781_v2  ;;  %v5535_v54 = vmul.f32 %v10841_v24, %v5502_v16  ;;  %v2754_v43 = vadd.f32 %v10602_v62, %v2720_v40  ;;  %v8802_v58 = vpop.eup %8801  ;;  %v755_v10 = vmul.f32 0.5, %v8800_v1 }
 0x279   : > { %8811 = vtanh.f32 %v2263_v36  ;;  %v3016_v17 = vadd.f32 %v10616_v8, %v2982_v59  ;;  %v3278_v47 = vadd.f32 %v10635_v25, %v3244_v35  ;;  %v8804_v41 = vpop.eup %8803  ;;  %v5764_v49 = vadd.f32 0.5, %v5732_v7 }
 0x27a   : > { %v5305_v5 = vadd.f32 %v5273_v30, %v5043_v11  ;;  %v1017_v14 = vmul.f32 0.5, %v8802_v58  ;;  %8813 = vtanh.f32 %v2525_v0  ;;  %v8806_v9 = vpop.eup %8805  ;;  %v787_v56 = vadd.f32 0.5, %v755_v10  ;;  %v14659_v30 = vld [vmem:[#allocation38_spill] sm:$0xff] }
 0x27b   : > { %v1279_v29 = vmul.f32 0.5, %v8804_v41  ;;  %v2787_v2 = vmul.f32 0.5, %v2754_v43  ;;  %v3049_v16 = vmul.f32 0.5, %v3016_v17  ;;  %v5797_v40 = vmul.f32 %v10855_v15, %v5764_v49  ;;  %v14661_v10 = vld [vmem:[#allocation50_spill] sm:$0xff] }
 0x27c   : > { %v5567_v13 = vadd.f32 %v5535_v54, %v5305_v5  ;;  %v1049_v62 = vadd.f32 0.5, %v1017_v14  ;;  %v1541_v1 = vmul.f32 0.5, %v8806_v9  ;;  %v820_v36 = vmul.f32 %v10641_v28, %v787_v56  ;;  %v14660_v54 = vld [vmem:[#allocation36_spill] sm:$0xff]  ;;  %v14662_v56 = vld [vmem:[#allocation74_spill] sm:$0xff] }
 0x27d   : > { %v1311_v59 = vadd.f32 0.5, %v1279_v29  ;;  %8815 = vtanh.f32 %v2787_v2  ;;  %v3311_v35 = vmul.f32 0.5, %v3278_v47  ;;  %v3506_v43 = vmul.f32 %v14660_v54, %v11142_v18  ;;  %v14663_v47 = vld [vmem:[#allocation40_spill] sm:$0xff] }
 0x27e   : > { %v5829_v25 = vadd.f32 %v5797_v40, %v5567_v13  ;;  %v1082_v11 = vmul.f32 %v14659_v30, %v1049_v62  ;;  %v1573_v7 = vadd.f32 0.5, %v1541_v1  ;;  %8817 = vtanh.f32 %v3049_v16  ;;  %v14664_v29 = vld [vmem:[#allocation48_spill] sm:$0xff]  ;;  %v14665_v13 = vld [vmem:[#allocation53_spill] sm:$0xff] }
 0x27f   : > { %v8808_v0 = vpop.eup %8807  ;;  %v1344_v58 = vmul.f32 %v14637_v34, %v1311_v59  ;;  %8819 = vtanh.f32 %v3311_v35  ;;  %v3768_v9 = vmul.f32 %v14661_v10, %v11142_v18  ;;  %v3540_v2 = vadd.f32 %v14664_v29, %v3506_v43 }
 0x280   : > { %v8810_v17 = vpop.eup %8809  ;;  %v5863_v41 = vadd.f32 %v14662_v56, %v5829_v25  ;;  %v1114_v5 = vadd.f32 %v1082_v11, %v820_v36  ;;  %v1606_v49 = vmul.f32 %v14663_v47, %v1573_v7  ;;  %v1803_v14 = vmul.f32 0.5, %v8808_v0  ;;  %v14667_v47 = vld [vmem:[#allocation42_spill] sm:$0xff] }
 0x281   : > { %v2065_v62 = vmul.f32 0.5, %v8810_v17  ;;  %v3802_v16 = vadd.f32 %v14641_v42, %v3768_v9  ;;  %v4030_v40 = vmul.f32 %v14665_v13, %v11142_v18  ;;  %v4292_v10 = vmul.f32 %v14644_v6, %v11142_v18  ;;  %v14666_v17 = vld [vmem:[#allocation41_spill] sm:$0xff] }
 0x282   : > { %v5895_v1 = vmul.f32 0.5, %v5863_v41  ;;  %v1376_v59 = vadd.f32 %v1344_v58, %v1114_v5  ;;  %v1835_v35 = vadd.f32 0.5, %v1803_v14  ;;  %v3573_v36 = vmul.f32 0.5, %v3540_v2 }
 0x283   : > { %v8812_v34 = vpop.eup %8811  ;;  %v2097_v25 = vadd.f32 0.5, %v2065_v62  ;;  %v3835_v11 = vmul.f32 0.5, %v3802_v16  ;;  %v4064_v7 = vadd.f32 %v14642_v51, %v4030_v40  ;;  %v4326_v62 = vadd.f32 %v14622_v46, %v4292_v10 }
 0x284   : > { %v8814_v0 = vpop.eup %8813  ;;  %8821 = vtanh.f32 %v5895_v1  ;;  %v1638_v43 = vadd.f32 %v1606_v49, %v1376_v59  ;;  %v1868_v9 = vmul.f32 %v14666_v17, %v1835_v35  ;;  %v2327_v42 = vmul.f32 0.5, %v8812_v34  ;;  %v14668_v59 = vld [vmem:[#allocation43_spill] sm:$0xff] }
 0x285   : > { %v2130_v13 = vmul.f32 %v14667_v47, %v2097_v25  ;;  %v2589_v41 = vmul.f32 0.5, %v8814_v0  ;;  %8823 = vtanh.f32 %v3573_v36  ;;  %v4097_v58 = vmul.f32 0.5, %v4064_v7 }
 0x286   : > { %v1900_v5 = vadd.f32 %v1868_v9, %v1638_v43  ;;  %v2359_v14 = vadd.f32 0.5, %v2327_v42  ;;  %8825 = vtanh.f32 %v3835_v11  ;;  %v4554_v40 = vmul.f32 %v14645_v12, %v11142_v18  ;;  %v14669_v11 = vld [vmem:[#allocation60_spill] sm:$0xff]  ;;  %v14670_v43 = vld [vmem:[#allocation63_spill] sm:$0xff] }
 0x287   : > { %v8816_v2 = vpop.eup %8815  ;;  %v2621_v16 = vadd.f32 0.5, %v2589_v41  ;;  %8827 = vtanh.f32 %v4097_v58  ;;  %v4816_v49 = vmul.f32 %v14647_v23, %v11142_v18  ;;  %v4359_v36 = vmul.f32 0.5, %v4326_v62 }
 0x288   : > { %v8818_v34 = vpop.eup %8817  ;;  %v2162_v1 = vadd.f32 %v2130_v13, %v1900_v5  ;;  %v2392_v35 = vmul.f32 %v14668_v59, %v2359_v14  ;;  %v2851_v25 = vmul.f32 0.5, %v8816_v2  ;;  %v4588_v0 = vadd.f32 %v14669_v11, %v4554_v40  ;;  %v14671_v5 = vld [vmem:[#allocation65_spill] sm:$0xff]  ;;  %v11228_v40 = vld [vmem:[%s10393_s0 + $0x28] sm:$0xff] }
 0x289   : > { %v8820_v7 = vpop.eup %8819  ;;  %v2654_v42 = vmul.f32 %v14648_v52, %v2621_v16  ;;  %v3113_v10 = vmul.f32 0.5, %v8818_v34  ;;  %v4850_v9 = vadd.f32 %v14670_v43, %v4816_v49  ;;  %8829 = vtanh.f32 %v4359_v36 }
 0x28a   : > { %v2424_v41 = vadd.f32 %v2392_v35, %v2162_v1  ;;  %v2883_v58 = vadd.f32 0.5, %v2851_v25  ;;  %v3375_v12 = vmul.f32 0.5, %v8820_v7  ;;  %v4621_v46 = vmul.f32 0.5, %v4588_v0  ;;  %v14672_v1 = vld [vmem:[#allocation66_spill] sm:$0xff] }
 0x28b   : > { %v3145_v23 = vadd.f32 0.5, %v3113_v10  ;;  %v4883_v13 = vmul.f32 0.5, %v4850_v9  ;;  %v5078_v14 = vmul.f32 %v14671_v5, %v11142_v18  ;;  %v5340_v34 = vmul.f32 %v14628_v22, %v11142_v18 }
 0x28c   : > { %v2686_v62 = vadd.f32 %v2654_v42, %v2424_v41  ;;  %v2916_v2 = vmul.f32 %v14649_v27, %v2883_v58  ;;  %v3407_v16 = vadd.f32 0.5, %v3375_v12  ;;  %8831 = vtanh.f32 %v4621_v46  ;;  %v14673_v41 = vld [vmem:[#allocation72_spill] sm:$0xff] }
 0x28d   : > { %v3178_v49 = vmul.f32 %v14650_v3, %v3145_v23  ;;  %v5112_v35 = vadd.f32 %v14672_v1, %v5078_v14  ;;  %v5602_v25 = vmul.f32 %v14629_v21, %v11142_v18  ;;  %8833 = vtanh.f32 %v4883_v13  ;;  %v14674_v23 = vld [vmem:[#allocation14_spill] sm:$0xff]  ;;  %v14675_v18 = vld [vmem:[#allocation15_spill] sm:$0xff] }
 0x28e   : > { %v8822_v36 = vpop.eup %8821  ;;  %v2948_v7 = vadd.f32 %v2916_v2, %v2686_v62  ;;  %v3440_v42 = vmul.f32 %v14603_v48, %v3407_v16  ;;  %v5374_v12 = vadd.f32 %v14630_v19, %v5340_v34  ;;  %v625_v46 = vmul.f32 %v14674_v23, %v11228_v40 }
 0x28f   : > { %v8824_v10 = vpop.eup %8823  ;;  %v5959_v0 = vmul.f32 0.5, %v8822_v36  ;;  %v5145_v9 = vmul.f32 0.5, %v5112_v35  ;;  %v5636_v58 = vadd.f32 %v14673_v41, %v5602_v25  ;;  %v887_v62 = vmul.f32 %v14675_v18, %v11228_v40  ;;  %v14678_v18 = vld [vmem:[#allocation49_spill] sm:$0xff] }
 0x290   : > { %v8826_v3 = vpop.eup %8825  ;;  %v3210_v14 = vadd.f32 %v3178_v49, %v2948_v7  ;;  %v3637_v22 = vmul.f32 0.5, %v8824_v10  ;;  %v5407_v1 = vmul.f32 0.5, %v5374_v12  ;;  %v14677_v49 = vld [vmem:[#allocation16_spill] sm:$0xff] }
 0x291   : > { %v8828_v2 = vpop.eup %8827  ;;  %v11241_v16 = vadd.f32 0.5, %v5959_v0  ;;  %v3899_v13 = vmul.f32 0.5, %v8826_v3  ;;  %8835 = vtanh.f32 %v5145_v9  ;;  %v5669_v34 = vmul.f32 0.5, %v5636_v58  ;;  %v14679_v3 = vld [vmem:[#allocation18_spill] sm:$0xff] }
 0x292   : > { %v3472_v36 = vadd.f32 %v3440_v42, %v3210_v14  ;;  %v3669_v35 = vadd.f32 0.5, %v3637_v22  ;;  %v4161_v48 = vmul.f32 0.5, %v8828_v2  ;;  %8837 = vtanh.f32 %v5407_v1  ;;  %v14680_v42 = vld [vmem:[#allocation20_spill] sm:$0xff] }
 0x293   : > { %14676 = vst [vmem:[#allocation78_spill] sm:$0xff] %v11241_v16  ;;  %6026 = vadd.xlane.f32.xlu1 %v11241_v16  ;;  %v3931_v25 = vadd.f32 0.5, %v3899_v13  ;;  %8839 = vtanh.f32 %v5669_v34  ;;  %v659_v7 = vadd.f32 %v14677_v49, %v625_v46  ;;  %v921_v12 = vadd.f32 %v14654_v53, %v887_v62  ;;  %v8830_v10 = vpop.eup %8829 }
 0x294   : > { %v3702_v41 = vmul.f32 %v14678_v18, %v3669_v35  ;;  %v4193_v0 = vadd.f32 0.5, %v4161_v48  ;;  %v1149_v9 = vmul.f32 %v14679_v3, %v11228_v40  ;;  %v1411_v22 = vmul.f32 %v14680_v42, %v11228_v40 }
 0x295   : > { %v3964_v1 = vmul.f32 %v14656_v26, %v3931_v25  ;;  %v4423_v58 = vmul.f32 0.5, %v8830_v10  ;;  %v692_v14 = vmul.f32 0.5, %v659_v7  ;;  %v954_v2 = vmul.f32 0.5, %v921_v12 }
 0x296   : > { %v3734_v13 = vadd.f32 %v3702_v41, %v3472_v36  ;;  %v4226_v46 = vmul.f32 %v14657_v60, %v4193_v0  ;;  %v1183_v62 = vadd.f32 %v14655_v55, %v1149_v9  ;;  %v1445_v34 = vadd.f32 %v10550_v31, %v1411_v22  ;;  %v8832_v35 = vpop.eup %8831 }
 0x297   : > { %v4455_v48 = vadd.f32 0.5, %v4423_v58  ;;  %8841 = vtanh.f32 %v692_v14  ;;  %v1673_v16 = vmul.f32 %v10552_v32, %v11228_v40  ;;  %v1935_v53 = vmul.f32 %v10561_v39, %v11228_v40  ;;  %v8834_v25 = vpop.eup %8833 }
 0x298   : > { %v3996_v10 = vadd.f32 %v3964_v1, %v3734_v13  ;;  %v4685_v7 = vmul.f32 0.5, %v8832_v35  ;;  %8843 = vtanh.f32 %v954_v2  ;;  %v1216_v41 = vmul.f32 0.5, %v1183_v62 }
 0x299   : > { %v4488_v36 = vmul.f32 %v10781_v61, %v4455_v48  ;;  %v4947_v12 = vmul.f32 0.5, %v8834_v25  ;;  %v1478_v0 = vmul.f32 0.5, %v1445_v34  ;;  %v1707_v9 = vadd.f32 %v10559_v38, %v1673_v16 }
 0x29a   : > { %v4258_v22 = vadd.f32 %v4226_v46, %v3996_v10  ;;  %v4717_v58 = vadd.f32 0.5, %v4685_v7  ;;  %8845 = vtanh.f32 %v1216_v41  ;;  %v1969_v14 = vadd.f32 %v10566_v44, %v1935_v53 }
 0x29b   : > { %v8836_v60 = vpop.eup %8835  ;;  %v4979_v32 = vadd.f32 0.5, %v4947_v12  ;;  %8847 = vtanh.f32 %v1478_v0  ;;  %v1740_v39 = vmul.f32 0.5, %v1707_v9  ;;  %v2197_v1 = vmul.f32 %v10568_v45, %v11228_v40 }
 0x29c   : > { %v8838_v2 = vpop.eup %8837  ;;  %v4520_v13 = vadd.f32 %v4488_v36, %v4258_v22  ;;  %v4750_v62 = vmul.f32 %v10798_v37, %v4717_v58  ;;  %v5209_v35 = vmul.f32 0.5, %v8836_v60  ;;  %v2002_v34 = vmul.f32 0.5, %v1969_v14  ;;  %v14681_v14 = vld [vmem:[#allocation29_spill] sm:$0xff] }
 0x29d   : > { %v8840_v48 = vpop.eup %8839  ;;  %v5012_v16 = vmul.f32 %v10816_v4, %v4979_v32  ;;  %v5471_v46 = vmul.f32 0.5, %v8838_v2  ;;  %8849 = vtanh.f32 %v1740_v39  ;;  %v2231_v53 = vadd.f32 %v10573_v50, %v2197_v1  ;;  %v14682_v2 = vld [vmem:[#allocation31_spill] sm:$0xff] }
 0x29e   : > { %v4782_v25 = vadd.f32 %v4750_v62, %v4520_v13  ;;  %v5241_v10 = vadd.f32 0.5, %v5209_v35  ;;  %v5733_v7 = vmul.f32 0.5, %v8840_v48  ;;  %8851 = vtanh.f32 %v2002_v34 }
 0x29f   : > { %v5503_v41 = vadd.f32 0.5, %v5471_v46  ;;  %v2264_v12 = vmul.f32 0.5, %v2231_v53  ;;  %v2459_v36 = vmul.f32 %v14658_v33, %v11228_v40  ;;  %v2721_v60 = vmul.f32 %v10588_v57, %v11228_v40 }
 0x2a0   : > { %v5044_v0 = vadd.f32 %v5012_v16, %v4782_v25  ;;  %v5274_v9 = vmul.f32 %v10825_v20, %v5241_v10  ;;  %v5765_v32 = vadd.f32 0.5, %v5733_v7  ;;  %v2983_v39 = vmul.f32 %v10604_v63, %v11228_v40  ;;  %v14683_v10 = vld [vmem:[#allocation34_spill] sm:$0xff] }
 0x2a1   : > { %v8842_v22 = vpop.eup %8841  ;;  %v5536_v58 = vmul.f32 %v10841_v24, %v5503_v41  ;;  %8853 = vtanh.f32 %v2264_v12  ;;  %v2493_v1 = vadd.f32 %v14681_v14, %v2459_v36  ;;  %v2755_v13 = vadd.f32 %v14682_v2, %v2721_v60 }
 0x2a2   : > { %v8844_v62 = vpop.eup %8843  ;;  %v5306_v35 = vadd.f32 %v5274_v9, %v5044_v0  ;;  %v5798_v34 = vmul.f32 %v10855_v15, %v5765_v32  ;;  %v756_v48 = vmul.f32 0.5, %v8842_v22  ;;  %v3017_v16 = vadd.f32 %v10616_v8, %v2983_v39  ;;  %v14684_v32 = vld [vmem:[#allocation35_spill] sm:$0xff] }
 0x2a3   : > { %v1018_v46 = vmul.f32 0.5, %v8844_v62  ;;  %v2526_v53 = vmul.f32 0.5, %v2493_v1  ;;  %v2788_v25 = vmul.f32 0.5, %v2755_v13  ;;  %v3245_v7 = vmul.f32 %v14683_v10, %v11228_v40 }
 0x2a4   : > { %v8846_v63 = vpop.eup %8845  ;;  %v5568_v41 = vadd.f32 %v5536_v58, %v5306_v35  ;;  %v788_v12 = vadd.f32 0.5, %v756_v48  ;;  %v3050_v24 = vmul.f32 0.5, %v3017_v16  ;;  %v3507_v36 = vmul.f32 %v14660_v54, %v11228_v40 }
 0x2a5   : > { %v8848_v60 = vpop.eup %8847  ;;  %v1050_v0 = vadd.f32 0.5, %v1018_v46  ;;  %v1280_v9 = vmul.f32 0.5, %v8846_v63  ;;  %8855 = vtanh.f32 %v2526_v53  ;;  %v3279_v22 = vadd.f32 %v14684_v32, %v3245_v7  ;;  %v14685_v7 = vld [vmem:[#allocation39_spill] sm:$0xff] }
 0x2a6   : > { %v5830_v39 = vadd.f32 %v5798_v34, %v5568_v41  ;;  %v821_v1 = vmul.f32 %v10641_v28, %v788_v12  ;;  %v1542_v13 = vmul.f32 0.5, %v8848_v60  ;;  %8857 = vtanh.f32 %v2788_v25  ;;  %v14686_v25 = vld [vmem:[#allocation40_spill] sm:$0xff] }
 0x2a7   : > { %v8850_v62 = vpop.eup %8849  ;;  %v1083_v8 = vmul.f32 %v14659_v30, %v1050_v0  ;;  %v1312_v58 = vadd.f32 0.5, %v1280_v9  ;;  %8859 = vtanh.f32 %v3050_v24  ;;  %v3312_v35 = vmul.f32 0.5, %v3279_v22  ;;  %v14687_v30 = vld [vmem:[#allocation50_spill] sm:$0xff] }
 0x2a8   : > { %v8852_v48 = vpop.eup %8851  ;;  %v5864_v16 = vadd.f32 %v14662_v56, %v5830_v39  ;;  %v1574_v54 = vadd.f32 0.5, %v1542_v13  ;;  %v1804_v46 = vmul.f32 0.5, %v8850_v62  ;;  %v3541_v63 = vadd.f32 %v14664_v29, %v3507_v36  ;;  %v14688_v13 = vld [vmem:[#allocation53_spill] sm:$0xff] }
 0x2a9   : > { %v1115_v53 = vadd.f32 %v1083_v8, %v821_v1  ;;  %v1345_v34 = vmul.f32 %v14685_v7, %v1312_v58  ;;  %v2066_v41 = vmul.f32 0.5, %v8852_v48  ;;  %8861 = vtanh.f32 %v3312_v35  ;;  %v14689_v35 = vld [vmem:[#allocation51_spill] sm:$0xff] }
 0x2aa   : > { %v5896_v12 = vmul.f32 0.5, %v5864_v16  ;;  %v1607_v60 = vmul.f32 %v14686_v25, %v1574_v54  ;;  %v1836_v32 = vadd.f32 0.5, %v1804_v46  ;;  %v3574_v0 = vmul.f32 0.5, %v3541_v63  ;;  %v14690_v63 = vld [vmem:[#allocation57_spill] sm:$0xff] }
 0x2ab   : > { %v8854_v9 = vpop.eup %8853  ;;  %v1377_v24 = vadd.f32 %v1345_v34, %v1115_v53  ;;  %v2098_v22 = vadd.f32 0.5, %v2066_v41  ;;  %v3769_v39 = vmul.f32 %v14687_v30, %v11228_v40  ;;  %v4031_v62 = vmul.f32 %v14688_v13, %v11228_v40  ;;  %v14691_v34 = vld [vmem:[#allocation59_spill] sm:$0xff] }
 0x2ac   : > { %8863 = vtanh.f32 %v5896_v12  ;;  %v1869_v8 = vmul.f32 %v14666_v17, %v1836_v32  ;;  %v2328_v36 = vmul.f32 0.5, %v8854_v9  ;;  %v4293_v1 = vmul.f32 %v14644_v6, %v11228_v40  ;;  %v14692_v17 = vld [vmem:[#allocation62_spill] sm:$0xff] }
 0x2ad   : > { %v1639_v58 = vadd.f32 %v1607_v60, %v1377_v24  ;;  %v2131_v54 = vmul.f32 %v14667_v47, %v2098_v22  ;;  %8865 = vtanh.f32 %v3574_v0  ;;  %v3803_v48 = vadd.f32 %v14689_v35, %v3769_v39 }
 0x2ae   : > { %v2360_v16 = vadd.f32 0.5, %v2328_v36  ;;  %v4065_v46 = vadd.f32 %v14642_v51, %v4031_v62  ;;  %v4327_v53 = vadd.f32 %v14690_v63, %v4293_v1  ;;  %v4555_v41 = vmul.f32 %v14691_v34, %v11228_v40 }
 0x2af   : > { %v8856_v12 = vpop.eup %8855  ;;  %v1901_v32 = vadd.f32 %v1869_v8, %v1639_v58  ;;  %v3836_v9 = vmul.f32 0.5, %v3803_v48  ;;  %v4817_v6 = vmul.f32 %v14692_v17, %v11228_v40  ;;  %v5079_v60 = vmul.f32 %v14671_v5, %v11228_v40 }
 0x2b0   : > { %v8858_v0 = vpop.eup %8857  ;;  %v2393_v24 = vmul.f32 %v14668_v59, %v2360_v16  ;;  %v2590_v22 = vmul.f32 0.5, %v8856_v12  ;;  %v4098_v39 = vmul.f32 0.5, %v4065_v46  ;;  %v4360_v62 = vmul.f32 0.5, %v4327_v53 }
 0x2b1   : > { %v8860_v36 = vpop.eup %8859  ;;  %v2163_v1 = vadd.f32 %v2131_v54, %v1901_v32  ;;  %v2852_v63 = vmul.f32 0.5, %v8858_v0  ;;  %8867 = vtanh.f32 %v3836_v9  ;;  %v4589_v34 = vadd.f32 %v14669_v11, %v4555_v41  ;;  %v14693_v41 = vld [vmem:[#allocation66_spill] sm:$0xff]  ;;  %v14694_v0 = vld [vmem:[#allocation68_spill] sm:$0xff] }
 0x2b2   : > { %v2622_v8 = vadd.f32 0.5, %v2590_v22  ;;  %v3114_v58 = vmul.f32 0.5, %v8860_v36  ;;  %8869 = vtanh.f32 %v4098_v39  ;;  %v4851_v48 = vadd.f32 %v14670_v43, %v4817_v6  ;;  %v11316_v39 = vld [vmem:[%s10393_s0 + $0x30] sm:$0xff] }
 0x2b3   : > { %v8862_v17 = vpop.eup %8861  ;;  %v2425_v5 = vadd.f32 %v2393_v24, %v2163_v1  ;;  %v2884_v47 = vadd.f32 0.5, %v2852_v63  ;;  %8871 = vtanh.f32 %v4360_v62  ;;  %v4622_v16 = vmul.f32 0.5, %v4589_v34  ;;  %v14695_v63 = vld [vmem:[#allocation46_spill] sm:$0xff] }
 0x2b4   : > { %v2655_v46 = vmul.f32 %v14648_v52, %v2622_v8  ;;  %v3146_v53 = vadd.f32 0.5, %v3114_v58  ;;  %v3376_v12 = vmul.f32 0.5, %v8862_v17  ;;  %v4884_v54 = vmul.f32 0.5, %v4851_v48  ;;  %v14696_v58 = vld [vmem:[#allocation47_spill] sm:$0xff] }
 0x2b5   : > { %v2917_v32 = vmul.f32 %v14649_v27, %v2884_v47  ;;  %8873 = vtanh.f32 %v4622_v16  ;;  %v5113_v9 = vadd.f32 %v14693_v41, %v5079_v60  ;;  %v5341_v22 = vmul.f32 %v14694_v0, %v11228_v40 }
 0x2b6   : > { %v8864_v6 = vpop.eup %8863  ;;  %v2687_v24 = vadd.f32 %v2655_v46, %v2425_v5  ;;  %v3179_v62 = vmul.f32 %v14695_v63, %v3146_v53  ;;  %v3408_v34 = vadd.f32 0.5, %v3376_v12  ;;  %8875 = vtanh.f32 %v4884_v54  ;;  %v14698_v53 = vld [vmem:[#allocation72_spill] sm:$0xff] }
 0x2b7   : > { %v8866_v36 = vpop.eup %8865  ;;  %v5960_v1 = vmul.f32 0.5, %v8864_v6  ;;  %v5146_v17 = vmul.f32 0.5, %v5113_v9  ;;  %v5375_v8 = vadd.f32 %v14630_v19, %v5341_v22  ;;  %v5603_v47 = vmul.f32 %v14629_v21, %v11228_v40  ;;  %v14699_v6 = vld [vmem:[#allocation15_spill] sm:$0xff] }
 0x2b8   : > { %v2949_v60 = vadd.f32 %v2917_v32, %v2687_v24  ;;  %v3441_v48 = vmul.f32 %v14696_v58, %v3408_v34  ;;  %v3638_v16 = vmul.f32 0.5, %v8866_v36  ;;  %v626_v27 = vmul.f32 %v14674_v23, %v11316_v39 }
 0x2b9   : > { %v11325_v5 = vadd.f32 0.5, %v5960_v1  ;;  %8877 = vtanh.f32 %v5146_v17  ;;  %v5408_v46 = vmul.f32 0.5, %v5375_v8  ;;  %v5637_v12 = vadd.f32 %v14698_v53, %v5603_v47 }
 0x2ba   : > { %v3211_v54 = vadd.f32 %v3179_v62, %v2949_v60  ;;  %v3670_v9 = vadd.f32 0.5, %v3638_v16  ;;  %v660_v22 = vadd.f32 %v14677_v49, %v626_v27  ;;  %v888_v40 = vmul.f32 %v14699_v6, %v11316_v39  ;;  %v14700_v16 = vld [vmem:[#allocation17_spill] sm:$0xff] }
 0x2bb   : > { %14697 = vst [vmem:[#allocation79_spill] sm:$0xff] %v11325_v5  ;;  %v8868_v32 = vpop.eup %8867  ;;  %6028 = vadd.xlane.f32.xlu0 %v11325_v5  ;;  %8879 = vtanh.f32 %v5408_v46  ;;  %v5670_v24 = vmul.f32 0.5, %v5637_v12  ;;  %v1150_v34 = vmul.f32 %v14679_v3, %v11316_v39  ;;  %v1412_v36 = vmul.f32 %v14680_v42, %v11316_v39 }
 0x2bc   : > { %v8870_v1 = vpop.eup %8869  ;;  %v3473_v17 = vadd.f32 %v3441_v48, %v3211_v54  ;;  %v3703_v62 = vmul.f32 %v14678_v18, %v3670_v9  ;;  %v3900_v8 = vmul.f32 0.5, %v8868_v32  ;;  %v693_v27 = vmul.f32 0.5, %v660_v22 }
 0x2bd   : > { %v8872_v47 = vpop.eup %8871  ;;  %v4162_v60 = vmul.f32 0.5, %v8870_v1  ;;  %8881 = vtanh.f32 %v5670_v24  ;;  %v922_v6 = vadd.f32 %v14700_v16, %v888_v40  ;;  %v1184_v46 = vadd.f32 %v14655_v55, %v1150_v34  ;;  %v14701_v24 = vld [vmem:[#allocation22_spill] sm:$0xff]  ;;  %v14702_v1 = vld [vmem:[#allocation55_spill] sm:$0xff] }
 0x2be   : > { %v3735_v12 = vadd.f32 %v3703_v62, %v3473_v17  ;;  %v3932_v5 = vadd.f32 0.5, %v3900_v8  ;;  %v4424_v49 = vmul.f32 0.5, %v8872_v47  ;;  %8883 = vtanh.f32 %v693_v27 }
 0x2bf   : > { %v8874_v3 = vpop.eup %8873  ;;  %v4194_v23 = vadd.f32 0.5, %v4162_v60  ;;  %v955_v42 = vmul.f32 0.5, %v922_v6  ;;  %v1217_v53 = vmul.f32 0.5, %v1184_v46  ;;  %v1446_v48 = vadd.f32 %v10550_v31, %v1412_v36 }
 0x2c0   : > { %v8876_v54 = vpop.eup %8875  ;;  %v3965_v9 = vmul.f32 %v14656_v26, %v3932_v5  ;;  %v4456_v22 = vadd.f32 0.5, %v4424_v49  ;;  %v4686_v32 = vmul.f32 0.5, %v8874_v3  ;;  %v1674_v40 = vmul.f32 %v14701_v24, %v11316_v39  ;;  %v14703_v49 = vld [vmem:[#allocation24_spill] sm:$0xff] }
 0x2c1   : > { %v4227_v34 = vmul.f32 %v14702_v1, %v4194_v23  ;;  %v4948_v17 = vmul.f32 0.5, %v8876_v54  ;;  %8885 = vtanh.f32 %v955_v42  ;;  %v1479_v62 = vmul.f32 0.5, %v1446_v48 }
 0x2c2   : > { %v3997_v8 = vadd.f32 %v3965_v9, %v3735_v12  ;;  %v4489_v27 = vmul.f32 %v10781_v61, %v4456_v22  ;;  %v4718_v6 = vadd.f32 0.5, %v4686_v32  ;;  %8887 = vtanh.f32 %v1217_v53 }
 0x2c3   : > { %v8878_v47 = vpop.eup %8877  ;;  %v4980_v36 = vadd.f32 0.5, %v4948_v17  ;;  %8889 = vtanh.f32 %v1479_v62  ;;  %v1708_v5 = vadd.f32 %v10559_v38, %v1674_v40  ;;  %v1936_v3 = vmul.f32 %v14703_v49, %v11316_v39 }
 0x2c4   : > { %v4259_v60 = vadd.f32 %v4227_v34, %v3997_v8  ;;  %v4751_v46 = vmul.f32 %v10798_v37, %v4718_v6  ;;  %v5210_v23 = vmul.f32 0.5, %v8878_v47  ;;  %v2198_v42 = vmul.f32 %v10568_v45, %v11316_v39 }
 0x2c5   : > { %v8880_v12 = vpop.eup %8879  ;;  %v5013_v48 = vmul.f32 %v10816_v4, %v4980_v36  ;;  %v1741_v54 = vmul.f32 0.5, %v1708_v5  ;;  %v1970_v53 = vadd.f32 %v10566_v44, %v1936_v3  ;;  %v2460_v9 = vmul.f32 %v14658_v33, %v11316_v39 }
 0x2c6   : > { %v4521_v22 = vadd.f32 %v4489_v27, %v4259_v60  ;;  %v5242_v32 = vadd.f32 0.5, %v5210_v23  ;;  %v5472_v40 = vmul.f32 0.5, %v8880_v12  ;;  %v2232_v34 = vadd.f32 %v10573_v50, %v2198_v42  ;;  %v14704_v42 = vld [vmem:[#allocation70_spill] sm:$0xff]  ;;  %v14705_v50 = vld [vmem:[#allocation32_spill] sm:$0xff] }
 0x2c7   : > { %v8882_v17 = vpop.eup %8881  ;;  %8891 = vtanh.f32 %v1741_v54  ;;  %v2003_v62 = vmul.f32 0.5, %v1970_v53  ;;  %v2494_v8 = vadd.f32 %v14681_v14, %v2460_v9  ;;  %v2722_v6 = vmul.f32 %v10588_v57, %v11316_v39 }
 0x2c8   : > { %v8884_v47 = vpop.eup %8883  ;;  %v4783_v36 = vadd.f32 %v4751_v46, %v4521_v22  ;;  %v5275_v5 = vmul.f32 %v10825_v20, %v5242_v32  ;;  %v5504_v3 = vadd.f32 0.5, %v5472_v40  ;;  %v5734_v45 = vmul.f32 0.5, %v8882_v17 }
 0x2c9   : > { %v757_v33 = vmul.f32 0.5, %v8884_v47  ;;  %8893 = vtanh.f32 %v2003_v62  ;;  %v2265_v27 = vmul.f32 0.5, %v2232_v34  ;;  %v2527_v60 = vmul.f32 0.5, %v2494_v8 }
 0x2ca   : > { %v5045_v23 = vadd.f32 %v5013_v48, %v4783_v36  ;;  %v5537_v12 = vmul.f32 %v14704_v42, %v5504_v3  ;;  %v5766_v54 = vadd.f32 0.5, %v5734_v45  ;;  %v2756_v53 = vadd.f32 %v14682_v2, %v2722_v6  ;;  %v14706_v6 = vld [vmem:[#allocation33_spill] sm:$0xff] }
 0x2cb   : > { %v8886_v9 = vpop.eup %8885  ;;  %v789_v14 = vadd.f32 0.5, %v757_v33  ;;  %8895 = vtanh.f32 %v2265_v27  ;;  %v2984_v46 = vmul.f32 %v14705_v50, %v11316_v39  ;;  %v3246_v22 = vmul.f32 %v14683_v10, %v11316_v39  ;;  %v14707_v27 = vld [vmem:[#allocation35_spill] sm:$0xff] }
 0x2cc   : > { %v8888_v32 = vpop.eup %8887  ;;  %v5307_v40 = vadd.f32 %v5275_v5, %v5045_v23  ;;  %v5799_v34 = vmul.f32 %v10855_v15, %v5766_v54  ;;  %v1019_v17 = vmul.f32 0.5, %v8886_v9  ;;  %8897 = vtanh.f32 %v2527_v60  ;;  %v14708_v5 = vld [vmem:[#allocation36_spill] sm:$0xff]  ;;  %v14709_v60 = vld [vmem:[#allocation38_spill] sm:$0xff] }
 0x2cd   : > { %v8890_v48 = vpop.eup %8889  ;;  %v822_v45 = vmul.f32 %v10641_v28, %v789_v14  ;;  %v1281_v62 = vmul.f32 0.5, %v8888_v32  ;;  %v2789_v8 = vmul.f32 0.5, %v2756_v53  ;;  %v3018_v33 = vadd.f32 %v14706_v6, %v2984_v46 }
 0x2ce   : > { %v5569_v47 = vadd.f32 %v5537_v12, %v5307_v40  ;;  %v1051_v36 = vadd.f32 0.5, %v1019_v17  ;;  %v1543_v3 = vmul.f32 0.5, %v8890_v48  ;;  %v3280_v50 = vadd.f32 %v14707_v27, %v3246_v22 }
 0x2cf   : > { %v1313_v2 = vadd.f32 0.5, %v1281_v62  ;;  %8899 = vtanh.f32 %v2789_v8  ;;  %v3051_v10 = vmul.f32 0.5, %v3018_v33  ;;  %v3508_v23 = vmul.f32 %v14708_v5, %v11316_v39 }
 0x2d0   : > { %v5831_v54 = vadd.f32 %v5799_v34, %v5569_v47  ;;  %v1084_v9 = vmul.f32 %v14709_v60, %v1051_v36  ;;  %v1575_v15 = vadd.f32 0.5, %v1543_v3  ;;  %v3313_v14 = vmul.f32 0.5, %v3280_v50 }
 0x2d1   : > { %v8892_v32 = vpop.eup %8891  ;;  %v1346_v53 = vmul.f32 %v14685_v7, %v1313_v2  ;;  %8901 = vtanh.f32 %v3051_v10  ;;  %v3542_v12 = vadd.f32 %v14664_v29, %v3508_v23  ;;  %v3770_v46 = vmul.f32 %v14687_v30, %v11316_v39 }
 0x2d2   : > { %v5865_v22 = vadd.f32 %v14662_v56, %v5831_v54  ;;  %v1116_v40 = vadd.f32 %v1084_v9, %v822_v45  ;;  %v1608_v17 = vmul.f32 %v14686_v25, %v1575_v15  ;;  %v1805_v48 = vmul.f32 0.5, %v8892_v32  ;;  %v14710_v15 = vld [vmem:[#allocation56_spill] sm:$0xff] }
 0x2d3   : > { %v8894_v34 = vpop.eup %8893  ;;  %8903 = vtanh.f32 %v3313_v14  ;;  %v3575_v62 = vmul.f32 0.5, %v3542_v12  ;;  %v3804_v50 = vadd.f32 %v14689_v35, %v3770_v46  ;;  %v4032_v2 = vmul.f32 %v14688_v13, %v11316_v39  ;;  %v14711_v14 = vld [vmem:[#allocation41_spill] sm:$0xff] }
 0x2d4   : > { %v5897_v10 = vmul.f32 0.5, %v5865_v22  ;;  %v1378_v8 = vadd.f32 %v1346_v53, %v1116_v40  ;;  %v1837_v33 = vadd.f32 0.5, %v1805_v48  ;;  %v2067_v47 = vmul.f32 0.5, %v8894_v34  ;;  %v14712_v40 = vld [vmem:[#allocation42_spill] sm:$0xff]  ;;  %v14713_v34 = vld [vmem:[#allocation57_spill] sm:$0xff] }
 0x2d5   : > { %v8896_v36 = vpop.eup %8895  ;;  %8905 = vtanh.f32 %v3575_v62  ;;  %v3837_v3 = vmul.f32 0.5, %v3804_v50  ;;  %v4066_v45 = vadd.f32 %v14642_v51, %v4032_v2  ;;  %v4294_v23 = vmul.f32 %v14710_v15, %v11316_v39  ;;  %v14714_v50 = vld [vmem:[#allocation59_spill] sm:$0xff] }
 0x2d6   : > { %v8898_v54 = vpop.eup %8897  ;;  %8907 = vtanh.f32 %v5897_v10  ;;  %v1640_v9 = vadd.f32 %v1608_v17, %v1378_v8  ;;  %v1870_v32 = vmul.f32 %v14711_v14, %v1837_v33  ;;  %v2099_v12 = vadd.f32 0.5, %v2067_v47  ;;  %v14715_v17 = vld [vmem:[#allocation62_spill] sm:$0xff] }
 0x2d7   : > { %v2329_v46 = vmul.f32 0.5, %v8896_v36  ;;  %v2591_v13 = vmul.f32 0.5, %v8898_v54  ;;  %8909 = vtanh.f32 %v3837_v3  ;;  %v4099_v53 = vmul.f32 0.5, %v4066_v45 }
 0x2d8   : > { %v1902_v22 = vadd.f32 %v1870_v32, %v1640_v9  ;;  %v2132_v48 = vmul.f32 %v14712_v40, %v2099_v12  ;;  %v4328_v62 = vadd.f32 %v14713_v34, %v4294_v23  ;;  %v4556_v2 = vmul.f32 %v14714_v50, %v11316_v39  ;;  %v14716_v9 = vld [vmem:[#allocation65_spill] sm:$0xff] }
 0x2d9   : > { %v8900_v51 = vpop.eup %8899  ;;  %v2361_v15 = vadd.f32 0.5, %v2329_v46  ;;  %v2623_v25 = vadd.f32 0.5, %v2591_v13  ;;  %8911 = vtanh.f32 %v4099_v53  ;;  %v4818_v10 = vmul.f32 %v14715_v17, %v11316_v39 }
 0x2da   : > { %v2164_v8 = vadd.f32 %v2132_v48, %v1902_v22  ;;  %v2853_v33 = vmul.f32 0.5, %v8900_v51  ;;  %v4361_v47 = vmul.f32 0.5, %v4328_v62  ;;  %v4590_v36 = vadd.f32 %v14669_v11, %v4556_v2  ;;  %v14717_v62 = vld [vmem:[#allocation45_spill] sm:$0xff] }
 0x2db   : > { %v8902_v3 = vpop.eup %8901  ;;  %v2394_v45 = vmul.f32 %v14668_v59, %v2361_v15  ;;  %v2656_v23 = vmul.f32 %v14648_v52, %v2623_v25  ;;  %v4852_v54 = vadd.f32 %v14670_v43, %v4818_v10  ;;  %v5080_v32 = vmul.f32 %v14716_v9, %v11316_v39 }
 0x2dc   : > { %v2885_v13 = vadd.f32 0.5, %v2853_v33  ;;  %v3115_v12 = vmul.f32 0.5, %v8902_v3  ;;  %8913 = vtanh.f32 %v4361_v47  ;;  %v4623_v46 = vmul.f32 0.5, %v4590_v36 }
 0x2dd   : > { %v8904_v53 = vpop.eup %8903  ;;  %v2426_v22 = vadd.f32 %v2394_v45, %v2164_v8  ;;  %v4885_v51 = vmul.f32 0.5, %v4852_v54  ;;  %v5114_v48 = vadd.f32 %v14693_v41, %v5080_v32  ;;  %v5342_v15 = vmul.f32 %v14694_v0, %v11316_v39  ;;  %v11407_v32 = vld [vmem:[%s10393_s0 + $0x38] sm:$0xff] }
 0x2de   : > { %v2918_v25 = vmul.f32 %v14717_v62, %v2885_v13  ;;  %v3147_v2 = vadd.f32 0.5, %v3115_v12  ;;  %v3377_v10 = vmul.f32 0.5, %v8904_v53  ;;  %8915 = vtanh.f32 %v4623_v46 }
 0x2df   : > { %v8906_v43 = vpop.eup %8905  ;;  %v2688_v9 = vadd.f32 %v2656_v23, %v2426_v22  ;;  %8917 = vtanh.f32 %v4885_v51  ;;  %v5147_v33 = vmul.f32 0.5, %v5114_v48  ;;  %v5376_v47 = vadd.f32 %v14630_v19, %v5342_v15  ;;  %v14718_v48 = vld [vmem:[#allocation72_spill] sm:$0xff] }
 0x2e0   : > { %v8908_v36 = vpop.eup %8907  ;;  %v3180_v8 = vmul.f32 %v14695_v63, %v3147_v2  ;;  %v3409_v3 = vadd.f32 0.5, %v3377_v10  ;;  %v3639_v45 = vmul.f32 0.5, %v8906_v43  ;;  %v5604_v54 = vmul.f32 %v14629_v21, %v11316_v39  ;;  %v14720_v39 = vld [vmem:[#allocation14_spill] sm:$0xff] }
 0x2e1   : > { %v8910_v13 = vpop.eup %8909  ;;  %v5961_v12 = vmul.f32 0.5, %v8908_v36  ;;  %v2950_v53 = vadd.f32 %v2918_v25, %v2688_v9  ;;  %8919 = vtanh.f32 %v5147_v33  ;;  %v5409_v46 = vmul.f32 0.5, %v5376_v47  ;;  %v14721_v47 = vld [vmem:[#allocation16_spill] sm:$0xff] }
 0x2e2   : > { %v3442_v23 = vmul.f32 %v14696_v58, %v3409_v3  ;;  %v3671_v22 = vadd.f32 0.5, %v3639_v45  ;;  %v3901_v51 = vmul.f32 0.5, %v8910_v13  ;;  %v5638_v15 = vadd.f32 %v14718_v48, %v5604_v54  ;;  %v14722_v45 = vld [vmem:[#allocation15_spill] sm:$0xff]  ;;  %v14723_v13 = vld [vmem:[#allocation18_spill] sm:$0xff] }
 0x2e3   : > { %v8912_v19 = vpop.eup %8911  ;;  %v11411_v2 = vadd.f32 0.5, %v5961_v12  ;;  %v3212_v43 = vadd.f32 %v3180_v8, %v2950_v53  ;;  %8921 = vtanh.f32 %v5409_v46  ;;  %v627_v10 = vmul.f32 %v14720_v39, %v11407_v32 }
 0x2e4   : > { %v3704_v21 = vmul.f32 %v14678_v18, %v3671_v22  ;;  %v3933_v36 = vadd.f32 0.5, %v3901_v51  ;;  %v4163_v9 = vmul.f32 0.5, %v8912_v19  ;;  %v5671_v25 = vmul.f32 0.5, %v5638_v15  ;;  %v14724_v22 = vld [vmem:[#allocation20_spill] sm:$0xff] }
 0x2e5   : > { %14719 = vst [vmem:[#allocation80_spill] sm:$0xff] %v11411_v2  ;;  %6030 = vadd.xlane.f32.xlu1 %v11411_v2  ;;  %v3474_v33 = vadd.f32 %v3442_v23, %v3212_v43  ;;  %v661_v3 = vadd.f32 %v14721_v47, %v627_v10  ;;  %v889_v54 = vmul.f32 %v14722_v45, %v11407_v32 }
 0x2e6   : > { %v1151_v8 = vmul.f32 %v14723_v13, %v11407_v32  ;;  %v8914_v12 = vpop.eup %8913  ;;  %v3966_v53 = vmul.f32 %v14656_v26, %v3933_v36  ;;  %v4195_v46 = vadd.f32 0.5, %v4163_v9  ;;  %8923 = vtanh.f32 %v5671_v25 }
 0x2e7   : > { %v1413_v19 = vmul.f32 %v14724_v22, %v11407_v32  ;;  %v3736_v51 = vadd.f32 %v3704_v21, %v3474_v33  ;;  %v4425_v15 = vmul.f32 0.5, %v8914_v12  ;;  %v694_v2 = vmul.f32 0.5, %v661_v3 }
 0x2e8   : > { %v923_v23 = vadd.f32 %v14700_v16, %v889_v54  ;;  %v8916_v43 = vpop.eup %8915  ;;  %v4228_v10 = vmul.f32 %v14702_v1, %v4195_v46  ;;  %v1185_v47 = vadd.f32 %v14655_v55, %v1151_v8  ;;  %v1675_v36 = vmul.f32 %v14701_v24, %v11407_v32 }
 0x2e9   : > { %v1447_v13 = vadd.f32 %v10550_v31, %v1413_v19  ;;  %v8918_v9 = vpop.eup %8917  ;;  %v3998_v25 = vadd.f32 %v3966_v53, %v3736_v51  ;;  %v4457_v26 = vadd.f32 0.5, %v4425_v15  ;;  %v4687_v45 = vmul.f32 0.5, %v8916_v43 }
 0x2ea   : > { %8925 = vtanh.f32 %v694_v2  ;;  %v4949_v21 = vmul.f32 0.5, %v8918_v9  ;;  %v956_v33 = vmul.f32 0.5, %v923_v23  ;;  %v1218_v3 = vmul.f32 0.5, %v1185_v47 }
 0x2eb   : > { %v1480_v12 = vmul.f32 0.5, %v1447_v13  ;;  %v8920_v54 = vpop.eup %8919  ;;  %v4260_v22 = vadd.f32 %v4228_v10, %v3998_v25  ;;  %v4490_v46 = vmul.f32 %v10781_v61, %v4457_v26  ;;  %v4719_v1 = vadd.f32 0.5, %v4687_v45  ;;  %v14725_v10 = vld [vmem:[#allocation26_spill] sm:$0xff] }
 0x2ec   : > { %v1709_v8 = vadd.f32 %v10559_v38, %v1675_v36  ;;  %v4981_v19 = vadd.f32 0.5, %v4949_v21  ;;  %v5211_v31 = vmul.f32 0.5, %v8920_v54  ;;  %8927 = vtanh.f32 %v956_v33  ;;  %v14727_v54 = vld [vmem:[#allocation27_spill] sm:$0xff] }
 0x2ed   : > { %v1937_v53 = vmul.f32 %v14703_v49, %v11407_v32  ;;  %v8922_v51 = vpop.eup %8921  ;;  %v4522_v15 = vadd.f32 %v4490_v46, %v4260_v22  ;;  %v4752_v2 = vmul.f32 %v10798_v37, %v4719_v1  ;;  %8929 = vtanh.f32 %v1218_v3  ;;  %v14726_v1 = vld [vmem:[#allocation28_spill] sm:$0xff] }
 0x2ee   : > { %v1742_v47 = vmul.f32 0.5, %v1709_v8  ;;  %v5014_v13 = vmul.f32 %v10816_v4, %v4981_v19  ;;  %v5243_v23 = vadd.f32 0.5, %v5211_v31  ;;  %v5473_v43 = vmul.f32 0.5, %v8922_v51  ;;  %v14728_v19 = vld [vmem:[#allocation29_spill] sm:$0xff]  ;;  %v14729_v51 = vld [vmem:[#allocation31_spill] sm:$0xff] }
 0x2ef   : > { %8931 = vtanh.f32 %v1480_v12  ;;  %v4784_v26 = vadd.f32 %v4752_v2, %v4522_v15  ;;  %v1971_v45 = vadd.f32 %v10566_v44, %v1937_v53  ;;  %v2199_v36 = vmul.f32 %v14725_v10, %v11407_v32  ;;  %v14730_v2 = vld [vmem:[#allocation32_spill] sm:$0xff] }
 0x2f0   : > { %8933 = vtanh.f32 %v1742_v47  ;;  %v8924_v9 = vpop.eup %8923  ;;  %v5276_v25 = vmul.f32 %v10825_v20, %v5243_v23  ;;  %v5505_v22 = vadd.f32 0.5, %v5473_v43  ;;  %v2461_v21 = vmul.f32 %v14726_v1, %v11407_v32 }
 0x2f1   : > { %v2723_v33 = vmul.f32 %v10588_v57, %v11407_v32  ;;  %v5046_v31 = vadd.f32 %v5014_v13, %v4784_v26  ;;  %v5735_v3 = vmul.f32 0.5, %v8924_v9  ;;  %v2004_v12 = vmul.f32 0.5, %v1971_v45  ;;  %v14731_v9 = vld [vmem:[#allocation73_spill] sm:$0xff] }
 0x2f2   : > { %v2233_v46 = vadd.f32 %v14727_v54, %v2199_v36  ;;  %v5538_v8 = vmul.f32 %v14704_v42, %v5505_v22  ;;  %v2495_v53 = vadd.f32 %v14728_v19, %v2461_v21  ;;  %v2985_v47 = vmul.f32 %v14730_v2, %v11407_v32  ;;  %v14732_v21 = vld [vmem:[#allocation34_spill] sm:$0xff] }
 0x2f3   : > { %v2757_v15 = vadd.f32 %v14729_v51, %v2723_v33  ;;  %v5308_v43 = vadd.f32 %v5276_v25, %v5046_v31  ;;  %v5767_v20 = vadd.f32 0.5, %v5735_v3  ;;  %8935 = vtanh.f32 %v2004_v12 }
 0x2f4   : > { %v8926_v23 = vpop.eup %8925  ;;  %v2266_v4 = vmul.f32 0.5, %v2233_v46  ;;  %v2528_v13 = vmul.f32 0.5, %v2495_v53  ;;  %v3019_v45 = vadd.f32 %v14706_v6, %v2985_v47  ;;  %v3247_v33 = vmul.f32 %v14732_v21, %v11407_v32 }
 0x2f5   : > { %v758_v57 = vmul.f32 0.5, %v8926_v23  ;;  %v2790_v26 = vmul.f32 0.5, %v2757_v15  ;;  %v5570_v36 = vadd.f32 %v5538_v8, %v5308_v43  ;;  %v5800_v22 = vmul.f32 %v14731_v9, %v5767_v20 }
 0x2f6   : > { %8937 = vtanh.f32 %v2266_v4  ;;  %v8928_v42 = vpop.eup %8927  ;;  %v3052_v2 = vmul.f32 0.5, %v3019_v45  ;;  %v3509_v25 = vmul.f32 %v14708_v5, %v11407_v32  ;;  %v3281_v46 = vadd.f32 %v14707_v27, %v3247_v33 }
 0x2f7   : > { %v790_v51 = vadd.f32 0.5, %v758_v57  ;;  %8939 = vtanh.f32 %v2528_v13  ;;  %v8930_v31 = vpop.eup %8929  ;;  %v5832_v3 = vadd.f32 %v5800_v22, %v5570_v36  ;;  %v1020_v12 = vmul.f32 0.5, %v8928_v42 }
 0x2f8   : > { %8941 = vtanh.f32 %v2790_v26  ;;  %v1282_v4 = vmul.f32 0.5, %v8930_v31  ;;  %v3543_v53 = vadd.f32 %v14664_v29, %v3509_v25  ;;  %v3314_v43 = vmul.f32 0.5, %v3281_v46 }
 0x2f9   : > { %v8932_v8 = vpop.eup %8931  ;;  %v823_v20 = vmul.f32 %v10641_v28, %v790_v51  ;;  %8943 = vtanh.f32 %v3052_v2  ;;  %v5866_v57 = vadd.f32 %v14662_v56, %v5832_v3  ;;  %v1052_v47 = vadd.f32 0.5, %v1020_v12  ;;  %v14733_v12 = vld [vmem:[#allocation40_spill] sm:$0xff] }
 0x2fa   : > { %v8934_v15 = vpop.eup %8933  ;;  %v1544_v23 = vmul.f32 0.5, %v8932_v8  ;;  %v1314_v13 = vadd.f32 0.5, %v1282_v4  ;;  %v3576_v36 = vmul.f32 0.5, %v3543_v53  ;;  %v3771_v42 = vmul.f32 %v14687_v30, %v11407_v32  ;;  %v14734_v8 = vld [vmem:[#allocation53_spill] sm:$0xff] }
 0x2fb   : > { %v1806_v45 = vmul.f32 0.5, %v8934_v15  ;;  %v5898_v26 = vmul.f32 0.5, %v5866_v57  ;;  %v1085_v22 = vmul.f32 %v14709_v60, %v1052_v47  ;;  %8945 = vtanh.f32 %v3314_v43  ;;  %v14735_v47 = vld [vmem:[#allocation56_spill] sm:$0xff] }
 0x2fc   : > { %v1576_v51 = vadd.f32 0.5, %v1544_v23  ;;  %v1347_v2 = vmul.f32 %v14685_v7, %v1314_v13  ;;  %8947 = vtanh.f32 %v3576_v36  ;;  %v3805_v25 = vadd.f32 %v14689_v35, %v3771_v42 }
 0x2fd   : > { %v1838_v33 = vadd.f32 0.5, %v1806_v45  ;;  %v8936_v31 = vpop.eup %8935  ;;  %8949 = vtanh.f32 %v5898_v26  ;;  %v1117_v3 = vadd.f32 %v1085_v22, %v823_v20  ;;  %v4033_v4 = vmul.f32 %v14734_v8, %v11407_v32  ;;  %v14736_v45 = vld [vmem:[#allocation54_spill] sm:$0xff] }
 0x2fe   : > { %v1609_v46 = vmul.f32 %v14733_v12, %v1576_v51  ;;  %v2068_v15 = vmul.f32 0.5, %v8936_v31  ;;  %v3838_v57 = vmul.f32 0.5, %v3805_v25  ;;  %v4295_v23 = vmul.f32 %v14735_v47, %v11407_v32 }
 0x2ff   : > { %v1871_v53 = vmul.f32 %v14711_v14, %v1838_v33  ;;  %v1379_v13 = vadd.f32 %v1347_v2, %v1117_v3  ;;  %v4067_v36 = vadd.f32 %v14736_v45, %v4033_v4  ;;  %v4557_v42 = vmul.f32 %v14714_v50, %v11407_v32 }
 0x300   : > { %v8938_v43 = vpop.eup %8937  ;;  %v4819_v20 = vmul.f32 %v14715_v17, %v11407_v32  ;;  %v2100_v22 = vadd.f32 0.5, %v2068_v15  ;;  %8951 = vtanh.f32 %v3838_v57  ;;  %v4329_v33 = vadd.f32 %v14713_v34, %v4295_v23 }
 0x301   : > { %v8940_v26 = vpop.eup %8939  ;;  %v2330_v51 = vmul.f32 0.5, %v8938_v43  ;;  %v1641_v31 = vadd.f32 %v1609_v46, %v1379_v13  ;;  %v4100_v12 = vmul.f32 0.5, %v4067_v36  ;;  %v4591_v2 = vadd.f32 %v14669_v11, %v4557_v42  ;;  %v14737_v42 = vld [vmem:[#allocation63_spill] sm:$0xff] }
 0x302   : > { %v8942_v25 = vpop.eup %8941  ;;  %v2592_v14 = vmul.f32 0.5, %v8940_v26  ;;  %v2133_v4 = vmul.f32 %v14712_v40, %v2100_v22  ;;  %v4362_v47 = vmul.f32 0.5, %v4329_v33  ;;  %v4853_v26 = vadd.f32 %v14737_v42, %v4819_v20 }
 0x303   : > { %v8944_v3 = vpop.eup %8943  ;;  %v2362_v45 = vadd.f32 0.5, %v2330_v51  ;;  %v2854_v50 = vmul.f32 0.5, %v8942_v25  ;;  %v1903_v8 = vadd.f32 %v1871_v53, %v1641_v31  ;;  %8953 = vtanh.f32 %v4100_v12 }
 0x304   : > { %v2624_v17 = vadd.f32 0.5, %v2592_v14  ;;  %v3116_v35 = vmul.f32 0.5, %v8944_v3  ;;  %8955 = vtanh.f32 %v4362_v47  ;;  %v4624_v23 = vmul.f32 0.5, %v4591_v2  ;;  %v14738_v14 = vld [vmem:[#allocation65_spill] sm:$0xff]  ;;  %v14739_v3 = vld [vmem:[#allocation71_spill] sm:$0xff] }
 0x305   : > { %v2395_v15 = vmul.f32 %v14668_v59, %v2362_v45  ;;  %v2886_v57 = vadd.f32 0.5, %v2854_v50  ;;  %v8946_v46 = vpop.eup %8945  ;;  %v2165_v43 = vadd.f32 %v2133_v4, %v1903_v8  ;;  %v5081_v12 = vmul.f32 %v14738_v14, %v11407_v32 }
 0x306   : > { %v2657_v13 = vmul.f32 %v14648_v52, %v2624_v17  ;;  %v3148_v36 = vadd.f32 0.5, %v3116_v35  ;;  %v8948_v22 = vpop.eup %8947  ;;  %v3378_v33 = vmul.f32 0.5, %v8946_v46  ;;  %8957 = vtanh.f32 %v4624_v23 }
 0x307   : > { %v2919_v51 = vmul.f32 %v14717_v62, %v2886_v57  ;;  %v8950_v53 = vpop.eup %8949  ;;  %v2427_v50 = vadd.f32 %v2395_v15, %v2165_v43  ;;  %v3640_v45 = vmul.f32 0.5, %v8948_v22  ;;  %v4886_v8 = vmul.f32 0.5, %v4853_v26  ;;  %v11493_v57 = vld [vmem:[%s10393_s0 + $0x40] sm:$0xff] }
 0x308   : > { %v3181_v47 = vmul.f32 %v14695_v63, %v3148_v36  ;;  %v5962_v25 = vmul.f32 0.5, %v8950_v53  ;;  %v3410_v17 = vadd.f32 0.5, %v3378_v33  ;;  %v5115_v35 = vadd.f32 %v14693_v41, %v5081_v12  ;;  %v14741_v36 = vld [vmem:[#allocation69_spill] sm:$0xff] }
 0x309   : > { %v5343_v20 = vmul.f32 %v14694_v0, %v11407_v32  ;;  %v2689_v31 = vadd.f32 %v2657_v13, %v2427_v50  ;;  %v3672_v2 = vadd.f32 0.5, %v3640_v45  ;;  %8959 = vtanh.f32 %v4886_v8  ;;  %v14742_v50 = vld [vmem:[#allocation15_spill] sm:$0xff] }
 0x30a   : > { %v5605_v4 = vmul.f32 %v14739_v3, %v11407_v32  ;;  %v8952_v15 = vpop.eup %8951  ;;  %v11495_v23 = vadd.f32 0.5, %v5962_v25  ;;  %v3443_v46 = vmul.f32 %v14696_v58, %v3410_v17  ;;  %v5148_v43 = vmul.f32 0.5, %v5115_v35 }
 0x30b   : > { %v5377_v26 = vadd.f32 %v14741_v36, %v5343_v20  ;;  %v2951_v22 = vadd.f32 %v2919_v51, %v2689_v31  ;;  %v3705_v33 = vmul.f32 %v14678_v18, %v3672_v2  ;;  %v3902_v12 = vmul.f32 0.5, %v8952_v15  ;;  %v14743_v51 = vld [vmem:[#allocation18_spill] sm:$0xff] }
 0x30c   : > { %14740 = vst [vmem:[#allocation81_spill] sm:$0xff] %v11495_v23  ;;  %v5639_v13 = vadd.f32 %v14718_v48, %v5605_v4  ;;  %6032 = vadd.xlane.f32.xlu0 %v11495_v23  ;;  %8961 = vtanh.f32 %v5148_v43  ;;  %v628_v53 = vmul.f32 %v14720_v39, %v11493_v57  ;;  %v890_v45 = vmul.f32 %v14742_v50, %v11493_v57  ;;  %v14744_v4 = vld [vmem:[#allocation16_spill] sm:$0xff] }
 0x30d   : > { %v5410_v32 = vmul.f32 0.5, %v5377_v26  ;;  %v8954_v8 = vpop.eup %8953  ;;  %v3213_v25 = vadd.f32 %v3181_v47, %v2951_v22  ;;  %v3934_v17 = vadd.f32 0.5, %v3902_v12  ;;  %v1152_v20 = vmul.f32 %v14743_v51, %v11493_v57  ;;  %v14745_v23 = vld [vmem:[#allocation52_spill] sm:$0xff] }
 0x30e   : > { %v5672_v35 = vmul.f32 0.5, %v5639_v13  ;;  %v8956_v31 = vpop.eup %8955  ;;  %v4164_v2 = vmul.f32 0.5, %v8954_v8  ;;  %v662_v15 = vadd.f32 %v14744_v4, %v628_v53  ;;  %v924_v43 = vadd.f32 %v14700_v16, %v890_v45  ;;  %v14747_v53 = vld [vmem:[#allocation55_spill] sm:$0xff] }
 0x30f   : > { %8963 = vtanh.f32 %v5410_v32  ;;  %v3475_v26 = vadd.f32 %v3443_v46, %v3213_v25  ;;  %v3967_v48 = vmul.f32 %v14745_v23, %v3934_v17  ;;  %v4426_v39 = vmul.f32 0.5, %v8956_v31  ;;  %v14746_v32 = vld [vmem:[#allocation20_spill] sm:$0xff] }
 0x310   : > { %8965 = vtanh.f32 %v5672_v35  ;;  %v8958_v50 = vpop.eup %8957  ;;  %v4196_v18 = vadd.f32 0.5, %v4164_v2  ;;  %v695_v47 = vmul.f32 0.5, %v662_v15  ;;  %v957_v22 = vmul.f32 0.5, %v924_v43 }
 0x311   : > { %v1186_v12 = vadd.f32 %v14655_v55, %v1152_v20  ;;  %v3737_v13 = vadd.f32 %v3705_v33, %v3475_v26  ;;  %v4458_v51 = vadd.f32 0.5, %v4426_v39  ;;  %v4688_v3 = vmul.f32 0.5, %v8958_v50  ;;  %v14748_v39 = vld [vmem:[#allocation21_spill] sm:$0xff] }
 0x312   : > { %v1414_v8 = vmul.f32 %v14746_v32, %v11493_v57  ;;  %v4229_v4 = vmul.f32 %v14747_v53, %v4196_v18  ;;  %8967 = vtanh.f32 %v695_v47  ;;  %v1676_v45 = vmul.f32 %v14701_v24, %v11493_v57 }
 0x313   : > { %v1219_v46 = vmul.f32 0.5, %v1186_v12  ;;  %v8960_v25 = vpop.eup %8959  ;;  %v3999_v17 = vadd.f32 %v3967_v48, %v3737_v13  ;;  %v4491_v35 = vmul.f32 %v10781_v61, %v4458_v51  ;;  %v4720_v31 = vadd.f32 0.5, %v4688_v3 }
 0x314   : > { %8969 = vtanh.f32 %v957_v22  ;;  %v4950_v20 = vmul.f32 0.5, %v8960_v25  ;;  %v1448_v33 = vadd.f32 %v14748_v39, %v1414_v8  ;;  %v1710_v50 = vadd.f32 %v10559_v38, %v1676_v45 }
 0x315   : > { %8971 = vtanh.f32 %v1219_v46  ;;  %v4261_v2 = vadd.f32 %v4229_v4, %v3999_v17  ;;  %v4753_v18 = vmul.f32 %v10798_v37, %v4720_v31  ;;  %v1938_v15 = vmul.f32 %v14703_v49, %v11493_v57  ;;  %v14749_v46 = vld [vmem:[#allocation64_spill] sm:$0xff]  ;;  %v14750_v17 = vld [vmem:[#allocation30_spill] sm:$0xff] }
 0x316   : > { %v2200_v43 = vmul.f32 %v14725_v10, %v11493_v57  ;;  %v8962_v48 = vpop.eup %8961  ;;  %v4982_v26 = vadd.f32 0.5, %v4950_v20  ;;  %v1481_v51 = vmul.f32 0.5, %v1448_v33  ;;  %v1743_v3 = vmul.f32 0.5, %v1710_v50 }
 0x317   : > { %v2462_v47 = vmul.f32 %v14726_v1, %v11493_v57  ;;  %v4523_v22 = vadd.f32 %v4491_v35, %v4261_v2  ;;  %v5212_v12 = vmul.f32 0.5, %v8962_v48  ;;  %v1972_v13 = vadd.f32 %v10566_v44, %v1938_v15 }
 0x318   : > { %v2234_v4 = vadd.f32 %v14727_v54, %v2200_v43  ;;  %v5015_v45 = vmul.f32 %v14749_v46, %v4982_v26  ;;  %8973 = vtanh.f32 %v1481_v51  ;;  %v2724_v31 = vmul.f32 %v14750_v17, %v11493_v57  ;;  %v14751_v43 = vld [vmem:[#allocation67_spill] sm:$0xff]  ;;  %v14753_v17 = vld [vmem:[#allocation32_spill] sm:$0xff] }
 0x319   : > { %v8964_v8 = vpop.eup %8963  ;;  %v2496_v25 = vadd.f32 %v14728_v19, %v2462_v47  ;;  %v4785_v33 = vadd.f32 %v4753_v18, %v4523_v22  ;;  %v5244_v50 = vadd.f32 0.5, %v5212_v12  ;;  %8975 = vtanh.f32 %v1743_v3  ;;  %v14752_v26 = vld [vmem:[#allocation31_spill] sm:$0xff]  ;;  %v14754_v12 = vld [vmem:[#allocation70_spill] sm:$0xff] }
 0x31a   : > { %v8966_v20 = vpop.eup %8965  ;;  %v5474_v38 = vmul.f32 0.5, %v8964_v8  ;;  %v2005_v2 = vmul.f32 0.5, %v1972_v13  ;;  %v2267_v48 = vmul.f32 0.5, %v2234_v4  ;;  %v2758_v51 = vadd.f32 %v14752_v26, %v2724_v31 }
 0x31b   : > { %v5736_v35 = vmul.f32 0.5, %v8966_v20  ;;  %v2529_v15 = vmul.f32 0.5, %v2496_v25  ;;  %v5047_v44 = vadd.f32 %v5015_v45, %v4785_v33  ;;  %v5277_v54 = vmul.f32 %v14751_v43, %v5244_v50 }
 0x31c   : > { %v5506_v37 = vadd.f32 0.5, %v5474_v38  ;;  %v8968_v46 = vpop.eup %8967  ;;  %8977 = vtanh.f32 %v2005_v2  ;;  %v2986_v19 = vmul.f32 %v14753_v17, %v11493_v57  ;;  %v3248_v18 = vmul.f32 %v14732_v21, %v11493_v57 }
 0x31d   : > { %v5768_v47 = vadd.f32 0.5, %v5736_v35  ;;  %v5309_v22 = vadd.f32 %v5277_v54, %v5047_v44  ;;  %v759_v4 = vmul.f32 0.5, %v8968_v46  ;;  %8979 = vtanh.f32 %v2267_v48 }
 0x31e   : > { %v8970_v3 = vpop.eup %8969  ;;  %v5539_v13 = vmul.f32 %v14754_v12, %v5506_v37  ;;  %8981 = vtanh.f32 %v2529_v15  ;;  %v2791_v25 = vmul.f32 0.5, %v2758_v51  ;;  %v3020_v50 = vadd.f32 %v14706_v6, %v2986_v19 }
 0x31f   : > { %v8972_v8 = vpop.eup %8971  ;;  %v5801_v38 = vmul.f32 %v14731_v9, %v5768_v47  ;;  %v1021_v45 = vmul.f32 0.5, %v8970_v3  ;;  %v791_v20 = vadd.f32 0.5, %v759_v4  ;;  %v3282_v2 = vadd.f32 %v14707_v27, %v3248_v18 }
 0x320   : > { %v5571_v31 = vadd.f32 %v5539_v13, %v5309_v22  ;;  %v1283_v33 = vmul.f32 0.5, %v8972_v8  ;;  %8983 = vtanh.f32 %v2791_v25  ;;  %v3510_v44 = vmul.f32 %v14708_v5, %v11493_v57 }
 0x321   : > { %v1053_v35 = vadd.f32 0.5, %v1021_v45  ;;  %v824_v54 = vmul.f32 %v10641_v28, %v791_v20  ;;  %v3053_v48 = vmul.f32 0.5, %v3020_v50  ;;  %v3315_v51 = vmul.f32 0.5, %v3282_v2  ;;  %v14755_v20 = vld [vmem:[#allocation51_spill] sm:$0xff]  ;;  %v14756_v50 = vld [vmem:[#allocation53_spill] sm:$0xff] }
 0x322   : > { %v5833_v37 = vadd.f32 %v5801_v38, %v5571_v31  ;;  %v1315_v46 = vadd.f32 0.5, %v1283_v33  ;;  %v8974_v47 = vpop.eup %8973  ;;  %v3544_v3 = vadd.f32 %v14664_v29, %v3510_v44  ;;  %v3772_v19 = vmul.f32 %v14687_v30, %v11493_v57 }
 0x323   : > { %v1086_v15 = vmul.f32 %v14709_v60, %v1053_v35  ;;  %v8976_v22 = vpop.eup %8975  ;;  %v1545_v4 = vmul.f32 0.5, %v8974_v47  ;;  %8985 = vtanh.f32 %v3053_v48  ;;  %v4034_v35 = vmul.f32 %v14756_v50, %v11493_v57 }
 0x324   : > { %v5867_v18 = vadd.f32 %v14662_v56, %v5833_v37  ;;  %v1348_v13 = vmul.f32 %v14685_v7, %v1315_v46  ;;  %v1807_v38 = vmul.f32 0.5, %v8976_v22  ;;  %8987 = vtanh.f32 %v3315_v51  ;;  %v14757_v37 = vld [vmem:[#allocation56_spill] sm:$0xff]  ;;  %v14759_v22 = vld [vmem:[#allocation41_spill] sm:$0xff] }
 0x325   : > { %v1118_v8 = vadd.f32 %v1086_v15, %v824_v54  ;;  %v3577_v45 = vmul.f32 0.5, %v3544_v3  ;;  %v1577_v31 = vadd.f32 0.5, %v1545_v4  ;;  %v3806_v33 = vadd.f32 %v14755_v20, %v3772_v19  ;;  %v14758_v54 = vld [vmem:[#allocation40_spill] sm:$0xff]  ;;  %v14760_v4 = vld [vmem:[#allocation54_spill] sm:$0xff] }
 0x326   : > { %v5899_v25 = vmul.f32 0.5, %v5867_v18  ;;  %v8978_v2 = vpop.eup %8977  ;;  %v1839_v29 = vadd.f32 0.5, %v1807_v38  ;;  %v4296_v46 = vmul.f32 %v14757_v37, %v11493_v57  ;;  %v4068_v7 = vadd.f32 %v14760_v4, %v4034_v35 }
 0x327   : > { %v1380_v44 = vadd.f32 %v1348_v13, %v1118_v8  ;;  %8989 = vtanh.f32 %v3577_v45  ;;  %v8980_v47 = vpop.eup %8979  ;;  %v1610_v48 = vmul.f32 %v14758_v54, %v1577_v31  ;;  %v2069_v15 = vmul.f32 0.5, %v8978_v2  ;;  %v14761_v31 = vld [vmem:[#allocation59_spill] sm:$0xff] }
 0x328   : > { %8991 = vtanh.f32 %v5899_v25  ;;  %v3839_v51 = vmul.f32 0.5, %v3806_v33  ;;  %v8982_v3 = vpop.eup %8981  ;;  %v1872_v18 = vmul.f32 %v14759_v22, %v1839_v29  ;;  %v2331_v19 = vmul.f32 0.5, %v8980_v47 }
 0x329   : > { %v4330_v56 = vadd.f32 %v14713_v34, %v4296_v46  ;;  %v1642_v13 = vadd.f32 %v1610_v48, %v1380_v44  ;;  %v2101_v8 = vadd.f32 0.5, %v2069_v15  ;;  %v2593_v38 = vmul.f32 0.5, %v8982_v3  ;;  %v14762_v46 = vld [vmem:[#allocation62_spill] sm:$0xff] }
 0x32a   : > { %8993 = vtanh.f32 %v3839_v51  ;;  %v8984_v45 = vpop.eup %8983  ;;  %v2363_v37 = vadd.f32 0.5, %v2331_v19  ;;  %v4101_v50 = vmul.f32 0.5, %v4068_v7  ;;  %v4558_v2 = vmul.f32 %v14761_v31, %v11493_v57 }
 0x32b   : > { %v4363_v25 = vmul.f32 0.5, %v4330_v56  ;;  %v1904_v33 = vadd.f32 %v1872_v18, %v1642_v13  ;;  %v2134_v54 = vmul.f32 %v14712_v40, %v2101_v8  ;;  %v2625_v29 = vadd.f32 0.5, %v2593_v38 }
 0x32c   : > { %v2855_v47 = vmul.f32 0.5, %v8984_v45  ;;  %v2396_v35 = vmul.f32 %v14668_v59, %v2363_v37  ;;  %8995 = vtanh.f32 %v4101_v50  ;;  %v4592_v44 = vadd.f32 %v14669_v11, %v4558_v2 }
 0x32d   : > { %v4820_v48 = vmul.f32 %v14762_v46, %v11493_v57  ;;  %v8986_v15 = vpop.eup %8985  ;;  %v2166_v51 = vadd.f32 %v2134_v54, %v1904_v33  ;;  %v2658_v56 = vmul.f32 %v14648_v52, %v2625_v29  ;;  %8997 = vtanh.f32 %v4363_v25 }
 0x32e   : > { %v2887_v7 = vadd.f32 0.5, %v2855_v47  ;;  %v8988_v3 = vpop.eup %8987  ;;  %v3117_v18 = vmul.f32 0.5, %v8986_v15  ;;  %v4625_v19 = vmul.f32 0.5, %v4592_v44  ;;  %v5082_v37 = vmul.f32 %v14738_v14, %v11493_v57 }
 0x32f   : > { %v4854_v13 = vadd.f32 %v14737_v42, %v4820_v48  ;;  %v2428_v50 = vadd.f32 %v2396_v35, %v2166_v51  ;;  %v3379_v38 = vmul.f32 0.5, %v8988_v3  ;;  %v5344_v54 = vmul.f32 %v14694_v0, %v11493_v57  ;;  %v11579_v3 = vld [vmem:[%s10393_s0 + $0x48] sm:$0xff] }
 0x330   : > { %v2920_v8 = vmul.f32 %v14717_v62, %v2887_v7  ;;  %v3149_v2 = vadd.f32 0.5, %v3117_v18  ;;  %8999 = vtanh.f32 %v4625_v19  ;;  %v5116_v33 = vadd.f32 %v14693_v41, %v5082_v37 }
 0x331   : > { %v8990_v45 = vpop.eup %8989  ;;  %v4887_v25 = vmul.f32 0.5, %v4854_v13  ;;  %v2690_v47 = vadd.f32 %v2658_v56, %v2428_v50  ;;  %v3411_v44 = vadd.f32 0.5, %v3379_v38  ;;  %v5378_v15 = vadd.f32 %v14741_v36, %v5344_v54  ;;  %v14764_v50 = vld [vmem:[#allocation71_spill] sm:$0xff] }
 0x332   : > { %v8992_v29 = vpop.eup %8991  ;;  %v3641_v48 = vmul.f32 0.5, %v8990_v45  ;;  %v3182_v51 = vmul.f32 %v14695_v63, %v3149_v2  ;;  %v5149_v7 = vmul.f32 0.5, %v5116_v33  ;;  %v5606_v38 = vmul.f32 %v14764_v50, %v11493_v57  ;;  %v14765_v45 = vld [vmem:[#allocation49_spill] sm:$0xff] }
 0x333   : > { %v5963_v35 = vmul.f32 0.5, %v8992_v29  ;;  %9001 = vtanh.f32 %v4887_v25  ;;  %v2952_v0 = vadd.f32 %v2920_v8, %v2690_v47  ;;  %v3444_v18 = vmul.f32 %v14696_v58, %v3411_v44  ;;  %v14766_v25 = vld [vmem:[#allocation14_spill] sm:$0xff]  ;;  %v14767_v47 = vld [vmem:[#allocation72_spill] sm:$0xff] }
 0x334   : > { %v8994_v62 = vpop.eup %8993  ;;  %v3673_v19 = vadd.f32 0.5, %v3641_v48  ;;  %v5411_v13 = vmul.f32 0.5, %v5378_v15  ;;  %9003 = vtanh.f32 %v5149_v7  ;;  %v629_v33 = vmul.f32 %v14766_v25, %v11579_v3  ;;  %v14768_v48 = vld [vmem:[#allocation15_spill] sm:$0xff]  ;;  %v14769_v15 = vld [vmem:[#allocation18_spill] sm:$0xff]  ;;  %v14770_v7 = vld [vmem:[#allocation16_spill] sm:$0xff] }
 0x335   : > { %v11582_v37 = vadd.f32 0.5, %v5963_v35  ;;  %v3903_v56 = vmul.f32 0.5, %v8994_v62  ;;  %v3214_v54 = vadd.f32 %v3182_v51, %v2952_v0  ;;  %v5640_v44 = vadd.f32 %v14767_v47, %v5606_v38 }
 0x336   : > { %v3706_v2 = vmul.f32 %v14765_v45, %v3673_v19  ;;  %9005 = vtanh.f32 %v5411_v13  ;;  %v8996_v29 = vpop.eup %8995  ;;  %v891_v62 = vmul.f32 %v14768_v48, %v11579_v3  ;;  %v1153_v35 = vmul.f32 %v14769_v15, %v11579_v3 }
 0x337   : > { %14763 = vst [vmem:[#allocation82_spill] sm:$0xff] %v11582_v37  ;;  %6034 = vadd.xlane.f32.xlu1 %v11582_v37  ;;  %v3935_v8 = vadd.f32 0.5, %v3903_v56  ;;  %v8998_v57 = vpop.eup %8997  ;;  %v3476_v0 = vadd.f32 %v3444_v18, %v3214_v54  ;;  %v4165_v51 = vmul.f32 0.5, %v8996_v29  ;;  %v663_v19 = vadd.f32 %v14770_v7, %v629_v33 }
 0x338   : > { %v1415_v13 = vmul.f32 %v14746_v32, %v11579_v3  ;;  %v4427_v37 = vmul.f32 0.5, %v8998_v57  ;;  %v5673_v56 = vmul.f32 0.5, %v5640_v44  ;;  %v925_v38 = vadd.f32 %v14700_v16, %v891_v62 }
 0x339   : > { %v3968_v45 = vmul.f32 %v14745_v23, %v3935_v8  ;;  %v3738_v25 = vadd.f32 %v3706_v2, %v3476_v0  ;;  %v4197_v58 = vadd.f32 0.5, %v4165_v51  ;;  %v696_v48 = vmul.f32 0.5, %v663_v19 }
 0x33a   : > { %v1187_v63 = vadd.f32 %v14655_v55, %v1153_v35  ;;  %v9000_v15 = vpop.eup %8999  ;;  %v4459_v47 = vadd.f32 0.5, %v4427_v37  ;;  %9007 = vtanh.f32 %v5673_v56  ;;  %v958_v18 = vmul.f32 0.5, %v925_v38  ;;  %v14772_v56 = vld [vmem:[#allocation23_spill] sm:$0xff] }
 0x33b   : > { %v1449_v54 = vadd.f32 %v14748_v39, %v1415_v13  ;;  %v4000_v33 = vadd.f32 %v3968_v45, %v3738_v25  ;;  %v4230_v29 = vmul.f32 %v14747_v53, %v4197_v58  ;;  %v4689_v32 = vmul.f32 0.5, %v9000_v15 }
 0x33c   : > { %9009 = vtanh.f32 %v696_v48  ;;  %v4492_v44 = vmul.f32 %v10781_v61, %v4459_v47  ;;  %v1220_v2 = vmul.f32 0.5, %v1187_v63  ;;  %v1677_v37 = vmul.f32 %v14701_v24, %v11579_v3  ;;  %v14771_v48 = vld [vmem:[#allocation61_spill] sm:$0xff] }
 0x33d   : > { %v9002_v8 = vpop.eup %9001  ;;  %9011 = vtanh.f32 %v958_v18  ;;  %v1482_v62 = vmul.f32 0.5, %v1449_v54  ;;  %v4262_v57 = vadd.f32 %v4230_v29, %v4000_v33  ;;  %v4721_v0 = vadd.f32 0.5, %v4689_v32  ;;  %v14773_v18 = vld [vmem:[#allocation25_spill] sm:$0xff]  ;;  %v14774_v29 = vld [vmem:[#allocation64_spill] sm:$0xff] }
 0x33e   : > { %v4951_v35 = vmul.f32 0.5, %v9002_v8  ;;  %v9004_v51 = vpop.eup %9003  ;;  %9013 = vtanh.f32 %v1220_v2  ;;  %v1939_v45 = vmul.f32 %v14703_v49, %v11579_v3  ;;  %v2201_v58 = vmul.f32 %v14725_v10, %v11579_v3  ;;  %v14775_v10 = vld [vmem:[#allocation27_spill] sm:$0xff] }
 0x33f   : > { %v2463_v25 = vmul.f32 %v14726_v1, %v11579_v3  ;;  %v4524_v63 = vadd.f32 %v4492_v44, %v4262_v57  ;;  %v4754_v15 = vmul.f32 %v14771_v48, %v4721_v0  ;;  %v5213_v19 = vmul.f32 0.5, %v9004_v51  ;;  %v14776_v44 = vld [vmem:[#allocation29_spill] sm:$0xff] }
 0x340   : > { %v9006_v47 = vpop.eup %9005  ;;  %v4983_v32 = vadd.f32 0.5, %v4951_v35  ;;  %9015 = vtanh.f32 %v1482_v62  ;;  %v1711_v38 = vadd.f32 %v14772_v56, %v1677_v37  ;;  %v1973_v54 = vadd.f32 %v14773_v18, %v1939_v45  ;;  %v14777_v62 = vld [vmem:[#allocation30_spill] sm:$0xff] }
 0x341   : > { %v5475_v13 = vmul.f32 0.5, %v9006_v47  ;;  %v4786_v33 = vadd.f32 %v4754_v15, %v4524_v63  ;;  %v5245_v2 = vadd.f32 0.5, %v5213_v19  ;;  %v2235_v61 = vadd.f32 %v14775_v10, %v2201_v58 }
 0x342   : > { %v5016_v8 = vmul.f32 %v14774_v29, %v4983_v32  ;;  %v1744_v1 = vmul.f32 0.5, %v1711_v38  ;;  %v2006_v39 = vmul.f32 0.5, %v1973_v54  ;;  %v2497_v57 = vadd.f32 %v14776_v44, %v2463_v25 }
 0x343   : > { %v5507_v49 = vadd.f32 0.5, %v5475_v13  ;;  %v5278_v35 = vmul.f32 %v14751_v43, %v5245_v2  ;;  %v2268_v51 = vmul.f32 0.5, %v2235_v61  ;;  %v2725_v37 = vmul.f32 %v14777_v62, %v11579_v3 }
 0x344   : > { %v5048_v0 = vadd.f32 %v5016_v8, %v4786_v33  ;;  %v9008_v47 = vpop.eup %9007  ;;  %9017 = vtanh.f32 %v1744_v1  ;;  %v2530_v63 = vmul.f32 0.5, %v2497_v57  ;;  %v2987_v58 = vmul.f32 %v14753_v17, %v11579_v3 }
 0x345   : > { %v5540_v45 = vmul.f32 %v14754_v12, %v5507_v49  ;;  %v5737_v19 = vmul.f32 0.5, %v9008_v47  ;;  %9019 = vtanh.f32 %v2006_v39  ;;  %v2759_v25 = vadd.f32 %v14752_v26, %v2725_v37 }
 0x346   : > { %v9010_v15 = vpop.eup %9009  ;;  %v5310_v32 = vadd.f32 %v5278_v35, %v5048_v0  ;;  %9021 = vtanh.f32 %v2268_v51  ;;  %v3021_v61 = vadd.f32 %v14706_v6, %v2987_v58  ;;  %v3249_v54 = vmul.f32 %v14732_v21, %v11579_v3 }
 0x347   : > { %v9012_v13 = vpop.eup %9011  ;;  %v760_v38 = vmul.f32 0.5, %v9010_v15  ;;  %v5769_v1 = vadd.f32 0.5, %v5737_v19  ;;  %9023 = vtanh.f32 %v2530_v63  ;;  %v2792_v57 = vmul.f32 0.5, %v2759_v25 }
 0x348   : > { %v5572_v49 = vadd.f32 %v5540_v45, %v5310_v32  ;;  %v1022_v33 = vmul.f32 0.5, %v9012_v13  ;;  %v9014_v8 = vpop.eup %9013  ;;  %v3054_v0 = vmul.f32 0.5, %v3021_v61  ;;  %v3283_v39 = vadd.f32 %v14707_v27, %v3249_v54 }
 0x349   : > { %v792_v2 = vadd.f32 0.5, %v760_v38  ;;  %v5802_v35 = vmul.f32 %v14731_v9, %v5769_v1  ;;  %v1284_v47 = vmul.f32 0.5, %v9014_v8  ;;  %v3511_v51 = vmul.f32 %v14708_v5, %v11579_v3  ;;  %v14778_v38 = vld [vmem:[#allocation48_spill] sm:$0xff]  ;;  %v14779_v1 = vld [vmem:[#allocation53_spill] sm:$0xff]  ;;  %v14780_v8 = vld [vmem:[#allocation74_spill] sm:$0xff] }
 0x34a   : > { %v1054_v37 = vadd.f32 0.5, %v1022_v33  ;;  %v9016_v58 = vpop.eup %9015  ;;  %9025 = vtanh.f32 %v2792_v57  ;;  %v3316_v45 = vmul.f32 0.5, %v3283_v39  ;;  %v3773_v63 = vmul.f32 %v14687_v30, %v11579_v3  ;;  %v14781_v39 = vld [vmem:[#allocation39_spill] sm:$0xff] }
 0x34b   : > { %v825_v15 = vmul.f32 %v10641_v28, %v792_v2  ;;  %v5834_v32 = vadd.f32 %v5802_v35, %v5572_v49  ;;  %v1316_v25 = vadd.f32 0.5, %v1284_v47  ;;  %v1546_v13 = vmul.f32 0.5, %v9016_v58  ;;  %v14782_v58 = vld [vmem:[#allocation40_spill] sm:$0xff] }
 0x34c   : > { %v1087_v19 = vmul.f32 %v14709_v60, %v1054_v37  ;;  %9027 = vtanh.f32 %v3054_v0  ;;  %v3545_v61 = vadd.f32 %v14778_v38, %v3511_v51  ;;  %v3807_v54 = vadd.f32 %v14755_v20, %v3773_v63 }
 0x34d   : > { %v4035_v33 = vmul.f32 %v14779_v1, %v11579_v3  ;;  %v5868_v2 = vadd.f32 %v14780_v8, %v5834_v32  ;;  %v1349_v28 = vmul.f32 %v14781_v39, %v1316_v25  ;;  %v1578_v27 = vadd.f32 0.5, %v1546_v13 }
 0x34e   : > { %v1119_v57 = vadd.f32 %v1087_v19, %v825_v15  ;;  %v9018_v30 = vpop.eup %9017  ;;  %9029 = vtanh.f32 %v3316_v45  ;;  %v3578_v49 = vmul.f32 0.5, %v3545_v61  ;;  %v3840_v35 = vmul.f32 0.5, %v3807_v54  ;;  %v14783_v15 = vld [vmem:[#allocation56_spill] sm:$0xff] }
 0x34f   : > { %v4069_v37 = vadd.f32 %v14760_v4, %v4035_v33  ;;  %v9020_v0 = vpop.eup %9019  ;;  %v5900_v47 = vmul.f32 0.5, %v5868_v2  ;;  %v1611_v63 = vmul.f32 %v14782_v58, %v1578_v27  ;;  %v1808_v20 = vmul.f32 0.5, %v9018_v30 }
 0x350   : > { %v1381_v51 = vadd.f32 %v1349_v28, %v1119_v57  ;;  %v9022_v60 = vpop.eup %9021  ;;  %v2070_v1 = vmul.f32 0.5, %v9020_v0  ;;  %9031 = vtanh.f32 %v3578_v49  ;;  %v4297_v19 = vmul.f32 %v14783_v15, %v11579_v3 }
 0x351   : > { %v4102_v32 = vmul.f32 0.5, %v4069_v37  ;;  %v9024_v25 = vpop.eup %9023  ;;  %9033 = vtanh.f32 %v5900_v47  ;;  %v1840_v13 = vadd.f32 0.5, %v1808_v20  ;;  %v2332_v61 = vmul.f32 0.5, %v9022_v60 }
 0x352   : > { %v1643_v45 = vadd.f32 %v1611_v63, %v1381_v51  ;;  %v2102_v54 = vadd.f32 0.5, %v2070_v1  ;;  %v2594_v33 = vmul.f32 0.5, %v9024_v25  ;;  %9035 = vtanh.f32 %v3840_v35 }
 0x353   : > { %v4331_v28 = vadd.f32 %v14713_v34, %v4297_v19  ;;  %v1873_v27 = vmul.f32 %v14759_v22, %v1840_v13  ;;  %v2364_v30 = vadd.f32 0.5, %v2332_v61  ;;  %9037 = vtanh.f32 %v4102_v32 }
 0x354   : > { %v4559_v2 = vmul.f32 %v14761_v31, %v11579_v3  ;;  %v9026_v57 = vpop.eup %9025  ;;  %v2135_v49 = vmul.f32 %v14712_v40, %v2102_v54  ;;  %v2626_v37 = vadd.f32 0.5, %v2594_v33  ;;  %v4821_v60 = vmul.f32 %v14762_v46, %v11579_v3 }
 0x355   : > { %v4364_v0 = vmul.f32 0.5, %v4331_v28  ;;  %v1905_v20 = vadd.f32 %v1873_v27, %v1643_v45  ;;  %v2397_v1 = vmul.f32 %v14668_v59, %v2364_v30  ;;  %v2856_v35 = vmul.f32 0.5, %v9026_v57  ;;  %v14784_v27 = vld [vmem:[#allocation68_spill] sm:$0xff] }
 0x356   : > { %v4593_v47 = vadd.f32 %v14669_v11, %v4559_v2  ;;  %v9028_v51 = vpop.eup %9027  ;;  %v2659_v63 = vmul.f32 %v14648_v52, %v2626_v37  ;;  %v4855_v32 = vadd.f32 %v14737_v42, %v4821_v60  ;;  %v5083_v19 = vmul.f32 %v14738_v14, %v11579_v3  ;;  %v14785_v37 = vld [vmem:[#allocation45_spill] sm:$0xff]  ;;  %v11669_v11 = vld [vmem:[%s10393_s0 + $0x50] sm:$0xff] }
 0x357   : > { %9039 = vtanh.f32 %v4364_v0  ;;  %v2167_v25 = vadd.f32 %v2135_v49, %v1905_v20  ;;  %v2888_v13 = vadd.f32 0.5, %v2856_v35  ;;  %v3118_v61 = vmul.f32 0.5, %v9028_v51 }
 0x358   : > { %v4626_v54 = vmul.f32 0.5, %v4593_v47  ;;  %v9030_v33 = vpop.eup %9029  ;;  %v4888_v45 = vmul.f32 0.5, %v4855_v32  ;;  %v5117_v28 = vadd.f32 %v14693_v41, %v5083_v19  ;;  %v5345_v30 = vmul.f32 %v14784_v27, %v11579_v3  ;;  %v14786_v47 = vld [vmem:[#allocation72_spill] sm:$0xff]  ;;  %v14787_v41 = vld [vmem:[#allocation46_spill] sm:$0xff] }
 0x359   : > { %v5607_v2 = vmul.f32 %v14764_v50, %v11579_v3  ;;  %v2429_v57 = vadd.f32 %v2397_v1, %v2167_v25  ;;  %v2921_v0 = vmul.f32 %v14785_v37, %v2888_v13  ;;  %v3150_v60 = vadd.f32 0.5, %v3118_v61 }
 0x35a   : > { %v3380_v52 = vmul.f32 0.5, %v9030_v33  ;;  %v9032_v49 = vpop.eup %9031  ;;  %9041 = vtanh.f32 %v4626_v54  ;;  %v5150_v20 = vmul.f32 0.5, %v5117_v28  ;;  %v5379_v35 = vadd.f32 %v14741_v36, %v5345_v30  ;;  %v14788_v33 = vld [vmem:[#allocation47_spill] sm:$0xff] }
 0x35b   : > { %v5641_v51 = vadd.f32 %v14786_v47, %v5607_v2  ;;  %v9034_v32 = vpop.eup %9033  ;;  %v2691_v19 = vadd.f32 %v2659_v63, %v2429_v57  ;;  %v3183_v27 = vmul.f32 %v14787_v41, %v3150_v60  ;;  %v3642_v42 = vmul.f32 0.5, %v9032_v49  ;;  %v14791_v49 = vld [vmem:[#allocation49_spill] sm:$0xff] }
 0x35c   : > { %v3412_v14 = vadd.f32 0.5, %v3380_v52  ;;  %v9036_v3 = vpop.eup %9035  ;;  %v5964_v1 = vmul.f32 0.5, %v9034_v32  ;;  %9043 = vtanh.f32 %v4888_v45  ;;  %v5412_v25 = vmul.f32 0.5, %v5379_v35  ;;  %v14790_v52 = vld [vmem:[#allocation14_spill] sm:$0xff] }
 0x35d   : > { %v5674_v13 = vmul.f32 0.5, %v5641_v51  ;;  %v9038_v61 = vpop.eup %9037  ;;  %v2953_v54 = vadd.f32 %v2921_v0, %v2691_v19  ;;  %v3674_v30 = vadd.f32 0.5, %v3642_v42  ;;  %v3904_v37 = vmul.f32 0.5, %v9036_v3 }
 0x35e   : > { %v3445_v28 = vmul.f32 %v14788_v33, %v3412_v14  ;;  %v11672_v2 = vadd.f32 0.5, %v5964_v1  ;;  %v4166_v63 = vmul.f32 0.5, %v9038_v61  ;;  %9045 = vtanh.f32 %v5150_v20  ;;  %v14792_v14 = vld [vmem:[#allocation15_spill] sm:$0xff]  ;;  %v14794_v61 = vld [vmem:[#allocation20_spill] sm:$0xff] }
 0x35f   : > { %v630_v57 = vmul.f32 %v14790_v52, %v11669_v11  ;;  %v3215_v60 = vadd.f32 %v3183_v27, %v2953_v54  ;;  %v3707_v41 = vmul.f32 %v14791_v49, %v3674_v30  ;;  %v3936_v32 = vadd.f32 0.5, %v3904_v37  ;;  %v14793_v27 = vld [vmem:[#allocation18_spill] sm:$0xff] }
 0x360   : > { %14789 = vst [vmem:[#allocation83_spill] sm:$0xff] %v11672_v2  ;;  %9047 = vtanh.f32 %v5412_v25  ;;  %6036 = vadd.xlane.f32.xlu0 %v11672_v2  ;;  %v4198_v0 = vadd.f32 0.5, %v4166_v63  ;;  %v892_v35 = vmul.f32 %v14792_v14, %v11669_v11  ;;  %v1154_v3 = vmul.f32 %v14793_v27, %v11669_v11 }
 0x361   : > { %v9040_v45 = vpop.eup %9039  ;;  %9049 = vtanh.f32 %v5674_v13  ;;  %v664_v42 = vadd.f32 %v14770_v7, %v630_v57  ;;  %v3477_v51 = vadd.f32 %v3445_v28, %v3215_v60  ;;  %v3969_v20 = vmul.f32 %v14745_v23, %v3936_v32  ;;  %v14795_v32 = vld [vmem:[#allocation21_spill] sm:$0xff] }
 0x362   : > { %v4428_v19 = vmul.f32 0.5, %v9040_v45  ;;  %v4231_v37 = vmul.f32 %v14747_v53, %v4198_v0  ;;  %v926_v25 = vadd.f32 %v14700_v16, %v892_v35  ;;  %v1416_v13 = vmul.f32 %v14794_v61, %v11669_v11  ;;  %v14796_v0 = vld [vmem:[#allocation24_spill] sm:$0xff]  ;;  %v14797_v35 = vld [vmem:[#allocation58_spill] sm:$0xff] }
 0x363   : > { %v697_v1 = vmul.f32 0.5, %v664_v42  ;;  %v3739_v54 = vadd.f32 %v3707_v41, %v3477_v51  ;;  %v1188_v63 = vadd.f32 %v14655_v55, %v1154_v3  ;;  %v1678_v28 = vmul.f32 %v14701_v24, %v11669_v11 }
 0x364   : > { %v4460_v30 = vadd.f32 0.5, %v4428_v19  ;;  %v9042_v57 = vpop.eup %9041  ;;  %v959_v60 = vmul.f32 0.5, %v926_v25  ;;  %v1450_v45 = vadd.f32 %v14795_v32, %v1416_v13  ;;  %v1940_v42 = vmul.f32 %v14796_v0, %v11669_v11 }
 0x365   : > { %9051 = vtanh.f32 %v697_v1  ;;  %v4001_v2 = vadd.f32 %v3969_v20, %v3739_v54  ;;  %v4690_v23 = vmul.f32 0.5, %v9042_v57  ;;  %v1221_v61 = vmul.f32 0.5, %v1188_v63  ;;  %v14798_v20 = vld [vmem:[#allocation26_spill] sm:$0xff] }
 0x366   : > { %v4493_v53 = vmul.f32 %v14797_v35, %v4460_v30  ;;  %v9044_v41 = vpop.eup %9043  ;;  %9053 = vtanh.f32 %v959_v60  ;;  %v1483_v51 = vmul.f32 0.5, %v1450_v45  ;;  %v1712_v19 = vadd.f32 %v14772_v56, %v1678_v28 }
 0x367   : > { %v1974_v3 = vadd.f32 %v14773_v18, %v1940_v42  ;;  %v4263_v24 = vadd.f32 %v4231_v37, %v4001_v2  ;;  %v4722_v1 = vadd.f32 0.5, %v4690_v23  ;;  %v4952_v25 = vmul.f32 0.5, %v9044_v41  ;;  %v14799_v2 = vld [vmem:[#allocation28_spill] sm:$0xff] }
 0x368   : > { %9055 = vtanh.f32 %v1221_v61  ;;  %v9046_v13 = vpop.eup %9045  ;;  %v1745_v32 = vmul.f32 0.5, %v1712_v19  ;;  %v2202_v54 = vmul.f32 %v14798_v20, %v11669_v11  ;;  %v2464_v37 = vmul.f32 %v14799_v2, %v11669_v11 }
 0x369   : > { %9057 = vtanh.f32 %v1483_v51  ;;  %v2007_v0 = vmul.f32 0.5, %v1974_v3  ;;  %v4525_v63 = vadd.f32 %v4493_v53, %v4263_v24  ;;  %v4755_v57 = vmul.f32 %v14771_v48, %v4722_v1 }
 0x36a   : > { %v9048_v30 = vpop.eup %9047  ;;  %v4984_v60 = vadd.f32 0.5, %v4952_v25  ;;  %v5214_v45 = vmul.f32 0.5, %v9046_v13  ;;  %9059 = vtanh.f32 %v1745_v32  ;;  %v2236_v23 = vadd.f32 %v14775_v10, %v2202_v54 }
 0x36b   : > { %v9050_v28 = vpop.eup %9049  ;;  %v5476_v35 = vmul.f32 0.5, %v9048_v30  ;;  %v4787_v61 = vadd.f32 %v4755_v57, %v4525_v63  ;;  %9061 = vtanh.f32 %v2007_v0  ;;  %v2498_v53 = vadd.f32 %v14776_v44, %v2464_v37 }
 0x36c   : > { %v5017_v42 = vmul.f32 %v14774_v29, %v4984_v60  ;;  %v5246_v41 = vadd.f32 0.5, %v5214_v45  ;;  %v5738_v51 = vmul.f32 0.5, %v9050_v28  ;;  %v2269_v24 = vmul.f32 0.5, %v2236_v23 }
 0x36d   : > { %v5508_v19 = vadd.f32 0.5, %v5476_v35  ;;  %v2726_v32 = vmul.f32 %v14777_v62, %v11669_v11  ;;  %v2531_v30 = vmul.f32 0.5, %v2498_v53  ;;  %v2988_v63 = vmul.f32 %v14753_v17, %v11669_v11 }
 0x36e   : > { %v5049_v3 = vadd.f32 %v5017_v42, %v4787_v61  ;;  %v5279_v1 = vmul.f32 %v14751_v43, %v5246_v41  ;;  %v5770_v25 = vadd.f32 0.5, %v5738_v51  ;;  %9063 = vtanh.f32 %v2269_v24 }
 0x36f   : > { %v9052_v13 = vpop.eup %9051  ;;  %v5541_v54 = vmul.f32 %v14754_v12, %v5508_v19  ;;  %v2760_v60 = vadd.f32 %v14752_v26, %v2726_v32  ;;  %9065 = vtanh.f32 %v2531_v30  ;;  %v3022_v28 = vadd.f32 %v14706_v6, %v2988_v63  ;;  %v14801_v30 = vld [vmem:[#allocation37_spill] sm:$0xff] }
 0x370   : > { %v5311_v35 = vadd.f32 %v5279_v1, %v5049_v3  ;;  %v5803_v0 = vmul.f32 %v14731_v9, %v5770_v25  ;;  %v761_v57 = vmul.f32 0.5, %v9052_v13  ;;  %v9054_v45 = vpop.eup %9053  ;;  %v3250_v23 = vmul.f32 %v14732_v21, %v11669_v11  ;;  %v14800_v1 = vld [vmem:[#allocation35_spill] sm:$0xff] }
 0x371   : > { %v3512_v37 = vmul.f32 %v14708_v5, %v11669_v11  ;;  %v1023_v51 = vmul.f32 0.5, %v9054_v45  ;;  %v2793_v19 = vmul.f32 0.5, %v2760_v60  ;;  %v3055_v3 = vmul.f32 0.5, %v3022_v28 }
 0x372   : > { %v9056_v61 = vpop.eup %9055  ;;  %v5573_v42 = vadd.f32 %v5541_v54, %v5311_v35  ;;  %v793_v41 = vadd.f32 0.5, %v761_v57  ;;  %v3284_v25 = vadd.f32 %v14800_v1, %v3250_v23  ;;  %v14802_v57 = vld [vmem:[#allocation38_spill] sm:$0xff] }
 0x373   : > { %v9058_v24 = vpop.eup %9057  ;;  %v1285_v53 = vmul.f32 0.5, %v9056_v61  ;;  %v3546_v32 = vadd.f32 %v14778_v38, %v3512_v37  ;;  %v1055_v6 = vadd.f32 0.5, %v1023_v51  ;;  %9067 = vtanh.f32 %v2793_v19 }
 0x374   : > { %v5835_v13 = vadd.f32 %v5803_v0, %v5573_v42  ;;  %v826_v63 = vmul.f32 %v14801_v30, %v793_v41  ;;  %v1547_v21 = vmul.f32 0.5, %v9058_v24  ;;  %v9060_v9 = vpop.eup %9059  ;;  %v3317_v5 = vmul.f32 0.5, %v3284_v25  ;;  %v14803_v0 = vld [vmem:[#allocation50_spill] sm:$0xff]  ;;  %v14804_v42 = vld [vmem:[#allocation53_spill] sm:$0xff] }
 0x375   : > { %v1317_v17 = vadd.f32 0.5, %v1285_v53  ;;  %v3579_v54 = vmul.f32 0.5, %v3546_v32  ;;  %v1088_v60 = vmul.f32 %v14802_v57, %v1055_v6  ;;  %v1809_v28 = vmul.f32 0.5, %v9060_v9  ;;  %v9062_v61 = vpop.eup %9061  ;;  %v14805_v6 = vld [vmem:[#allocation51_spill] sm:$0xff] }
 0x376   : > { %v5869_v35 = vadd.f32 %v14780_v8, %v5835_v13  ;;  %v1579_v45 = vadd.f32 0.5, %v1547_v21  ;;  %9069 = vtanh.f32 %v3055_v3  ;;  %v3774_v37 = vmul.f32 %v14803_v0, %v11669_v11 }
 0x377   : > { %v1350_v23 = vmul.f32 %v14781_v39, %v1317_v17  ;;  %v4036_v41 = vmul.f32 %v14804_v42, %v11669_v11  ;;  %v1120_v19 = vadd.f32 %v1088_v60, %v826_v63  ;;  %v1841_v53 = vadd.f32 0.5, %v1809_v28 }
 0x378   : > { %v5901_v51 = vmul.f32 0.5, %v5869_v35  ;;  %v1612_v24 = vmul.f32 %v14782_v58, %v1579_v45  ;;  %v9064_v25 = vpop.eup %9063  ;;  %v2071_v32 = vmul.f32 0.5, %v9062_v61  ;;  %9071 = vtanh.f32 %v3317_v5 }
 0x379   : > { %v3808_v9 = vadd.f32 %v14805_v6, %v3774_v37  ;;  %v4070_v21 = vadd.f32 %v14760_v4, %v4036_v41  ;;  %v1382_v17 = vadd.f32 %v1350_v23, %v1120_v19  ;;  %v1874_v3 = vmul.f32 %v14759_v22, %v1841_v53  ;;  %v9066_v0 = vpop.eup %9065 }
 0x37a   : > { %9073 = vtanh.f32 %v5901_v51  ;;  %v2333_v13 = vmul.f32 0.5, %v9064_v25  ;;  %v2103_v39 = vadd.f32 0.5, %v2071_v32  ;;  %v2595_v28 = vmul.f32 0.5, %v9066_v0  ;;  %v14807_v25 = vld [vmem:[#allocation63_spill] sm:$0xff]  ;;  %v14808_v32 = vld [vmem:[#allocation65_spill] sm:$0xff] }
 0x37b   : > { %9075 = vtanh.f32 %v3579_v54  ;;  %v3841_v35 = vmul.f32 0.5, %v3808_v9  ;;  %v4103_v63 = vmul.f32 0.5, %v4070_v21  ;;  %v1644_v60 = vadd.f32 %v1612_v24, %v1382_v17  ;;  %v14806_v24 = vld [vmem:[#allocation60_spill] sm:$0xff] }
 0x37c   : > { %v2365_v45 = vadd.f32 0.5, %v2333_v13  ;;  %v4298_v5 = vmul.f32 %v14783_v15, %v11669_v11  ;;  %v2136_v61 = vmul.f32 %v14712_v40, %v2103_v39  ;;  %v4560_v23 = vmul.f32 %v14761_v31, %v11669_v11  ;;  %v14809_v17 = vld [vmem:[#allocation44_spill] sm:$0xff] }
 0x37d   : > { %9077 = vtanh.f32 %v3841_v35  ;;  %v4822_v37 = vmul.f32 %v14762_v46, %v11669_v11  ;;  %v1906_v41 = vadd.f32 %v1874_v3, %v1644_v60  ;;  %v2627_v51 = vadd.f32 0.5, %v2595_v28  ;;  %v9068_v19 = vpop.eup %9067  ;;  %v14810_v3 = vld [vmem:[#allocation68_spill] sm:$0xff] }
 0x37e   : > { %v2398_v54 = vmul.f32 %v14668_v59, %v2365_v45  ;;  %9079 = vtanh.f32 %v4103_v63  ;;  %v4332_v0 = vadd.f32 %v14713_v34, %v4298_v5  ;;  %v4594_v53 = vadd.f32 %v14806_v24, %v4560_v23  ;;  %v11749_v45 = vld [vmem:[%s10393_s0 + $0x58] sm:$0xff]  ;;  %v14811_v34 = vld [vmem:[#allocation66_spill] sm:$0xff] }
 0x37f   : > { %v4856_v39 = vadd.f32 %v14807_v25, %v4822_v37  ;;  %v5084_v9 = vmul.f32 %v14808_v32, %v11669_v11  ;;  %v2168_v21 = vadd.f32 %v2136_v61, %v1906_v41  ;;  %v2660_v13 = vmul.f32 %v14809_v17, %v2627_v51 }
 0x380   : > { %v2857_v35 = vmul.f32 0.5, %v9068_v19  ;;  %v5346_v60 = vmul.f32 %v14810_v3, %v11669_v11  ;;  %v9070_v63 = vpop.eup %9069  ;;  %v4365_v28 = vmul.f32 0.5, %v4332_v0  ;;  %v4627_v46 = vmul.f32 0.5, %v4594_v53  ;;  %v14812_v53 = vld [vmem:[#allocation45_spill] sm:$0xff] }
 0x381   : > { %v4889_v5 = vmul.f32 0.5, %v4856_v39  ;;  %v5118_v23 = vadd.f32 %v14811_v34, %v5084_v9  ;;  %v2430_v24 = vadd.f32 %v2398_v54, %v2168_v21  ;;  %v3119_v25 = vmul.f32 0.5, %v9070_v63 }
 0x382   : > { %v2889_v37 = vadd.f32 0.5, %v2857_v35  ;;  %v5380_v32 = vadd.f32 %v14741_v36, %v5346_v60  ;;  %v9072_v61 = vpop.eup %9071  ;;  %9081 = vtanh.f32 %v4365_v28  ;;  %v5608_v51 = vmul.f32 %v14764_v50, %v11669_v11  ;;  %v14813_v28 = vld [vmem:[#allocation46_spill] sm:$0xff] }
 0x383   : > { %v5151_v41 = vmul.f32 0.5, %v5118_v23  ;;  %v631_v19 = vmul.f32 %v14790_v52, %v11749_v45  ;;  %v2692_v0 = vadd.f32 %v2660_v13, %v2430_v24  ;;  %v3151_v17 = vadd.f32 0.5, %v3119_v25 }
 0x384   : > { %v9074_v3 = vpop.eup %9073  ;;  %v2922_v39 = vmul.f32 %v14812_v53, %v2889_v37  ;;  %v3381_v9 = vmul.f32 0.5, %v9072_v61  ;;  %9083 = vtanh.f32 %v4627_v46  ;;  %v5413_v35 = vmul.f32 0.5, %v5380_v32 }
 0x385   : > { %v9076_v54 = vpop.eup %9075  ;;  %v5965_v21 = vmul.f32 0.5, %v9074_v3  ;;  %v5642_v60 = vadd.f32 %v14786_v47, %v5608_v51  ;;  %v3184_v23 = vmul.f32 %v14813_v28, %v3151_v17  ;;  %9085 = vtanh.f32 %v4889_v5 }
 0x386   : > { %v2954_v63 = vadd.f32 %v2922_v39, %v2692_v0  ;;  %v3413_v36 = vadd.f32 0.5, %v3381_v9  ;;  %v3643_v11 = vmul.f32 0.5, %v9076_v54  ;;  %v665_v13 = vadd.f32 %v14770_v7, %v631_v19  ;;  %v14815_v54 = vld [vmem:[#allocation52_spill] sm:$0xff] }
 0x387   : > { %v9078_v50 = vpop.eup %9077  ;;  %v11760_v34 = vadd.f32 0.5, %v5965_v21  ;;  %v5675_v24 = vmul.f32 0.5, %v5642_v60  ;;  %9087 = vtanh.f32 %v5151_v41  ;;  %v893_v51 = vmul.f32 %v14792_v14, %v11749_v45  ;;  %v14816_v41 = vld [vmem:[#allocation20_spill] sm:$0xff] }
 0x388   : > { %v9080_v25 = vpop.eup %9079  ;;  %v3216_v37 = vadd.f32 %v3184_v23, %v2954_v63  ;;  %v3446_v3 = vmul.f32 %v14788_v33, %v3413_v36  ;;  %v3675_v46 = vadd.f32 0.5, %v3643_v11  ;;  %v3905_v32 = vmul.f32 0.5, %v9078_v50  ;;  %v14817_v23 = vld [vmem:[#allocation55_spill] sm:$0xff] }
 0x389   : > { %14814 = vst [vmem:[#allocation84_spill] sm:$0xff] %v11760_v34  ;;  %6038 = vadd.xlane.f32.xlu1 %v11760_v34  ;;  %v4167_v61 = vmul.f32 0.5, %v9080_v25  ;;  %v698_v17 = vmul.f32 0.5, %v665_v13  ;;  %9089 = vtanh.f32 %v5413_v35  ;;  %v927_v9 = vadd.f32 %v14700_v16, %v893_v51 }
 0x38a   : > { %v3478_v0 = vadd.f32 %v3446_v3, %v3216_v37  ;;  %v3708_v5 = vmul.f32 %v14791_v49, %v3675_v46  ;;  %v3937_v39 = vadd.f32 0.5, %v3905_v32  ;;  %9091 = vtanh.f32 %v5675_v24  ;;  %v14818_v24 = vld [vmem:[#allocation22_spill] sm:$0xff]  ;;  %v14819_v46 = vld [vmem:[#allocation21_spill] sm:$0xff] }
 0x38b   : > { %v4199_v19 = vadd.f32 0.5, %v4167_v61  ;;  %v1155_v36 = vmul.f32 %v14793_v27, %v11749_v45  ;;  %9093 = vtanh.f32 %v698_v17  ;;  %v1417_v60 = vmul.f32 %v14816_v41, %v11749_v45  ;;  %v14820_v61 = vld [vmem:[#allocation24_spill] sm:$0xff] }
 0x38c   : > { %v3740_v50 = vadd.f32 %v3708_v5, %v3478_v0  ;;  %v3970_v21 = vmul.f32 %v14815_v54, %v3937_v39  ;;  %v9082_v63 = vpop.eup %9081  ;;  %v960_v13 = vmul.f32 0.5, %v927_v9  ;;  %v1679_v25 = vmul.f32 %v14818_v24, %v11749_v45 }
 0x38d   : > { %v4232_v11 = vmul.f32 %v14817_v23, %v4199_v19  ;;  %v1189_v35 = vadd.f32 %v14655_v55, %v1155_v36  ;;  %v4429_v3 = vmul.f32 0.5, %v9082_v63  ;;  %v1451_v32 = vadd.f32 %v14819_v46, %v1417_v60  ;;  %v14821_v63 = vld [vmem:[#allocation58_spill] sm:$0xff] }
 0x38e   : > { %v4002_v37 = vadd.f32 %v3970_v21, %v3740_v50  ;;  %v1941_v51 = vmul.f32 %v14820_v61, %v11749_v45  ;;  %v9084_v17 = vpop.eup %9083  ;;  %9095 = vtanh.f32 %v960_v13  ;;  %v1713_v5 = vadd.f32 %v14772_v56, %v1679_v25 }
 0x38f   : > { %v1222_v0 = vmul.f32 0.5, %v1189_v35  ;;  %v2203_v39 = vmul.f32 %v14798_v20, %v11749_v45  ;;  %v4461_v9 = vadd.f32 0.5, %v4429_v3  ;;  %v4691_v36 = vmul.f32 0.5, %v9084_v17  ;;  %v9086_v23 = vpop.eup %9085 }
 0x390   : > { %v4264_v19 = vadd.f32 %v4232_v11, %v4002_v37  ;;  %v1484_v34 = vmul.f32 0.5, %v1451_v32  ;;  %v1746_v50 = vmul.f32 0.5, %v1713_v5  ;;  %v1975_v21 = vadd.f32 %v14773_v18, %v1941_v51 }
 0x391   : > { %9097 = vtanh.f32 %v1222_v0  ;;  %v2237_v60 = vadd.f32 %v14775_v10, %v2203_v39  ;;  %v4494_v61 = vmul.f32 %v14821_v63, %v4461_v9  ;;  %v4723_v13 = vadd.f32 0.5, %v4691_v36  ;;  %v9088_v25 = vpop.eup %9087 }
 0x392   : > { %v4953_v35 = vmul.f32 0.5, %v9086_v23  ;;  %9099 = vtanh.f32 %v1484_v34  ;;  %v2008_v56 = vmul.f32 0.5, %v1975_v21  ;;  %v2465_v11 = vmul.f32 %v14799_v2, %v11749_v45 }
 0x393   : > { %9101 = vtanh.f32 %v1746_v50  ;;  %v2270_v20 = vmul.f32 0.5, %v2237_v60  ;;  %v9090_v37 = vpop.eup %9089  ;;  %v4526_v3 = vadd.f32 %v4494_v61, %v4264_v19  ;;  %v4756_v32 = vmul.f32 %v14771_v48, %v4723_v13 }
 0x394   : > { %v4985_v17 = vadd.f32 0.5, %v4953_v35  ;;  %v5215_v51 = vmul.f32 0.5, %v9088_v25  ;;  %v9092_v0 = vpop.eup %9091  ;;  %v5477_v5 = vmul.f32 0.5, %v9090_v37  ;;  %9103 = vtanh.f32 %v2008_v56 }
 0x395   : > { %v2499_v39 = vadd.f32 %v14776_v44, %v2465_v11  ;;  %v2727_v34 = vmul.f32 %v14777_v62, %v11749_v45  ;;  %v9094_v23 = vpop.eup %9093  ;;  %v4788_v9 = vadd.f32 %v4756_v32, %v4526_v3  ;;  %v5739_v21 = vmul.f32 0.5, %v9092_v0  ;;  %v14822_v3 = vld [vmem:[#allocation32_spill] sm:$0xff] }
 0x396   : > { %v5018_v36 = vmul.f32 %v14774_v29, %v4985_v17  ;;  %v5247_v50 = vadd.f32 0.5, %v5215_v51  ;;  %v5509_v60 = vadd.f32 0.5, %v5477_v5  ;;  %v762_v61 = vmul.f32 0.5, %v9094_v23  ;;  %v14823_v51 = vld [vmem:[#allocation73_spill] sm:$0xff] }
 0x397   : > { %9105 = vtanh.f32 %v2270_v20  ;;  %v2532_v19 = vmul.f32 0.5, %v2499_v39  ;;  %v5771_v25 = vadd.f32 0.5, %v5739_v21  ;;  %v2761_v56 = vadd.f32 %v14752_v26, %v2727_v34  ;;  %v14825_v34 = vld [vmem:[#allocation34_spill] sm:$0xff]  ;;  %v14826_v21 = vld [vmem:[#allocation36_spill] sm:$0xff] }
 0x398   : > { %v5050_v13 = vadd.f32 %v5018_v36, %v4788_v9  ;;  %v5280_v35 = vmul.f32 %v14751_v43, %v5247_v50  ;;  %v9096_v11 = vpop.eup %9095  ;;  %v5542_v37 = vmul.f32 %v14754_v12, %v5509_v60  ;;  %v794_v62 = vadd.f32 0.5, %v762_v61  ;;  %v14824_v9 = vld [vmem:[#allocation33_spill] sm:$0xff] }
 0x399   : > { %9107 = vtanh.f32 %v2532_v19  ;;  %v2989_v32 = vmul.f32 %v14822_v3, %v11749_v45  ;;  %v5804_v0 = vmul.f32 %v14823_v51, %v5771_v25  ;;  %v1024_v5 = vmul.f32 0.5, %v9096_v11 }
 0x39a   : > { %v5312_v17 = vadd.f32 %v5280_v35, %v5050_v13  ;;  %v2794_v20 = vmul.f32 0.5, %v2761_v56  ;;  %v827_v23 = vmul.f32 %v14801_v30, %v794_v62  ;;  %v3251_v50 = vmul.f32 %v14825_v34, %v11749_v45 }
 0x39b   : > { %v9098_v39 = vpop.eup %9097  ;;  %v3023_v36 = vadd.f32 %v14824_v9, %v2989_v32  ;;  %v3513_v60 = vmul.f32 %v14826_v21, %v11749_v45  ;;  %v1056_v26 = vadd.f32 0.5, %v1024_v5 }
 0x39c   : > { %v9100_v61 = vpop.eup %9099  ;;  %v5574_v19 = vadd.f32 %v5542_v37, %v5312_v17  ;;  %v1286_v3 = vmul.f32 0.5, %v9098_v39  ;;  %9109 = vtanh.f32 %v2794_v20  ;;  %v3285_v56 = vadd.f32 %v14800_v1, %v3251_v50  ;;  %v14827_v20 = vld [vmem:[#allocation39_spill] sm:$0xff] }
 0x39d   : > { %v9102_v13 = vpop.eup %9101  ;;  %v1548_v35 = vmul.f32 0.5, %v9100_v61  ;;  %v3056_v25 = vmul.f32 0.5, %v3023_v36  ;;  %v3547_v62 = vadd.f32 %v14778_v38, %v3513_v60  ;;  %v1089_v32 = vmul.f32 %v14802_v57, %v1056_v26  ;;  %v14828_v26 = vld [vmem:[#allocation50_spill] sm:$0xff] }
 0x39e   : > { %v5836_v11 = vadd.f32 %v5804_v0, %v5574_v19  ;;  %v1318_v30 = vadd.f32 0.5, %v1286_v3  ;;  %v1810_v9 = vmul.f32 0.5, %v9102_v13  ;;  %v9104_v51 = vpop.eup %9103  ;;  %v3318_v21 = vmul.f32 0.5, %v3285_v56 }
 0x39f   : > { %v1580_v34 = vadd.f32 0.5, %v1548_v35  ;;  %9111 = vtanh.f32 %v3056_v25  ;;  %v3580_v37 = vmul.f32 0.5, %v3547_v62  ;;  %v1121_v5 = vadd.f32 %v1089_v32, %v827_v23 }
 0x3a0   : > { %v5870_v17 = vadd.f32 %v14780_v8, %v5836_v11  ;;  %v1351_v39 = vmul.f32 %v14827_v20, %v1318_v30  ;;  %v1842_v36 = vadd.f32 0.5, %v1810_v9  ;;  %v2072_v60 = vmul.f32 0.5, %v9104_v51 }
 0x3a1   : > { %v9106_v61 = vpop.eup %9105  ;;  %v1613_v50 = vmul.f32 %v14782_v58, %v1580_v34  ;;  %9113 = vtanh.f32 %v3318_v21  ;;  %v3775_v3 = vmul.f32 %v14828_v26, %v11749_v45  ;;  %v4037_v30 = vmul.f32 %v14804_v42, %v11749_v45 }
 0x3a2   : > { %v5902_v0 = vmul.f32 0.5, %v5870_v17  ;;  %v1383_v19 = vadd.f32 %v1351_v39, %v1121_v5  ;;  %v1875_v13 = vmul.f32 %v14759_v22, %v1842_v36  ;;  %v2334_v35 = vmul.f32 0.5, %v9106_v61 }
 0x3a3   : > { %v9108_v25 = vpop.eup %9107  ;;  %v2104_v56 = vadd.f32 0.5, %v2072_v60  ;;  %9115 = vtanh.f32 %v3580_v37  ;;  %v3809_v23 = vadd.f32 %v14805_v6, %v3775_v3  ;;  %v4071_v11 = vadd.f32 %v14760_v4, %v4037_v30  ;;  %v14829_v60 = vld [vmem:[#allocation57_spill] sm:$0xff] }
 0x3a4   : > { %9117 = vtanh.f32 %v5902_v0  ;;  %v1645_v9 = vadd.f32 %v1613_v50, %v1383_v19  ;;  %v2366_v51 = vadd.f32 0.5, %v2334_v35  ;;  %v2596_v34 = vmul.f32 0.5, %v9108_v25  ;;  %v14830_v19 = vld [vmem:[#allocation44_spill] sm:$0xff] }
 0x3a5   : > { %v2137_v21 = vmul.f32 %v14712_v40, %v2104_v56  ;;  %v3842_v62 = vmul.f32 0.5, %v3809_v23  ;;  %v4299_v32 = vmul.f32 %v14783_v15, %v11749_v45  ;;  %v4561_v36 = vmul.f32 %v14761_v31, %v11749_v45  ;;  %v14831_v25 = vld [vmem:[#allocation60_spill] sm:$0xff]  ;;  %v14832_v23 = vld [vmem:[#allocation62_spill] sm:$0xff]  ;;  %v14834_v31 = vld [vmem:[#allocation63_spill] sm:$0xff] }
 0x3a6   : > { %v9110_v17 = vpop.eup %9109  ;;  %v1907_v5 = vadd.f32 %v1875_v13, %v1645_v9  ;;  %v2399_v37 = vmul.f32 %v14668_v59, %v2366_v51  ;;  %v2628_v39 = vadd.f32 0.5, %v2596_v34  ;;  %v4104_v50 = vmul.f32 0.5, %v4071_v11  ;;  %v14833_v34 = vld [vmem:[#allocation65_spill] sm:$0xff] }
 0x3a7   : > { %v2858_v61 = vmul.f32 0.5, %v9110_v17  ;;  %9119 = vtanh.f32 %v3842_v62  ;;  %v4333_v3 = vadd.f32 %v14829_v60, %v4299_v32  ;;  %v4595_v56 = vadd.f32 %v14831_v25, %v4561_v36  ;;  %v11842_v25 = vld [vmem:[%s10393_s0 + $0x60] sm:$0xff] }
 0x3a8   : > { %v2169_v0 = vadd.f32 %v2137_v21, %v1907_v5  ;;  %v2661_v35 = vmul.f32 %v14830_v19, %v2628_v39  ;;  %v4823_v30 = vmul.f32 %v14832_v23, %v11749_v45  ;;  %9121 = vtanh.f32 %v4104_v50  ;;  %v14835_v39 = vld [vmem:[#allocation66_spill] sm:$0xff]  ;;  %v14836_v19 = vld [vmem:[#allocation68_spill] sm:$0xff] }
 0x3a9   : > { %v9112_v13 = vpop.eup %9111  ;;  %v2890_v9 = vadd.f32 0.5, %v2858_v61  ;;  %v4366_v51 = vmul.f32 0.5, %v4333_v3  ;;  %v5085_v59 = vmul.f32 %v14833_v34, %v11749_v45  ;;  %v4628_v11 = vmul.f32 0.5, %v4595_v56  ;;  %v14837_v56 = vld [vmem:[#allocation69_spill] sm:$0xff] }
 0x3aa   : > { %v2431_v17 = vadd.f32 %v2399_v37, %v2169_v0  ;;  %v3120_v62 = vmul.f32 0.5, %v9112_v13  ;;  %v4857_v32 = vadd.f32 %v14834_v31, %v4823_v30  ;;  %v5347_v61 = vmul.f32 %v14836_v19, %v11749_v45  ;;  %v14838_v30 = vld [vmem:[#allocation71_spill] sm:$0xff] }
 0x3ab   : > { %v9114_v21 = vpop.eup %9113  ;;  %v2923_v5 = vmul.f32 %v14812_v53, %v2890_v9  ;;  %9123 = vtanh.f32 %v4366_v51  ;;  %v5119_v36 = vadd.f32 %v14835_v39, %v5085_v59  ;;  %v5609_v31 = vmul.f32 %v14838_v30, %v11749_v45 }
 0x3ac   : > { %v2693_v50 = vadd.f32 %v2661_v35, %v2431_v17  ;;  %v3152_v3 = vadd.f32 0.5, %v3120_v62  ;;  %v3382_v23 = vmul.f32 0.5, %v9114_v21  ;;  %9125 = vtanh.f32 %v4628_v11 }
 0x3ad   : > { %v9116_v34 = vpop.eup %9115  ;;  %v4890_v37 = vmul.f32 0.5, %v4857_v32  ;;  %v5152_v0 = vmul.f32 0.5, %v5119_v36  ;;  %v5381_v13 = vadd.f32 %v14837_v56, %v5347_v61  ;;  %v5643_v62 = vadd.f32 %v14786_v47, %v5609_v31 }
 0x3ae   : > { %v9118_v9 = vpop.eup %9117  ;;  %v2955_v51 = vadd.f32 %v2923_v5, %v2693_v50  ;;  %v3185_v59 = vmul.f32 %v14813_v28, %v3152_v3  ;;  %v3414_v53 = vadd.f32 0.5, %v3382_v23  ;;  %v3644_v39 = vmul.f32 0.5, %v9116_v34 }
 0x3af   : > { %v5966_v35 = vmul.f32 0.5, %v9118_v9  ;;  %9127 = vtanh.f32 %v4890_v37  ;;  %v5414_v17 = vmul.f32 0.5, %v5381_v13  ;;  %v5676_v5 = vmul.f32 0.5, %v5643_v62 }
 0x3b0   : > { %v3217_v11 = vadd.f32 %v3185_v59, %v2955_v51  ;;  %v3447_v32 = vmul.f32 %v14788_v33, %v3414_v53  ;;  %v3676_v21 = vadd.f32 0.5, %v3644_v39  ;;  %9129 = vtanh.f32 %v5152_v0 }
 0x3b1   : > { %v9120_v36 = vpop.eup %9119  ;;  %v11846_v45 = vadd.f32 0.5, %v5966_v35  ;;  %9131 = vtanh.f32 %v5414_v17  ;;  %v632_v23 = vmul.f32 %v14790_v52, %v11842_v25  ;;  %v894_v31 = vmul.f32 %v14792_v14, %v11842_v25 }
 0x3b2   : > { %v3479_v34 = vadd.f32 %v3447_v32, %v3217_v11  ;;  %v3709_v61 = vmul.f32 %v14791_v49, %v3676_v21  ;;  %v3906_v50 = vmul.f32 0.5, %v9120_v36  ;;  %v9122_v3 = vpop.eup %9121  ;;  %9133 = vtanh.f32 %v5676_v5 }
 0x3b3   : > { %14839 = vst [vmem:[#allocation85_spill] sm:$0xff] %v11846_v45  ;;  %6040 = vadd.xlane.f32.xlu0 %v11846_v45  ;;  %v666_v53 = vadd.f32 %v14770_v7, %v632_v23  ;;  %v1156_v39 = vmul.f32 %v14793_v27, %v11842_v25  ;;  %v1418_v37 = vmul.f32 %v14816_v41, %v11842_v25  ;;  %v4168_v9 = vmul.f32 0.5, %v9122_v3  ;;  %v14840_v3 = vld [vmem:[#allocation55_spill] sm:$0xff]  ;;  %v14842_v41 = vld [vmem:[#allocation24_spill] sm:$0xff] }
 0x3b4   : > { %v3741_v0 = vadd.f32 %v3709_v61, %v3479_v34  ;;  %v3938_v13 = vadd.f32 0.5, %v3906_v50  ;;  %v928_v51 = vadd.f32 %v14700_v16, %v894_v31  ;;  %v1680_v11 = vmul.f32 %v14818_v24, %v11842_v25 }
 0x3b5   : > { %v9124_v59 = vpop.eup %9123  ;;  %v699_v35 = vmul.f32 0.5, %v666_v53  ;;  %v1190_v17 = vadd.f32 %v14655_v55, %v1156_v39  ;;  %v1452_v62 = vadd.f32 %v14819_v46, %v1418_v37  ;;  %v4200_v36 = vadd.f32 0.5, %v4168_v9  ;;  %v14841_v46 = vld [vmem:[#allocation23_spill] sm:$0xff] }
 0x3b6   : > { %v9126_v32 = vpop.eup %9125  ;;  %v3971_v21 = vmul.f32 %v14815_v54, %v3938_v13  ;;  %v4430_v5 = vmul.f32 0.5, %v9124_v59  ;;  %v961_v23 = vmul.f32 0.5, %v928_v51  ;;  %v1714_v24 = vadd.f32 %v14841_v46, %v1680_v11  ;;  %v14843_v11 = vld [vmem:[#allocation26_spill] sm:$0xff] }
 0x3b7   : > { %v4692_v34 = vmul.f32 0.5, %v9126_v32  ;;  %9135 = vtanh.f32 %v699_v35  ;;  %v1223_v61 = vmul.f32 0.5, %v1190_v17  ;;  %v1485_v50 = vmul.f32 0.5, %v1452_v62 }
 0x3b8   : > { %v4003_v31 = vadd.f32 %v3971_v21, %v3741_v0  ;;  %v4233_v53 = vmul.f32 %v14840_v3, %v4200_v36  ;;  %v4462_v45 = vadd.f32 0.5, %v4430_v5  ;;  %9137 = vtanh.f32 %v961_v23 }
 0x3b9   : > { %v9128_v39 = vpop.eup %9127  ;;  %v4724_v37 = vadd.f32 0.5, %v4692_v34  ;;  %9139 = vtanh.f32 %v1223_v61  ;;  %v1942_v13 = vmul.f32 %v14842_v41, %v11842_v25  ;;  %v1747_v32 = vmul.f32 0.5, %v1714_v24 }
 0x3ba   : > { %v9130_v9 = vpop.eup %9129  ;;  %v4265_v59 = vadd.f32 %v4233_v53, %v4003_v31  ;;  %v4495_v51 = vmul.f32 %v14821_v63, %v4462_v45  ;;  %v4954_v35 = vmul.f32 0.5, %v9128_v39  ;;  %9141 = vtanh.f32 %v1485_v50 }
 0x3bb   : > { %v9132_v17 = vpop.eup %9131  ;;  %v4757_v0 = vmul.f32 %v14771_v48, %v4724_v37  ;;  %v5216_v62 = vmul.f32 0.5, %v9130_v9  ;;  %v1976_v21 = vadd.f32 %v14773_v18, %v1942_v13  ;;  %v2204_v34 = vmul.f32 %v14843_v11, %v11842_v25 }
 0x3bc   : > { %v4527_v36 = vadd.f32 %v4495_v51, %v4265_v59  ;;  %v4986_v5 = vadd.f32 0.5, %v4954_v35  ;;  %v5478_v23 = vmul.f32 0.5, %v9132_v17  ;;  %v9134_v61 = vpop.eup %9133  ;;  %9143 = vtanh.f32 %v1747_v32  ;;  %v14844_v17 = vld [vmem:[#allocation30_spill] sm:$0xff] }
 0x3bd   : > { %v5248_v46 = vadd.f32 0.5, %v5216_v62  ;;  %v2009_v31 = vmul.f32 0.5, %v1976_v21  ;;  %v2466_v45 = vmul.f32 %v14799_v2, %v11842_v25  ;;  %v5740_v24 = vmul.f32 0.5, %v9134_v61 }
 0x3be   : > { %v4789_v50 = vadd.f32 %v4757_v0, %v4527_v36  ;;  %v5019_v53 = vmul.f32 %v14774_v29, %v4986_v5  ;;  %v5510_v39 = vadd.f32 0.5, %v5478_v23  ;;  %v2238_v13 = vadd.f32 %v14775_v10, %v2204_v34  ;;  %v14845_v36 = vld [vmem:[#allocation32_spill] sm:$0xff] }
 0x3bf   : > { %v5281_v37 = vmul.f32 %v14751_v43, %v5248_v46  ;;  %9145 = vtanh.f32 %v2009_v31  ;;  %v2500_v9 = vadd.f32 %v14776_v44, %v2466_v45  ;;  %v5772_v35 = vadd.f32 0.5, %v5740_v24  ;;  %v14846_v46 = vld [vmem:[#allocation34_spill] sm:$0xff]  ;;  %v14847_v31 = vld [vmem:[#allocation73_spill] sm:$0xff] }
 0x3c0   : > { %v5051_v59 = vadd.f32 %v5019_v53, %v4789_v50  ;;  %v5543_v51 = vmul.f32 %v14754_v12, %v5510_v39  ;;  %v2728_v62 = vmul.f32 %v14844_v17, %v11842_v25  ;;  %v2271_v0 = vmul.f32 0.5, %v2238_v13  ;;  %v14848_v53 = vld [vmem:[#allocation31_spill] sm:$0xff]  ;;  %v14849_v17 = vld [vmem:[#allocation33_spill] sm:$0xff] }
 0x3c1   : > { %v9136_v32 = vpop.eup %9135  ;;  %v2533_v21 = vmul.f32 0.5, %v2500_v9  ;;  %v2990_v5 = vmul.f32 %v14845_v36, %v11842_v25  ;;  %v3252_v23 = vmul.f32 %v14846_v46, %v11842_v25  ;;  %v5805_v45 = vmul.f32 %v14847_v31, %v5772_v35 }
 0x3c2   : > { %v9138_v61 = vpop.eup %9137  ;;  %v5313_v34 = vadd.f32 %v5281_v37, %v5051_v59  ;;  %v763_v50 = vmul.f32 0.5, %v9136_v32  ;;  %v2762_v39 = vadd.f32 %v14848_v53, %v2728_v62  ;;  %9147 = vtanh.f32 %v2271_v0  ;;  %v14850_v32 = vld [vmem:[#allocation37_spill] sm:$0xff] }
 0x3c3   : > { %v9140_v24 = vpop.eup %9139  ;;  %v1025_v12 = vmul.f32 0.5, %v9138_v61  ;;  %v3024_v44 = vadd.f32 %v14849_v17, %v2990_v5  ;;  %v3286_v13 = vadd.f32 %v14800_v1, %v3252_v23  ;;  %9149 = vtanh.f32 %v2533_v21  ;;  %v14851_v23 = vld [vmem:[#allocation36_spill] sm:$0xff] }
 0x3c4   : > { %v9142_v9 = vpop.eup %9141  ;;  %v5575_v10 = vadd.f32 %v5543_v51, %v5313_v34  ;;  %v795_v36 = vadd.f32 0.5, %v763_v50  ;;  %v1287_v43 = vmul.f32 0.5, %v9140_v24  ;;  %v2795_v37 = vmul.f32 0.5, %v2762_v39 }
 0x3c5   : > { %v1057_v46 = vadd.f32 0.5, %v1025_v12  ;;  %v1549_v29 = vmul.f32 0.5, %v9142_v9  ;;  %v3057_v59 = vmul.f32 0.5, %v3024_v44  ;;  %v3319_v53 = vmul.f32 0.5, %v3286_v13 }
 0x3c6   : > { %v5837_v35 = vadd.f32 %v5805_v45, %v5575_v10  ;;  %v828_v31 = vmul.f32 %v14850_v32, %v795_v36  ;;  %v1319_v62 = vadd.f32 0.5, %v1287_v43  ;;  %v9144_v61 = vpop.eup %9143  ;;  %9151 = vtanh.f32 %v2795_v37 }
 0x3c7   : > { %v1090_v0 = vmul.f32 %v14802_v57, %v1057_v46  ;;  %v1581_v5 = vadd.f32 0.5, %v1549_v29  ;;  %v3514_v51 = vmul.f32 %v14851_v23, %v11842_v25  ;;  %v1811_v21 = vmul.f32 0.5, %v9144_v61 }
 0x3c8   : > { %v5871_v34 = vadd.f32 %v14780_v8, %v5837_v35  ;;  %v1352_v12 = vmul.f32 %v14827_v20, %v1319_v62  ;;  %9153 = vtanh.f32 %v3057_v59  ;;  %v3776_v50 = vmul.f32 %v14828_v26, %v11842_v25 }
 0x3c9   : > { %v9146_v44 = vpop.eup %9145  ;;  %v1122_v10 = vadd.f32 %v1090_v0, %v828_v31  ;;  %v1614_v36 = vmul.f32 %v14782_v58, %v1581_v5  ;;  %9155 = vtanh.f32 %v3319_v53  ;;  %v3548_v43 = vadd.f32 %v14778_v38, %v3514_v51 }
 0x3ca   : > { %v5903_v45 = vmul.f32 0.5, %v5871_v34  ;;  %v1843_v46 = vadd.f32 0.5, %v1811_v21  ;;  %v2073_v29 = vmul.f32 0.5, %v9146_v44  ;;  %v4038_v13 = vmul.f32 %v14804_v42, %v11842_v25 }
 0x3cb   : > { %v1384_v39 = vadd.f32 %v1352_v12, %v1122_v10  ;;  %v3581_v24 = vmul.f32 0.5, %v3548_v43  ;;  %v4300_v9 = vmul.f32 %v14783_v15, %v11842_v25  ;;  %v3810_v37 = vadd.f32 %v14805_v6, %v3776_v50  ;;  %v14852_v12 = vld [vmem:[#allocation59_spill] sm:$0xff]  ;;  %v14854_v50 = vld [vmem:[#allocation62_spill] sm:$0xff] }
 0x3cc   : > { %9157 = vtanh.f32 %v5903_v45  ;;  %v1876_v31 = vmul.f32 %v14759_v22, %v1843_v46  ;;  %v2105_v53 = vadd.f32 0.5, %v2073_v29  ;;  %v9148_v59 = vpop.eup %9147  ;;  %v4072_v62 = vadd.f32 %v14760_v4, %v4038_v13 }
 0x3cd   : > { %v1646_v35 = vadd.f32 %v1614_v36, %v1384_v39  ;;  %9159 = vtanh.f32 %v3581_v24  ;;  %v4334_v61 = vadd.f32 %v14829_v60, %v4300_v9  ;;  %v9150_v0 = vpop.eup %9149  ;;  %v2335_v51 = vmul.f32 0.5, %v9148_v59  ;;  %v14853_v36 = vld [vmem:[#allocation60_spill] sm:$0xff] }
 0x3ce   : > { %v2138_v5 = vmul.f32 %v14712_v40, %v2105_v53  ;;  %v3843_v34 = vmul.f32 0.5, %v3810_v37  ;;  %v4562_v21 = vmul.f32 %v14852_v12, %v11842_v25  ;;  %v2597_v10 = vmul.f32 0.5, %v9150_v0  ;;  %v14855_v53 = vld [vmem:[#allocation65_spill] sm:$0xff]  ;;  %v14856_v12 = vld [vmem:[#allocation43_spill] sm:$0xff]  ;;  %v14857_v0 = vld [vmem:[#allocation44_spill] sm:$0xff] }
 0x3cf   : > { %v1908_v44 = vadd.f32 %v1876_v31, %v1646_v35  ;;  %v4105_v43 = vmul.f32 0.5, %v4072_v62  ;;  %v4367_v45 = vmul.f32 0.5, %v4334_v61  ;;  %v2367_v46 = vadd.f32 0.5, %v2335_v51 }
 0x3d0   : > { %9161 = vtanh.f32 %v3843_v34  ;;  %v4596_v29 = vadd.f32 %v14853_v36, %v4562_v21  ;;  %v4824_v39 = vmul.f32 %v14854_v50, %v11842_v25  ;;  %v9152_v24 = vpop.eup %9151  ;;  %v2629_v9 = vadd.f32 0.5, %v2597_v10  ;;  %v14858_v21 = vld [vmem:[#allocation63_spill] sm:$0xff]  ;;  %v14859_v50 = vld [vmem:[#allocation66_spill] sm:$0xff] }
 0x3d1   : > { %v2170_v13 = vadd.f32 %v2138_v5, %v1908_v44  ;;  %9163 = vtanh.f32 %v4105_v43  ;;  %v5086_v37 = vmul.f32 %v14855_v53, %v11842_v25  ;;  %v2400_v31 = vmul.f32 %v14856_v12, %v2367_v46 }
 0x3d2   : > { %v9154_v59 = vpop.eup %9153  ;;  %v2859_v35 = vmul.f32 0.5, %v9152_v24  ;;  %9165 = vtanh.f32 %v4367_v45  ;;  %v4629_v62 = vmul.f32 0.5, %v4596_v29  ;;  %v2662_v51 = vmul.f32 %v14857_v0, %v2629_v9  ;;  %v14860_v24 = vld [vmem:[#allocation45_spill] sm:$0xff] }
 0x3d3   : > { %v9156_v61 = vpop.eup %9155  ;;  %v3121_v34 = vmul.f32 0.5, %v9154_v59  ;;  %v4858_v36 = vadd.f32 %v14858_v21, %v4824_v39  ;;  %v5120_v5 = vadd.f32 %v14859_v50, %v5086_v37  ;;  %v2432_v44 = vadd.f32 %v2400_v31, %v2170_v13  ;;  %v11927_v21 = vld [vmem:[%s10393_s0 + $0x68] sm:$0xff] }
 0x3d4   : > { %v2891_v10 = vadd.f32 0.5, %v2859_v35  ;;  %v3383_v43 = vmul.f32 0.5, %v9156_v61  ;;  %9167 = vtanh.f32 %v4629_v62  ;;  %v5348_v45 = vmul.f32 %v14836_v19, %v11842_v25 }
 0x3d5   : > { %v3153_v53 = vadd.f32 0.5, %v3121_v34  ;;  %v4891_v60 = vmul.f32 0.5, %v4858_v36  ;;  %v5153_v40 = vmul.f32 0.5, %v5120_v5  ;;  %v2694_v29 = vadd.f32 %v2662_v51, %v2432_v44 }
 0x3d6   : > { %v9158_v46 = vpop.eup %9157  ;;  %v2924_v9 = vmul.f32 %v14860_v24, %v2891_v10  ;;  %v3415_v59 = vadd.f32 0.5, %v3383_v43  ;;  %v5610_v39 = vmul.f32 %v14838_v30, %v11842_v25  ;;  %v5382_v36 = vadd.f32 %v14837_v56, %v5348_v45 }
 0x3d7   : > { %v9160_v13 = vpop.eup %9159  ;;  %v5967_v37 = vmul.f32 0.5, %v9158_v46  ;;  %v3186_v31 = vmul.f32 %v14813_v28, %v3153_v53  ;;  %9169 = vtanh.f32 %v4891_v60  ;;  %v633_v25 = vmul.f32 %v14790_v52, %v11927_v21 }
 0x3d8   : > { %v2956_v35 = vadd.f32 %v2924_v9, %v2694_v29  ;;  %v3448_v62 = vmul.f32 %v14788_v33, %v3415_v59  ;;  %v3645_v61 = vmul.f32 0.5, %v9160_v13  ;;  %9171 = vtanh.f32 %v5153_v40 }
 0x3d9   : > { %v11932_v51 = vadd.f32 0.5, %v5967_v37  ;;  %v5415_v34 = vmul.f32 0.5, %v5382_v36  ;;  %v5644_v5 = vadd.f32 %v14786_v47, %v5610_v39  ;;  %v895_v60 = vmul.f32 %v14792_v14, %v11927_v21 }
 0x3da   : > { %v9162_v44 = vpop.eup %9161  ;;  %v3218_v10 = vadd.f32 %v3186_v31, %v2956_v35  ;;  %v3677_v43 = vadd.f32 0.5, %v3645_v61  ;;  %v1157_v53 = vmul.f32 %v14793_v27, %v11927_v21  ;;  %v667_v29 = vadd.f32 %v14770_v7, %v633_v25 }
 0x3db   : > { %14861 = vst [vmem:[#allocation86_spill] sm:$0xff] %v11932_v51  ;;  %v9164_v45 = vpop.eup %9163  ;;  %6042 = vadd.xlane.f32.xlu1 %v11932_v51  ;;  %v3907_v40 = vmul.f32 0.5, %v9162_v44  ;;  %9173 = vtanh.f32 %v5415_v34  ;;  %v5677_v46 = vmul.f32 0.5, %v5644_v5  ;;  %v929_v37 = vadd.f32 %v14700_v16, %v895_v60 }
 0x3dc   : > { %v9166_v9 = vpop.eup %9165  ;;  %v3480_v59 = vadd.f32 %v3448_v62, %v3218_v10  ;;  %v3710_v39 = vmul.f32 %v14791_v49, %v3677_v43  ;;  %v4169_v13 = vmul.f32 0.5, %v9164_v45  ;;  %v700_v35 = vmul.f32 0.5, %v667_v29  ;;  %v14862_v43 = vld [vmem:[#allocation20_spill] sm:$0xff] }
 0x3dd   : > { %v3939_v31 = vadd.f32 0.5, %v3907_v40  ;;  %v4431_v36 = vmul.f32 0.5, %v9166_v9  ;;  %9175 = vtanh.f32 %v5677_v46  ;;  %v962_v51 = vmul.f32 0.5, %v929_v37  ;;  %v14863_v9 = vld [vmem:[#allocation22_spill] sm:$0xff] }
 0x3de   : > { %v9168_v61 = vpop.eup %9167  ;;  %v3742_v27 = vadd.f32 %v3710_v39, %v3480_v59  ;;  %v4201_v14 = vadd.f32 0.5, %v4169_v13  ;;  %v1191_v34 = vadd.f32 %v14655_v55, %v1157_v53  ;;  %9177 = vtanh.f32 %v700_v35  ;;  %v14864_v13 = vld [vmem:[#allocation21_spill] sm:$0xff]  ;;  %v14865_v35 = vld [vmem:[#allocation23_spill] sm:$0xff] }
 0x3df   : > { %v3972_v5 = vmul.f32 %v14815_v54, %v3939_v31  ;;  %v4463_v25 = vadd.f32 0.5, %v4431_v36  ;;  %v4693_v44 = vmul.f32 0.5, %v9168_v61  ;;  %9179 = vtanh.f32 %v962_v51 }
 0x3e0   : > { %v4234_v62 = vmul.f32 %v14840_v3, %v4201_v14  ;;  %v1224_v10 = vmul.f32 0.5, %v1191_v34  ;;  %v1419_v60 = vmul.f32 %v14862_v43, %v11927_v21  ;;  %v1681_v53 = vmul.f32 %v14863_v9, %v11927_v21 }
 0x3e1   : > { %v9170_v45 = vpop.eup %9169  ;;  %v4004_v40 = vadd.f32 %v3972_v5, %v3742_v27  ;;  %v4496_v46 = vmul.f32 %v14821_v63, %v4463_v25  ;;  %v4725_v29 = vadd.f32 0.5, %v4693_v44  ;;  %v1943_v14 = vmul.f32 %v14842_v41, %v11927_v21 }
 0x3e2   : > { %v9172_v59 = vpop.eup %9171  ;;  %v4955_v39 = vmul.f32 0.5, %v9170_v45  ;;  %9181 = vtanh.f32 %v1224_v10  ;;  %v1453_v37 = vadd.f32 %v14864_v13, %v1419_v60  ;;  %v1715_v27 = vadd.f32 %v14865_v35, %v1681_v53 }
 0x3e3   : > { %v4266_v51 = vadd.f32 %v4234_v62, %v4004_v40  ;;  %v4758_v31 = vmul.f32 %v14771_v48, %v4725_v29  ;;  %v5217_v36 = vmul.f32 0.5, %v9172_v59  ;;  %v1977_v5 = vadd.f32 %v14773_v18, %v1943_v14  ;;  %v14866_v62 = vld [vmem:[#allocation64_spill] sm:$0xff]  ;;  %v14868_v14 = vld [vmem:[#allocation27_spill] sm:$0xff] }
 0x3e4   : > { %v4987_v61 = vadd.f32 0.5, %v4955_v39  ;;  %v1486_v34 = vmul.f32 0.5, %v1453_v37  ;;  %v2205_v25 = vmul.f32 %v14843_v11, %v11927_v21  ;;  %v1748_v60 = vmul.f32 0.5, %v1715_v27  ;;  %v14867_v37 = vld [vmem:[#allocation67_spill] sm:$0xff] }
 0x3e5   : > { %v9174_v44 = vpop.eup %9173  ;;  %v4528_v10 = vadd.f32 %v4496_v46, %v4266_v51  ;;  %v5249_v45 = vadd.f32 0.5, %v5217_v36  ;;  %v2467_v63 = vmul.f32 %v14799_v2, %v11927_v21  ;;  %v2010_v59 = vmul.f32 0.5, %v1977_v5  ;;  %v14869_v46 = vld [vmem:[#allocation29_spill] sm:$0xff] }
 0x3e6   : > { %v5020_v40 = vmul.f32 %v14866_v62, %v4987_v61  ;;  %v5479_v29 = vmul.f32 0.5, %v9174_v44  ;;  %9183 = vtanh.f32 %v1486_v34  ;;  %v2239_v18 = vadd.f32 %v14868_v14, %v2205_v25  ;;  %v14870_v61 = vld [vmem:[#allocation30_spill] sm:$0xff]  ;;  %v14871_v34 = vld [vmem:[#allocation32_spill] sm:$0xff] }
 0x3e7   : > { %v9176_v53 = vpop.eup %9175  ;;  %v4790_v39 = vadd.f32 %v4758_v31, %v4528_v10  ;;  %v5282_v48 = vmul.f32 %v14867_v37, %v5249_v45  ;;  %9185 = vtanh.f32 %v1748_v60  ;;  %v2501_v51 = vadd.f32 %v14869_v46, %v2467_v63  ;;  %v14872_v10 = vld [vmem:[#allocation70_spill] sm:$0xff] }
 0x3e8   : > { %v5511_v11 = vadd.f32 0.5, %v5479_v29  ;;  %v5741_v41 = vmul.f32 0.5, %v9176_v53  ;;  %9187 = vtanh.f32 %v2010_v59  ;;  %v9178_v36 = vpop.eup %9177  ;;  %v2272_v2 = vmul.f32 0.5, %v2239_v18  ;;  %v14873_v59 = vld [vmem:[#allocation31_spill] sm:$0xff] }
 0x3e9   : > { %v5052_v27 = vadd.f32 %v5020_v40, %v4790_v39  ;;  %v2729_v44 = vmul.f32 %v14870_v61, %v11927_v21  ;;  %v2991_v5 = vmul.f32 %v14871_v34, %v11927_v21  ;;  %v9180_v31 = vpop.eup %9179  ;;  %v764_v37 = vmul.f32 0.5, %v9178_v36  ;;  %v14874_v40 = vld [vmem:[#allocation73_spill] sm:$0xff] }
 0x3ea   : > { %v5544_v45 = vmul.f32 %v14872_v10, %v5511_v11  ;;  %v5773_v60 = vadd.f32 0.5, %v5741_v41  ;;  %v2534_v25 = vmul.f32 0.5, %v2501_v51  ;;  %v1026_v53 = vmul.f32 0.5, %v9180_v31 }
 0x3eb   : > { %v5314_v29 = vadd.f32 %v5282_v48, %v5052_v27  ;;  %9189 = vtanh.f32 %v2272_v2  ;;  %v2763_v63 = vadd.f32 %v14873_v59, %v2729_v44  ;;  %v796_v39 = vadd.f32 0.5, %v764_v37  ;;  %v14875_v48 = vld [vmem:[#allocation34_spill] sm:$0xff] }
 0x3ec   : > { %v9182_v46 = vpop.eup %9181  ;;  %v5806_v18 = vmul.f32 %v14874_v40, %v5773_v60  ;;  %9191 = vtanh.f32 %v2534_v25  ;;  %v3025_v61 = vadd.f32 %v14849_v17, %v2991_v5  ;;  %v1058_v34 = vadd.f32 0.5, %v1026_v53 }
 0x3ed   : > { %v5576_v14 = vadd.f32 %v5544_v45, %v5314_v29  ;;  %v1288_v62 = vmul.f32 0.5, %v9182_v46  ;;  %v2796_v35 = vmul.f32 0.5, %v2763_v63  ;;  %v829_v41 = vmul.f32 %v14850_v32, %v796_v39 }
 0x3ee   : > { %v3058_v11 = vmul.f32 0.5, %v3025_v61  ;;  %v3253_v51 = vmul.f32 %v14875_v48, %v11927_v21  ;;  %v3515_v2 = vmul.f32 %v14851_v23, %v11927_v21  ;;  %v1091_v27 = vmul.f32 %v14802_v57, %v1058_v34 }
 0x3ef   : > { %v5838_v36 = vadd.f32 %v5806_v18, %v5576_v14  ;;  %v1320_v37 = vadd.f32 0.5, %v1288_v62  ;;  %9193 = vtanh.f32 %v2796_v35  ;;  %v3777_v61 = vmul.f32 %v14828_v26, %v11927_v21 }
 0x3f0   : > { %v9184_v44 = vpop.eup %9183  ;;  %9195 = vtanh.f32 %v3058_v11  ;;  %v3287_v5 = vadd.f32 %v14800_v1, %v3253_v51  ;;  %v3549_v46 = vadd.f32 %v14778_v38, %v3515_v2  ;;  %v1123_v60 = vadd.f32 %v1091_v27, %v829_v41 }
 0x3f1   : > { %v9186_v31 = vpop.eup %9185  ;;  %v5872_v45 = vadd.f32 %v14780_v8, %v5838_v36  ;;  %v1353_v25 = vmul.f32 %v14827_v20, %v1320_v37  ;;  %v1550_v14 = vmul.f32 0.5, %v9184_v44  ;;  %v3811_v53 = vadd.f32 %v14805_v6, %v3777_v61 }
 0x3f2   : > { %v9188_v29 = vpop.eup %9187  ;;  %v1812_v34 = vmul.f32 0.5, %v9186_v31  ;;  %v3320_v62 = vmul.f32 0.5, %v3287_v5  ;;  %v3582_v35 = vmul.f32 0.5, %v3549_v46  ;;  %v4039_v36 = vmul.f32 %v14804_v42, %v11927_v21 }
 0x3f3   : > { %v5904_v63 = vmul.f32 0.5, %v5872_v45  ;;  %v1385_v18 = vadd.f32 %v1353_v25, %v1123_v60  ;;  %v1582_v39 = vadd.f32 0.5, %v1550_v14  ;;  %v2074_v11 = vmul.f32 0.5, %v9188_v29  ;;  %v14876_v60 = vld [vmem:[#allocation42_spill] sm:$0xff] }
 0x3f4   : > { %v1844_v51 = vadd.f32 0.5, %v1812_v34  ;;  %9197 = vtanh.f32 %v3320_v62  ;;  %v3844_v2 = vmul.f32 0.5, %v3811_v53  ;;  %v4301_v44 = vmul.f32 %v14783_v15, %v11927_v21  ;;  %v14877_v62 = vld [vmem:[#allocation57_spill] sm:$0xff] }
 0x3f5   : > { %v9190_v41 = vpop.eup %9189  ;;  %9199 = vtanh.f32 %v5904_v63  ;;  %v1615_v27 = vmul.f32 %v14782_v58, %v1582_v39  ;;  %v2106_v37 = vadd.f32 0.5, %v2074_v11  ;;  %v4073_v31 = vadd.f32 %v14760_v4, %v4039_v36  ;;  %v14878_v63 = vld [vmem:[#allocation59_spill] sm:$0xff]  ;;  %v14880_v36 = vld [vmem:[#allocation65_spill] sm:$0xff] }
 0x3f6   : > { %v9192_v5 = vpop.eup %9191  ;;  %v1877_v46 = vmul.f32 %v14759_v22, %v1844_v51  ;;  %v2336_v61 = vmul.f32 0.5, %v9190_v41  ;;  %9201 = vtanh.f32 %v3582_v35  ;;  %v4335_v53 = vadd.f32 %v14877_v62, %v4301_v44  ;;  %v14879_v51 = vld [vmem:[#allocation62_spill] sm:$0xff] }
 0x3f7   : > { %v1647_v45 = vadd.f32 %v1615_v27, %v1385_v18  ;;  %v2139_v25 = vmul.f32 %v14876_v60, %v2106_v37  ;;  %v2598_v14 = vmul.f32 0.5, %v9192_v5  ;;  %9203 = vtanh.f32 %v3844_v2 }
 0x3f8   : > { %v2368_v29 = vadd.f32 0.5, %v2336_v61  ;;  %v4106_v34 = vmul.f32 0.5, %v4073_v31  ;;  %v4563_v39 = vmul.f32 %v14878_v63, %v11927_v21  ;;  %v4825_v35 = vmul.f32 %v14879_v51, %v11927_v21  ;;  %v14881_v31 = vld [vmem:[#allocation60_spill] sm:$0xff] }
 0x3f9   : > { %v9194_v11 = vpop.eup %9193  ;;  %v1909_v15 = vadd.f32 %v1877_v46, %v1647_v45  ;;  %v2630_v42 = vadd.f32 0.5, %v2598_v14  ;;  %v5087_v18 = vmul.f32 %v14880_v36, %v11927_v21  ;;  %v4368_v37 = vmul.f32 0.5, %v4335_v53  ;;  %v14882_v45 = vld [vmem:[#allocation63_spill] sm:$0xff] }
 0x3fa   : > { %v9196_v41 = vpop.eup %9195  ;;  %v2401_v27 = vmul.f32 %v14856_v12, %v2368_v29  ;;  %v2860_v2 = vmul.f32 0.5, %v9194_v11  ;;  %9205 = vtanh.f32 %v4106_v34  ;;  %v4597_v62 = vadd.f32 %v14881_v31, %v4563_v39 }
 0x3fb   : > { %v2171_v5 = vadd.f32 %v2139_v25, %v1909_v15  ;;  %v2663_v44 = vmul.f32 %v14857_v0, %v2630_v42  ;;  %v3122_v61 = vmul.f32 0.5, %v9196_v41  ;;  %9207 = vtanh.f32 %v4368_v37  ;;  %v12017_v37 = vld [vmem:[%s10393_s0 + $0x70] sm:$0xff] }
 0x3fc   : > { %v2892_v46 = vadd.f32 0.5, %v2860_v2  ;;  %v4859_v14 = vadd.f32 %v14882_v45, %v4825_v35  ;;  %v5121_v51 = vadd.f32 %v14859_v50, %v5087_v18  ;;  %v4630_v60 = vmul.f32 0.5, %v4597_v62 }
 0x3fd   : > { %v2433_v63 = vadd.f32 %v2401_v27, %v2171_v5  ;;  %v3154_v36 = vadd.f32 0.5, %v3122_v61  ;;  %v5349_v29 = vmul.f32 %v14836_v19, %v11927_v21  ;;  %v5611_v53 = vmul.f32 %v14838_v30, %v11927_v21 }
 0x3fe   : > { %v9198_v34 = vpop.eup %9197  ;;  %v2925_v15 = vmul.f32 %v14860_v24, %v2892_v46  ;;  %v4892_v42 = vmul.f32 0.5, %v4859_v14  ;;  %v5154_v25 = vmul.f32 0.5, %v5121_v51  ;;  %9209 = vtanh.f32 %v4630_v60 }
 0x3ff   : > { %v9200_v39 = vpop.eup %9199  ;;  %v2695_v11 = vadd.f32 %v2663_v44, %v2433_v63  ;;  %v3187_v35 = vmul.f32 %v14813_v28, %v3154_v36  ;;  %v3384_v18 = vmul.f32 0.5, %v9198_v34  ;;  %v5383_v27 = vadd.f32 %v14837_v56, %v5349_v29 }
 0x400   : > { %v9202_v41 = vpop.eup %9201  ;;  %v5968_v62 = vmul.f32 0.5, %v9200_v39  ;;  %9211 = vtanh.f32 %v4892_v42  ;;  %v5645_v2 = vadd.f32 %v14786_v47, %v5611_v53  ;;  %v634_v29 = vmul.f32 %v14790_v52, %v12017_v37  ;;  %v14885_v39 = vld [vmem:[#allocation18_spill] sm:$0xff] }
 0x401   : > { %v9204_v5 = vpop.eup %9203  ;;  %v2957_v51 = vadd.f32 %v2925_v15, %v2695_v11  ;;  %v3416_v61 = vadd.f32 0.5, %v3384_v18  ;;  %v3646_v46 = vmul.f32 0.5, %v9202_v41  ;;  %9213 = vtanh.f32 %v5154_v25  ;;  %v14884_v15 = vld [vmem:[#allocation15_spill] sm:$0xff] }
 0x402   : > { %v12019_v21 = vadd.f32 0.5, %v5968_v62  ;;  %v3908_v63 = vmul.f32 0.5, %v9204_v5  ;;  %v5416_v36 = vmul.f32 0.5, %v5383_v27  ;;  %v5678_v44 = vmul.f32 0.5, %v5645_v2 }
 0x403   : > { %v3219_v60 = vadd.f32 %v3187_v35, %v2957_v51  ;;  %v3449_v14 = vmul.f32 %v14788_v33, %v3416_v61  ;;  %v3678_v34 = vadd.f32 0.5, %v3646_v46  ;;  %v896_v25 = vmul.f32 %v14884_v15, %v12017_v37 }
 0x404   : > { %14883 = vst [vmem:[#allocation87_spill] sm:$0xff] %v12019_v21  ;;  %v9206_v42 = vpop.eup %9205  ;;  %6044 = vadd.xlane.f32.xlu0 %v12019_v21  ;;  %v3940_v53 = vadd.f32 0.5, %v3908_v63  ;;  %9215 = vtanh.f32 %v5416_v36  ;;  %v1158_v11 = vmul.f32 %v14885_v39, %v12017_v37  ;;  %v668_v2 = vadd.f32 %v14770_v7, %v634_v29 }
 0x405   : > { %v3481_v18 = vadd.f32 %v3449_v14, %v3219_v60  ;;  %v3711_v35 = vmul.f32 %v14791_v49, %v3678_v34  ;;  %v4170_v41 = vmul.f32 0.5, %v9206_v42  ;;  %9217 = vtanh.f32 %v5678_v44  ;;  %v9208_v62 = vpop.eup %9207 }
 0x406   : > { %v3973_v27 = vmul.f32 %v14815_v54, %v3940_v53  ;;  %v930_v5 = vadd.f32 %v14700_v16, %v896_v25  ;;  %v1192_v51 = vadd.f32 %v14655_v55, %v1158_v11  ;;  %v4432_v63 = vmul.f32 0.5, %v9208_v62  ;;  %v14887_v62 = vld [vmem:[#allocation24_spill] sm:$0xff] }
 0x407   : > { %v3743_v61 = vadd.f32 %v3711_v35, %v3481_v18  ;;  %v4202_v46 = vadd.f32 0.5, %v4170_v41  ;;  %v1420_v36 = vmul.f32 %v14862_v43, %v12017_v37  ;;  %v701_v60 = vmul.f32 0.5, %v668_v2  ;;  %v14886_v35 = vld [vmem:[#allocation23_spill] sm:$0xff]  ;;  %v14888_v43 = vld [vmem:[#allocation58_spill] sm:$0xff] }
 0x408   : > { %v963_v14 = vmul.f32 0.5, %v930_v5  ;;  %v1225_v34 = vmul.f32 0.5, %v1192_v51  ;;  %v1682_v44 = vmul.f32 %v14863_v9, %v12017_v37  ;;  %v9210_v42 = vpop.eup %9209  ;;  %v4464_v21 = vadd.f32 0.5, %v4432_v63 }
 0x409   : > { %v4005_v53 = vadd.f32 %v3973_v27, %v3743_v61  ;;  %v4235_v29 = vmul.f32 %v14840_v3, %v4202_v46  ;;  %v1454_v25 = vadd.f32 %v14864_v13, %v1420_v36  ;;  %v4694_v18 = vmul.f32 0.5, %v9210_v42  ;;  %v14889_v42 = vld [vmem:[#allocation25_spill] sm:$0xff] }
 0x40a   : > { %v9212_v11 = vpop.eup %9211  ;;  %9219 = vtanh.f32 %v701_v60  ;;  %v1716_v41 = vadd.f32 %v14886_v35, %v1682_v44  ;;  %v1944_v2 = vmul.f32 %v14887_v62, %v12017_v37  ;;  %v4497_v55 = vmul.f32 %v14888_v43, %v4464_v21  ;;  %v14890_v44 = vld [vmem:[#allocation61_spill] sm:$0xff] }
 0x40b   : > { %v9214_v5 = vpop.eup %9213  ;;  %v4267_v51 = vadd.f32 %v4235_v29, %v4005_v53  ;;  %v4956_v9 = vmul.f32 0.5, %v9212_v11  ;;  %9221 = vtanh.f32 %v963_v14  ;;  %v4726_v27 = vadd.f32 0.5, %v4694_v18  ;;  %v14891_v53 = vld [vmem:[#allocation26_spill] sm:$0xff]  ;;  %v14892_v11 = vld [vmem:[#allocation64_spill] sm:$0xff] }
 0x40c   : > { %v5218_v61 = vmul.f32 0.5, %v9214_v5  ;;  %9223 = vtanh.f32 %v1225_v34  ;;  %v1487_v46 = vmul.f32 0.5, %v1454_v25  ;;  %v1749_v13 = vmul.f32 0.5, %v1716_v41  ;;  %v14894_v5 = vld [vmem:[#allocation27_spill] sm:$0xff] }
 0x40d   : > { %v4529_v63 = vadd.f32 %v4497_v55, %v4267_v51  ;;  %v4988_v36 = vadd.f32 0.5, %v4956_v9  ;;  %v1978_v60 = vadd.f32 %v14889_v42, %v1944_v2  ;;  %v4759_v35 = vmul.f32 %v14890_v44, %v4726_v27  ;;  %v14893_v55 = vld [vmem:[#allocation67_spill] sm:$0xff]  ;;  %v14895_v27 = vld [vmem:[#allocation28_spill] sm:$0xff] }
 0x40e   : > { %v9216_v3 = vpop.eup %9215  ;;  %v5250_v54 = vadd.f32 0.5, %v5218_v61  ;;  %9225 = vtanh.f32 %v1487_v46  ;;  %v2206_v29 = vmul.f32 %v14891_v53, %v12017_v37  ;;  %v2468_v61 = vmul.f32 %v14895_v27, %v12017_v37  ;;  %v14896_v46 = vld [vmem:[#allocation30_spill] sm:$0xff] }
 0x40f   : > { %v9218_v21 = vpop.eup %9217  ;;  %v5021_v14 = vmul.f32 %v14892_v11, %v4988_v36  ;;  %v5480_v18 = vmul.f32 0.5, %v9216_v3  ;;  %9227 = vtanh.f32 %v1749_v13  ;;  %v2011_v34 = vmul.f32 0.5, %v1978_v60  ;;  %v14897_v3 = vld [vmem:[#allocation32_spill] sm:$0xff] }
 0x410   : > { %v4791_v25 = vadd.f32 %v4759_v35, %v4529_v63  ;;  %v5283_v9 = vmul.f32 %v14893_v55, %v5250_v54  ;;  %v5742_v41 = vmul.f32 0.5, %v9218_v21  ;;  %v2240_v2 = vadd.f32 %v14894_v5, %v2206_v29  ;;  %v14898_v54 = vld [vmem:[#allocation29_spill] sm:$0xff] }
 0x411   : > { %v5512_v51 = vadd.f32 0.5, %v5480_v18  ;;  %9229 = vtanh.f32 %v2011_v34  ;;  %v2730_v42 = vmul.f32 %v14896_v46, %v12017_v37  ;;  %v2992_v13 = vmul.f32 %v14897_v3, %v12017_v37 }
 0x412   : > { %v5053_v53 = vadd.f32 %v5021_v14, %v4791_v25  ;;  %v5774_v62 = vadd.f32 0.5, %v5742_v41  ;;  %v2273_v36 = vmul.f32 0.5, %v2240_v2  ;;  %v2502_v63 = vadd.f32 %v14898_v54, %v2468_v61 }
 0x413   : > { %v5545_v35 = vmul.f32 %v14872_v10, %v5512_v51  ;;  %v2764_v60 = vadd.f32 %v14873_v59, %v2730_v42  ;;  %v3254_v29 = vmul.f32 %v14875_v48, %v12017_v37  ;;  %v3026_v14 = vadd.f32 %v14849_v17, %v2992_v13 }
 0x414   : > { %v9220_v21 = vpop.eup %9219  ;;  %v5315_v18 = vadd.f32 %v5283_v9, %v5053_v53  ;;  %v5807_v34 = vmul.f32 %v14874_v40, %v5774_v62  ;;  %9231 = vtanh.f32 %v2273_v36  ;;  %v2535_v2 = vmul.f32 0.5, %v2502_v63 }
 0x415   : > { %v9222_v25 = vpop.eup %9221  ;;  %v765_v41 = vmul.f32 0.5, %v9220_v21  ;;  %v2797_v3 = vmul.f32 0.5, %v2764_v60  ;;  %v3288_v51 = vadd.f32 %v14800_v1, %v3254_v29  ;;  %v3059_v42 = vmul.f32 0.5, %v3026_v14 }
 0x416   : > { %v9224_v10 = vpop.eup %9223  ;;  %v5577_v61 = vadd.f32 %v5545_v35, %v5315_v18  ;;  %v1027_v55 = vmul.f32 0.5, %v9222_v25  ;;  %v3516_v48 = vmul.f32 %v14851_v23, %v12017_v37  ;;  %9233 = vtanh.f32 %v2535_v2 }
 0x417   : > { %v797_v59 = vadd.f32 0.5, %v765_v41  ;;  %v1289_v53 = vmul.f32 0.5, %v9224_v10  ;;  %v3321_v62 = vmul.f32 0.5, %v3288_v51  ;;  %9235 = vtanh.f32 %v2797_v3 }
 0x418   : > { %v9226_v9 = vpop.eup %9225  ;;  %v5839_v36 = vadd.f32 %v5807_v34, %v5577_v61  ;;  %v1059_v13 = vadd.f32 0.5, %v1027_v55  ;;  %v3550_v63 = vadd.f32 %v14778_v38, %v3516_v48  ;;  %9237 = vtanh.f32 %v3059_v42 }
 0x419   : > { %v9228_v60 = vpop.eup %9227  ;;  %v830_v29 = vmul.f32 %v14850_v32, %v797_v59  ;;  %v1321_v21 = vadd.f32 0.5, %v1289_v53  ;;  %v1551_v35 = vmul.f32 0.5, %v9226_v9  ;;  %9239 = vtanh.f32 %v3321_v62  ;;  %v14899_v53 = vld [vmem:[#allocation53_spill] sm:$0xff] }
 0x41a   : > { %v5873_v18 = vadd.f32 %v14780_v8, %v5839_v36  ;;  %v1092_v14 = vmul.f32 %v14802_v57, %v1059_v13  ;;  %v1813_v25 = vmul.f32 0.5, %v9228_v60  ;;  %v3583_v55 = vmul.f32 0.5, %v3550_v63 }
 0x41b   : > { %v9230_v10 = vpop.eup %9229  ;;  %v1354_v41 = vmul.f32 %v14827_v20, %v1321_v21  ;;  %v1583_v34 = vadd.f32 0.5, %v1551_v35  ;;  %v3778_v48 = vmul.f32 %v14828_v26, %v12017_v37  ;;  %v4040_v62 = vmul.f32 %v14899_v53, %v12017_v37  ;;  %v14900_v35 = vld [vmem:[#allocation56_spill] sm:$0xff] }
 0x41c   : > { %v5905_v3 = vmul.f32 0.5, %v5873_v18  ;;  %v1124_v2 = vadd.f32 %v1092_v14, %v830_v29  ;;  %v1845_v59 = vadd.f32 0.5, %v1813_v25  ;;  %v2075_v51 = vmul.f32 0.5, %v9230_v10  ;;  %v14901_v25 = vld [vmem:[#allocation42_spill] sm:$0xff] }
 0x41d   : > { %v1616_v61 = vmul.f32 %v14782_v58, %v1583_v34  ;;  %9241 = vtanh.f32 %v3583_v55  ;;  %v3812_v42 = vadd.f32 %v14805_v6, %v3778_v48  ;;  %v4074_v29 = vadd.f32 %v14760_v4, %v4040_v62  ;;  %v14902_v34 = vld [vmem:[#allocation59_spill] sm:$0xff]  ;;  %v14903_v48 = vld [vmem:[#allocation62_spill] sm:$0xff] }
 0x41e   : > { %v9232_v9 = vpop.eup %9231  ;;  %9243 = vtanh.f32 %v5905_v3  ;;  %v1386_v36 = vadd.f32 %v1354_v41, %v1124_v2  ;;  %v1878_v13 = vmul.f32 %v14759_v22, %v1845_v59  ;;  %v2107_v63 = vadd.f32 0.5, %v2075_v51  ;;  %v14904_v51 = vld [vmem:[#allocation57_spill] sm:$0xff] }
 0x41f   : > { %v2337_v60 = vmul.f32 0.5, %v9232_v9  ;;  %v3845_v21 = vmul.f32 0.5, %v3812_v42  ;;  %v4302_v18 = vmul.f32 %v14900_v35, %v12017_v37  ;;  %v4564_v55 = vmul.f32 %v14902_v34, %v12017_v37 }
 0x420   : > { %v1648_v14 = vadd.f32 %v1616_v61, %v1386_v36  ;;  %v2140_v10 = vmul.f32 %v14901_v25, %v2107_v63  ;;  %v4826_v3 = vmul.f32 %v14903_v48, %v12017_v37  ;;  %v9234_v41 = vpop.eup %9233  ;;  %v4107_v59 = vmul.f32 0.5, %v4074_v29 }
 0x421   : > { %v2369_v2 = vadd.f32 0.5, %v2337_v60  ;;  %9245 = vtanh.f32 %v3845_v21  ;;  %v4336_v42 = vadd.f32 %v14904_v51, %v4302_v18  ;;  %v9236_v9 = vpop.eup %9235  ;;  %v2599_v22 = vmul.f32 0.5, %v9234_v41 }
 0x422   : > { %v1910_v62 = vadd.f32 %v1878_v13, %v1648_v14  ;;  %v4598_v35 = vadd.f32 %v14881_v31, %v4564_v55  ;;  %v4860_v61 = vadd.f32 %v14882_v45, %v4826_v3  ;;  %v9238_v36 = vpop.eup %9237  ;;  %v2861_v25 = vmul.f32 0.5, %v9236_v9 }
 0x423   : > { %v2402_v63 = vmul.f32 %v14856_v12, %v2369_v2  ;;  %9247 = vtanh.f32 %v4107_v59  ;;  %v4369_v34 = vmul.f32 0.5, %v4336_v42  ;;  %v9240_v48 = vpop.eup %9239  ;;  %v2631_v60 = vadd.f32 0.5, %v2599_v22  ;;  %v12096_v42 = vld [vmem:[%s10393_s0 + $0x78] sm:$0xff] }
 0x424   : > { %v2172_v58 = vadd.f32 %v2140_v10, %v1910_v62  ;;  %v3123_v21 = vmul.f32 0.5, %v9238_v36  ;;  %v4631_v29 = vmul.f32 0.5, %v4598_v35  ;;  %v2893_v18 = vadd.f32 0.5, %v2861_v25  ;;  %v14905_v10 = vld [vmem:[#allocation65_spill] sm:$0xff] }
 0x425   : > { %v3385_v51 = vmul.f32 0.5, %v9240_v48  ;;  %9249 = vtanh.f32 %v4369_v34  ;;  %v4893_v13 = vmul.f32 0.5, %v4860_v61  ;;  %v2664_v55 = vmul.f32 %v14857_v0, %v2631_v60 }
 0x426   : > { %v2434_v14 = vadd.f32 %v2402_v63, %v2172_v58  ;;  %v3155_v3 = vadd.f32 0.5, %v3123_v21  ;;  %9251 = vtanh.f32 %v4631_v29  ;;  %v2926_v2 = vmul.f32 %v14860_v24, %v2893_v18 }
 0x427   : > { %v9242_v41 = vpop.eup %9241  ;;  %v3417_v59 = vadd.f32 0.5, %v3385_v51  ;;  %9253 = vtanh.f32 %v4893_v13  ;;  %v5088_v22 = vmul.f32 %v14905_v10, %v12017_v37  ;;  %v5350_v58 = vmul.f32 %v14836_v19, %v12017_v37 }
 0x428   : > { %v9244_v35 = vpop.eup %9243  ;;  %v2696_v25 = vadd.f32 %v2664_v55, %v2434_v14  ;;  %v3188_v34 = vmul.f32 %v14813_v28, %v3155_v3  ;;  %v3647_v48 = vmul.f32 0.5, %v9242_v41  ;;  %v5612_v51 = vmul.f32 %v14838_v30, %v12017_v37 }
 0x429   : > { %v5969_v9 = vmul.f32 0.5, %v9244_v35  ;;  %v3450_v62 = vmul.f32 %v14788_v33, %v3417_v59  ;;  %v5122_v61 = vadd.f32 %v14859_v50, %v5088_v22  ;;  %v5384_v60 = vadd.f32 %v14837_v56, %v5350_v58 }
 0x42a   : > { %v2958_v36 = vadd.f32 %v2926_v2, %v2696_v25  ;;  %v3679_v63 = vadd.f32 0.5, %v3647_v48  ;;  %v635_v21 = vmul.f32 %v14790_v52, %v12096_v42  ;;  %v5646_v14 = vadd.f32 %v14786_v47, %v5612_v51 }
 0x42b   : > { %v9246_v29 = vpop.eup %9245  ;;  %v12108_v18 = vadd.f32 0.5, %v5969_v9  ;;  %v5155_v13 = vmul.f32 0.5, %v5122_v61  ;;  %v897_v55 = vmul.f32 %v14884_v15, %v12096_v42  ;;  %v5417_v2 = vmul.f32 0.5, %v5384_v60 }
 0x42c   : > { %v3220_v3 = vadd.f32 %v3188_v34, %v2958_v36  ;;  %v3712_v41 = vmul.f32 %v14791_v49, %v3679_v63  ;;  %v3909_v37 = vmul.f32 0.5, %v9246_v29  ;;  %v5679_v22 = vmul.f32 0.5, %v5646_v14  ;;  %v14907_v29 = vld [vmem:[#allocation52_spill] sm:$0xff] }
 0x42d   : > { %14906 = vst [vmem:[#allocation88_spill] sm:$0xff] %v12108_v18  ;;  %v9248_v59 = vpop.eup %9247  ;;  %6046 = vadd.xlane.f32.xlu1 %v12108_v18  ;;  %9255 = vtanh.f32 %v5155_v13  ;;  %v669_v35 = vadd.f32 %v14770_v7, %v635_v21  ;;  %v931_v25 = vadd.f32 %v14700_v16, %v897_v55  ;;  %v1159_v36 = vmul.f32 %v14885_v39, %v12096_v42 }
 0x42e   : > { %v3482_v48 = vadd.f32 %v3450_v62, %v3220_v3  ;;  %v3941_v58 = vadd.f32 0.5, %v3909_v37  ;;  %v4171_v9 = vmul.f32 0.5, %v9248_v59  ;;  %9257 = vtanh.f32 %v5417_v2  ;;  %v14908_v62 = vld [vmem:[#allocation19_spill] sm:$0xff]  ;;  %v14909_v3 = vld [vmem:[#allocation20_spill] sm:$0xff] }
 0x42f   : > { %v9250_v61 = vpop.eup %9249  ;;  %9259 = vtanh.f32 %v5679_v22  ;;  %v702_v34 = vmul.f32 0.5, %v669_v35  ;;  %v964_v51 = vmul.f32 0.5, %v931_v25  ;;  %v1193_v55 = vadd.f32 %v14908_v62, %v1159_v36  ;;  %v14910_v59 = vld [vmem:[#allocation55_spill] sm:$0xff] }
 0x430   : > { %v9252_v63 = vpop.eup %9251  ;;  %v3744_v60 = vadd.f32 %v3712_v41, %v3482_v48  ;;  %v3974_v13 = vmul.f32 %v14907_v29, %v3941_v58  ;;  %v4203_v14 = vadd.f32 0.5, %v4171_v9  ;;  %v4433_v18 = vmul.f32 0.5, %v9250_v61  ;;  %v14911_v48 = vld [vmem:[#allocation21_spill] sm:$0xff] }
 0x431   : > { %v9254_v21 = vpop.eup %9253  ;;  %v4695_v7 = vmul.f32 0.5, %v9252_v63  ;;  %9261 = vtanh.f32 %v702_v34  ;;  %v1421_v37 = vmul.f32 %v14909_v3, %v12096_v42  ;;  %v1226_v41 = vmul.f32 0.5, %v1193_v55  ;;  %v14912_v34 = vld [vmem:[#allocation22_spill] sm:$0xff] }
 0x432   : > { %v4006_v2 = vadd.f32 %v3974_v13, %v3744_v60  ;;  %v4236_v22 = vmul.f32 %v14910_v59, %v4203_v14  ;;  %v4465_v35 = vadd.f32 0.5, %v4433_v18  ;;  %v4957_v25 = vmul.f32 0.5, %v9254_v21  ;;  %v14913_v13 = vld [vmem:[#allocation24_spill] sm:$0xff]  ;;  %v14915_v55 = vld [vmem:[#allocation26_spill] sm:$0xff] }
 0x433   : > { %v4727_v16 = vadd.f32 0.5, %v4695_v7  ;;  %9263 = vtanh.f32 %v964_v51  ;;  %v1455_v58 = vadd.f32 %v14911_v48, %v1421_v37  ;;  %v1683_v36 = vmul.f32 %v14912_v34, %v12096_v42  ;;  %v14914_v51 = vld [vmem:[#allocation23_spill] sm:$0xff] }
 0x434   : > { %v4268_v9 = vadd.f32 %v4236_v22, %v4006_v2  ;;  %v4498_v61 = vmul.f32 %v14888_v43, %v4465_v35  ;;  %v4989_v63 = vadd.f32 0.5, %v4957_v25  ;;  %9265 = vtanh.f32 %v1226_v41  ;;  %v14916_v22 = vld [vmem:[#allocation25_spill] sm:$0xff] }
 0x435   : > { %v4760_v62 = vmul.f32 %v14890_v44, %v4727_v16  ;;  %v1488_v60 = vmul.f32 0.5, %v1455_v58  ;;  %v1945_v18 = vmul.f32 %v14913_v13, %v12096_v42  ;;  %v1717_v21 = vadd.f32 %v14914_v51, %v1683_v36 }
 0x436   : > { %v4530_v14 = vadd.f32 %v4498_v61, %v4268_v9  ;;  %v5022_v7 = vmul.f32 %v14892_v11, %v4989_v63  ;;  %v2207_v37 = vmul.f32 %v14915_v55, %v12096_v42  ;;  %v2469_v16 = vmul.f32 %v14895_v27, %v12096_v42 }
 0x437   : > { %v9256_v2 = vpop.eup %9255  ;;  %9267 = vtanh.f32 %v1488_v60  ;;  %v1979_v35 = vadd.f32 %v14916_v22, %v1945_v18  ;;  %v2731_v25 = vmul.f32 %v14896_v46, %v12096_v42  ;;  %v1750_v61 = vmul.f32 0.5, %v1717_v21  ;;  %v14917_v60 = vld [vmem:[#allocation31_spill] sm:$0xff] }
 0x438   : > { %v9258_v41 = vpop.eup %9257  ;;  %v4792_v58 = vadd.f32 %v4760_v62, %v4530_v14  ;;  %v5219_v9 = vmul.f32 0.5, %v9256_v2  ;;  %v2241_v63 = vadd.f32 %v14894_v5, %v2207_v37  ;;  %v2503_v55 = vadd.f32 %v14898_v54, %v2469_v16  ;;  %v14918_v14 = vld [vmem:[#allocation67_spill] sm:$0xff]  ;;  %v14920_v16 = vld [vmem:[#allocation32_spill] sm:$0xff] }
 0x439   : > { %v9260_v36 = vpop.eup %9259  ;;  %v5481_v11 = vmul.f32 0.5, %v9258_v41  ;;  %v2012_v13 = vmul.f32 0.5, %v1979_v35  ;;  %v2765_v44 = vadd.f32 %v14917_v60, %v2731_v25  ;;  %9269 = vtanh.f32 %v1750_v61  ;;  %v14919_v35 = vld [vmem:[#allocation70_spill] sm:$0xff] }
 0x43a   : > { %v5054_v18 = vadd.f32 %v5022_v7, %v4792_v58  ;;  %v5251_v22 = vadd.f32 0.5, %v5219_v9  ;;  %v5743_v43 = vmul.f32 0.5, %v9260_v36  ;;  %v2274_v46 = vmul.f32 0.5, %v2241_v63  ;;  %v14921_v25 = vld [vmem:[#allocation34_spill] sm:$0xff] }
 0x43b   : > { %v9262_v27 = vpop.eup %9261  ;;  %v5513_v51 = vadd.f32 0.5, %v5481_v11  ;;  %9271 = vtanh.f32 %v2012_v13  ;;  %v2536_v62 = vmul.f32 0.5, %v2503_v55  ;;  %v2798_v5 = vmul.f32 0.5, %v2765_v44 }
 0x43c   : > { %v5284_v21 = vmul.f32 %v14918_v14, %v5251_v22  ;;  %v5775_v2 = vadd.f32 0.5, %v5743_v43  ;;  %v766_v37 = vmul.f32 0.5, %v9262_v27  ;;  %9273 = vtanh.f32 %v2274_v46 }
 0x43d   : > { %v9264_v41 = vpop.eup %9263  ;;  %v5546_v34 = vmul.f32 %v14919_v35, %v5513_v51  ;;  %v2993_v7 = vmul.f32 %v14920_v16, %v12096_v42  ;;  %v3255_v58 = vmul.f32 %v14921_v25, %v12096_v42  ;;  %9275 = vtanh.f32 %v2536_v62 }
 0x43e   : > { %v5316_v9 = vadd.f32 %v5284_v21, %v5054_v18  ;;  %v5808_v11 = vmul.f32 %v14874_v40, %v5775_v2  ;;  %v798_v13 = vadd.f32 0.5, %v766_v37  ;;  %v1028_v55 = vmul.f32 0.5, %v9264_v41  ;;  %v9266_v61 = vpop.eup %9265 }
 0x43f   : > { %v3027_v43 = vadd.f32 %v14849_v17, %v2993_v7  ;;  %v3289_v44 = vadd.f32 %v14800_v1, %v3255_v58  ;;  %v3517_v27 = vmul.f32 %v14851_v23, %v12096_v42  ;;  %v1290_v63 = vmul.f32 0.5, %v9266_v61 }
 0x440   : > { %v5578_v46 = vadd.f32 %v5546_v34, %v5316_v9  ;;  %v831_v51 = vmul.f32 %v14850_v32, %v798_v13  ;;  %v1060_v22 = vadd.f32 0.5, %v1028_v55  ;;  %9277 = vtanh.f32 %v2798_v5 }
 0x441   : > { %v9268_v36 = vpop.eup %9267  ;;  %v3060_v18 = vmul.f32 0.5, %v3027_v43  ;;  %v3322_v21 = vmul.f32 0.5, %v3289_v44  ;;  %v3551_v2 = vadd.f32 %v14778_v38, %v3517_v27  ;;  %v1322_v41 = vadd.f32 0.5, %v1290_v63 }
 0x442   : > { %v5840_v37 = vadd.f32 %v5808_v11, %v5578_v46  ;;  %v1093_v62 = vmul.f32 %v14802_v57, %v1060_v22  ;;  %v1552_v7 = vmul.f32 0.5, %v9268_v36  ;;  %v3779_v34 = vmul.f32 %v14828_v26, %v12096_v42  ;;  %v14922_v36 = vld [vmem:[#allocation40_spill] sm:$0xff] }
 0x443   : > { %9279 = vtanh.f32 %v3060_v18  ;;  %v3584_v58 = vmul.f32 0.5, %v3551_v2  ;;  %v4041_v9 = vmul.f32 %v14899_v53, %v12096_v42  ;;  %v9270_v13 = vpop.eup %9269  ;;  %v1355_v61 = vmul.f32 %v14827_v20, %v1322_v41 }
 0x444   : > { %v5874_v5 = vadd.f32 %v14780_v8, %v5840_v37  ;;  %v1125_v55 = vadd.f32 %v1093_v62, %v831_v51  ;;  %v1584_v43 = vadd.f32 0.5, %v1552_v7  ;;  %v1814_v44 = vmul.f32 0.5, %v9270_v13 }
 0x445   : > { %v9272_v11 = vpop.eup %9271  ;;  %9281 = vtanh.f32 %v3322_v21  ;;  %v3813_v27 = vadd.f32 %v14805_v6, %v3779_v34  ;;  %v4075_v46 = vadd.f32 %v14760_v4, %v4041_v9  ;;  %v14923_v21 = vld [vmem:[#allocation41_spill] sm:$0xff]  ;;  %v14924_v34 = vld [vmem:[#allocation56_spill] sm:$0xff] }
 0x446   : > { %v5906_v22 = vmul.f32 0.5, %v5874_v5  ;;  %v1387_v63 = vadd.f32 %v1355_v61, %v1125_v55  ;;  %v1617_v18 = vmul.f32 %v14922_v36, %v1584_v43  ;;  %v2076_v2 = vmul.f32 0.5, %v9272_v11  ;;  %v9274_v53 = vpop.eup %9273  ;;  %v14925_v5 = vld [vmem:[#allocation59_spill] sm:$0xff]  ;;  %v14926_v61 = vld [vmem:[#allocation42_spill] sm:$0xff] }
 0x447   : > { %v1846_v26 = vadd.f32 0.5, %v1814_v44  ;;  %9283 = vtanh.f32 %v3584_v58  ;;  %v3846_v37 = vmul.f32 0.5, %v3813_v27  ;;  %v4108_v51 = vmul.f32 0.5, %v4075_v46  ;;  %v9276_v13 = vpop.eup %9275  ;;  %v14927_v46 = vld [vmem:[#allocation57_spill] sm:$0xff] }
 0x448   : > { %9285 = vtanh.f32 %v5906_v22  ;;  %v1649_v62 = vadd.f32 %v1617_v18, %v1387_v63  ;;  %v2108_v41 = vadd.f32 0.5, %v2076_v2  ;;  %v2338_v7 = vmul.f32 0.5, %v9274_v53 }
 0x449   : > { %v1879_v20 = vmul.f32 %v14923_v21, %v1846_v26  ;;  %9287 = vtanh.f32 %v3846_v37  ;;  %v4303_v9 = vmul.f32 %v14924_v34, %v12096_v42  ;;  %v4565_v55 = vmul.f32 %v14925_v5, %v12096_v42  ;;  %v14928_v26 = vld [vmem:[#allocation62_spill] sm:$0xff] }
 0x44a   : > { %v2141_v43 = vmul.f32 %v14926_v61, %v2108_v41  ;;  %v2370_v11 = vadd.f32 0.5, %v2338_v7  ;;  %v2600_v58 = vmul.f32 0.5, %v9276_v13  ;;  %9289 = vtanh.f32 %v4108_v51  ;;  %v9278_v44 = vpop.eup %9277 }
 0x44b   : > { %v1911_v27 = vadd.f32 %v1879_v20, %v1649_v62  ;;  %v4337_v22 = vadd.f32 %v14927_v46, %v4303_v9  ;;  %v4599_v53 = vadd.f32 %v14881_v31, %v4565_v55  ;;  %v4827_v63 = vmul.f32 %v14928_v26, %v12096_v42 }
 0x44c   : > { %v2403_v18 = vmul.f32 %v14856_v12, %v2370_v11  ;;  %v2632_v2 = vadd.f32 0.5, %v2600_v58  ;;  %v2862_v37 = vmul.f32 0.5, %v9278_v44  ;;  %v5089_v5 = vmul.f32 %v14905_v10, %v12096_v42 }
 0x44d   : > { %v9280_v41 = vpop.eup %9279  ;;  %v2173_v7 = vadd.f32 %v2141_v43, %v1911_v27  ;;  %v4370_v13 = vmul.f32 0.5, %v4337_v22  ;;  %v4632_v51 = vmul.f32 0.5, %v4599_v53  ;;  %v4861_v20 = vadd.f32 %v14882_v45, %v4827_v63 }
 0x44e   : > { %v2665_v62 = vmul.f32 %v14857_v0, %v2632_v2  ;;  %v2894_v9 = vadd.f32 0.5, %v2862_v37  ;;  %v3124_v55 = vmul.f32 0.5, %v9280_v41  ;;  %v5123_v31 = vadd.f32 %v14859_v50, %v5089_v5 }
 0x44f   : > { %v9282_v61 = vpop.eup %9281  ;;  %v2435_v26 = vadd.f32 %v2403_v18, %v2173_v7  ;;  %9291 = vtanh.f32 %v4370_v13  ;;  %v4894_v11 = vmul.f32 0.5, %v4861_v20  ;;  %v5351_v58 = vmul.f32 %v14836_v19, %v12096_v42 }
 0x450   : > { %v2927_v44 = vmul.f32 %v14860_v24, %v2894_v9  ;;  %v3156_v43 = vadd.f32 0.5, %v3124_v55  ;;  %v3386_v27 = vmul.f32 0.5, %v9282_v61  ;;  %9293 = vtanh.f32 %v4632_v51  ;;  %v12190_v51 = vld [vmem:[%s10393_s0 + $0x80] sm:$0xff] }
 0x451   : > { %v9284_v22 = vpop.eup %9283  ;;  %v2697_v53 = vadd.f32 %v2665_v62, %v2435_v26  ;;  %9295 = vtanh.f32 %v4894_v11  ;;  %v5156_v63 = vmul.f32 0.5, %v5123_v31  ;;  %v5385_v2 = vadd.f32 %v14837_v56, %v5351_v58 }
 0x452   : > { %v9286_v5 = vpop.eup %9285  ;;  %v3189_v18 = vmul.f32 %v14813_v28, %v3156_v43  ;;  %v3418_v37 = vadd.f32 0.5, %v3386_v27  ;;  %v3648_v41 = vmul.f32 0.5, %v9284_v22  ;;  %v5613_v7 = vmul.f32 %v14838_v30, %v12096_v42 }
 0x453   : > { %v9288_v13 = vpop.eup %9287  ;;  %v5970_v20 = vmul.f32 0.5, %v9286_v5  ;;  %v2959_v9 = vadd.f32 %v2927_v44, %v2697_v53  ;;  %9297 = vtanh.f32 %v5156_v63  ;;  %v5418_v61 = vmul.f32 0.5, %v5385_v2 }
 0x454   : > { %v9290_v26 = vpop.eup %9289  ;;  %v3451_v31 = vmul.f32 %v14788_v33, %v3418_v37  ;;  %v3680_v62 = vadd.f32 0.5, %v3648_v41  ;;  %v3910_v55 = vmul.f32 0.5, %v9288_v13  ;;  %v5647_v11 = vadd.f32 %v14786_v47, %v5613_v7  ;;  %v14930_v41 = vld [vmem:[#allocation16_spill] sm:$0xff] }
 0x455   : > { %v12194_v58 = vadd.f32 0.5, %v5970_v20  ;;  %v3221_v43 = vadd.f32 %v3189_v18, %v2959_v9  ;;  %v4172_v27 = vmul.f32 0.5, %v9290_v26  ;;  %9299 = vtanh.f32 %v5418_v61  ;;  %v14931_v26 = vld [vmem:[#allocation17_spill] sm:$0xff] }
 0x456   : > { %v3713_v42 = vmul.f32 %v14791_v49, %v3680_v62  ;;  %v3942_v22 = vadd.f32 0.5, %v3910_v55  ;;  %v5680_v44 = vmul.f32 0.5, %v5647_v11  ;;  %v636_v53 = vmul.f32 %v14790_v52, %v12190_v51  ;;  %v14932_v62 = vld [vmem:[#allocation19_spill] sm:$0xff] }
 0x457   : > { %14929 = vst [vmem:[#allocation89_spill] sm:$0xff] %v12194_v58  ;;  %6048 = vadd.xlane.f32.xlu0 %v12194_v58  ;;  %v3483_v63 = vadd.f32 %v3451_v31, %v3221_v43  ;;  %v4204_v2 = vadd.f32 0.5, %v4172_v27  ;;  %v898_v5 = vmul.f32 %v14884_v15, %v12190_v51  ;;  %v1160_v37 = vmul.f32 %v14885_v39, %v12190_v51 }
 0x458   : > { %v3975_v18 = vmul.f32 %v14907_v29, %v3942_v22  ;;  %9301 = vtanh.f32 %v5680_v44  ;;  %v670_v7 = vadd.f32 %v14930_v41, %v636_v53  ;;  %v1422_v13 = vmul.f32 %v14909_v3, %v12190_v51  ;;  %v14933_v22 = vld [vmem:[#allocation22_spill] sm:$0xff] }
 0x459   : > { %v9292_v20 = vpop.eup %9291  ;;  %v3745_v9 = vadd.f32 %v3713_v42, %v3483_v63  ;;  %v4237_v61 = vmul.f32 %v14910_v59, %v4204_v2  ;;  %v932_v31 = vadd.f32 %v14931_v26, %v898_v5  ;;  %v1194_v55 = vadd.f32 %v14932_v62, %v1160_v37  ;;  %v14935_v62 = vld [vmem:[#allocation58_spill] sm:$0xff] }
 0x45a   : > { %v9294_v11 = vpop.eup %9293  ;;  %v4434_v43 = vmul.f32 0.5, %v9292_v20  ;;  %v703_v27 = vmul.f32 0.5, %v670_v7  ;;  %v1456_v58 = vadd.f32 %v14911_v48, %v1422_v13  ;;  %v1684_v44 = vmul.f32 %v14933_v22, %v12190_v51  ;;  %v14934_v20 = vld [vmem:[#allocation23_spill] sm:$0xff] }
 0x45b   : > { %v9296_v53 = vpop.eup %9295  ;;  %v4007_v29 = vadd.f32 %v3975_v18, %v3745_v9  ;;  %v4696_v39 = vmul.f32 0.5, %v9294_v11  ;;  %v965_v3 = vmul.f32 0.5, %v932_v31  ;;  %v1227_v15 = vmul.f32 0.5, %v1194_v55  ;;  %v14936_v18 = vld [vmem:[#allocation61_spill] sm:$0xff]  ;;  %v14937_v55 = vld [vmem:[#allocation24_spill] sm:$0xff] }
 0x45c   : > { %v4466_v42 = vadd.f32 0.5, %v4434_v43  ;;  %v4958_v63 = vmul.f32 0.5, %v9296_v53  ;;  %9303 = vtanh.f32 %v703_v27  ;;  %v1489_v2 = vmul.f32 0.5, %v1456_v58  ;;  %v14938_v43 = vld [vmem:[#allocation64_spill] sm:$0xff] }
 0x45d   : > { %v9298_v5 = vpop.eup %9297  ;;  %v4269_v59 = vadd.f32 %v4237_v61, %v4007_v29  ;;  %v4728_v37 = vadd.f32 0.5, %v4696_v39  ;;  %9305 = vtanh.f32 %v965_v3  ;;  %v1718_v7 = vadd.f32 %v14934_v20, %v1684_v44  ;;  %v14939_v61 = vld [vmem:[#allocation25_spill] sm:$0xff]  ;;  %v14940_v44 = vld [vmem:[#allocation26_spill] sm:$0xff] }
 0x45e   : > { %v4499_v13 = vmul.f32 %v14935_v62, %v4466_v42  ;;  %v4990_v48 = vadd.f32 0.5, %v4958_v63  ;;  %v5220_v26 = vmul.f32 0.5, %v9298_v5  ;;  %9307 = vtanh.f32 %v1227_v15  ;;  %v14941_v15 = vld [vmem:[#allocation28_spill] sm:$0xff] }
 0x45f   : > { %v9300_v22 = vpop.eup %9299  ;;  %v4761_v9 = vmul.f32 %v14936_v18, %v4728_v37  ;;  %9309 = vtanh.f32 %v1489_v2  ;;  %v1751_v31 = vmul.f32 0.5, %v1718_v7  ;;  %v1946_v11 = vmul.f32 %v14937_v55, %v12190_v51 }
 0x460   : > { %v4531_v58 = vadd.f32 %v4499_v13, %v4269_v59  ;;  %v5023_v29 = vmul.f32 %v14938_v43, %v4990_v48  ;;  %v5252_v39 = vadd.f32 0.5, %v5220_v26  ;;  %v5482_v3 = vmul.f32 0.5, %v9300_v22  ;;  %v14942_v59 = vld [vmem:[#allocation30_spill] sm:$0xff]  ;;  %v14943_v22 = vld [vmem:[#allocation27_spill] sm:$0xff] }
 0x461   : > { %9311 = vtanh.f32 %v1751_v31  ;;  %v1980_v27 = vadd.f32 %v14939_v61, %v1946_v11  ;;  %v2208_v53 = vmul.f32 %v14940_v44, %v12190_v51  ;;  %v2470_v42 = vmul.f32 %v14941_v15, %v12190_v51 }
 0x462   : > { %v9302_v63 = vpop.eup %9301  ;;  %v4793_v2 = vadd.f32 %v4761_v9, %v4531_v58  ;;  %v5285_v5 = vmul.f32 %v14918_v14, %v5252_v39  ;;  %v5514_v37 = vadd.f32 0.5, %v5482_v3  ;;  %v2732_v7 = vmul.f32 %v14942_v59, %v12190_v51 }
 0x463   : > { %v5744_v48 = vmul.f32 0.5, %v9302_v63  ;;  %v2013_v26 = vmul.f32 0.5, %v1980_v27  ;;  %v2242_v13 = vadd.f32 %v14943_v22, %v2208_v53  ;;  %v2504_v31 = vadd.f32 %v14898_v54, %v2470_v42 }
 0x464   : > { %v5055_v11 = vadd.f32 %v5023_v29, %v4793_v2  ;;  %v5547_v43 = vmul.f32 %v14919_v35, %v5514_v37  ;;  %v2766_v61 = vadd.f32 %v14917_v60, %v2732_v7  ;;  %v2994_v9 = vmul.f32 %v14920_v16, %v12190_v51 }
 0x465   : > { %v5776_v58 = vadd.f32 0.5, %v5744_v48  ;;  %9313 = vtanh.f32 %v2013_v26  ;;  %v2275_v39 = vmul.f32 0.5, %v2242_v13  ;;  %v2537_v3 = vmul.f32 0.5, %v2504_v31 }
 0x466   : > { %v9304_v14 = vpop.eup %9303  ;;  %v5317_v59 = vadd.f32 %v5285_v5, %v5055_v11  ;;  %v2799_v63 = vmul.f32 0.5, %v2766_v61  ;;  %v3028_v27 = vadd.f32 %v14849_v17, %v2994_v9  ;;  %v3256_v53 = vmul.f32 %v14921_v25, %v12190_v51 }
 0x467   : > { %v9306_v29 = vpop.eup %9305  ;;  %v5809_v42 = vmul.f32 %v14874_v40, %v5776_v58  ;;  %v767_v2 = vmul.f32 0.5, %v9304_v14  ;;  %9315 = vtanh.f32 %v2275_v39  ;;  %v3518_v37 = vmul.f32 %v14851_v23, %v12190_v51 }
 0x468   : > { %v9308_v7 = vpop.eup %9307  ;;  %v5579_v48 = vadd.f32 %v5547_v43, %v5317_v59  ;;  %v1029_v26 = vmul.f32 0.5, %v9306_v29  ;;  %9317 = vtanh.f32 %v2537_v3  ;;  %v3061_v13 = vmul.f32 0.5, %v3028_v27 }
 0x469   : > { %v9310_v5 = vpop.eup %9309  ;;  %v799_v61 = vadd.f32 0.5, %v767_v2  ;;  %v1291_v31 = vmul.f32 0.5, %v9308_v7  ;;  %9319 = vtanh.f32 %v2799_v63  ;;  %v3290_v11 = vadd.f32 %v14800_v1, %v3256_v53  ;;  %v14944_v63 = vld [vmem:[#allocation39_spill] sm:$0xff] }
 0x46a   : > { %v5841_v9 = vadd.f32 %v5809_v42, %v5579_v48  ;;  %v1061_v17 = vadd.f32 0.5, %v1029_v26  ;;  %v1553_v25 = vmul.f32 0.5, %v9310_v5  ;;  %9321 = vtanh.f32 %v3061_v13  ;;  %v14945_v42 = vld [vmem:[#allocation50_spill] sm:$0xff] }
 0x46b   : > { %v9312_v14 = vpop.eup %9311  ;;  %v832_v58 = vmul.f32 %v14850_v32, %v799_v61  ;;  %v1323_v39 = vadd.f32 0.5, %v1291_v31  ;;  %v3323_v23 = vmul.f32 0.5, %v3290_v11  ;;  %v3552_v43 = vadd.f32 %v14778_v38, %v3518_v37 }
 0x46c   : > { %v5875_v59 = vadd.f32 %v14780_v8, %v5841_v9  ;;  %v1094_v3 = vmul.f32 %v14802_v57, %v1061_v17  ;;  %v1585_v27 = vadd.f32 0.5, %v1553_v25  ;;  %v1815_v29 = vmul.f32 0.5, %v9312_v14  ;;  %v14946_v17 = vld [vmem:[#allocation53_spill] sm:$0xff] }
 0x46d   : > { %v1356_v2 = vmul.f32 %v14944_v63, %v1323_v39  ;;  %9323 = vtanh.f32 %v3323_v23  ;;  %v3585_v53 = vmul.f32 0.5, %v3552_v43  ;;  %v3780_v7 = vmul.f32 %v14945_v42, %v12190_v51 }
 0x46e   : > { %v5907_v48 = vmul.f32 0.5, %v5875_v59  ;;  %v1126_v26 = vadd.f32 %v1094_v3, %v832_v58  ;;  %v1618_v13 = vmul.f32 %v14922_v36, %v1585_v27  ;;  %v1847_v5 = vadd.f32 0.5, %v1815_v29  ;;  %v14947_v59 = vld [vmem:[#allocation59_spill] sm:$0xff] }
 0x46f   : > { %v9314_v61 = vpop.eup %9313  ;;  %9325 = vtanh.f32 %v3585_v53  ;;  %v3814_v37 = vadd.f32 %v14805_v6, %v3780_v7  ;;  %v4042_v25 = vmul.f32 %v14946_v17, %v12190_v51  ;;  %v4304_v31 = vmul.f32 %v14924_v34, %v12190_v51  ;;  %v14948_v34 = vld [vmem:[#allocation62_spill] sm:$0xff] }
 0x470   : > { %9327 = vtanh.f32 %v5907_v48  ;;  %v1388_v23 = vadd.f32 %v1356_v2, %v1126_v26  ;;  %v1880_v11 = vmul.f32 %v14923_v21, %v1847_v5  ;;  %v2077_v9 = vmul.f32 0.5, %v9314_v61 }
 0x471   : > { %v9316_v14 = vpop.eup %9315  ;;  %v3847_v58 = vmul.f32 0.5, %v3814_v37  ;;  %v4076_v39 = vadd.f32 %v14760_v4, %v4042_v25  ;;  %v4338_v43 = vadd.f32 %v14927_v46, %v4304_v31  ;;  %v4566_v3 = vmul.f32 %v14947_v59, %v12190_v51  ;;  %v14949_v25 = vld [vmem:[#allocation42_spill] sm:$0xff] }
 0x472   : > { %v9318_v27 = vpop.eup %9317  ;;  %v1650_v29 = vadd.f32 %v1618_v13, %v1388_v23  ;;  %v2109_v53 = vadd.f32 0.5, %v2077_v9  ;;  %v2339_v7 = vmul.f32 0.5, %v9316_v14  ;;  %v4828_v48 = vmul.f32 %v14948_v34, %v12190_v51  ;;  %v14950_v13 = vld [vmem:[#allocation60_spill] sm:$0xff] }
 0x473   : > { %v9320_v2 = vpop.eup %9319  ;;  %v2601_v26 = vmul.f32 0.5, %v9318_v27  ;;  %9329 = vtanh.f32 %v3847_v58  ;;  %v4109_v5 = vmul.f32 0.5, %v4076_v39  ;;  %v4371_v61 = vmul.f32 0.5, %v4338_v43 }
 0x474   : > { %v9322_v37 = vpop.eup %9321  ;;  %v1912_v21 = vadd.f32 %v1880_v11, %v1650_v29  ;;  %v2142_v4 = vmul.f32 %v14949_v25, %v2109_v53  ;;  %v2371_v31 = vadd.f32 0.5, %v2339_v7  ;;  %v2863_v46 = vmul.f32 0.5, %v9320_v2 }
 0x475   : > { %v2633_v36 = vadd.f32 0.5, %v2601_v26  ;;  %v3125_v59 = vmul.f32 0.5, %v9322_v37  ;;  %9331 = vtanh.f32 %v4109_v5  ;;  %v4600_v23 = vadd.f32 %v14950_v13, %v4566_v3 }
 0x476   : > { %v2174_v9 = vadd.f32 %v2142_v4, %v1912_v21  ;;  %v2404_v14 = vmul.f32 %v14856_v12, %v2371_v31  ;;  %v2895_v34 = vadd.f32 0.5, %v2863_v46  ;;  %9333 = vtanh.f32 %v4371_v61  ;;  %v12274_v61 = vld [vmem:[%s10393_s0 + $0x88] sm:$0xff] }
 0x477   : > { %v9324_v27 = vpop.eup %9323  ;;  %v2666_v58 = vmul.f32 %v14857_v0, %v2633_v36  ;;  %v3157_v39 = vadd.f32 0.5, %v3125_v59  ;;  %v4633_v43 = vmul.f32 0.5, %v4600_v23  ;;  %v4862_v11 = vadd.f32 %v14882_v45, %v4828_v48 }
 0x478   : > { %v2436_v29 = vadd.f32 %v2404_v14, %v2174_v9  ;;  %v2928_v53 = vmul.f32 %v14860_v24, %v2895_v34  ;;  %v3387_v7 = vmul.f32 0.5, %v9324_v27  ;;  %v5090_v3 = vmul.f32 %v14905_v10, %v12190_v51 }
 0x479   : > { %v9326_v4 = vpop.eup %9325  ;;  %v3190_v21 = vmul.f32 %v14813_v28, %v3157_v39  ;;  %9335 = vtanh.f32 %v4633_v43  ;;  %v4895_v46 = vmul.f32 0.5, %v4862_v11  ;;  %v5352_v36 = vmul.f32 %v14836_v19, %v12190_v51 }
 0x47a   : > { %v9328_v59 = vpop.eup %9327  ;;  %v2698_v2 = vadd.f32 %v2666_v58, %v2436_v29  ;;  %v3419_v26 = vadd.f32 0.5, %v3387_v7  ;;  %v3649_v5 = vmul.f32 0.5, %v9326_v4  ;;  %v5124_v48 = vadd.f32 %v14859_v50, %v5090_v3 }
 0x47b   : > { %v5971_v34 = vmul.f32 0.5, %v9328_v59  ;;  %9337 = vtanh.f32 %v4895_v46  ;;  %v5386_v37 = vadd.f32 %v14837_v56, %v5352_v36  ;;  %v5614_v31 = vmul.f32 %v14838_v30, %v12190_v51  ;;  %v14952_v36 = vld [vmem:[#allocation15_spill] sm:$0xff] }
 0x47c   : > { %v2960_v23 = vadd.f32 %v2928_v53, %v2698_v2  ;;  %v3452_v9 = vmul.f32 %v14788_v33, %v3419_v26  ;;  %v3681_v14 = vadd.f32 0.5, %v3649_v5  ;;  %v5157_v27 = vmul.f32 0.5, %v5124_v48 }
 0x47d   : > { %v9330_v39 = vpop.eup %9329  ;;  %v12280_v58 = vadd.f32 0.5, %v5971_v34  ;;  %v5419_v43 = vmul.f32 0.5, %v5386_v37  ;;  %v5648_v11 = vadd.f32 %v14786_v47, %v5614_v31  ;;  %v637_v29 = vmul.f32 %v14790_v52, %v12274_v61 }
 0x47e   : > { %v3222_v7 = vadd.f32 %v3190_v21, %v2960_v23  ;;  %v3714_v3 = vmul.f32 %v14791_v49, %v3681_v14  ;;  %v3911_v4 = vmul.f32 0.5, %v9330_v39  ;;  %9339 = vtanh.f32 %v5157_v27  ;;  %v14953_v21 = vld [vmem:[#allocation18_spill] sm:$0xff]  ;;  %v14954_v23 = vld [vmem:[#allocation17_spill] sm:$0xff]  ;;  %v14955_v39 = vld [vmem:[#allocation52_spill] sm:$0xff] }
 0x47f   : > { %14951 = vst [vmem:[#allocation90_spill] sm:$0xff] %v12280_v58  ;;  %v9332_v51 = vpop.eup %9331  ;;  %6050 = vadd.xlane.f32.xlu1 %v12280_v58  ;;  %9341 = vtanh.f32 %v5419_v43  ;;  %v5681_v53 = vmul.f32 0.5, %v5648_v11  ;;  %v671_v46 = vadd.f32 %v14930_v41, %v637_v29  ;;  %v899_v59 = vmul.f32 %v14952_v36, %v12274_v61  ;;  %v14956_v29 = vld [vmem:[#allocation19_spill] sm:$0xff] }
 0x480   : > { %v9334_v2 = vpop.eup %9333  ;;  %v3484_v26 = vadd.f32 %v3452_v9, %v3222_v7  ;;  %v3943_v5 = vadd.f32 0.5, %v3911_v4  ;;  %v4173_v48 = vmul.f32 0.5, %v9332_v51  ;;  %v1161_v34 = vmul.f32 %v14953_v21, %v12274_v61  ;;  %v14957_v7 = vld [vmem:[#allocation20_spill] sm:$0xff]  ;;  %v14958_v21 = vld [vmem:[#allocation55_spill] sm:$0xff] }
 0x481   : > { %v4435_v37 = vmul.f32 0.5, %v9334_v2  ;;  %9343 = vtanh.f32 %v5681_v53  ;;  %v704_v31 = vmul.f32 0.5, %v671_v46  ;;  %v933_v14 = vadd.f32 %v14954_v23, %v899_v59  ;;  %v14959_v59 = vld [vmem:[#allocation21_spill] sm:$0xff] }
 0x482   : > { %v3746_v27 = vadd.f32 %v3714_v3, %v3484_v26  ;;  %v3976_v43 = vmul.f32 %v14955_v39, %v3943_v5  ;;  %v4205_v11 = vadd.f32 0.5, %v4173_v48  ;;  %v1195_v58 = vadd.f32 %v14956_v29, %v1161_v34  ;;  %v14960_v5 = vld [vmem:[#allocation22_spill] sm:$0xff] }
 0x483   : > { %v9336_v49 = vpop.eup %9335  ;;  %v4467_v41 = vadd.f32 0.5, %v4435_v37  ;;  %9345 = vtanh.f32 %v704_v31  ;;  %v966_v9 = vmul.f32 0.5, %v933_v14  ;;  %v1423_v4 = vmul.f32 %v14957_v7, %v12274_v61 }
 0x484   : > { %v4008_v51 = vadd.f32 %v3976_v43, %v3746_v27  ;;  %v4238_v2 = vmul.f32 %v14958_v21, %v4205_v11  ;;  %v4697_v53 = vmul.f32 0.5, %v9336_v49  ;;  %v1228_v46 = vmul.f32 0.5, %v1195_v58 }
 0x485   : > { %v9338_v36 = vpop.eup %9337  ;;  %v4500_v3 = vmul.f32 %v14935_v62, %v4467_v41  ;;  %9347 = vtanh.f32 %v966_v9  ;;  %v1457_v26 = vadd.f32 %v14959_v59, %v1423_v4  ;;  %v1685_v48 = vmul.f32 %v14960_v5, %v12274_v61 }
 0x486   : > { %v4270_v34 = vadd.f32 %v4238_v2, %v4008_v51  ;;  %v4729_v37 = vadd.f32 0.5, %v4697_v53  ;;  %v4959_v31 = vmul.f32 0.5, %v9338_v36  ;;  %9349 = vtanh.f32 %v1228_v46  ;;  %v14961_v53 = vld [vmem:[#allocation25_spill] sm:$0xff] }
 0x487   : > { %v1490_v14 = vmul.f32 0.5, %v1457_v26  ;;  %v1719_v27 = vadd.f32 %v14934_v20, %v1685_v48  ;;  %v1947_v49 = vmul.f32 %v14937_v55, %v12274_v61  ;;  %v2209_v58 = vmul.f32 %v14940_v44, %v12274_v61  ;;  %v14962_v48 = vld [vmem:[#allocation64_spill] sm:$0xff] }
 0x488   : > { %v9340_v41 = vpop.eup %9339  ;;  %v4532_v43 = vadd.f32 %v4500_v3, %v4270_v34  ;;  %v4762_v11 = vmul.f32 %v14936_v18, %v4729_v37  ;;  %v4991_v9 = vadd.f32 0.5, %v4959_v31  ;;  %v2471_v4 = vmul.f32 %v14941_v15, %v12274_v61 }
 0x489   : > { %v9342_v51 = vpop.eup %9341  ;;  %v5221_v36 = vmul.f32 0.5, %v9340_v41  ;;  %9351 = vtanh.f32 %v1490_v14  ;;  %v1752_v2 = vmul.f32 0.5, %v1719_v27  ;;  %v1981_v46 = vadd.f32 %v14961_v53, %v1947_v49  ;;  %v14963_v27 = vld [vmem:[#allocation67_spill] sm:$0xff] }
 0x48a   : > { %v4794_v26 = vadd.f32 %v4762_v11, %v4532_v43  ;;  %v5024_v62 = vmul.f32 %v14962_v48, %v4991_v9  ;;  %v5483_v20 = vmul.f32 0.5, %v9342_v51  ;;  %v2243_v44 = vadd.f32 %v14943_v22, %v2209_v58  ;;  %v14964_v43 = vld [vmem:[#allocation30_spill] sm:$0xff] }
 0x48b   : > { %v9344_v55 = vpop.eup %9343  ;;  %v5253_v3 = vadd.f32 0.5, %v5221_v36  ;;  %9353 = vtanh.f32 %v1752_v2  ;;  %v2014_v34 = vmul.f32 0.5, %v1981_v46  ;;  %v2505_v37 = vadd.f32 %v14898_v54, %v2471_v4 }
 0x48c   : > { %v5056_v31 = vadd.f32 %v5024_v62, %v4794_v26  ;;  %v5515_v15 = vadd.f32 0.5, %v5483_v20  ;;  %v5745_v18 = vmul.f32 0.5, %v9344_v55  ;;  %v2276_v41 = vmul.f32 0.5, %v2243_v44  ;;  %v14965_v26 = vld [vmem:[#allocation34_spill] sm:$0xff] }
 0x48d   : > { %v9346_v14 = vpop.eup %9345  ;;  %v5286_v5 = vmul.f32 %v14963_v27, %v5253_v3  ;;  %9355 = vtanh.f32 %v2014_v34  ;;  %v2538_v49 = vmul.f32 0.5, %v2505_v37  ;;  %v2733_v11 = vmul.f32 %v14964_v43, %v12274_v61  ;;  %v14966_v37 = vld [vmem:[#allocation33_spill] sm:$0xff] }
 0x48e   : > { %v5548_v58 = vmul.f32 %v14919_v35, %v5515_v15  ;;  %v5777_v9 = vadd.f32 0.5, %v5745_v18  ;;  %v768_v51 = vmul.f32 0.5, %v9346_v14  ;;  %9357 = vtanh.f32 %v2276_v41 }
 0x48f   : > { %v9348_v36 = vpop.eup %9347  ;;  %v5318_v2 = vadd.f32 %v5286_v5, %v5056_v31  ;;  %9359 = vtanh.f32 %v2538_v49  ;;  %v2767_v62 = vadd.f32 %v14917_v60, %v2733_v11  ;;  %v2995_v20 = vmul.f32 %v14920_v16, %v12274_v61  ;;  %v14967_v49 = vld [vmem:[#allocation36_spill] sm:$0xff] }
 0x490   : > { %v9350_v55 = vpop.eup %9349  ;;  %v5810_v44 = vmul.f32 %v14874_v40, %v5777_v9  ;;  %v800_v4 = vadd.f32 0.5, %v768_v51  ;;  %v1030_v46 = vmul.f32 0.5, %v9348_v36  ;;  %v3257_v3 = vmul.f32 %v14965_v26, %v12274_v61 }
 0x491   : > { %v5580_v15 = vadd.f32 %v5548_v58, %v5318_v2  ;;  %v1292_v18 = vmul.f32 0.5, %v9350_v55  ;;  %v2800_v34 = vmul.f32 0.5, %v2767_v62  ;;  %v3029_v41 = vadd.f32 %v14966_v37, %v2995_v20 }
 0x492   : > { %v833_v5 = vmul.f32 %v14850_v32, %v800_v4  ;;  %v1062_v31 = vadd.f32 0.5, %v1030_v46  ;;  %v3291_v14 = vadd.f32 %v14800_v1, %v3257_v3  ;;  %v3519_v11 = vmul.f32 %v14967_v49, %v12274_v61 }
 0x493   : > { %v9352_v60 = vpop.eup %9351  ;;  %v5842_v9 = vadd.f32 %v5810_v44, %v5580_v15  ;;  %v1324_v51 = vadd.f32 0.5, %v1292_v18  ;;  %9361 = vtanh.f32 %v2800_v34  ;;  %v3062_v36 = vmul.f32 0.5, %v3029_v41 }
 0x494   : > { %v1095_v26 = vmul.f32 %v14802_v57, %v1062_v31  ;;  %v1554_v58 = vmul.f32 0.5, %v9352_v60  ;;  %v3324_v2 = vmul.f32 0.5, %v3291_v14  ;;  %v3553_v62 = vadd.f32 %v14778_v38, %v3519_v11 }
 0x495   : > { %v9354_v20 = vpop.eup %9353  ;;  %v5876_v55 = vadd.f32 %v14780_v8, %v5842_v9  ;;  %v1357_v4 = vmul.f32 %v14944_v63, %v1324_v51  ;;  %9363 = vtanh.f32 %v3062_v36  ;;  %v3781_v46 = vmul.f32 %v14945_v42, %v12274_v61  ;;  %v14968_v9 = vld [vmem:[#allocation40_spill] sm:$0xff] }
 0x496   : > { %v1127_v3 = vadd.f32 %v1095_v26, %v833_v5  ;;  %v1586_v44 = vadd.f32 0.5, %v1554_v58  ;;  %v1816_v15 = vmul.f32 0.5, %v9354_v20  ;;  %9365 = vtanh.f32 %v3324_v2  ;;  %v14969_v58 = vld [vmem:[#allocation54_spill] sm:$0xff] }
 0x497   : > { %v9356_v18 = vpop.eup %9355  ;;  %v5908_v34 = vmul.f32 0.5, %v5876_v55  ;;  %v3586_v41 = vmul.f32 0.5, %v3553_v62  ;;  %v3815_v60 = vadd.f32 %v14805_v6, %v3781_v46  ;;  %v4043_v31 = vmul.f32 %v14946_v17, %v12274_v61  ;;  %v14970_v55 = vld [vmem:[#allocation41_spill] sm:$0xff] }
 0x498   : > { %v9358_v14 = vpop.eup %9357  ;;  %v1389_v11 = vadd.f32 %v1357_v4, %v1127_v3  ;;  %v1619_v51 = vmul.f32 %v14968_v9, %v1586_v44  ;;  %v1848_v36 = vadd.f32 0.5, %v1816_v15  ;;  %v2078_v63 = vmul.f32 0.5, %v9356_v18  ;;  %v14971_v4 = vld [vmem:[#allocation56_spill] sm:$0xff] }
 0x499   : > { %v9360_v8 = vpop.eup %9359  ;;  %9367 = vtanh.f32 %v5908_v34  ;;  %v2340_v26 = vmul.f32 0.5, %v9358_v14  ;;  %v3848_v5 = vmul.f32 0.5, %v3815_v60  ;;  %v4077_v2 = vadd.f32 %v14969_v58, %v4043_v31  ;;  %v14972_v31 = vld [vmem:[#allocation57_spill] sm:$0xff] }
 0x49a   : > { %v1651_v20 = vadd.f32 %v1619_v51, %v1389_v11  ;;  %v1881_v62 = vmul.f32 %v14970_v55, %v1848_v36  ;;  %v2110_v42 = vadd.f32 0.5, %v2078_v63  ;;  %v2602_v46 = vmul.f32 0.5, %v9360_v8  ;;  %v14973_v63 = vld [vmem:[#allocation59_spill] sm:$0xff]  ;;  %v14974_v36 = vld [vmem:[#allocation62_spill] sm:$0xff] }
 0x49b   : > { %v2372_v6 = vadd.f32 0.5, %v2340_v26  ;;  %9369 = vtanh.f32 %v3586_v41  ;;  %v4110_v17 = vmul.f32 0.5, %v4077_v2  ;;  %v4305_v3 = vmul.f32 %v14971_v4, %v12274_v61 }
 0x49c   : > { %v1913_v44 = vadd.f32 %v1881_v62, %v1651_v20  ;;  %v2143_v15 = vmul.f32 %v14949_v25, %v2110_v42  ;;  %v2634_v18 = vadd.f32 0.5, %v2602_v46  ;;  %9371 = vtanh.f32 %v3848_v5 }
 0x49d   : > { %v9362_v34 = vpop.eup %9361  ;;  %v2405_v60 = vmul.f32 %v14856_v12, %v2372_v6  ;;  %9373 = vtanh.f32 %v4110_v17  ;;  %v4339_v14 = vadd.f32 %v14972_v31, %v4305_v3  ;;  %v4567_v8 = vmul.f32 %v14973_v63, %v12274_v61 }
 0x49e   : > { %v2175_v11 = vadd.f32 %v2143_v15, %v1913_v44  ;;  %v2667_v41 = vmul.f32 %v14857_v0, %v2634_v18  ;;  %v2864_v51 = vmul.f32 0.5, %v9362_v34  ;;  %v4829_v26 = vmul.f32 %v14974_v36, %v12274_v61 }
 0x49f   : > { %v9364_v2 = vpop.eup %9363  ;;  %v4372_v42 = vmul.f32 0.5, %v4339_v14  ;;  %v4601_v5 = vadd.f32 %v14950_v13, %v4567_v8  ;;  %v5091_v6 = vmul.f32 %v14905_v10, %v12274_v61  ;;  %v5353_v17 = vmul.f32 %v14836_v19, %v12274_v61 }
 0x4a0   : > { %v9366_v20 = vpop.eup %9365  ;;  %v2437_v62 = vadd.f32 %v2405_v60, %v2175_v11  ;;  %v2896_v46 = vadd.f32 0.5, %v2864_v51  ;;  %v3126_v3 = vmul.f32 0.5, %v9364_v2  ;;  %v4863_v44 = vadd.f32 %v14882_v45, %v4829_v26  ;;  %v12361_v11 = vld [vmem:[%s10393_s0 + $0x90] sm:$0xff] }
 0x4a1   : > { %v3388_v15 = vmul.f32 0.5, %v9366_v20  ;;  %9375 = vtanh.f32 %v4372_v42  ;;  %v4634_v18 = vmul.f32 0.5, %v4601_v5  ;;  %v5125_v34 = vadd.f32 %v14859_v50, %v5091_v6 }
 0x4a2   : > { %v2699_v14 = vadd.f32 %v2667_v41, %v2437_v62  ;;  %v2929_v8 = vmul.f32 %v14860_v24, %v2896_v46  ;;  %v3158_v0 = vadd.f32 0.5, %v3126_v3  ;;  %v4896_v12 = vmul.f32 0.5, %v4863_v44 }
 0x4a3   : > { %v9368_v10 = vpop.eup %9367  ;;  %v3420_v13 = vadd.f32 0.5, %v3388_v15  ;;  %9377 = vtanh.f32 %v4634_v18  ;;  %v5158_v19 = vmul.f32 0.5, %v5125_v34  ;;  %v5387_v60 = vadd.f32 %v14837_v56, %v5353_v17  ;;  %v14977_v18 = vld [vmem:[#allocation16_spill] sm:$0xff] }
 0x4a4   : > { %v5972_v51 = vmul.f32 0.5, %v9368_v10  ;;  %v2961_v26 = vadd.f32 %v2929_v8, %v2699_v14  ;;  %v3191_v2 = vmul.f32 %v14813_v28, %v3158_v0  ;;  %9379 = vtanh.f32 %v4896_v12  ;;  %v14976_v0 = vld [vmem:[#allocation15_spill] sm:$0xff] }
 0x4a5   : > { %v9370_v42 = vpop.eup %9369  ;;  %v3453_v41 = vmul.f32 %v14788_v33, %v3420_v13  ;;  %9381 = vtanh.f32 %v5158_v19  ;;  %v5420_v5 = vmul.f32 0.5, %v5387_v60  ;;  %v5615_v6 = vmul.f32 %v14838_v30, %v12274_v61 }
 0x4a6   : > { %v9372_v20 = vpop.eup %9371  ;;  %v12367_v62 = vadd.f32 0.5, %v5972_v51  ;;  %v3223_v46 = vadd.f32 %v3191_v2, %v2961_v26  ;;  %v3650_v17 = vmul.f32 0.5, %v9370_v42  ;;  %v638_v10 = vmul.f32 %v14790_v52, %v12361_v11  ;;  %v14978_v51 = vld [vmem:[#allocation18_spill] sm:$0xff]  ;;  %v14979_v2 = vld [vmem:[#allocation49_spill] sm:$0xff] }
 0x4a7   : > { %v9374_v3 = vpop.eup %9373  ;;  %v3912_v44 = vmul.f32 0.5, %v9372_v20  ;;  %9383 = vtanh.f32 %v5420_v5  ;;  %v5649_v12 = vadd.f32 %v14786_v47, %v5615_v6  ;;  %v900_v19 = vmul.f32 %v14976_v0, %v12361_v11 }
 0x4a8   : > { %14975 = vst [vmem:[#allocation91_spill] sm:$0xff] %v12367_v62  ;;  %6052 = vadd.xlane.f32.xlu0 %v12367_v62  ;;  %v3485_v13 = vadd.f32 %v3453_v41, %v3223_v46  ;;  %v3682_v61 = vadd.f32 0.5, %v3650_v17  ;;  %v4174_v15 = vmul.f32 0.5, %v9374_v3  ;;  %v672_v34 = vadd.f32 %v14977_v18, %v638_v10 }
 0x4a9   : > { %v3944_v14 = vadd.f32 0.5, %v3912_v44  ;;  %v5682_v8 = vmul.f32 0.5, %v5649_v12  ;;  %v934_v60 = vadd.f32 %v14954_v23, %v900_v19  ;;  %v1162_v26 = vmul.f32 %v14978_v51, %v12361_v11 }
 0x4aa   : > { %v3715_v42 = vmul.f32 %v14979_v2, %v3682_v61  ;;  %v4206_v5 = vadd.f32 0.5, %v4174_v15  ;;  %v705_v6 = vmul.f32 0.5, %v672_v34  ;;  %v1424_v20 = vmul.f32 %v14957_v7, %v12361_v11  ;;  %v14980_v15 = vld [vmem:[#allocation22_spill] sm:$0xff] }
 0x4ab   : > { %v9376_v62 = vpop.eup %9375  ;;  %v3977_v41 = vmul.f32 %v14955_v39, %v3944_v14  ;;  %9385 = vtanh.f32 %v5682_v8  ;;  %v967_v46 = vmul.f32 0.5, %v934_v60  ;;  %v1196_v17 = vadd.f32 %v14956_v29, %v1162_v26  ;;  %v14981_v60 = vld [vmem:[#allocation24_spill] sm:$0xff] }
 0x4ac   : > { %v3747_v10 = vadd.f32 %v3715_v42, %v3485_v13  ;;  %v4239_v3 = vmul.f32 %v14958_v21, %v4206_v5  ;;  %v4436_v44 = vmul.f32 0.5, %v9376_v62  ;;  %9387 = vtanh.f32 %v705_v6  ;;  %v14982_v5 = vld [vmem:[#allocation23_spill] sm:$0xff] }
 0x4ad   : > { %v9378_v12 = vpop.eup %9377  ;;  %9389 = vtanh.f32 %v967_v46  ;;  %v1229_v19 = vmul.f32 0.5, %v1196_v17  ;;  %v1458_v61 = vadd.f32 %v14959_v59, %v1424_v20  ;;  %v1686_v34 = vmul.f32 %v14980_v15, %v12361_v11  ;;  %v14983_v17 = vld [vmem:[#allocation58_spill] sm:$0xff] }
 0x4ae   : > { %v9380_v7 = vpop.eup %9379  ;;  %v4009_v23 = vadd.f32 %v3977_v41, %v3747_v10  ;;  %v4468_v14 = vadd.f32 0.5, %v4436_v44  ;;  %v4698_v8 = vmul.f32 0.5, %v9378_v12  ;;  %v1948_v26 = vmul.f32 %v14981_v60, %v12361_v11  ;;  %v14984_v12 = vld [vmem:[#allocation61_spill] sm:$0xff] }
 0x4af   : > { %v9382_v13 = vpop.eup %9381  ;;  %v4960_v42 = vmul.f32 0.5, %v9380_v7  ;;  %9391 = vtanh.f32 %v1229_v19  ;;  %v1491_v62 = vmul.f32 0.5, %v1458_v61  ;;  %v1720_v6 = vadd.f32 %v14982_v5, %v1686_v34 }
 0x4b0   : > { %v4271_v46 = vadd.f32 %v4239_v3, %v4009_v23  ;;  %v4501_v21 = vmul.f32 %v14983_v17, %v4468_v14  ;;  %v4730_v20 = vadd.f32 0.5, %v4698_v8  ;;  %v5222_v59 = vmul.f32 0.5, %v9382_v13  ;;  %v14985_v23 = vld [vmem:[#allocation26_spill] sm:$0xff]  ;;  %v14986_v13 = vld [vmem:[#allocation28_spill] sm:$0xff] }
 0x4b1   : > { %v9384_v29 = vpop.eup %9383  ;;  %v4992_v15 = vadd.f32 0.5, %v4960_v42  ;;  %9393 = vtanh.f32 %v1491_v62  ;;  %v1753_v41 = vmul.f32 0.5, %v1720_v6  ;;  %v1982_v10 = vadd.f32 %v14961_v53, %v1948_v26 }
 0x4b2   : > { %v4533_v44 = vadd.f32 %v4501_v21, %v4271_v46  ;;  %v4763_v60 = vmul.f32 %v14984_v12, %v4730_v20  ;;  %v5254_v39 = vadd.f32 0.5, %v5222_v59  ;;  %v5484_v7 = vmul.f32 0.5, %v9384_v29 }
 0x4b3   : > { %v5025_v19 = vmul.f32 %v14962_v48, %v4992_v15  ;;  %9395 = vtanh.f32 %v1753_v41  ;;  %v2015_v61 = vmul.f32 0.5, %v1982_v10  ;;  %v2210_v3 = vmul.f32 %v14985_v23, %v12361_v11  ;;  %v14987_v10 = vld [vmem:[#allocation31_spill] sm:$0xff] }
 0x4b4   : > { %v4795_v34 = vadd.f32 %v4763_v60, %v4533_v44  ;;  %v5287_v14 = vmul.f32 %v14963_v27, %v5254_v39  ;;  %v5516_v8 = vadd.f32 0.5, %v5484_v7  ;;  %v2472_v42 = vmul.f32 %v14986_v13, %v12361_v11 }
 0x4b5   : > { %v9386_v26 = vpop.eup %9385  ;;  %9397 = vtanh.f32 %v2015_v61  ;;  %v2244_v21 = vadd.f32 %v14943_v22, %v2210_v3  ;;  %v2734_v29 = vmul.f32 %v14964_v43, %v12361_v11  ;;  %v2996_v59 = vmul.f32 %v14920_v16, %v12361_v11 }
 0x4b6   : > { %v9388_v15 = vpop.eup %9387  ;;  %v5057_v62 = vadd.f32 %v5025_v19, %v4795_v34  ;;  %v5549_v60 = vmul.f32 %v14919_v35, %v5516_v8  ;;  %v5746_v6 = vmul.f32 0.5, %v9386_v26  ;;  %v2506_v39 = vadd.f32 %v14898_v54, %v2472_v42 }
 0x4b7   : > { %v9390_v46 = vpop.eup %9389  ;;  %v769_v20 = vmul.f32 0.5, %v9388_v15  ;;  %v2277_v41 = vmul.f32 0.5, %v2244_v21  ;;  %v2768_v44 = vadd.f32 %v14987_v10, %v2734_v29  ;;  %v3030_v7 = vadd.f32 %v14966_v37, %v2996_v59  ;;  %v14988_v29 = vld [vmem:[#allocation34_spill] sm:$0xff] }
 0x4b8   : > { %v5319_v61 = vadd.f32 %v5287_v14, %v5057_v62  ;;  %v5778_v3 = vadd.f32 0.5, %v5746_v6  ;;  %v1031_v43 = vmul.f32 0.5, %v9390_v46  ;;  %v2539_v27 = vmul.f32 0.5, %v2506_v39 }
 0x4b9   : > { %v9392_v13 = vpop.eup %9391  ;;  %v801_v16 = vadd.f32 0.5, %v769_v20  ;;  %9399 = vtanh.f32 %v2277_v41  ;;  %v2801_v19 = vmul.f32 0.5, %v2768_v44  ;;  %v3063_v34 = vmul.f32 0.5, %v3030_v7  ;;  %v14990_v20 = vld [vmem:[#allocation74_spill] sm:$0xff]  ;;  %v14991_v7 = vld [vmem:[#allocation39_spill] sm:$0xff] }
 0x4ba   : > { %v5581_v8 = vadd.f32 %v5549_v60, %v5319_v61  ;;  %v5811_v26 = vmul.f32 %v14874_v40, %v5778_v3  ;;  %v1063_v42 = vadd.f32 0.5, %v1031_v43  ;;  %v1293_v35 = vmul.f32 0.5, %v9392_v13 }
 0x4bb   : > { %v9394_v15 = vpop.eup %9393  ;;  %v834_v21 = vmul.f32 %v14850_v32, %v801_v16  ;;  %9401 = vtanh.f32 %v2539_v27  ;;  %v3258_v14 = vmul.f32 %v14988_v29, %v12361_v11  ;;  %v3520_v59 = vmul.f32 %v14967_v49, %v12361_v11  ;;  %v14989_v16 = vld [vmem:[#allocation50_spill] sm:$0xff] }
 0x4bc   : > { %v5843_v62 = vadd.f32 %v5811_v26, %v5581_v8  ;;  %v1096_v6 = vmul.f32 %v14802_v57, %v1063_v42  ;;  %v1325_v39 = vadd.f32 0.5, %v1293_v35  ;;  %v1555_v46 = vmul.f32 0.5, %v9394_v15 }
 0x4bd   : > { %v9396_v60 = vpop.eup %9395  ;;  %9403 = vtanh.f32 %v2801_v19  ;;  %v3292_v43 = vadd.f32 %v14800_v1, %v3258_v14  ;;  %v3554_v13 = vadd.f32 %v14778_v38, %v3520_v59  ;;  %v3782_v27 = vmul.f32 %v14989_v16, %v12361_v11  ;;  %v14992_v38 = vld [vmem:[#allocation51_spill] sm:$0xff] }
 0x4be   : > { %v5877_v41 = vadd.f32 %v14990_v20, %v5843_v62  ;;  %v1128_v44 = vadd.f32 %v1096_v6, %v834_v21  ;;  %v1358_v61 = vmul.f32 %v14991_v7, %v1325_v39  ;;  %v1587_v3 = vadd.f32 0.5, %v1555_v46  ;;  %v14993_v62 = vld [vmem:[#allocation53_spill] sm:$0xff] }
 0x4bf   : > { %v9398_v8 = vpop.eup %9397  ;;  %v1817_v26 = vmul.f32 0.5, %v9396_v60  ;;  %9405 = vtanh.f32 %v3063_v34  ;;  %v3325_v35 = vmul.f32 0.5, %v3292_v43  ;;  %v3587_v42 = vmul.f32 0.5, %v3554_v13 }
 0x4c0   : > { %v5909_v15 = vmul.f32 0.5, %v5877_v41  ;;  %v1390_v19 = vadd.f32 %v1358_v61, %v1128_v44  ;;  %v1620_v14 = vmul.f32 %v14968_v9, %v1587_v3  ;;  %v2079_v1 = vmul.f32 0.5, %v9398_v8 }
 0x4c1   : > { %v1849_v59 = vadd.f32 0.5, %v1817_v26  ;;  %9407 = vtanh.f32 %v3325_v35  ;;  %v3816_v57 = vadd.f32 %v14992_v38, %v3782_v27  ;;  %v4044_v21 = vmul.f32 %v14993_v62, %v12361_v11 }
 0x4c2   : > { %9409 = vtanh.f32 %v5909_v15  ;;  %v1652_v6 = vadd.f32 %v1620_v14, %v1390_v19  ;;  %v2111_v39 = vadd.f32 0.5, %v2079_v1  ;;  %v4306_v34 = vmul.f32 %v14971_v4, %v12361_v11  ;;  %v14994_v15 = vld [vmem:[#allocation60_spill] sm:$0xff] }
 0x4c3   : > { %v9400_v46 = vpop.eup %9399  ;;  %v1882_v60 = vmul.f32 %v14970_v55, %v1849_v59  ;;  %9411 = vtanh.f32 %v3587_v42  ;;  %v3849_v43 = vmul.f32 0.5, %v3816_v57  ;;  %v4078_v13 = vadd.f32 %v14969_v58, %v4044_v21 }
 0x4c4   : > { %v2144_v41 = vmul.f32 %v14949_v25, %v2111_v39  ;;  %v2341_v44 = vmul.f32 0.5, %v9400_v46  ;;  %v4340_v27 = vadd.f32 %v14972_v31, %v4306_v34  ;;  %v4568_v61 = vmul.f32 %v14973_v63, %v12361_v11  ;;  %v14995_v39 = vld [vmem:[#allocation65_spill] sm:$0xff]  ;;  %v14996_v46 = vld [vmem:[#allocation43_spill] sm:$0xff] }
 0x4c5   : > { %v9402_v3 = vpop.eup %9401  ;;  %v1914_v1 = vadd.f32 %v1882_v60, %v1652_v6  ;;  %9413 = vtanh.f32 %v3849_v43  ;;  %v4111_v8 = vmul.f32 0.5, %v4078_v13  ;;  %v4830_v26 = vmul.f32 %v14974_v36, %v12361_v11 }
 0x4c6   : > { %v2373_v35 = vadd.f32 0.5, %v2341_v44  ;;  %v2603_v42 = vmul.f32 0.5, %v9402_v3  ;;  %v4373_v57 = vmul.f32 0.5, %v4340_v27  ;;  %v4602_v19 = vadd.f32 %v14994_v15, %v4568_v61  ;;  %v14997_v61 = vld [vmem:[#allocation68_spill] sm:$0xff] }
 0x4c7   : > { %v9404_v14 = vpop.eup %9403  ;;  %v2176_v59 = vadd.f32 %v2144_v41, %v1914_v1  ;;  %9415 = vtanh.f32 %v4111_v8  ;;  %v4864_v21 = vadd.f32 %v14882_v45, %v4830_v26  ;;  %v5092_v34 = vmul.f32 %v14995_v39, %v12361_v11  ;;  %v14998_v1 = vld [vmem:[#allocation44_spill] sm:$0xff] }
 0x4c8   : > { %v2406_v6 = vmul.f32 %v14996_v46, %v2373_v35  ;;  %v2635_v60 = vadd.f32 0.5, %v2603_v42  ;;  %v2865_v43 = vmul.f32 0.5, %v9404_v14  ;;  %9417 = vtanh.f32 %v4373_v57 }
 0x4c9   : > { %v9406_v13 = vpop.eup %9405  ;;  %v4635_v36 = vmul.f32 0.5, %v4602_v19  ;;  %v4897_v44 = vmul.f32 0.5, %v4864_v21  ;;  %v5126_v27 = vadd.f32 %v14859_v50, %v5092_v34  ;;  %v5354_v41 = vmul.f32 %v14997_v61, %v12361_v11  ;;  %v12450_v61 = vld [vmem:[%s10393_s0 + $0x98] sm:$0xff] }
 0x4ca   : > { %v2438_v3 = vadd.f32 %v2406_v6, %v2176_v59  ;;  %v2668_v8 = vmul.f32 %v14998_v1, %v2635_v60  ;;  %v2897_v26 = vadd.f32 0.5, %v2865_v43  ;;  %v3127_v45 = vmul.f32 0.5, %v9406_v13 }
 0x4cb   : > { %v9408_v39 = vpop.eup %9407  ;;  %9419 = vtanh.f32 %v4635_v36  ;;  %v5159_v35 = vmul.f32 0.5, %v5126_v27  ;;  %v5388_v42 = vadd.f32 %v14837_v56, %v5354_v41  ;;  %v5616_v57 = vmul.f32 %v14838_v30, %v12361_v11 }
 0x4cc   : > { %v9410_v19 = vpop.eup %9409  ;;  %v2700_v14 = vadd.f32 %v2668_v8, %v2438_v3  ;;  %v2930_v21 = vmul.f32 %v14860_v24, %v2897_v26  ;;  %v3159_v34 = vadd.f32 0.5, %v3127_v45  ;;  %v3389_v50 = vmul.f32 0.5, %v9408_v39 }
 0x4cd   : > { %v9412_v59 = vpop.eup %9411  ;;  %v5973_v6 = vmul.f32 0.5, %v9410_v19  ;;  %9421 = vtanh.f32 %v4897_v44  ;;  %v5421_v60 = vmul.f32 0.5, %v5388_v42  ;;  %v5650_v36 = vadd.f32 %v14786_v47, %v5616_v57 }
 0x4ce   : > { %v2962_v43 = vadd.f32 %v2930_v21, %v2700_v14  ;;  %v3192_v13 = vmul.f32 %v14813_v28, %v3159_v34  ;;  %v3421_v27 = vadd.f32 0.5, %v3389_v50  ;;  %v3651_v41 = vmul.f32 0.5, %v9412_v59 }
 0x4cf   : > { %v9414_v11 = vpop.eup %9413  ;;  %v12454_v56 = vadd.f32 0.5, %v5973_v6  ;;  %9423 = vtanh.f32 %v5159_v35  ;;  %v5683_v3 = vmul.f32 0.5, %v5650_v36  ;;  %v639_v45 = vmul.f32 %v14790_v52, %v12450_v61 }
 0x4d0   : > { %v3224_v39 = vadd.f32 %v3192_v13, %v2962_v43  ;;  %v3454_v8 = vmul.f32 %v14788_v33, %v3421_v27  ;;  %v3683_v44 = vadd.f32 0.5, %v3651_v41  ;;  %v3913_v26 = vmul.f32 0.5, %v9414_v11  ;;  %v15000_v43 = vld [vmem:[#allocation17_spill] sm:$0xff]  ;;  %v15001_v27 = vld [vmem:[#allocation52_spill] sm:$0xff] }
 0x4d1   : > { %14999 = vst [vmem:[#allocation39_spill] sm:$0xff] %v12454_v56  ;;  %v9416_v42 = vpop.eup %9415  ;;  %6054 = vadd.xlane.f32.xlu1 %v12454_v56  ;;  %9425 = vtanh.f32 %v5421_v60  ;;  %v673_v50 = vadd.f32 %v14977_v18, %v639_v45  ;;  %v901_v57 = vmul.f32 %v14976_v0, %v12450_v61  ;;  %v1163_v35 = vmul.f32 %v14978_v51, %v12450_v61  ;;  %v15002_v45 = vld [vmem:[#allocation19_spill] sm:$0xff] }
 0x4d2   : > { %v9418_v19 = vpop.eup %9417  ;;  %v3486_v14 = vadd.f32 %v3454_v8, %v3224_v39  ;;  %v3716_v21 = vmul.f32 %v14979_v2, %v3683_v44  ;;  %v3945_v34 = vadd.f32 0.5, %v3913_v26  ;;  %v4175_v59 = vmul.f32 0.5, %v9416_v42  ;;  %v15003_v39 = vld [vmem:[#allocation20_spill] sm:$0xff]  ;;  %v15004_v26 = vld [vmem:[#allocation55_spill] sm:$0xff] }
 0x4d3   : > { %v4437_v6 = vmul.f32 0.5, %v9418_v19  ;;  %9427 = vtanh.f32 %v5683_v3  ;;  %v706_v36 = vmul.f32 0.5, %v673_v50  ;;  %v935_v13 = vadd.f32 %v15000_v43, %v901_v57 }
 0x4d4   : > { %v3748_v60 = vadd.f32 %v3716_v21, %v3486_v14  ;;  %v3978_v41 = vmul.f32 %v15001_v27, %v3945_v34  ;;  %v4207_v11 = vadd.f32 0.5, %v4175_v59  ;;  %v1197_v56 = vadd.f32 %v15002_v45, %v1163_v35  ;;  %v15005_v14 = vld [vmem:[#allocation21_spill] sm:$0xff]  ;;  %v15006_v35 = vld [vmem:[#allocation22_spill] sm:$0xff] }
 0x4d5   : > { %v9420_v0 = vpop.eup %9419  ;;  %v4469_v33 = vadd.f32 0.5, %v4437_v6  ;;  %9429 = vtanh.f32 %v706_v36  ;;  %v968_v51 = vmul.f32 0.5, %v935_v13  ;;  %v1425_v8 = vmul.f32 %v15003_v39, %v12450_v61 }
 0x4d6   : > { %v4010_v44 = vadd.f32 %v3978_v41, %v3748_v60  ;;  %v4240_v42 = vmul.f32 %v15004_v26, %v4207_v11  ;;  %v4699_v3 = vmul.f32 0.5, %v9420_v0  ;;  %v1230_v50 = vmul.f32 0.5, %v1197_v56  ;;  %v15007_v0 = vld [vmem:[#allocation24_spill] sm:$0xff] }
 0x4d7   : > { %v9422_v19 = vpop.eup %9421  ;;  %v4502_v57 = vmul.f32 %v14983_v17, %v4469_v33  ;;  %9431 = vtanh.f32 %v968_v51  ;;  %v1459_v21 = vadd.f32 %v15005_v14, %v1425_v8  ;;  %v1687_v34 = vmul.f32 %v15006_v35, %v12450_v61 }
 0x4d8   : > { %v4272_v59 = vadd.f32 %v4240_v42, %v4010_v44  ;;  %v4731_v6 = vadd.f32 0.5, %v4699_v3  ;;  %v4961_v36 = vmul.f32 0.5, %v9422_v19  ;;  %9433 = vtanh.f32 %v1230_v50 }
 0x4d9   : > { %v9424_v13 = vpop.eup %9423  ;;  %v1492_v45 = vmul.f32 0.5, %v1459_v21  ;;  %v1721_v60 = vadd.f32 %v14982_v5, %v1687_v34  ;;  %v1949_v56 = vmul.f32 %v15007_v0, %v12450_v61  ;;  %v2211_v33 = vmul.f32 %v14985_v23, %v12450_v61 }
 0x4da   : > { %v4534_v51 = vadd.f32 %v4502_v57, %v4272_v59  ;;  %v4764_v41 = vmul.f32 %v14984_v12, %v4731_v6  ;;  %v4993_v11 = vadd.f32 0.5, %v4961_v36  ;;  %v5223_v8 = vmul.f32 0.5, %v9424_v13  ;;  %v15008_v59 = vld [vmem:[#allocation28_spill] sm:$0xff]  ;;  %v15009_v13 = vld [vmem:[#allocation67_spill] sm:$0xff] }
 0x4db   : > { %v9426_v17 = vpop.eup %9425  ;;  %9435 = vtanh.f32 %v1492_v45  ;;  %v1754_v44 = vmul.f32 0.5, %v1721_v60  ;;  %v1983_v42 = vadd.f32 %v14961_v53, %v1949_v56  ;;  %v2245_v3 = vadd.f32 %v14943_v22, %v2211_v33 }
 0x4dc   : > { %v4796_v50 = vadd.f32 %v4764_v41, %v4534_v51  ;;  %v5026_v19 = vmul.f32 %v14962_v48, %v4993_v11  ;;  %v5255_v21 = vadd.f32 0.5, %v5223_v8  ;;  %v5485_v34 = vmul.f32 0.5, %v9426_v17  ;;  %v15010_v51 = vld [vmem:[#allocation30_spill] sm:$0xff]  ;;  %v15011_v17 = vld [vmem:[#allocation32_spill] sm:$0xff] }
 0x4dd   : > { %v9428_v0 = vpop.eup %9427  ;;  %9437 = vtanh.f32 %v1754_v44  ;;  %v2016_v23 = vmul.f32 0.5, %v1983_v42  ;;  %v2278_v57 = vmul.f32 0.5, %v2245_v3  ;;  %v2473_v6 = vmul.f32 %v15008_v59, %v12450_v61  ;;  %v15012_v44 = vld [vmem:[#allocation70_spill] sm:$0xff] }
 0x4de   : > { %v5058_v36 = vadd.f32 %v5026_v19, %v4796_v50  ;;  %v5288_v45 = vmul.f32 %v15009_v13, %v5255_v21  ;;  %v5517_v60 = vadd.f32 0.5, %v5485_v34  ;;  %v5747_v12 = vmul.f32 0.5, %v9428_v0 }
 0x4df   : > { %v9430_v56 = vpop.eup %9429  ;;  %9439 = vtanh.f32 %v2016_v23  ;;  %v2507_v33 = vadd.f32 %v14898_v54, %v2473_v6  ;;  %v2735_v41 = vmul.f32 %v15010_v51, %v12450_v61  ;;  %v2997_v11 = vmul.f32 %v15011_v17, %v12450_v61 }
 0x4e0   : > { %v5320_v8 = vadd.f32 %v5288_v45, %v5058_v36  ;;  %v5550_v42 = vmul.f32 %v15012_v44, %v5517_v60  ;;  %v5779_v3 = vadd.f32 0.5, %v5747_v12  ;;  %v770_v59 = vmul.f32 0.5, %v9430_v56 }
 0x4e1   : > { %v9432_v50 = vpop.eup %9431  ;;  %9441 = vtanh.f32 %v2278_v57  ;;  %v2540_v19 = vmul.f32 0.5, %v2507_v33  ;;  %v2769_v0 = vadd.f32 %v14987_v10, %v2735_v41  ;;  %v3031_v23 = vadd.f32 %v14966_v37, %v2997_v11 }
 0x4e2   : > { %v9434_v21 = vpop.eup %9433  ;;  %v5582_v34 = vadd.f32 %v5550_v42, %v5320_v8  ;;  %v5812_v6 = vmul.f32 %v14874_v40, %v5779_v3  ;;  %v802_v54 = vadd.f32 0.5, %v770_v59  ;;  %v1032_v51 = vmul.f32 0.5, %v9432_v50  ;;  %v15013_v42 = vld [vmem:[#allocation38_spill] sm:$0xff] }
 0x4e3   : > { %v1294_v13 = vmul.f32 0.5, %v9434_v21  ;;  %9443 = vtanh.f32 %v2540_v19  ;;  %v2802_v36 = vmul.f32 0.5, %v2769_v0  ;;  %v3064_v45 = vmul.f32 0.5, %v3031_v23  ;;  %v15014_v19 = vld [vmem:[#allocation35_spill] sm:$0xff]  ;;  %v15015_v23 = vld [vmem:[#allocation48_spill] sm:$0xff] }
 0x4e4   : > { %v5844_v60 = vadd.f32 %v5812_v6, %v5582_v34  ;;  %v835_v12 = vmul.f32 %v14850_v32, %v802_v54  ;;  %v1064_v56 = vadd.f32 0.5, %v1032_v51  ;;  %v3259_v57 = vmul.f32 %v14988_v29, %v12450_v61 }
 0x4e5   : > { %v9436_v33 = vpop.eup %9435  ;;  %v1326_v41 = vadd.f32 0.5, %v1294_v13  ;;  %9445 = vtanh.f32 %v2802_v36  ;;  %v3521_v11 = vmul.f32 %v14967_v49, %v12450_v61  ;;  %v3783_v59 = vmul.f32 %v14989_v16, %v12450_v61 }
 0x4e6   : > { %v5878_v8 = vadd.f32 %v14990_v20, %v5844_v60  ;;  %v1097_v3 = vmul.f32 %v15013_v42, %v1064_v56  ;;  %v1556_v50 = vmul.f32 0.5, %v9436_v33  ;;  %9447 = vtanh.f32 %v3064_v45 }
 0x4e7   : > { %v9438_v54 = vpop.eup %9437  ;;  %v1359_v51 = vmul.f32 %v14991_v7, %v1326_v41  ;;  %v3293_v0 = vadd.f32 %v15014_v19, %v3259_v57  ;;  %v3555_v13 = vadd.f32 %v15015_v23, %v3521_v11  ;;  %v3817_v21 = vadd.f32 %v14992_v38, %v3783_v59 }
 0x4e8   : > { %v5910_v34 = vmul.f32 0.5, %v5878_v8  ;;  %v1129_v6 = vadd.f32 %v1097_v3, %v835_v12  ;;  %v1588_v36 = vadd.f32 0.5, %v1556_v50  ;;  %v1818_v37 = vmul.f32 0.5, %v9438_v54 }
 0x4e9   : > { %v9440_v16 = vpop.eup %9439  ;;  %v3326_v32 = vmul.f32 0.5, %v3293_v0  ;;  %v3588_v60 = vmul.f32 0.5, %v3555_v13  ;;  %v3850_v20 = vmul.f32 0.5, %v3817_v21  ;;  %v4045_v45 = vmul.f32 %v14993_v62, %v12450_v61 }
 0x4ea   : > { %9449 = vtanh.f32 %v5910_v34  ;;  %v1391_v56 = vadd.f32 %v1359_v51, %v1129_v6  ;;  %v1621_v33 = vmul.f32 %v14968_v9, %v1588_v36  ;;  %v1850_v57 = vadd.f32 0.5, %v1818_v37 }
 0x4eb   : > { %v9442_v41 = vpop.eup %9441  ;;  %v2080_v11 = vmul.f32 0.5, %v9440_v16  ;;  %9451 = vtanh.f32 %v3326_v32  ;;  %v4079_v59 = vadd.f32 %v14969_v58, %v4045_v45  ;;  %v4307_v12 = vmul.f32 %v14971_v4, %v12450_v61  ;;  %v15016_v45 = vld [vmem:[#allocation62_spill] sm:$0xff] }
 0x4ec   : > { %v1653_v8 = vadd.f32 %v1621_v33, %v1391_v56  ;;  %v1883_v3 = vmul.f32 %v14970_v55, %v1850_v57  ;;  %v2342_v50 = vmul.f32 0.5, %v9442_v41  ;;  %9453 = vtanh.f32 %v3588_v60 }
 0x4ed   : > { %v9444_v54 = vpop.eup %9443  ;;  %v2112_v0 = vadd.f32 0.5, %v2080_v11  ;;  %9455 = vtanh.f32 %v3850_v20  ;;  %v4112_v51 = vmul.f32 0.5, %v4079_v59  ;;  %v4341_v13 = vadd.f32 %v14972_v31, %v4307_v12  ;;  %v15017_v12 = vld [vmem:[#allocation63_spill] sm:$0xff] }
 0x4ee   : > { %v1915_v37 = vadd.f32 %v1883_v3, %v1653_v8  ;;  %v2374_v21 = vadd.f32 0.5, %v2342_v50  ;;  %v2604_v16 = vmul.f32 0.5, %v9444_v54  ;;  %v4569_v32 = vmul.f32 %v14973_v63, %v12450_v61 }
 0x4ef   : > { %v9446_v34 = vpop.eup %9445  ;;  %v2145_v6 = vmul.f32 %v14949_v25, %v2112_v0  ;;  %9457 = vtanh.f32 %v4112_v51  ;;  %v4374_v36 = vmul.f32 0.5, %v4341_v13  ;;  %v4831_v60 = vmul.f32 %v15016_v45, %v12450_v61  ;;  %v15018_v0 = vld [vmem:[#allocation65_spill] sm:$0xff] }
 0x4f0   : > { %v9448_v56 = vpop.eup %9447  ;;  %v2407_v20 = vmul.f32 %v14996_v46, %v2374_v21  ;;  %v2636_v33 = vadd.f32 0.5, %v2604_v16  ;;  %v2866_v57 = vmul.f32 0.5, %v9446_v34  ;;  %v4603_v41 = vadd.f32 %v14994_v15, %v4569_v32  ;;  %v15019_v16 = vld [vmem:[#allocation68_spill] sm:$0xff] }
 0x4f1   : > { %v2177_v11 = vadd.f32 %v2145_v6, %v1915_v37  ;;  %v3128_v59 = vmul.f32 0.5, %v9448_v56  ;;  %9459 = vtanh.f32 %v4374_v36  ;;  %v4865_v8 = vadd.f32 %v15017_v12, %v4831_v60  ;;  %v15020_v6 = vld [vmem:[#allocation66_spill] sm:$0xff] }
 0x4f2   : > { %v2669_v3 = vmul.f32 %v14998_v1, %v2636_v33  ;;  %v2898_v50 = vadd.f32 0.5, %v2866_v57  ;;  %v4636_v54 = vmul.f32 0.5, %v4603_v41  ;;  %v5093_v51 = vmul.f32 %v15018_v0, %v12450_v61  ;;  %v12536_v56 = vld [vmem:[%s10393_s0 + $0xa0] sm:$0xff]  ;;  %v15021_v1 = vld [vmem:[#allocation69_spill] sm:$0xff] }
 0x4f3   : > { %v2439_v13 = vadd.f32 %v2407_v20, %v2177_v11  ;;  %v3160_v45 = vadd.f32 0.5, %v3128_v59  ;;  %v4898_v21 = vmul.f32 0.5, %v4865_v8  ;;  %v5355_v34 = vmul.f32 %v15019_v16, %v12450_v61 }
 0x4f4   : > { %v9450_v32 = vpop.eup %9449  ;;  %v2931_v37 = vmul.f32 %v14860_v24, %v2898_v50  ;;  %9461 = vtanh.f32 %v4636_v54  ;;  %v5127_v36 = vadd.f32 %v15020_v6, %v5093_v51  ;;  %v5617_v60 = vmul.f32 %v14838_v30, %v12450_v61 }
 0x4f5   : > { %v9452_v33 = vpop.eup %9451  ;;  %v5974_v57 = vmul.f32 0.5, %v9450_v32  ;;  %v2701_v41 = vadd.f32 %v2669_v3, %v2439_v13  ;;  %v3193_v20 = vmul.f32 %v14813_v28, %v3160_v45  ;;  %9463 = vtanh.f32 %v4898_v21 }
 0x4f6   : > { %v9454_v11 = vpop.eup %9453  ;;  %v3390_v59 = vmul.f32 0.5, %v9452_v33  ;;  %v5160_v8 = vmul.f32 0.5, %v5127_v36  ;;  %v5389_v16 = vadd.f32 %v15021_v1, %v5355_v34  ;;  %v5651_v50 = vadd.f32 %v14786_v47, %v5617_v60  ;;  %v15023_v33 = vld [vmem:[#allocation47_spill] sm:$0xff] }
 0x4f7   : > { %v9456_v54 = vpop.eup %9455  ;;  %v12541_v51 = vadd.f32 0.5, %v5974_v57  ;;  %v2963_v6 = vadd.f32 %v2931_v37, %v2701_v41  ;;  %v3652_v61 = vmul.f32 0.5, %v9454_v11  ;;  %v640_v30 = vmul.f32 %v14790_v52, %v12536_v56 }
 0x4f8   : > { %v3422_v32 = vadd.f32 0.5, %v3390_v59  ;;  %v3914_v3 = vmul.f32 0.5, %v9456_v54  ;;  %9465 = vtanh.f32 %v5160_v8  ;;  %v5422_v45 = vmul.f32 0.5, %v5389_v16  ;;  %v15024_v16 = vld [vmem:[#allocation15_spill] sm:$0xff] }
 0x4f9   : > { %15022 = vst [vmem:[#allocation92_spill] sm:$0xff] %v12541_v51  ;;  %v9458_v13 = vpop.eup %9457  ;;  %6056 = vadd.xlane.f32.xlu0 %v12541_v51  ;;  %v3225_v21 = vadd.f32 %v3193_v20, %v2963_v6  ;;  %v3684_v36 = vadd.f32 0.5, %v3652_v61  ;;  %v5684_v34 = vmul.f32 0.5, %v5651_v50  ;;  %v674_v60 = vadd.f32 %v14977_v18, %v640_v30  ;;  %v15025_v61 = vld [vmem:[#allocation18_spill] sm:$0xff] }
 0x4fa   : > { %v3455_v57 = vmul.f32 %v15023_v33, %v3422_v32  ;;  %v3946_v47 = vadd.f32 0.5, %v3914_v3  ;;  %v4176_v37 = vmul.f32 0.5, %v9458_v13  ;;  %9467 = vtanh.f32 %v5422_v45  ;;  %v15027_v51 = vld [vmem:[#allocation58_spill] sm:$0xff] }
 0x4fb   : > { %v9460_v41 = vpop.eup %9459  ;;  %v3717_v11 = vmul.f32 %v14979_v2, %v3684_v36  ;;  %9469 = vtanh.f32 %v5684_v34  ;;  %v707_v59 = vmul.f32 0.5, %v674_v60  ;;  %v902_v8 = vmul.f32 %v15024_v16, %v12536_v56 }
 0x4fc   : > { %v3487_v54 = vadd.f32 %v3455_v57, %v3225_v21  ;;  %v3979_v6 = vmul.f32 %v15001_v27, %v3946_v47  ;;  %v4208_v20 = vadd.f32 0.5, %v4176_v37  ;;  %v4438_v50 = vmul.f32 0.5, %v9460_v41  ;;  %v15026_v37 = vld [vmem:[#allocation19_spill] sm:$0xff] }
 0x4fd   : > { %9471 = vtanh.f32 %v707_v59  ;;  %v936_v30 = vadd.f32 %v15000_v43, %v902_v8  ;;  %v1164_v32 = vmul.f32 %v15025_v61, %v12536_v56  ;;  %v1426_v3 = vmul.f32 %v15003_v39, %v12536_v56 }
 0x4fe   : > { %v9462_v45 = vpop.eup %9461  ;;  %v3749_v13 = vadd.f32 %v3717_v11, %v3487_v54  ;;  %v4241_v36 = vmul.f32 %v15004_v26, %v4208_v20  ;;  %v4470_v34 = vadd.f32 0.5, %v4438_v50  ;;  %v1688_v21 = vmul.f32 %v15006_v35, %v12536_v56 }
 0x4ff   : > { %v9464_v47 = vpop.eup %9463  ;;  %v4700_v60 = vmul.f32 0.5, %v9462_v45  ;;  %v969_v57 = vmul.f32 0.5, %v936_v30  ;;  %v1198_v41 = vadd.f32 %v15026_v37, %v1164_v32  ;;  %v1460_v59 = vadd.f32 %v15005_v14, %v1426_v3  ;;  %v15028_v30 = vld [vmem:[#allocation24_spill] sm:$0xff]  ;;  %v15029_v32 = vld [vmem:[#allocation61_spill] sm:$0xff] }
 0x500   : > { %v4011_v8 = vadd.f32 %v3979_v6, %v3749_v13  ;;  %v4503_v43 = vmul.f32 %v15027_v51, %v4470_v34  ;;  %v4962_v27 = vmul.f32 0.5, %v9464_v47  ;;  %v1722_v39 = vadd.f32 %v14982_v5, %v1688_v21  ;;  %v15030_v6 = vld [vmem:[#allocation26_spill] sm:$0xff] }
 0x501   : > { %v4732_v11 = vadd.f32 0.5, %v4700_v60  ;;  %9473 = vtanh.f32 %v969_v57  ;;  %v1231_v54 = vmul.f32 0.5, %v1198_v41  ;;  %v1493_v20 = vmul.f32 0.5, %v1460_v59 }
 0x502   : > { %v9466_v50 = vpop.eup %9465  ;;  %v4273_v26 = vadd.f32 %v4241_v36, %v4011_v8  ;;  %v4994_v35 = vadd.f32 0.5, %v4962_v27  ;;  %v1755_v61 = vmul.f32 0.5, %v1722_v39  ;;  %v1950_v45 = vmul.f32 %v15028_v30, %v12536_v56 }
 0x503   : > { %v4765_v37 = vmul.f32 %v15029_v32, %v4732_v11  ;;  %v5224_v3 = vmul.f32 0.5, %v9466_v50  ;;  %9475 = vtanh.f32 %v1231_v54  ;;  %v2212_v13 = vmul.f32 %v15030_v6, %v12536_v56  ;;  %v15031_v11 = vld [vmem:[#allocation28_spill] sm:$0xff]  ;;  %v15032_v6 = vld [vmem:[#allocation67_spill] sm:$0xff] }
 0x504   : > { %v9468_v34 = vpop.eup %9467  ;;  %v4535_v21 = vadd.f32 %v4503_v43, %v4273_v26  ;;  %v5027_v47 = vmul.f32 %v14962_v48, %v4994_v35  ;;  %9477 = vtanh.f32 %v1493_v20  ;;  %v1984_v60 = vadd.f32 %v14961_v53, %v1950_v45  ;;  %v15033_v20 = vld [vmem:[#allocation30_spill] sm:$0xff] }
 0x505   : > { %v9470_v36 = vpop.eup %9469  ;;  %v5256_v27 = vadd.f32 0.5, %v5224_v3  ;;  %v5486_v39 = vmul.f32 0.5, %v9468_v34  ;;  %9479 = vtanh.f32 %v1755_v61  ;;  %v2246_v57 = vadd.f32 %v14943_v22, %v2212_v13 }
 0x506   : > { %v4797_v41 = vadd.f32 %v4765_v37, %v4535_v21  ;;  %v5748_v59 = vmul.f32 0.5, %v9470_v36  ;;  %v2017_v8 = vmul.f32 0.5, %v1984_v60  ;;  %v2474_v54 = vmul.f32 %v15031_v11, %v12536_v56  ;;  %v15034_v37 = vld [vmem:[#allocation29_spill] sm:$0xff] }
 0x507   : > { %v9472_v50 = vpop.eup %9471  ;;  %v5289_v43 = vmul.f32 %v15032_v6, %v5256_v27  ;;  %v5518_v26 = vadd.f32 0.5, %v5486_v39  ;;  %v2279_v35 = vmul.f32 0.5, %v2246_v57  ;;  %v2736_v45 = vmul.f32 %v15033_v20, %v12536_v56 }
 0x508   : > { %v5059_v53 = vadd.f32 %v5027_v47, %v4797_v41  ;;  %v5780_v3 = vadd.f32 0.5, %v5748_v59  ;;  %v771_v34 = vmul.f32 0.5, %v9472_v50  ;;  %9481 = vtanh.f32 %v2017_v8 }
 0x509   : > { %v5551_v61 = vmul.f32 %v15012_v44, %v5518_v26  ;;  %9483 = vtanh.f32 %v2279_v35  ;;  %v2508_v13 = vadd.f32 %v15034_v37, %v2474_v54  ;;  %v2770_v21 = vadd.f32 %v14987_v10, %v2736_v45  ;;  %v15035_v54 = vld [vmem:[#allocation37_spill] sm:$0xff] }
 0x50a   : > { %v5321_v60 = vadd.f32 %v5289_v43, %v5059_v53  ;;  %v5813_v36 = vmul.f32 %v14874_v40, %v5780_v3  ;;  %v803_v27 = vadd.f32 0.5, %v771_v34  ;;  %v2998_v39 = vmul.f32 %v15011_v17, %v12536_v56  ;;  %v15036_v53 = vld [vmem:[#allocation33_spill] sm:$0xff]  ;;  %v15037_v34 = vld [vmem:[#allocation50_spill] sm:$0xff] }
 0x50b   : > { %v9474_v57 = vpop.eup %9473  ;;  %v2541_v6 = vmul.f32 0.5, %v2508_v13  ;;  %v2803_v47 = vmul.f32 0.5, %v2770_v21  ;;  %v3260_v41 = vmul.f32 %v14988_v29, %v12536_v56  ;;  %v3522_v59 = vmul.f32 %v14967_v49, %v12536_v56 }
 0x50c   : > { %v5583_v8 = vadd.f32 %v5551_v61, %v5321_v60  ;;  %v836_v50 = vmul.f32 %v15035_v54, %v803_v27  ;;  %v1033_v26 = vmul.f32 0.5, %v9474_v57  ;;  %v3032_v43 = vadd.f32 %v15036_v53, %v2998_v39  ;;  %v15038_v39 = vld [vmem:[#allocation74_spill] sm:$0xff] }
 0x50d   : > { %v9476_v35 = vpop.eup %9475  ;;  %9485 = vtanh.f32 %v2541_v6  ;;  %v3294_v45 = vadd.f32 %v15014_v19, %v3260_v41  ;;  %v3556_v3 = vadd.f32 %v15015_v23, %v3522_v59  ;;  %v3784_v13 = vmul.f32 %v15037_v34, %v12536_v56 }
 0x50e   : > { %v9478_v21 = vpop.eup %9477  ;;  %v5845_v40 = vadd.f32 %v5813_v36, %v5583_v8  ;;  %v1065_v29 = vadd.f32 0.5, %v1033_v26  ;;  %v1295_v17 = vmul.f32 0.5, %v9476_v35  ;;  %9487 = vtanh.f32 %v2803_v47 }
 0x50f   : > { %v9480_v61 = vpop.eup %9479  ;;  %v1557_v60 = vmul.f32 0.5, %v9478_v21  ;;  %v3065_v27 = vmul.f32 0.5, %v3032_v43  ;;  %v3327_v57 = vmul.f32 0.5, %v3294_v45  ;;  %v3589_v49 = vmul.f32 0.5, %v3556_v3 }
 0x510   : > { %v5879_v54 = vadd.f32 %v15038_v39, %v5845_v40  ;;  %v1098_v6 = vmul.f32 %v15013_v42, %v1065_v29  ;;  %v1327_v41 = vadd.f32 0.5, %v1295_v17  ;;  %v1819_v19 = vmul.f32 0.5, %v9480_v61 }
 0x511   : > { %v1589_v59 = vadd.f32 0.5, %v1557_v60  ;;  %9489 = vtanh.f32 %v3065_v27  ;;  %v3818_v34 = vadd.f32 %v14992_v38, %v3784_v13  ;;  %v4046_v36 = vmul.f32 %v14993_v62, %v12536_v56 }
 0x512   : > { %v9482_v8 = vpop.eup %9481  ;;  %v5911_v47 = vmul.f32 0.5, %v5879_v54  ;;  %v1130_v26 = vadd.f32 %v1098_v6, %v836_v50  ;;  %v1360_v43 = vmul.f32 %v14991_v7, %v1327_v41  ;;  %v1851_v35 = vadd.f32 0.5, %v1819_v19 }
 0x513   : > { %v9484_v45 = vpop.eup %9483  ;;  %v1622_v40 = vmul.f32 %v14968_v9, %v1589_v59  ;;  %v2081_v3 = vmul.f32 0.5, %v9482_v8  ;;  %9491 = vtanh.f32 %v3327_v57  ;;  %v3851_v29 = vmul.f32 0.5, %v3818_v34  ;;  %v15039_v59 = vld [vmem:[#allocation62_spill] sm:$0xff] }
 0x514   : > { %9493 = vtanh.f32 %v5911_v47  ;;  %v1392_v17 = vadd.f32 %v1360_v43, %v1130_v26  ;;  %v1884_v21 = vmul.f32 %v14970_v55, %v1851_v35  ;;  %v2343_v13 = vmul.f32 0.5, %v9484_v45 }
 0x515   : > { %v2113_v61 = vadd.f32 0.5, %v2081_v3  ;;  %9495 = vtanh.f32 %v3589_v49  ;;  %v4080_v60 = vadd.f32 %v14969_v58, %v4046_v36  ;;  %v4308_v54 = vmul.f32 %v14971_v4, %v12536_v56 }
 0x516   : > { %v1654_v50 = vadd.f32 %v1622_v40, %v1392_v17  ;;  %v2375_v19 = vadd.f32 0.5, %v2343_v13  ;;  %9497 = vtanh.f32 %v3851_v29  ;;  %v4570_v27 = vmul.f32 %v14973_v63, %v12536_v56 }
 0x517   : > { %v9486_v57 = vpop.eup %9485  ;;  %v2146_v34 = vmul.f32 %v14949_v25, %v2113_v61  ;;  %v4113_v6 = vmul.f32 0.5, %v4080_v60  ;;  %v4342_v41 = vadd.f32 %v14972_v31, %v4308_v54  ;;  %v4832_v49 = vmul.f32 %v15039_v59, %v12536_v56  ;;  %v15040_v54 = vld [vmem:[#allocation68_spill] sm:$0xff] }
 0x518   : > { %v9488_v8 = vpop.eup %9487  ;;  %v1916_v36 = vadd.f32 %v1884_v21, %v1654_v50  ;;  %v2408_v47 = vmul.f32 %v14996_v46, %v2375_v19  ;;  %v2605_v26 = vmul.f32 0.5, %v9486_v57  ;;  %v4604_v43 = vadd.f32 %v14994_v15, %v4570_v27  ;;  %v15041_v27 = vld [vmem:[#allocation44_spill] sm:$0xff] }
 0x519   : > { %v2867_v35 = vmul.f32 0.5, %v9488_v8  ;;  %9499 = vtanh.f32 %v4113_v6  ;;  %v4375_v45 = vmul.f32 0.5, %v4342_v41  ;;  %v4866_v40 = vadd.f32 %v15017_v12, %v4832_v49  ;;  %v12619_v41 = vld [vmem:[%s10393_s0 + $0xa8] sm:$0xff]  ;;  %v15042_v8 = vld [vmem:[#allocation66_spill] sm:$0xff] }
 0x51a   : > { %v2178_v3 = vadd.f32 %v2146_v34, %v1916_v36  ;;  %v2637_v29 = vadd.f32 0.5, %v2605_v26  ;;  %v4637_v17 = vmul.f32 0.5, %v4604_v43  ;;  %v5094_v13 = vmul.f32 %v15018_v0, %v12536_v56 }
 0x51b   : > { %v9490_v61 = vpop.eup %9489  ;;  %v2899_v60 = vadd.f32 0.5, %v2867_v35  ;;  %9501 = vtanh.f32 %v4375_v45  ;;  %v4899_v21 = vmul.f32 0.5, %v4866_v40  ;;  %v5356_v50 = vmul.f32 %v15040_v54, %v12536_v56 }
 0x51c   : > { %v2440_v19 = vadd.f32 %v2408_v47, %v2178_v3  ;;  %v2670_v57 = vmul.f32 %v15041_v27, %v2637_v29  ;;  %v3129_v6 = vmul.f32 0.5, %v9490_v61  ;;  %9503 = vtanh.f32 %v4637_v17  ;;  %v15043_v47 = vld [vmem:[#allocation71_spill] sm:$0xff] }
 0x51d   : > { %v9492_v34 = vpop.eup %9491  ;;  %v2932_v49 = vmul.f32 %v14860_v24, %v2899_v60  ;;  %9505 = vtanh.f32 %v4899_v21  ;;  %v5128_v36 = vadd.f32 %v15042_v8, %v5094_v13  ;;  %v5390_v26 = vadd.f32 %v15021_v1, %v5356_v50 }
 0x51e   : > { %v9494_v43 = vpop.eup %9493  ;;  %v2702_v35 = vadd.f32 %v2670_v57, %v2440_v19  ;;  %v3161_v45 = vadd.f32 0.5, %v3129_v6  ;;  %v3391_v40 = vmul.f32 0.5, %v9492_v34  ;;  %v5618_v3 = vmul.f32 %v15043_v47, %v12536_v56  ;;  %v15045_v57 = vld [vmem:[#allocation72_spill] sm:$0xff] }
 0x51f   : > { %v9496_v29 = vpop.eup %9495  ;;  %v5975_v61 = vmul.f32 0.5, %v9494_v43  ;;  %v5161_v17 = vmul.f32 0.5, %v5128_v36  ;;  %v5423_v54 = vmul.f32 0.5, %v5390_v26  ;;  %v641_v27 = vmul.f32 %v14790_v52, %v12619_v41  ;;  %v15051_v52 = vld [vmem:[#allocation55_spill] sm:$0xff] }
 0x520   : > { %v9498_v60 = vpop.eup %9497  ;;  %v2964_v21 = vadd.f32 %v2932_v49, %v2702_v35  ;;  %v3194_v13 = vmul.f32 %v14813_v28, %v3161_v45  ;;  %v3423_v24 = vadd.f32 0.5, %v3391_v40  ;;  %v3653_v50 = vmul.f32 0.5, %v9496_v29 }
 0x521   : > { %v12629_v1 = vadd.f32 0.5, %v5975_v61  ;;  %v3915_v19 = vmul.f32 0.5, %v9498_v60  ;;  %9507 = vtanh.f32 %v5161_v17  ;;  %v5652_v6 = vadd.f32 %v15045_v57, %v5618_v3  ;;  %v15046_v3 = vld [vmem:[#allocation18_spill] sm:$0xff]  ;;  %v15047_v60 = vld [vmem:[#allocation52_spill] sm:$0xff] }
 0x522   : > { %v3226_v56 = vadd.f32 %v3194_v13, %v2964_v21  ;;  %v3456_v34 = vmul.f32 %v15023_v33, %v3423_v24  ;;  %v3685_v36 = vadd.f32 0.5, %v3653_v50  ;;  %9509 = vtanh.f32 %v5423_v54  ;;  %v15048_v13 = vld [vmem:[#allocation17_spill] sm:$0xff] }
 0x523   : > { %15044 = vst [vmem:[#allocation93_spill] sm:$0xff] %v12629_v1  ;;  %v9500_v26 = vpop.eup %9499  ;;  %6058 = vadd.xlane.f32.xlu1 %v12629_v1  ;;  %v3947_v43 = vadd.f32 0.5, %v3915_v19  ;;  %v5685_v49 = vmul.f32 0.5, %v5652_v6  ;;  %v675_v35 = vadd.f32 %v14977_v18, %v641_v27  ;;  %v903_v45 = vmul.f32 %v15024_v16, %v12619_v41  ;;  %v15049_v18 = vld [vmem:[#allocation19_spill] sm:$0xff] }
 0x524   : > { %v3488_v40 = vadd.f32 %v3456_v34, %v3226_v56  ;;  %v3718_v29 = vmul.f32 %v14979_v2, %v3685_v36  ;;  %v4177_v61 = vmul.f32 0.5, %v9500_v26  ;;  %v1165_v17 = vmul.f32 %v15046_v3, %v12619_v41  ;;  %v15050_v26 = vld [vmem:[#allocation20_spill] sm:$0xff] }
 0x525   : > { %v9502_v24 = vpop.eup %9501  ;;  %v3980_v54 = vmul.f32 %v15047_v60, %v3947_v43  ;;  %9511 = vtanh.f32 %v5685_v49  ;;  %v708_v21 = vmul.f32 0.5, %v675_v35  ;;  %v937_v50 = vadd.f32 %v15048_v13, %v903_v45 }
 0x526   : > { %v9504_v19 = vpop.eup %9503  ;;  %v3750_v6 = vadd.f32 %v3718_v29, %v3488_v40  ;;  %v4209_v27 = vadd.f32 0.5, %v4177_v61  ;;  %v4439_v1 = vmul.f32 0.5, %v9502_v24  ;;  %v1199_v16 = vadd.f32 %v15049_v18, %v1165_v17  ;;  %v15052_v24 = vld [vmem:[#allocation22_spill] sm:$0xff] }
 0x527   : > { %v9506_v56 = vpop.eup %9505  ;;  %v4701_v34 = vmul.f32 0.5, %v9504_v19  ;;  %9513 = vtanh.f32 %v708_v21  ;;  %v970_v36 = vmul.f32 0.5, %v937_v50  ;;  %v1427_v3 = vmul.f32 %v15050_v26, %v12619_v41 }
 0x528   : > { %v4012_v2 = vadd.f32 %v3980_v54, %v3750_v6  ;;  %v4242_v43 = vmul.f32 %v15051_v52, %v4209_v27  ;;  %v4471_v49 = vadd.f32 0.5, %v4439_v1  ;;  %v4963_v35 = vmul.f32 0.5, %v9506_v56 }
 0x529   : > { %v4733_v60 = vadd.f32 0.5, %v4701_v34  ;;  %9515 = vtanh.f32 %v970_v36  ;;  %v1232_v45 = vmul.f32 0.5, %v1199_v16  ;;  %v1461_v40 = vadd.f32 %v15005_v14, %v1427_v3  ;;  %v15053_v34 = vld [vmem:[#allocation25_spill] sm:$0xff] }
 0x52a   : > { %v4274_v29 = vadd.f32 %v4242_v43, %v4012_v2  ;;  %v4504_v61 = vmul.f32 %v15027_v51, %v4471_v49  ;;  %v4995_v17 = vadd.f32 0.5, %v4963_v35  ;;  %v1689_v21 = vmul.f32 %v15052_v24, %v12619_v41  ;;  %v15054_v43 = vld [vmem:[#allocation26_spill] sm:$0xff] }
 0x52b   : > { %v9508_v50 = vpop.eup %9507  ;;  %v4766_v19 = vmul.f32 %v15029_v32, %v4733_v60  ;;  %9517 = vtanh.f32 %v1232_v45  ;;  %v1494_v54 = vmul.f32 0.5, %v1461_v40  ;;  %v1951_v1 = vmul.f32 %v15028_v30, %v12619_v41 }
 0x52c   : > { %v9510_v6 = vpop.eup %9509  ;;  %v4536_v27 = vadd.f32 %v4504_v61, %v4274_v29  ;;  %v5028_v16 = vmul.f32 %v14962_v48, %v4995_v17  ;;  %v5225_v3 = vmul.f32 0.5, %v9508_v50  ;;  %v1723_v2 = vadd.f32 %v14982_v5, %v1689_v21 }
 0x52d   : > { %v5487_v56 = vmul.f32 0.5, %v9510_v6  ;;  %9519 = vtanh.f32 %v1494_v54  ;;  %v1985_v36 = vadd.f32 %v15053_v34, %v1951_v1  ;;  %v2213_v49 = vmul.f32 %v15054_v43, %v12619_v41  ;;  %v15055_v54 = vld [vmem:[#allocation67_spill] sm:$0xff] }
 0x52e   : > { %v4798_v60 = vadd.f32 %v4766_v19, %v4536_v27  ;;  %v5257_v35 = vadd.f32 0.5, %v5225_v3  ;;  %v1756_v45 = vmul.f32 0.5, %v1723_v2  ;;  %v2475_v40 = vmul.f32 %v15031_v11, %v12619_v41 }
 0x52f   : > { %v9512_v30 = vpop.eup %9511  ;;  %v5519_v29 = vadd.f32 0.5, %v5487_v56  ;;  %v2018_v61 = vmul.f32 0.5, %v1985_v36  ;;  %v2247_v17 = vadd.f32 %v14943_v22, %v2213_v49  ;;  %v2737_v21 = vmul.f32 %v15033_v20, %v12619_v41 }
 0x530   : > { %v5060_v50 = vadd.f32 %v5028_v16, %v4798_v60  ;;  %v5290_v1 = vmul.f32 %v15055_v54, %v5257_v35  ;;  %v5749_v6 = vmul.f32 0.5, %v9512_v30  ;;  %9521 = vtanh.f32 %v1756_v45  ;;  %v15056_v16 = vld [vmem:[#allocation32_spill] sm:$0xff]  ;;  %v15057_v30 = vld [vmem:[#allocation34_spill] sm:$0xff] }
 0x531   : > { %v9514_v34 = vpop.eup %9513  ;;  %v5552_v19 = vmul.f32 %v15012_v44, %v5519_v29  ;;  %9523 = vtanh.f32 %v2018_v61  ;;  %v2280_v27 = vmul.f32 0.5, %v2247_v17  ;;  %v2509_v3 = vadd.f32 %v15034_v37, %v2475_v40  ;;  %v15058_v29 = vld [vmem:[#allocation73_spill] sm:$0xff] }
 0x532   : > { %v5322_v2 = vadd.f32 %v5290_v1, %v5060_v50  ;;  %v5781_v56 = vadd.f32 0.5, %v5749_v6  ;;  %v772_v36 = vmul.f32 0.5, %v9514_v34  ;;  %v2771_v49 = vadd.f32 %v14987_v10, %v2737_v21  ;;  %v15059_v21 = vld [vmem:[#allocation35_spill] sm:$0xff] }
 0x533   : > { %v9516_v22 = vpop.eup %9515  ;;  %9525 = vtanh.f32 %v2280_v27  ;;  %v2542_v20 = vmul.f32 0.5, %v2509_v3  ;;  %v2999_v60 = vmul.f32 %v15056_v16, %v12619_v41  ;;  %v3261_v35 = vmul.f32 %v15057_v30, %v12619_v41  ;;  %v15060_v27 = vld [vmem:[#allocation37_spill] sm:$0xff] }
 0x534   : > { %v5584_v45 = vadd.f32 %v5552_v19, %v5322_v2  ;;  %v5814_v61 = vmul.f32 %v15058_v29, %v5781_v56  ;;  %v804_v17 = vadd.f32 0.5, %v772_v36  ;;  %v1034_v44 = vmul.f32 0.5, %v9516_v22  ;;  %v15061_v2 = vld [vmem:[#allocation36_spill] sm:$0xff] }
 0x535   : > { %v9518_v40 = vpop.eup %9517  ;;  %9527 = vtanh.f32 %v2542_v20  ;;  %v2804_v50 = vmul.f32 0.5, %v2771_v49  ;;  %v3033_v34 = vadd.f32 %v15036_v53, %v2999_v60  ;;  %v3295_v1 = vadd.f32 %v15059_v21, %v3261_v35  ;;  %v15062_v35 = vld [vmem:[#allocation50_spill] sm:$0xff] }
 0x536   : > { %v5846_v6 = vadd.f32 %v5814_v61, %v5584_v45  ;;  %v837_v3 = vmul.f32 %v15060_v27, %v804_v17  ;;  %v1066_v10 = vadd.f32 0.5, %v1034_v44  ;;  %v1296_v16 = vmul.f32 0.5, %v9518_v40 }
 0x537   : > { %v9520_v37 = vpop.eup %9519  ;;  %9529 = vtanh.f32 %v2804_v50  ;;  %v3066_v30 = vmul.f32 0.5, %v3033_v34  ;;  %v3328_v19 = vmul.f32 0.5, %v3295_v1  ;;  %v3523_v56 = vmul.f32 %v15061_v2, %v12619_v41 }
 0x538   : > { %v5880_v22 = vadd.f32 %v15038_v39, %v5846_v6  ;;  %v1099_v20 = vmul.f32 %v15013_v42, %v1066_v10  ;;  %v1328_v36 = vadd.f32 0.5, %v1296_v16  ;;  %v1558_v49 = vmul.f32 0.5, %v9520_v37 }
 0x539   : > { %9531 = vtanh.f32 %v3066_v30  ;;  %v3557_v60 = vadd.f32 %v15015_v23, %v3523_v56  ;;  %v3785_v44 = vmul.f32 %v15062_v35, %v12619_v41  ;;  %v4047_v45 = vmul.f32 %v14993_v62, %v12619_v41 }
 0x53a   : > { %v9522_v61 = vpop.eup %9521  ;;  %v5912_v17 = vmul.f32 0.5, %v5880_v22  ;;  %v1131_v40 = vadd.f32 %v1099_v20, %v837_v3  ;;  %v1361_v50 = vmul.f32 %v14991_v7, %v1328_v36  ;;  %v1590_v34 = vadd.f32 0.5, %v1558_v49 }
 0x53b   : > { %v9524_v1 = vpop.eup %9523  ;;  %v1820_v6 = vmul.f32 0.5, %v9522_v61  ;;  %9533 = vtanh.f32 %v3328_v19  ;;  %v3590_v10 = vmul.f32 0.5, %v3557_v60  ;;  %v3819_v37 = vadd.f32 %v14992_v38, %v3785_v44 }
 0x53c   : > { %9535 = vtanh.f32 %v5912_v17  ;;  %v1393_v16 = vadd.f32 %v1361_v50, %v1131_v40  ;;  %v1623_v30 = vmul.f32 %v14968_v9, %v1590_v34  ;;  %v2082_v56 = vmul.f32 0.5, %v9524_v1 }
 0x53d   : > { %v9526_v35 = vpop.eup %9525  ;;  %v1852_v39 = vadd.f32 0.5, %v1820_v6  ;;  %9537 = vtanh.f32 %v3590_v10  ;;  %v3852_v62 = vmul.f32 0.5, %v3819_v37  ;;  %v4081_v3 = vadd.f32 %v14969_v58, %v4047_v45 }
 0x53e   : > { %v1655_v22 = vadd.f32 %v1623_v30, %v1393_v16  ;;  %v2114_v20 = vadd.f32 0.5, %v2082_v56  ;;  %v2344_v36 = vmul.f32 0.5, %v9526_v35  ;;  %v4309_v19 = vmul.f32 %v14971_v4, %v12619_v41 }
 0x53f   : > { %v9528_v49 = vpop.eup %9527  ;;  %v1885_v60 = vmul.f32 %v14970_v55, %v1852_v39  ;;  %9539 = vtanh.f32 %v3852_v62  ;;  %v4114_v44 = vmul.f32 0.5, %v4081_v3  ;;  %v4571_v61 = vmul.f32 %v14973_v63, %v12619_v41 }
 0x540   : > { %v2147_v17 = vmul.f32 %v14949_v25, %v2114_v20  ;;  %v2376_v40 = vadd.f32 0.5, %v2344_v36  ;;  %v2606_v50 = vmul.f32 0.5, %v9528_v49  ;;  %v4343_v45 = vadd.f32 %v14972_v31, %v4309_v19 }
 0x541   : > { %v9530_v34 = vpop.eup %9529  ;;  %v1917_v1 = vadd.f32 %v1885_v60, %v1655_v22  ;;  %9541 = vtanh.f32 %v4114_v44  ;;  %v4605_v35 = vadd.f32 %v14994_v15, %v4571_v61  ;;  %v4833_v6 = vmul.f32 %v15039_v59, %v12619_v41  ;;  %v15063_v22 = vld [vmem:[#allocation44_spill] sm:$0xff] }
 0x542   : > { %v2409_v62 = vmul.f32 %v14996_v46, %v2376_v40  ;;  %v2638_v39 = vadd.f32 0.5, %v2606_v50  ;;  %v2868_v10 = vmul.f32 0.5, %v9530_v34  ;;  %v4376_v37 = vmul.f32 0.5, %v4343_v45 }
 0x543   : > { %v9532_v16 = vpop.eup %9531  ;;  %v2179_v30 = vadd.f32 %v2147_v17, %v1917_v1  ;;  %v4638_v56 = vmul.f32 0.5, %v4605_v35  ;;  %v4867_v3 = vadd.f32 %v15017_v12, %v4833_v6  ;;  %v5095_v20 = vmul.f32 %v15018_v0, %v12619_v41  ;;  %v15064_v17 = vld [vmem:[#allocation45_spill] sm:$0xff]  ;;  %v15065_v35 = vld [vmem:[#allocation68_spill] sm:$0xff] }
 0x544   : > { %v2671_v36 = vmul.f32 %v15063_v22, %v2638_v39  ;;  %v2900_v19 = vadd.f32 0.5, %v2868_v10  ;;  %v3130_v49 = vmul.f32 0.5, %v9532_v16  ;;  %9543 = vtanh.f32 %v4376_v37 }
 0x545   : > { %v9534_v60 = vpop.eup %9533  ;;  %v2441_v44 = vadd.f32 %v2409_v62, %v2179_v30  ;;  %9545 = vtanh.f32 %v4638_v56  ;;  %v4900_v61 = vmul.f32 0.5, %v4867_v3  ;;  %v5129_v40 = vadd.f32 %v15042_v8, %v5095_v20  ;;  %v15066_v56 = vld [vmem:[#allocation69_spill] sm:$0xff]  ;;  %v12710_v20 = vld [vmem:[%s10393_s0 + $0xb0] sm:$0xff] }
 0x546   : > { %v9536_v50 = vpop.eup %9535  ;;  %v2933_v45 = vmul.f32 %v15064_v17, %v2900_v19  ;;  %v3162_v34 = vadd.f32 0.5, %v3130_v49  ;;  %v3392_v1 = vmul.f32 0.5, %v9534_v60  ;;  %v5357_v6 = vmul.f32 %v15065_v35, %v12619_v41 }
 0x547   : > { %v9538_v12 = vpop.eup %9537  ;;  %v5976_v39 = vmul.f32 0.5, %v9536_v50  ;;  %v2703_v10 = vadd.f32 %v2671_v36, %v2441_v44  ;;  %9547 = vtanh.f32 %v4900_v61  ;;  %v5162_v37 = vmul.f32 0.5, %v5129_v40 }
 0x548   : > { %v3195_v62 = vmul.f32 %v14813_v28, %v3162_v34  ;;  %v3424_v16 = vadd.f32 0.5, %v3392_v1  ;;  %v3654_v30 = vmul.f32 0.5, %v9538_v12  ;;  %v5391_v3 = vadd.f32 %v15066_v56, %v5357_v6  ;;  %v15068_v1 = vld [vmem:[#allocation14_spill] sm:$0xff] }
 0x549   : > { %v9540_v8 = vpop.eup %9539  ;;  %v12712_v19 = vadd.f32 0.5, %v5976_v39  ;;  %v2965_v49 = vadd.f32 %v2933_v45, %v2703_v10  ;;  %9549 = vtanh.f32 %v5162_v37  ;;  %v5619_v60 = vmul.f32 %v15043_v47, %v12619_v41  ;;  %v15069_v45 = vld [vmem:[#allocation15_spill] sm:$0xff]  ;;  %v15070_v10 = vld [vmem:[#allocation49_spill] sm:$0xff] }
 0x54a   : > { %v3457_v36 = vmul.f32 %v15023_v33, %v3424_v16  ;;  %v3686_v44 = vadd.f32 0.5, %v3654_v30  ;;  %v3916_v61 = vmul.f32 0.5, %v9540_v8  ;;  %v5424_v40 = vmul.f32 0.5, %v5391_v3  ;;  %v15071_v30 = vld [vmem:[#allocation16_spill] sm:$0xff] }
 0x54b   : > { %15067 = vst [vmem:[#allocation94_spill] sm:$0xff] %v12712_v19  ;;  %v9542_v50 = vpop.eup %9541  ;;  %6060 = vadd.xlane.f32.xlu0 %v12712_v19  ;;  %v3227_v12 = vadd.f32 %v3195_v62, %v2965_v49  ;;  %v5653_v34 = vadd.f32 %v15045_v57, %v5619_v60  ;;  %v642_v6 = vmul.f32 %v15068_v1, %v12710_v20  ;;  %v15072_v49 = vld [vmem:[#allocation52_spill] sm:$0xff]  ;;  %v15073_v1 = vld [vmem:[#allocation18_spill] sm:$0xff] }
 0x54c   : > { %v904_v39 = vmul.f32 %v15069_v45, %v12710_v20  ;;  %v3719_v37 = vmul.f32 %v15070_v10, %v3686_v44  ;;  %v3948_v41 = vadd.f32 0.5, %v3916_v61  ;;  %v4178_v56 = vmul.f32 0.5, %v9542_v50 }
 0x54d   : > { %9551 = vtanh.f32 %v5424_v40  ;;  %v3489_v16 = vadd.f32 %v3457_v36, %v3227_v12  ;;  %v5686_v8 = vmul.f32 0.5, %v5653_v34  ;;  %v676_v3 = vadd.f32 %v15071_v30, %v642_v6 }
 0x54e   : > { %v938_v19 = vadd.f32 %v15048_v13, %v904_v39  ;;  %v9544_v62 = vpop.eup %9543  ;;  %v3981_v60 = vmul.f32 %v15072_v49, %v3948_v41  ;;  %v4210_v33 = vadd.f32 0.5, %v4178_v56  ;;  %v1166_v57 = vmul.f32 %v15073_v1, %v12710_v20 }
 0x54f   : > { %v1428_v45 = vmul.f32 %v15050_v26, %v12710_v20  ;;  %v9546_v44 = vpop.eup %9545  ;;  %v3751_v61 = vadd.f32 %v3719_v37, %v3489_v16  ;;  %v4440_v50 = vmul.f32 0.5, %v9544_v62  ;;  %9553 = vtanh.f32 %v5686_v8 }
 0x550   : > { %v709_v36 = vmul.f32 0.5, %v676_v3  ;;  %v4243_v40 = vmul.f32 %v15051_v52, %v4210_v33  ;;  %v4702_v12 = vmul.f32 0.5, %v9546_v44  ;;  %v971_v34 = vmul.f32 0.5, %v938_v19  ;;  %v15074_v44 = vld [vmem:[#allocation24_spill] sm:$0xff] }
 0x551   : > { %v1200_v6 = vadd.f32 %v15049_v18, %v1166_v57  ;;  %v9548_v39 = vpop.eup %9547  ;;  %v4013_v41 = vadd.f32 %v3981_v60, %v3751_v61  ;;  %v4472_v56 = vadd.f32 0.5, %v4440_v50  ;;  %v1462_v49 = vadd.f32 %v15005_v14, %v1428_v45 }
 0x552   : > { %9555 = vtanh.f32 %v709_v36  ;;  %v4734_v13 = vadd.f32 0.5, %v4702_v12  ;;  %v4964_v30 = vmul.f32 0.5, %v9548_v39  ;;  %v1690_v33 = vmul.f32 %v15052_v24, %v12710_v20 }
 0x553   : > { %9557 = vtanh.f32 %v971_v34  ;;  %v1233_v26 = vmul.f32 0.5, %v1200_v6  ;;  %v9550_v37 = vpop.eup %9549  ;;  %v4275_v16 = vadd.f32 %v4243_v40, %v4013_v41  ;;  %v4505_v8 = vmul.f32 %v15027_v51, %v4472_v56  ;;  %v15075_v34 = vld [vmem:[#allocation25_spill] sm:$0xff]  ;;  %v15076_v41 = vld [vmem:[#allocation27_spill] sm:$0xff] }
 0x554   : > { %v1495_v3 = vmul.f32 0.5, %v1462_v49  ;;  %v4767_v57 = vmul.f32 %v15029_v32, %v4734_v13  ;;  %v4996_v19 = vadd.f32 0.5, %v4964_v30  ;;  %v5226_v62 = vmul.f32 0.5, %v9550_v37  ;;  %v15077_v37 = vld [vmem:[#allocation29_spill] sm:$0xff] }
 0x555   : > { %9559 = vtanh.f32 %v1233_v26  ;;  %v4537_v60 = vadd.f32 %v4505_v8, %v4275_v16  ;;  %v1724_v45 = vadd.f32 %v14982_v5, %v1690_v33  ;;  %v1952_v61 = vmul.f32 %v15074_v44, %v12710_v20  ;;  %v15078_v8 = vld [vmem:[#allocation30_spill] sm:$0xff] }
 0x556   : > { %9561 = vtanh.f32 %v1495_v3  ;;  %v5029_v36 = vmul.f32 %v14962_v48, %v4996_v19  ;;  %v5258_v40 = vadd.f32 0.5, %v5226_v62  ;;  %v2214_v49 = vmul.f32 %v15054_v43, %v12710_v20 }
 0x557   : > { %v9552_v50 = vpop.eup %9551  ;;  %v2476_v13 = vmul.f32 %v15031_v11, %v12710_v20  ;;  %v4799_v30 = vadd.f32 %v4767_v57, %v4537_v60  ;;  %v1757_v26 = vmul.f32 0.5, %v1724_v45  ;;  %v1986_v6 = vadd.f32 %v15075_v34, %v1952_v61  ;;  %v15079_v45 = vld [vmem:[#allocation31_spill] sm:$0xff] }
 0x558   : > { %v5488_v12 = vmul.f32 0.5, %v9552_v50  ;;  %v5291_v39 = vmul.f32 %v15055_v54, %v5258_v40  ;;  %v2248_v56 = vadd.f32 %v15076_v41, %v2214_v49  ;;  %v2738_v3 = vmul.f32 %v15078_v8, %v12710_v20  ;;  %v15080_v40 = vld [vmem:[#allocation70_spill] sm:$0xff]  ;;  %v15081_v49 = vld [vmem:[#allocation32_spill] sm:$0xff] }
 0x559   : > { %v2510_v16 = vadd.f32 %v15077_v37, %v2476_v13  ;;  %v9554_v33 = vpop.eup %9553  ;;  %v5061_v19 = vadd.f32 %v5029_v36, %v4799_v30  ;;  %9563 = vtanh.f32 %v1757_v26  ;;  %v2019_v48 = vmul.f32 0.5, %v1986_v6 }
 0x55a   : > { %v5520_v62 = vadd.f32 0.5, %v5488_v12  ;;  %v5750_v11 = vmul.f32 0.5, %v9554_v33  ;;  %v2281_v57 = vmul.f32 0.5, %v2248_v56  ;;  %v2772_v50 = vadd.f32 %v15079_v45, %v2738_v3 }
 0x55b   : > { %v2543_v60 = vmul.f32 0.5, %v2510_v16  ;;  %v5323_v43 = vadd.f32 %v5291_v39, %v5061_v19  ;;  %9565 = vtanh.f32 %v2019_v48  ;;  %v3000_v13 = vmul.f32 %v15081_v49, %v12710_v20  ;;  %v15082_v48 = vld [vmem:[#allocation34_spill] sm:$0xff] }
 0x55c   : > { %v9556_v61 = vpop.eup %9555  ;;  %v5553_v54 = vmul.f32 %v15080_v40, %v5520_v62  ;;  %v5782_v8 = vadd.f32 0.5, %v5750_v11  ;;  %9567 = vtanh.f32 %v2281_v57  ;;  %v2805_v36 = vmul.f32 0.5, %v2772_v50  ;;  %v15083_v50 = vld [vmem:[#allocation74_spill] sm:$0xff] }
 0x55d   : > { %v9558_v37 = vpop.eup %9557  ;;  %v773_v41 = vmul.f32 0.5, %v9556_v61  ;;  %9569 = vtanh.f32 %v2543_v60  ;;  %v3034_v26 = vadd.f32 %v15036_v53, %v3000_v13  ;;  %v3262_v16 = vmul.f32 %v15082_v48, %v12710_v20 }
 0x55e   : > { %v5585_v30 = vadd.f32 %v5553_v54, %v5323_v43  ;;  %v1035_v12 = vmul.f32 0.5, %v9558_v37  ;;  %v5815_v56 = vmul.f32 %v15058_v29, %v5782_v8  ;;  %9571 = vtanh.f32 %v2805_v36 }
 0x55f   : > { %v9560_v6 = vpop.eup %9559  ;;  %v805_v39 = vadd.f32 0.5, %v773_v41  ;;  %v3067_v11 = vmul.f32 0.5, %v3034_v26  ;;  %v3524_v62 = vmul.f32 %v15061_v2, %v12710_v20  ;;  %v3296_v57 = vadd.f32 %v15059_v21, %v3262_v16  ;;  %v15085_v16 = vld [vmem:[#allocation53_spill] sm:$0xff] }
 0x560   : > { %v9562_v3 = vpop.eup %9561  ;;  %v1067_v33 = vadd.f32 0.5, %v1035_v12  ;;  %v1297_v19 = vmul.f32 0.5, %v9560_v6  ;;  %v5847_v43 = vadd.f32 %v5815_v56, %v5585_v30  ;;  %v15084_v12 = vld [vmem:[#allocation50_spill] sm:$0xff] }
 0x561   : > { %v838_v54 = vmul.f32 %v15060_v27, %v805_v39  ;;  %v1559_v37 = vmul.f32 0.5, %v9562_v3  ;;  %9573 = vtanh.f32 %v3067_v11  ;;  %v3558_v60 = vadd.f32 %v15015_v23, %v3524_v62 }
 0x562   : > { %v1100_v8 = vmul.f32 %v15013_v42, %v1067_v33  ;;  %v1329_v41 = vadd.f32 0.5, %v1297_v19  ;;  %v5881_v61 = vadd.f32 %v15083_v50, %v5847_v43  ;;  %v3329_v36 = vmul.f32 0.5, %v3296_v57 }
 0x563   : > { %v1591_v13 = vadd.f32 0.5, %v1559_v37  ;;  %v3786_v26 = vmul.f32 %v15084_v12, %v12710_v20  ;;  %v9564_v6 = vpop.eup %9563  ;;  %v3591_v39 = vmul.f32 0.5, %v3558_v60  ;;  %v4048_v3 = vmul.f32 %v15085_v16, %v12710_v20 }
 0x564   : > { %v1132_v30 = vadd.f32 %v1100_v8, %v838_v54  ;;  %v1362_v56 = vmul.f32 %v14991_v7, %v1329_v41  ;;  %v5913_v33 = vmul.f32 0.5, %v5881_v61  ;;  %v1821_v11 = vmul.f32 0.5, %v9564_v6 }
 0x565   : > { %v1624_v19 = vmul.f32 %v14968_v9, %v1591_v13  ;;  %9575 = vtanh.f32 %v3329_v36  ;;  %v9566_v62 = vpop.eup %9565  ;;  %v3820_v37 = vadd.f32 %v14992_v38, %v3786_v26  ;;  %v4082_v57 = vadd.f32 %v14969_v58, %v4048_v3 }
 0x566   : > { %v1394_v43 = vadd.f32 %v1362_v56, %v1132_v30  ;;  %9577 = vtanh.f32 %v3591_v39  ;;  %v9568_v12 = vpop.eup %9567  ;;  %v1853_v54 = vadd.f32 0.5, %v1821_v11  ;;  %v2083_v8 = vmul.f32 0.5, %v9566_v62 }
 0x567   : > { %9579 = vtanh.f32 %v5913_v33  ;;  %v4310_v41 = vmul.f32 %v14971_v4, %v12710_v20  ;;  %v9570_v60 = vpop.eup %9569  ;;  %v2345_v16 = vmul.f32 0.5, %v9568_v12  ;;  %v3853_v13 = vmul.f32 0.5, %v3820_v37 }
 0x568   : > { %v1656_v61 = vadd.f32 %v1624_v19, %v1394_v43  ;;  %v4115_v6 = vmul.f32 0.5, %v4082_v57  ;;  %v9572_v36 = vpop.eup %9571  ;;  %v1886_v30 = vmul.f32 %v14970_v55, %v1853_v54  ;;  %v2115_v56 = vadd.f32 0.5, %v2083_v8 }
 0x569   : > { %v2607_v39 = vmul.f32 0.5, %v9570_v60  ;;  %v4344_v26 = vadd.f32 %v14972_v31, %v4310_v41  ;;  %v2377_v3 = vadd.f32 0.5, %v2345_v16  ;;  %v2869_v58 = vmul.f32 0.5, %v9572_v36 }
 0x56a   : > { %9581 = vtanh.f32 %v3853_v13  ;;  %v4572_v33 = vmul.f32 %v14973_v63, %v12710_v20  ;;  %v1918_v11 = vadd.f32 %v1886_v30, %v1656_v61  ;;  %v2148_v62 = vmul.f32 %v14949_v25, %v2115_v56  ;;  %v15086_v56 = vld [vmem:[#allocation63_spill] sm:$0xff] }
 0x56b   : > { %v2639_v19 = vadd.f32 0.5, %v2607_v39  ;;  %9583 = vtanh.f32 %v4115_v6  ;;  %v9574_v12 = vpop.eup %9573  ;;  %v2410_v43 = vmul.f32 %v14996_v46, %v2377_v3  ;;  %v2901_v37 = vadd.f32 0.5, %v2869_v58 }
 0x56c   : > { %v4377_v57 = vmul.f32 0.5, %v4344_v26  ;;  %v4606_v54 = vadd.f32 %v14994_v15, %v4572_v33  ;;  %v2180_v8 = vadd.f32 %v2148_v62, %v1918_v11  ;;  %v3131_v41 = vmul.f32 0.5, %v9574_v12  ;;  %v15087_v11 = vld [vmem:[#allocation66_spill] sm:$0xff] }
 0x56d   : > { %v2672_v16 = vmul.f32 %v15063_v22, %v2639_v19  ;;  %v4834_v60 = vmul.f32 %v15039_v59, %v12710_v20  ;;  %v2934_v61 = vmul.f32 %v15064_v17, %v2901_v37  ;;  %v5096_v6 = vmul.f32 %v15018_v0, %v12710_v20  ;;  %v15088_v17 = vld [vmem:[#allocation69_spill] sm:$0xff] }
 0x56e   : > { %9585 = vtanh.f32 %v4377_v57  ;;  %v4639_v13 = vmul.f32 0.5, %v4606_v54  ;;  %v2442_v30 = vadd.f32 %v2410_v43, %v2180_v8  ;;  %v3163_v58 = vadd.f32 0.5, %v3131_v41 }
 0x56f   : > { %v9576_v36 = vpop.eup %9575  ;;  %v4868_v39 = vadd.f32 %v15086_v56, %v4834_v60  ;;  %v5358_v26 = vmul.f32 %v15065_v35, %v12710_v20  ;;  %v5130_v62 = vadd.f32 %v15087_v11, %v5096_v6  ;;  %v5620_v19 = vmul.f32 %v15043_v47, %v12710_v20  ;;  %v12800_v6 = vld [vmem:[%s10393_s0 + $0xb8] sm:$0xff] }
 0x570   : > { %v9578_v3 = vpop.eup %9577  ;;  %v3393_v33 = vmul.f32 0.5, %v9576_v36  ;;  %9587 = vtanh.f32 %v4639_v13  ;;  %v2704_v37 = vadd.f32 %v2672_v16, %v2442_v30  ;;  %v3196_v57 = vmul.f32 %v14813_v28, %v3163_v58  ;;  %v15089_v13 = vld [vmem:[#allocation72_spill] sm:$0xff]  ;;  %v15091_v16 = vld [vmem:[#allocation47_spill] sm:$0xff] }
 0x571   : > { %v9580_v12 = vpop.eup %9579  ;;  %v3655_v43 = vmul.f32 0.5, %v9578_v3  ;;  %v4901_v54 = vmul.f32 0.5, %v4868_v39  ;;  %v5163_v60 = vmul.f32 0.5, %v5130_v62  ;;  %v5392_v35 = vadd.f32 %v15088_v17, %v5358_v26 }
 0x572   : > { %v5977_v8 = vmul.f32 0.5, %v9580_v12  ;;  %v3425_v41 = vadd.f32 0.5, %v3393_v33  ;;  %v2966_v0 = vadd.f32 %v2934_v61, %v2704_v37  ;;  %v5654_v56 = vadd.f32 %v15089_v13, %v5620_v19  ;;  %v15092_v19 = vld [vmem:[#allocation14_spill] sm:$0xff]  ;;  %v15093_v37 = vld [vmem:[#allocation15_spill] sm:$0xff] }
 0x573   : > { %v3687_v36 = vadd.f32 0.5, %v3655_v43  ;;  %9589 = vtanh.f32 %v4901_v54  ;;  %v5425_v58 = vmul.f32 0.5, %v5392_v35  ;;  %v643_v12 = vmul.f32 %v15092_v19, %v12800_v6 }
 0x574   : > { %v9582_v11 = vpop.eup %9581  ;;  %v12802_v20 = vadd.f32 0.5, %v5977_v8  ;;  %v3458_v30 = vmul.f32 %v15091_v16, %v3425_v41  ;;  %9591 = vtanh.f32 %v5163_v60  ;;  %v3228_v3 = vadd.f32 %v3196_v57, %v2966_v0  ;;  %v15095_v41 = vld [vmem:[#allocation17_spill] sm:$0xff] }
 0x575   : > { %v9584_v39 = vpop.eup %9583  ;;  %v3720_v33 = vmul.f32 %v15070_v10, %v3687_v36  ;;  %v3917_v62 = vmul.f32 0.5, %v9582_v11  ;;  %v5687_v26 = vmul.f32 0.5, %v5654_v56  ;;  %9593 = vtanh.f32 %v5425_v58  ;;  %v15094_v11 = vld [vmem:[#allocation16_spill] sm:$0xff] }
 0x576   : > { %15090 = vst [vmem:[#allocation95_spill] sm:$0xff] %v12802_v20  ;;  %6062 = vadd.xlane.f32.xlu1 %v12802_v20  ;;  %v4179_v61 = vmul.f32 0.5, %v9584_v39  ;;  %v905_v43 = vmul.f32 %v15093_v37, %v12800_v6  ;;  %v3490_v54 = vadd.f32 %v3458_v30, %v3228_v3  ;;  %v1167_v0 = vmul.f32 %v15073_v1, %v12800_v6  ;;  %v15096_v36 = vld [vmem:[#allocation20_spill] sm:$0xff] }
 0x577   : > { %v3949_v8 = vadd.f32 0.5, %v3917_v62  ;;  %9595 = vtanh.f32 %v5687_v26  ;;  %v677_v56 = vadd.f32 %v15094_v11, %v643_v12  ;;  %v1429_v58 = vmul.f32 %v15096_v36, %v12800_v6  ;;  %v15097_v20 = vld [vmem:[#allocation52_spill] sm:$0xff] }
 0x578   : > { %v9586_v35 = vpop.eup %9585  ;;  %v4211_v57 = vadd.f32 0.5, %v4179_v61  ;;  %v939_v60 = vadd.f32 %v15095_v41, %v905_v43  ;;  %v3752_v39 = vadd.f32 %v3720_v33, %v3490_v54  ;;  %v1201_v30 = vadd.f32 %v15049_v18, %v1167_v0 }
 0x579   : > { %v3982_v13 = vmul.f32 %v15097_v20, %v3949_v8  ;;  %v4441_v10 = vmul.f32 0.5, %v9586_v35  ;;  %v710_v26 = vmul.f32 0.5, %v677_v56  ;;  %v1463_v61 = vadd.f32 %v15005_v14, %v1429_v58 }
 0x57a   : > { %v9588_v3 = vpop.eup %9587  ;;  %v4244_v62 = vmul.f32 %v15051_v52, %v4211_v57  ;;  %v972_v1 = vmul.f32 0.5, %v939_v60  ;;  %v1234_v43 = vmul.f32 0.5, %v1201_v30  ;;  %v1691_v33 = vmul.f32 %v15052_v24, %v12800_v6 }
 0x57b   : > { %v4014_v37 = vadd.f32 %v3982_v13, %v3752_v39  ;;  %v4473_v12 = vadd.f32 0.5, %v4441_v10  ;;  %v4703_v11 = vmul.f32 0.5, %v9588_v3  ;;  %9597 = vtanh.f32 %v710_v26 }
 0x57c   : > { %v1496_v41 = vmul.f32 0.5, %v1463_v61  ;;  %v1953_v54 = vmul.f32 %v15074_v44, %v12800_v6  ;;  %9599 = vtanh.f32 %v972_v1  ;;  %v1725_v10 = vadd.f32 %v14982_v5, %v1691_v33  ;;  %v15099_v33 = vld [vmem:[#allocation28_spill] sm:$0xff] }
 0x57d   : > { %v9590_v8 = vpop.eup %9589  ;;  %v4276_v0 = vadd.f32 %v4244_v62, %v4014_v37  ;;  %v4506_v35 = vmul.f32 %v15027_v51, %v4473_v12  ;;  %v4735_v57 = vadd.f32 0.5, %v4703_v11  ;;  %9601 = vtanh.f32 %v1234_v43  ;;  %v15098_v62 = vld [vmem:[#allocation26_spill] sm:$0xff] }
 0x57e   : > { %v9592_v56 = vpop.eup %9591  ;;  %v4965_v60 = vmul.f32 0.5, %v9590_v8  ;;  %v1987_v13 = vadd.f32 %v15075_v34, %v1953_v54  ;;  %9603 = vtanh.f32 %v1496_v41  ;;  %v1758_v61 = vmul.f32 0.5, %v1725_v10  ;;  %v15100_v54 = vld [vmem:[#allocation64_spill] sm:$0xff] }
 0x57f   : > { %v4538_v58 = vadd.f32 %v4506_v35, %v4276_v0  ;;  %v4768_v39 = vmul.f32 %v15029_v32, %v4735_v57  ;;  %v5227_v30 = vmul.f32 0.5, %v9592_v56  ;;  %v9594_v3 = vpop.eup %9593  ;;  %v2215_v11 = vmul.f32 %v15098_v62, %v12800_v6  ;;  %v15101_v57 = vld [vmem:[#allocation27_spill] sm:$0xff] }
 0x580   : > { %v4997_v26 = vadd.f32 0.5, %v4965_v60  ;;  %v2020_v37 = vmul.f32 0.5, %v1987_v13  ;;  %v5489_v43 = vmul.f32 0.5, %v9594_v3  ;;  %v2477_v44 = vmul.f32 %v15099_v33, %v12800_v6  ;;  %v15102_v56 = vld [vmem:[#allocation67_spill] sm:$0xff]  ;;  %v15103_v13 = vld [vmem:[#allocation29_spill] sm:$0xff] }
 0x581   : > { %v9596_v1 = vpop.eup %9595  ;;  %v4800_v12 = vadd.f32 %v4768_v39, %v4538_v58  ;;  %v5259_v8 = vadd.f32 0.5, %v5227_v30  ;;  %9605 = vtanh.f32 %v1758_v61  ;;  %v2249_v41 = vadd.f32 %v15101_v57, %v2215_v11  ;;  %v15104_v39 = vld [vmem:[#allocation30_spill] sm:$0xff] }
 0x582   : > { %v5030_v0 = vmul.f32 %v15100_v54, %v4997_v26  ;;  %v5751_v35 = vmul.f32 0.5, %v9596_v1  ;;  %v5521_v10 = vadd.f32 0.5, %v5489_v43  ;;  %9607 = vtanh.f32 %v2020_v37 }
 0x583   : > { %v5292_v60 = vmul.f32 %v15102_v56, %v5259_v8  ;;  %v2511_v34 = vadd.f32 %v15103_v13, %v2477_v44  ;;  %v2282_v58 = vmul.f32 0.5, %v2249_v41  ;;  %v2739_v30 = vmul.f32 %v15104_v39, %v12800_v6 }
 0x584   : > { %v5062_v32 = vadd.f32 %v5030_v0, %v4800_v12  ;;  %v5783_v62 = vadd.f32 0.5, %v5751_v35  ;;  %v5554_v3 = vmul.f32 %v15080_v40, %v5521_v10  ;;  %v3001_v26 = vmul.f32 %v15081_v49, %v12800_v6 }
 0x585   : > { %v2544_v33 = vmul.f32 0.5, %v2511_v34  ;;  %v3263_v61 = vmul.f32 %v15082_v48, %v12800_v6  ;;  %v9598_v11 = vpop.eup %9597  ;;  %9609 = vtanh.f32 %v2282_v58  ;;  %v2773_v44 = vadd.f32 %v15079_v45, %v2739_v30 }
 0x586   : > { %v5324_v1 = vadd.f32 %v5292_v60, %v5062_v32  ;;  %v5816_v37 = vmul.f32 %v15058_v29, %v5783_v62  ;;  %v9600_v12 = vpop.eup %9599  ;;  %v774_v8 = vmul.f32 0.5, %v9598_v11  ;;  %v3035_v43 = vadd.f32 %v15036_v53, %v3001_v26 }
 0x587   : > { %9611 = vtanh.f32 %v2544_v33  ;;  %v3297_v34 = vadd.f32 %v15059_v21, %v3263_v61  ;;  %v9602_v0 = vpop.eup %9601  ;;  %v1036_v41 = vmul.f32 0.5, %v9600_v12  ;;  %v2806_v10 = vmul.f32 0.5, %v2773_v44 }
 0x588   : > { %v5586_v35 = vadd.f32 %v5554_v3, %v5324_v1  ;;  %v3525_v40 = vmul.f32 %v15061_v2, %v12800_v6  ;;  %v9604_v32 = vpop.eup %9603  ;;  %v806_v60 = vadd.f32 0.5, %v774_v8  ;;  %v1298_v62 = vmul.f32 0.5, %v9602_v0  ;;  %v15105_v0 = vld [vmem:[#allocation50_spill] sm:$0xff] }
 0x589   : > { %v3068_v58 = vmul.f32 0.5, %v3035_v43  ;;  %v3330_v29 = vmul.f32 0.5, %v3297_v34  ;;  %v1068_v45 = vadd.f32 0.5, %v1036_v41  ;;  %v1560_v11 = vmul.f32 0.5, %v9604_v32 }
 0x58a   : > { %v5848_v30 = vadd.f32 %v5816_v37, %v5586_v35  ;;  %9613 = vtanh.f32 %v2806_v10  ;;  %v839_v33 = vmul.f32 %v15060_v27, %v806_v60  ;;  %v1330_v26 = vadd.f32 0.5, %v1298_v62 }
 0x58b   : > { %9615 = vtanh.f32 %v3068_v58  ;;  %v3559_v3 = vadd.f32 %v15015_v23, %v3525_v40  ;;  %v9606_v61 = vpop.eup %9605  ;;  %v1101_v44 = vmul.f32 %v15013_v42, %v1068_v45  ;;  %v1592_v12 = vadd.f32 0.5, %v1560_v11  ;;  %v15106_v45 = vld [vmem:[#allocation53_spill] sm:$0xff] }
 0x58c   : > { %v5882_v1 = vadd.f32 %v15083_v50, %v5848_v30  ;;  %9617 = vtanh.f32 %v3330_v29  ;;  %v9608_v8 = vpop.eup %9607  ;;  %v1363_v43 = vmul.f32 %v14991_v7, %v1330_v26  ;;  %v1822_v37 = vmul.f32 0.5, %v9606_v61 }
 0x58d   : > { %v3592_v34 = vmul.f32 0.5, %v3559_v3  ;;  %v3787_v35 = vmul.f32 %v15105_v0, %v12800_v6  ;;  %v1133_v10 = vadd.f32 %v1101_v44, %v839_v33  ;;  %v1625_v32 = vmul.f32 %v14968_v9, %v1592_v12  ;;  %v15107_v44 = vld [vmem:[#allocation54_spill] sm:$0xff] }
 0x58e   : > { %v5914_v41 = vmul.f32 0.5, %v5882_v1  ;;  %v2084_v40 = vmul.f32 0.5, %v9608_v8  ;;  %v1854_v60 = vadd.f32 0.5, %v1822_v37  ;;  %v4049_v29 = vmul.f32 %v15106_v45, %v12800_v6 }
 0x58f   : > { %9619 = vtanh.f32 %v3592_v34  ;;  %v3821_v62 = vadd.f32 %v14992_v38, %v3787_v35  ;;  %v9610_v58 = vpop.eup %9609  ;;  %v1395_v30 = vadd.f32 %v1363_v43, %v1133_v10  ;;  %v4311_v26 = vmul.f32 %v14971_v4, %v12800_v6 }
 0x590   : > { %9621 = vtanh.f32 %v5914_v41  ;;  %v2116_v11 = vadd.f32 0.5, %v2084_v40  ;;  %v1887_v33 = vmul.f32 %v14970_v55, %v1854_v60  ;;  %v2346_v61 = vmul.f32 0.5, %v9610_v58 }
 0x591   : > { %v9612_v3 = vpop.eup %9611  ;;  %v3854_v1 = vmul.f32 0.5, %v3821_v62  ;;  %v4083_v12 = vadd.f32 %v15107_v44, %v4049_v29  ;;  %v1657_v8 = vadd.f32 %v1625_v32, %v1395_v30  ;;  %v4345_v35 = vadd.f32 %v14972_v31, %v4311_v26 }
 0x592   : > { %v2149_v37 = vmul.f32 %v14949_v25, %v2116_v11  ;;  %v2608_v34 = vmul.f32 0.5, %v9612_v3  ;;  %v2378_v9 = vadd.f32 0.5, %v2346_v61  ;;  %v4573_v41 = vmul.f32 %v14973_v63, %v12800_v6 }
 0x593   : > { %9623 = vtanh.f32 %v3854_v1  ;;  %v4116_v43 = vmul.f32 0.5, %v4083_v12  ;;  %v1919_v40 = vadd.f32 %v1887_v33, %v1657_v8  ;;  %v4378_v60 = vmul.f32 0.5, %v4345_v35  ;;  %v15108_v8 = vld [vmem:[#allocation63_spill] sm:$0xff] }
 0x594   : > { %v9614_v10 = vpop.eup %9613  ;;  %v2640_v4 = vadd.f32 0.5, %v2608_v34  ;;  %v4835_v62 = vmul.f32 %v15039_v59, %v12800_v6  ;;  %v2411_v32 = vmul.f32 %v14996_v46, %v2378_v9  ;;  %v4607_v30 = vadd.f32 %v14994_v15, %v4573_v41  ;;  %v15109_v9 = vld [vmem:[#allocation65_spill] sm:$0xff] }
 0x595   : > { %v9616_v29 = vpop.eup %9615  ;;  %v2870_v58 = vmul.f32 0.5, %v9614_v10  ;;  %9625 = vtanh.f32 %v4116_v43  ;;  %v2181_v26 = vadd.f32 %v2149_v37, %v1919_v40  ;;  %v5097_v10 = vmul.f32 %v15109_v9, %v12800_v6  ;;  %v15110_v43 = vld [vmem:[#allocation68_spill] sm:$0xff]  ;;  %v15111_v37 = vld [vmem:[#allocation45_spill] sm:$0xff] }
 0x596   : > { %v9618_v11 = vpop.eup %9617  ;;  %v2673_v3 = vmul.f32 %v15063_v22, %v2640_v4  ;;  %v3132_v61 = vmul.f32 0.5, %v9616_v29  ;;  %9627 = vtanh.f32 %v4378_v60  ;;  %v4640_v12 = vmul.f32 0.5, %v4607_v30 }
 0x597   : > { %v2902_v1 = vadd.f32 0.5, %v2870_v58  ;;  %v3394_v33 = vmul.f32 0.5, %v9618_v11  ;;  %v4869_v34 = vadd.f32 %v15108_v8, %v4835_v62  ;;  %v2443_v35 = vadd.f32 %v2411_v32, %v2181_v26  ;;  %v15112_v62 = vld [vmem:[#allocation66_spill] sm:$0xff] }
 0x598   : > { %v3164_v59 = vadd.f32 0.5, %v3132_v61  ;;  %v5359_v41 = vmul.f32 %v15110_v43, %v12800_v6  ;;  %9629 = vtanh.f32 %v4640_v12  ;;  %v5131_v32 = vadd.f32 %v15112_v62, %v5097_v10  ;;  %v12883_v26 = vld [vmem:[%s10393_s0 + $0xc0] sm:$0xff] }
 0x599   : > { %v9620_v15 = vpop.eup %9619  ;;  %v2935_v40 = vmul.f32 %v15111_v37, %v2902_v1  ;;  %v3426_v4 = vadd.f32 0.5, %v3394_v33  ;;  %v4902_v60 = vmul.f32 0.5, %v4869_v34  ;;  %v2705_v58 = vadd.f32 %v2673_v3, %v2443_v35  ;;  %v15114_v35 = vld [vmem:[#allocation15_spill] sm:$0xff] }
 0x59a   : > { %v9622_v29 = vpop.eup %9621  ;;  %v3197_v30 = vmul.f32 %v14813_v28, %v3164_v59  ;;  %v3656_v11 = vmul.f32 0.5, %v9620_v15  ;;  %v5393_v43 = vadd.f32 %v15088_v17, %v5359_v41  ;;  %v5164_v33 = vmul.f32 0.5, %v5131_v32 }
 0x59b   : > { %v5978_v61 = vmul.f32 0.5, %v9622_v29  ;;  %v3459_v9 = vmul.f32 %v15091_v16, %v3426_v4  ;;  %9631 = vtanh.f32 %v4902_v60  ;;  %v2967_v8 = vadd.f32 %v2935_v40, %v2705_v58  ;;  %v15115_v60 = vld [vmem:[#allocation49_spill] sm:$0xff] }
 0x59c   : > { %v3688_v1 = vadd.f32 0.5, %v3656_v11  ;;  %v5621_v12 = vmul.f32 %v15043_v47, %v12800_v6  ;;  %v5426_v15 = vmul.f32 0.5, %v5393_v43  ;;  %v644_v59 = vmul.f32 %v15092_v19, %v12883_v26  ;;  %v15116_v6 = vld [vmem:[#allocation72_spill] sm:$0xff]  ;;  %v15118_v43 = vld [vmem:[#allocation17_spill] sm:$0xff] }
 0x59d   : > { %v9624_v3 = vpop.eup %9623  ;;  %v12889_v34 = vadd.f32 0.5, %v5978_v61  ;;  %v906_v10 = vmul.f32 %v15114_v35, %v12883_v26  ;;  %v3229_v4 = vadd.f32 %v3197_v30, %v2967_v8  ;;  %9633 = vtanh.f32 %v5164_v33  ;;  %v15117_v11 = vld [vmem:[#allocation16_spill] sm:$0xff]  ;;  %v15119_v8 = vld [vmem:[#allocation18_spill] sm:$0xff] }
 0x59e   : > { %v3721_v29 = vmul.f32 %v15115_v60, %v3688_v1  ;;  %v3918_v41 = vmul.f32 0.5, %v9624_v3  ;;  %9635 = vtanh.f32 %v5426_v15  ;;  %v5655_v58 = vadd.f32 %v15116_v6, %v5621_v12 }
 0x59f   : > { %15113 = vst [vmem:[#allocation96_spill] sm:$0xff] %v12889_v34  ;;  %v9626_v40 = vpop.eup %9625  ;;  %6064 = vadd.xlane.f32.xlu0 %v12889_v34  ;;  %v678_v32 = vadd.f32 %v15117_v11, %v644_v59  ;;  %v940_v61 = vadd.f32 %v15118_v43, %v906_v10  ;;  %v3491_v19 = vadd.f32 %v3459_v9, %v3229_v4 }
 0x5a0   : > { %v9628_v17 = vpop.eup %9627  ;;  %v3950_v16 = vadd.f32 0.5, %v3918_v41  ;;  %v4180_v47 = vmul.f32 0.5, %v9626_v40  ;;  %v1168_v30 = vmul.f32 %v15119_v8, %v12883_v26  ;;  %v5688_v3 = vmul.f32 0.5, %v5655_v58 }
 0x5a1   : > { %v4442_v1 = vmul.f32 0.5, %v9628_v17  ;;  %v711_v33 = vmul.f32 0.5, %v678_v32  ;;  %v973_v35 = vmul.f32 0.5, %v940_v61  ;;  %v3753_v60 = vadd.f32 %v3721_v29, %v3491_v19 }
 0x5a2   : > { %v3983_v15 = vmul.f32 %v15097_v20, %v3950_v16  ;;  %v4212_v34 = vadd.f32 0.5, %v4180_v47  ;;  %v1202_v12 = vadd.f32 %v15049_v18, %v1168_v30  ;;  %v9630_v59 = vpop.eup %9629  ;;  %9637 = vtanh.f32 %v5688_v3 }
 0x5a3   : > { %v4474_v11 = vadd.f32 0.5, %v4442_v1  ;;  %v1430_v9 = vmul.f32 %v15096_v36, %v12883_v26  ;;  %v1692_v10 = vmul.f32 %v15052_v24, %v12883_v26  ;;  %v4704_v41 = vmul.f32 0.5, %v9630_v59 }
 0x5a4   : > { %v4015_v4 = vadd.f32 %v3983_v15, %v3753_v60  ;;  %v4245_v17 = vmul.f32 %v15051_v52, %v4212_v34  ;;  %9639 = vtanh.f32 %v711_v33  ;;  %v1235_v47 = vmul.f32 0.5, %v1202_v12  ;;  %v15120_v60 = vld [vmem:[#allocation24_spill] sm:$0xff]  ;;  %v15121_v34 = vld [vmem:[#allocation26_spill] sm:$0xff] }
 0x5a5   : > { %v9632_v19 = vpop.eup %9631  ;;  %v4507_v16 = vmul.f32 %v15027_v51, %v4474_v11  ;;  %9641 = vtanh.f32 %v973_v35  ;;  %v1464_v29 = vadd.f32 %v15005_v14, %v1430_v9  ;;  %v4736_v58 = vadd.f32 0.5, %v4704_v41  ;;  %v15122_v11 = vld [vmem:[#allocation61_spill] sm:$0xff] }
 0x5a6   : > { %v4277_v40 = vadd.f32 %v4245_v17, %v4015_v4  ;;  %v4966_v32 = vmul.f32 0.5, %v9632_v19  ;;  %v1726_v61 = vadd.f32 %v14982_v5, %v1692_v10  ;;  %9643 = vtanh.f32 %v1235_v47  ;;  %v15123_v17 = vld [vmem:[#allocation25_spill] sm:$0xff] }
 0x5a7   : > { %v1497_v30 = vmul.f32 0.5, %v1464_v29  ;;  %v1954_v1 = vmul.f32 %v15120_v60, %v12883_v26  ;;  %v2216_v3 = vmul.f32 %v15121_v34, %v12883_v26  ;;  %v9634_v33 = vpop.eup %9633  ;;  %v4769_v35 = vmul.f32 %v15122_v11, %v4736_v58 }
 0x5a8   : > { %v4539_v15 = vadd.f32 %v4507_v16, %v4277_v40  ;;  %v4998_v12 = vadd.f32 0.5, %v4966_v32  ;;  %v1759_v59 = vmul.f32 0.5, %v1726_v61  ;;  %v9636_v9 = vpop.eup %9635  ;;  %v5228_v4 = vmul.f32 0.5, %v9634_v33  ;;  %v15124_v16 = vld [vmem:[#allocation28_spill] sm:$0xff] }
 0x5a9   : > { %9645 = vtanh.f32 %v1497_v30  ;;  %v1988_v41 = vadd.f32 %v15123_v17, %v1954_v1  ;;  %v2250_v10 = vadd.f32 %v15101_v57, %v2216_v3  ;;  %v5490_v29 = vmul.f32 0.5, %v9636_v9 }
 0x5aa   : > { %v4801_v19 = vadd.f32 %v4769_v35, %v4539_v15  ;;  %v5031_v47 = vmul.f32 %v15100_v54, %v4998_v12  ;;  %9647 = vtanh.f32 %v1759_v59  ;;  %v5260_v51 = vadd.f32 0.5, %v5228_v4  ;;  %v15125_v12 = vld [vmem:[#allocation70_spill] sm:$0xff]  ;;  %v15126_v4 = vld [vmem:[#allocation31_spill] sm:$0xff] }
 0x5ab   : > { %v2021_v34 = vmul.f32 0.5, %v1988_v41  ;;  %v2283_v60 = vmul.f32 0.5, %v2250_v10  ;;  %v2478_v40 = vmul.f32 %v15124_v16, %v12883_v26  ;;  %v5522_v32 = vadd.f32 0.5, %v5490_v29 }
 0x5ac   : > { %v5063_v58 = vadd.f32 %v5031_v47, %v4801_v19  ;;  %v2740_v61 = vmul.f32 %v15104_v39, %v12883_v26  ;;  %v3002_v30 = vmul.f32 %v15081_v49, %v12883_v26  ;;  %v9638_v1 = vpop.eup %9637  ;;  %v5293_v3 = vmul.f32 %v15102_v56, %v5260_v51 }
 0x5ad   : > { %9649 = vtanh.f32 %v2021_v34  ;;  %v2512_v33 = vadd.f32 %v15103_v13, %v2478_v40  ;;  %v3264_v15 = vmul.f32 %v15082_v48, %v12883_v26  ;;  %v5555_v59 = vmul.f32 %v15125_v12, %v5522_v32 }
 0x5ae   : > { %v9640_v35 = vpop.eup %9639  ;;  %v5752_v9 = vmul.f32 0.5, %v9638_v1  ;;  %9651 = vtanh.f32 %v2283_v60  ;;  %v2774_v41 = vadd.f32 %v15126_v4, %v2740_v61  ;;  %v5325_v19 = vadd.f32 %v5293_v3, %v5063_v58  ;;  %v15127_v1 = vld [vmem:[#allocation73_spill] sm:$0xff] }
 0x5af   : > { %v9642_v10 = vpop.eup %9641  ;;  %v775_v47 = vmul.f32 0.5, %v9640_v35  ;;  %v2545_v29 = vmul.f32 0.5, %v2512_v33  ;;  %v3036_v49 = vadd.f32 %v15036_v53, %v3002_v30  ;;  %v3298_v40 = vadd.f32 %v15059_v21, %v3264_v15 }
 0x5b0   : > { %v5784_v51 = vadd.f32 0.5, %v5752_v9  ;;  %v1037_v34 = vmul.f32 0.5, %v9642_v10  ;;  %v2807_v56 = vmul.f32 0.5, %v2774_v41  ;;  %v9644_v13 = vpop.eup %9643  ;;  %v5587_v48 = vadd.f32 %v5555_v59, %v5325_v19 }
 0x5b1   : > { %v807_v54 = vadd.f32 0.5, %v775_v47  ;;  %9653 = vtanh.f32 %v2545_v29  ;;  %v3069_v32 = vmul.f32 0.5, %v3036_v49  ;;  %v1299_v61 = vmul.f32 0.5, %v9644_v13 }
 0x5b2   : > { %v5817_v60 = vmul.f32 %v15127_v1, %v5784_v51  ;;  %v1069_v12 = vadd.f32 0.5, %v1037_v34  ;;  %9655 = vtanh.f32 %v2807_v56  ;;  %v3331_v30 = vmul.f32 0.5, %v3298_v40 }
 0x5b3   : > { %v9646_v58 = vpop.eup %9645  ;;  %v840_v3 = vmul.f32 %v15060_v27, %v807_v54  ;;  %9657 = vtanh.f32 %v3069_v32  ;;  %v3526_v33 = vmul.f32 %v15061_v2, %v12883_v26  ;;  %v1331_v9 = vadd.f32 0.5, %v1299_v61  ;;  %v15128_v61 = vld [vmem:[#allocation40_spill] sm:$0xff] }
 0x5b4   : > { %v9648_v35 = vpop.eup %9647  ;;  %v5849_v15 = vadd.f32 %v5817_v60, %v5587_v48  ;;  %v1102_v59 = vmul.f32 %v15013_v42, %v1069_v12  ;;  %v1561_v41 = vmul.f32 0.5, %v9646_v58  ;;  %9659 = vtanh.f32 %v3331_v30 }
 0x5b5   : > { %v1823_v49 = vmul.f32 0.5, %v9648_v35  ;;  %v3560_v10 = vadd.f32 %v15015_v23, %v3526_v33  ;;  %v3788_v56 = vmul.f32 %v15105_v0, %v12883_v26  ;;  %v1364_v19 = vmul.f32 %v14991_v7, %v1331_v9 }
 0x5b6   : > { %v5883_v54 = vadd.f32 %v15083_v50, %v5849_v15  ;;  %v1134_v13 = vadd.f32 %v1102_v59, %v840_v3  ;;  %v1593_v47 = vadd.f32 0.5, %v1561_v41  ;;  %v4050_v34 = vmul.f32 %v15106_v45, %v12883_v26 }
 0x5b7   : > { %v9650_v29 = vpop.eup %9649  ;;  %v1855_v51 = vadd.f32 0.5, %v1823_v49  ;;  %v3593_v48 = vmul.f32 0.5, %v3560_v10  ;;  %v3822_v12 = vadd.f32 %v14992_v38, %v3788_v56  ;;  %v15129_v10 = vld [vmem:[#allocation56_spill] sm:$0xff] }
 0x5b8   : > { %v9652_v40 = vpop.eup %9651  ;;  %v5915_v32 = vmul.f32 0.5, %v5883_v54  ;;  %v1396_v60 = vadd.f32 %v1364_v19, %v1134_v13  ;;  %v1626_v58 = vmul.f32 %v15128_v61, %v1593_v47  ;;  %v2085_v30 = vmul.f32 0.5, %v9650_v29 }
 0x5b9   : > { %v1888_v33 = vmul.f32 %v14970_v55, %v1855_v51  ;;  %v2347_v3 = vmul.f32 0.5, %v9652_v40  ;;  %9661 = vtanh.f32 %v3593_v48  ;;  %v3855_v35 = vmul.f32 0.5, %v3822_v12 }
 0x5ba   : > { %9663 = vtanh.f32 %v5915_v32  ;;  %v1658_v15 = vadd.f32 %v1626_v58, %v1396_v60  ;;  %v2117_v59 = vadd.f32 0.5, %v2085_v30  ;;  %v4084_v9 = vadd.f32 %v15107_v44, %v4050_v34  ;;  %v15130_v32 = vld [vmem:[#allocation60_spill] sm:$0xff] }
 0x5bb   : > { %v9654_v41 = vpop.eup %9653  ;;  %v2379_v49 = vadd.f32 0.5, %v2347_v3  ;;  %9665 = vtanh.f32 %v3855_v35  ;;  %v4312_v56 = vmul.f32 %v15129_v10, %v12883_v26  ;;  %v4574_v54 = vmul.f32 %v14973_v63, %v12883_v26 }
 0x5bc   : > { %v9656_v13 = vpop.eup %9655  ;;  %v1920_v19 = vadd.f32 %v1888_v33, %v1658_v15  ;;  %v2150_v47 = vmul.f32 %v14949_v25, %v2117_v59  ;;  %v2609_v29 = vmul.f32 0.5, %v9654_v41  ;;  %v4117_v51 = vmul.f32 0.5, %v4084_v9  ;;  %v15131_v59 = vld [vmem:[#allocation62_spill] sm:$0xff] }
 0x5bd   : > { %v9658_v48 = vpop.eup %9657  ;;  %v2412_v12 = vmul.f32 %v14996_v46, %v2379_v49  ;;  %v2871_v40 = vmul.f32 0.5, %v9656_v13  ;;  %v4346_v34 = vadd.f32 %v14972_v31, %v4312_v56  ;;  %v4608_v60 = vadd.f32 %v15130_v32, %v4574_v54  ;;  %v15132_v54 = vld [vmem:[#allocation63_spill] sm:$0xff] }
 0x5be   : > { %v2182_v58 = vadd.f32 %v2150_v47, %v1920_v19  ;;  %v2641_v30 = vadd.f32 0.5, %v2609_v29  ;;  %v3133_v3 = vmul.f32 0.5, %v9658_v48  ;;  %9667 = vtanh.f32 %v4117_v51  ;;  %v9660_v35 = vpop.eup %9659  ;;  %v15133_v47 = vld [vmem:[#allocation65_spill] sm:$0xff]  ;;  %v12966_v51 = vld [vmem:[%s10393_s0 + $0xc8] sm:$0xff] }
 0x5bf   : > { %v2903_v63 = vadd.f32 0.5, %v2871_v40  ;;  %v4379_v33 = vmul.f32 0.5, %v4346_v34  ;;  %v4641_v15 = vmul.f32 0.5, %v4608_v60  ;;  %v4836_v9 = vmul.f32 %v15131_v59, %v12883_v26 }
 0x5c0   : > { %v2444_v41 = vadd.f32 %v2412_v12, %v2182_v58  ;;  %v2674_v49 = vmul.f32 %v15063_v22, %v2641_v30  ;;  %v3165_v13 = vadd.f32 0.5, %v3133_v3  ;;  %v3395_v46 = vmul.f32 0.5, %v9660_v35  ;;  %v15134_v30 = vld [vmem:[#allocation68_spill] sm:$0xff]  ;;  %v15135_v3 = vld [vmem:[#allocation71_spill] sm:$0xff] }
 0x5c1   : > { %v2936_v56 = vmul.f32 %v15111_v37, %v2903_v63  ;;  %9669 = vtanh.f32 %v4379_v33  ;;  %v4870_v19 = vadd.f32 %v15132_v54, %v4836_v9  ;;  %v5098_v29 = vmul.f32 %v15133_v47, %v12883_v26  ;;  %v15136_v37 = vld [vmem:[#allocation47_spill] sm:$0xff] }
 0x5c2   : > { %v2706_v48 = vadd.f32 %v2674_v49, %v2444_v41  ;;  %v3198_v40 = vmul.f32 %v14813_v28, %v3165_v13  ;;  %v3427_v34 = vadd.f32 0.5, %v3395_v46  ;;  %9671 = vtanh.f32 %v4641_v15  ;;  %v15137_v41 = vld [vmem:[#allocation14_spill] sm:$0xff] }
 0x5c3   : > { %v9662_v12 = vpop.eup %9661  ;;  %v4903_v60 = vmul.f32 0.5, %v4870_v19  ;;  %v5132_v58 = vadd.f32 %v15112_v62, %v5098_v29  ;;  %v5360_v63 = vmul.f32 %v15134_v30, %v12883_v26  ;;  %v5622_v35 = vmul.f32 %v15135_v3, %v12883_v26  ;;  %v15138_v19 = vld [vmem:[#allocation69_spill] sm:$0xff] }
 0x5c4   : > { %v9664_v33 = vpop.eup %9663  ;;  %v2968_v9 = vadd.f32 %v2936_v56, %v2706_v48  ;;  %v3460_v47 = vmul.f32 %v15136_v37, %v3427_v34  ;;  %v3657_v54 = vmul.f32 0.5, %v9662_v12  ;;  %v645_v49 = vmul.f32 %v15137_v41, %v12966_v51  ;;  %v15140_v48 = vld [vmem:[#allocation16_spill] sm:$0xff]  ;;  %v15141_v41 = vld [vmem:[#allocation49_spill] sm:$0xff] }
 0x5c5   : > { %v9666_v46 = vpop.eup %9665  ;;  %v5979_v15 = vmul.f32 0.5, %v9664_v33  ;;  %9673 = vtanh.f32 %v4903_v60  ;;  %v5165_v13 = vmul.f32 0.5, %v5132_v58  ;;  %v5394_v29 = vadd.f32 %v15138_v19, %v5360_v63 }
 0x5c6   : > { %v3230_v28 = vadd.f32 %v3198_v40, %v2968_v9  ;;  %v3689_v62 = vadd.f32 0.5, %v3657_v54  ;;  %v3919_v30 = vmul.f32 0.5, %v9666_v46  ;;  %v5656_v22 = vadd.f32 %v15116_v6, %v5622_v35  ;;  %v15142_v40 = vld [vmem:[#allocation15_spill] sm:$0xff] }
 0x5c7   : > { %v12979_v26 = vadd.f32 0.5, %v5979_v15  ;;  %9675 = vtanh.f32 %v5165_v13  ;;  %v5427_v56 = vmul.f32 0.5, %v5394_v29  ;;  %v679_v34 = vadd.f32 %v15140_v48, %v645_v49 }
 0x5c8   : > { %v9668_v12 = vpop.eup %9667  ;;  %v3492_v37 = vadd.f32 %v3460_v47, %v3230_v28  ;;  %v3722_v3 = vmul.f32 %v15141_v41, %v3689_v62  ;;  %v3951_v33 = vadd.f32 0.5, %v3919_v30  ;;  %v5689_v60 = vmul.f32 0.5, %v5656_v22 }
 0x5c9   : > { %15139 = vst [vmem:[#allocation69_spill] sm:$0xff] %v12979_v26  ;;  %6066 = vadd.xlane.f32.xlu1 %v12979_v26  ;;  %v4181_v58 = vmul.f32 0.5, %v9668_v12  ;;  %9677 = vtanh.f32 %v5427_v56  ;;  %v712_v54 = vmul.f32 0.5, %v679_v34  ;;  %v907_v63 = vmul.f32 %v15142_v40, %v12966_v51 }
 0x5ca   : > { %v3754_v35 = vadd.f32 %v3722_v3, %v3492_v37  ;;  %v3984_v9 = vmul.f32 %v15097_v20, %v3951_v33  ;;  %9679 = vtanh.f32 %v5689_v60  ;;  %v1169_v49 = vmul.f32 %v15119_v8, %v12966_v51 }
 0x5cb   : > { %v9670_v28 = vpop.eup %9669  ;;  %v4213_v47 = vadd.f32 0.5, %v4181_v58  ;;  %9681 = vtanh.f32 %v712_v54  ;;  %v941_v22 = vadd.f32 %v15118_v43, %v907_v63  ;;  %v1431_v62 = vmul.f32 %v15096_v36, %v12966_v51  ;;  %v15143_v58 = vld [vmem:[#allocation24_spill] sm:$0xff] }
 0x5cc   : > { %v9672_v30 = vpop.eup %9671  ;;  %v4016_v46 = vadd.f32 %v3984_v9, %v3754_v35  ;;  %v4443_v15 = vmul.f32 0.5, %v9670_v28  ;;  %v1203_v13 = vadd.f32 %v15049_v18, %v1169_v49  ;;  %v1693_v37 = vmul.f32 %v15052_v24, %v12966_v51  ;;  %v15144_v28 = vld [vmem:[#allocation58_spill] sm:$0xff] }
 0x5cd   : > { %v4246_v3 = vmul.f32 %v15051_v52, %v4213_v47  ;;  %v4705_v29 = vmul.f32 0.5, %v9672_v30  ;;  %v974_v56 = vmul.f32 0.5, %v941_v22  ;;  %v1465_v34 = vadd.f32 %v15005_v14, %v1431_v62 }
 0x5ce   : > { %v4475_v12 = vadd.f32 0.5, %v4443_v15  ;;  %v1236_v33 = vmul.f32 0.5, %v1203_v13  ;;  %v1727_v60 = vadd.f32 %v14982_v5, %v1693_v37  ;;  %v1955_v54 = vmul.f32 %v15143_v58, %v12966_v51  ;;  %v15145_v15 = vld [vmem:[#allocation26_spill] sm:$0xff] }
 0x5cf   : > { %v9674_v63 = vpop.eup %9673  ;;  %v4278_v35 = vadd.f32 %v4246_v3, %v4016_v46  ;;  %v4737_v9 = vadd.f32 0.5, %v4705_v29  ;;  %9683 = vtanh.f32 %v974_v56  ;;  %v1498_v49 = vmul.f32 0.5, %v1465_v34 }
 0x5d0   : > { %v4508_v26 = vmul.f32 %v15144_v28, %v4475_v12  ;;  %v4967_v24 = vmul.f32 0.5, %v9674_v63  ;;  %9685 = vtanh.f32 %v1236_v33  ;;  %v1760_v47 = vmul.f32 0.5, %v1727_v60 }
 0x5d1   : > { %v9676_v22 = vpop.eup %9675  ;;  %v4770_v62 = vmul.f32 %v15122_v11, %v4737_v9  ;;  %9687 = vtanh.f32 %v1498_v49  ;;  %v1989_v30 = vadd.f32 %v15123_v17, %v1955_v54  ;;  %v2217_v13 = vmul.f32 %v15145_v15, %v12966_v51  ;;  %v15146_v54 = vld [vmem:[#allocation64_spill] sm:$0xff] }
 0x5d2   : > { %v4540_v37 = vadd.f32 %v4508_v26, %v4278_v35  ;;  %v4999_v58 = vadd.f32 0.5, %v4967_v24  ;;  %v5229_v46 = vmul.f32 0.5, %v9676_v22  ;;  %9689 = vtanh.f32 %v1760_v47  ;;  %v15147_v47 = vld [vmem:[#allocation29_spill] sm:$0xff] }
 0x5d3   : > { %v9678_v3 = vpop.eup %9677  ;;  %v2022_v29 = vmul.f32 0.5, %v1989_v30  ;;  %v2251_v56 = vadd.f32 %v15101_v57, %v2217_v13  ;;  %v2479_v34 = vmul.f32 %v15124_v16, %v12966_v51  ;;  %v2741_v12 = vmul.f32 %v15104_v39, %v12966_v51  ;;  %v15148_v13 = vld [vmem:[#allocation67_spill] sm:$0xff] }
 0x5d4   : > { %v9680_v33 = vpop.eup %9679  ;;  %v4802_v60 = vadd.f32 %v4770_v62, %v4540_v37  ;;  %v5032_v63 = vmul.f32 %v15146_v54, %v4999_v58  ;;  %v5261_v9 = vadd.f32 0.5, %v5229_v46  ;;  %v5491_v49 = vmul.f32 0.5, %v9678_v3  ;;  %v15149_v58 = vld [vmem:[#allocation70_spill] sm:$0xff] }
 0x5d5   : > { %v9682_v26 = vpop.eup %9681  ;;  %v5753_v24 = vmul.f32 0.5, %v9680_v33  ;;  %9691 = vtanh.f32 %v2022_v29  ;;  %v2284_v35 = vmul.f32 0.5, %v2251_v56  ;;  %v2513_v22 = vadd.f32 %v15147_v47, %v2479_v34  ;;  %v15150_v33 = vld [vmem:[#allocation32_spill] sm:$0xff] }
 0x5d6   : > { %v5064_v30 = vadd.f32 %v5032_v63, %v4802_v60  ;;  %v5294_v57 = vmul.f32 %v15148_v13, %v5261_v9  ;;  %v5523_v17 = vadd.f32 0.5, %v5491_v49  ;;  %v776_v16 = vmul.f32 0.5, %v9682_v26  ;;  %v15151_v63 = vld [vmem:[#allocation34_spill] sm:$0xff] }
 0x5d7   : > { %v5785_v15 = vadd.f32 0.5, %v5753_v24  ;;  %9693 = vtanh.f32 %v2284_v35  ;;  %v2546_v39 = vmul.f32 0.5, %v2513_v22  ;;  %v2775_v62 = vadd.f32 %v15126_v4, %v2741_v12 }
 0x5d8   : > { %v5326_v37 = vadd.f32 %v5294_v57, %v5064_v30  ;;  %v5556_v46 = vmul.f32 %v15149_v58, %v5523_v17  ;;  %v808_v3 = vadd.f32 0.5, %v776_v16  ;;  %v3003_v29 = vmul.f32 %v15150_v33, %v12966_v51 }
 0x5d9   : > { %v9684_v56 = vpop.eup %9683  ;;  %v5818_v34 = vmul.f32 %v15127_v1, %v5785_v15  ;;  %9695 = vtanh.f32 %v2546_v39  ;;  %v2808_v60 = vmul.f32 0.5, %v2775_v62  ;;  %v3265_v9 = vmul.f32 %v15151_v63, %v12966_v51 }
 0x5da   : > { %v9686_v49 = vpop.eup %9685  ;;  %v5588_v26 = vadd.f32 %v5556_v46, %v5326_v37  ;;  %v841_v24 = vmul.f32 %v15060_v27, %v808_v3  ;;  %v1038_v12 = vmul.f32 0.5, %v9684_v56  ;;  %v3037_v57 = vadd.f32 %v15036_v53, %v3003_v29 }
 0x5db   : > { %v9688_v17 = vpop.eup %9687  ;;  %v1300_v16 = vmul.f32 0.5, %v9686_v49  ;;  %9697 = vtanh.f32 %v2808_v60  ;;  %v3299_v35 = vadd.f32 %v15059_v21, %v3265_v9  ;;  %v3527_v15 = vmul.f32 %v15061_v2, %v12966_v51 }
 0x5dc   : > { %v9690_v39 = vpop.eup %9689  ;;  %v5850_v22 = vadd.f32 %v5818_v34, %v5588_v26  ;;  %v1070_v30 = vadd.f32 0.5, %v1038_v12  ;;  %v1562_v62 = vmul.f32 0.5, %v9688_v17  ;;  %v3070_v63 = vmul.f32 0.5, %v3037_v57 }
 0x5dd   : > { %v1332_v1 = vadd.f32 0.5, %v1300_v16  ;;  %v1824_v37 = vmul.f32 0.5, %v9690_v39  ;;  %v3332_v46 = vmul.f32 0.5, %v3299_v35  ;;  %v3561_v3 = vadd.f32 %v15015_v23, %v3527_v15 }
 0x5de   : > { %v5884_v29 = vadd.f32 %v15083_v50, %v5850_v22  ;;  %v1103_v56 = vmul.f32 %v15013_v42, %v1070_v30  ;;  %v1594_v60 = vadd.f32 0.5, %v1562_v62  ;;  %9699 = vtanh.f32 %v3070_v63 }
 0x5df   : > { %v9692_v9 = vpop.eup %9691  ;;  %v1365_v49 = vmul.f32 %v14991_v7, %v1332_v1  ;;  %v1856_v2 = vadd.f32 0.5, %v1824_v37  ;;  %9701 = vtanh.f32 %v3332_v46  ;;  %v3594_v34 = vmul.f32 0.5, %v3561_v3 }
 0x5e0   : > { %v5916_v26 = vmul.f32 0.5, %v5884_v29  ;;  %v1135_v12 = vadd.f32 %v1103_v56, %v841_v24  ;;  %v1627_v57 = vmul.f32 %v15128_v61, %v1594_v60  ;;  %v2086_v17 = vmul.f32 0.5, %v9692_v9 }
 0x5e1   : > { %v9694_v16 = vpop.eup %9693  ;;  %v1889_v35 = vmul.f32 %v14970_v55, %v1856_v2  ;;  %9703 = vtanh.f32 %v3594_v34  ;;  %v3789_v15 = vmul.f32 %v15105_v0, %v12966_v51  ;;  %v4051_v63 = vmul.f32 %v15106_v45, %v12966_v51  ;;  %v15152_v2 = vld [vmem:[#allocation59_spill] sm:$0xff] }
 0x5e2   : > { %9705 = vtanh.f32 %v5916_v26  ;;  %v1397_v1 = vadd.f32 %v1365_v49, %v1135_v12  ;;  %v2118_v39 = vadd.f32 0.5, %v2086_v17  ;;  %v2348_v22 = vmul.f32 0.5, %v9694_v16  ;;  %v15153_v16 = vld [vmem:[#allocation43_spill] sm:$0xff] }
 0x5e3   : > { %v9696_v30 = vpop.eup %9695  ;;  %v3823_v24 = vadd.f32 %v14992_v38, %v3789_v15  ;;  %v4085_v62 = vadd.f32 %v15107_v44, %v4051_v63  ;;  %v4313_v37 = vmul.f32 %v15129_v10, %v12966_v51  ;;  %v4575_v46 = vmul.f32 %v15152_v2, %v12966_v51 }
 0x5e4   : > { %v1659_v3 = vadd.f32 %v1627_v57, %v1397_v1  ;;  %v2151_v29 = vmul.f32 %v14949_v25, %v2118_v39  ;;  %v2380_v56 = vadd.f32 0.5, %v2348_v22  ;;  %v2610_v60 = vmul.f32 0.5, %v9696_v30  ;;  %v15154_v22 = vld [vmem:[#allocation44_spill] sm:$0xff] }
 0x5e5   : > { %v9698_v9 = vpop.eup %9697  ;;  %v3856_v49 = vmul.f32 0.5, %v3823_v24  ;;  %v4118_v34 = vmul.f32 0.5, %v4085_v62  ;;  %v4347_v26 = vadd.f32 %v14972_v31, %v4313_v37  ;;  %v4609_v12 = vadd.f32 %v15130_v32, %v4575_v46 }
 0x5e6   : > { %v1921_v17 = vadd.f32 %v1889_v35, %v1659_v3  ;;  %v2413_v15 = vmul.f32 %v15153_v16, %v2380_v56  ;;  %v2642_v63 = vadd.f32 0.5, %v2610_v60  ;;  %v2872_v10 = vmul.f32 0.5, %v9698_v9  ;;  %v15155_v35 = vld [vmem:[#allocation63_spill] sm:$0xff]  ;;  %v15156_v3 = vld [vmem:[#allocation65_spill] sm:$0xff] }
 0x5e7   : > { %9707 = vtanh.f32 %v3856_v49  ;;  %v4380_v55 = vmul.f32 0.5, %v4347_v26  ;;  %v4642_v2 = vmul.f32 0.5, %v4609_v12  ;;  %v4837_v57 = vmul.f32 %v15131_v59, %v12966_v51  ;;  %v15157_v9 = vld [vmem:[#allocation45_spill] sm:$0xff]  ;;  %v15160_v59 = vld [vmem:[#allocation71_spill] sm:$0xff] }
 0x5e8   : > { %v9700_v1 = vpop.eup %9699  ;;  %v2183_v39 = vadd.f32 %v2151_v29, %v1921_v17  ;;  %v2675_v30 = vmul.f32 %v15154_v22, %v2642_v63  ;;  %v2904_v24 = vadd.f32 0.5, %v2872_v10  ;;  %9709 = vtanh.f32 %v4118_v34  ;;  %v15158_v63 = vld [vmem:[#allocation66_spill] sm:$0xff]  ;;  %v15159_v34 = vld [vmem:[#allocation68_spill] sm:$0xff] }
 0x5e9   : > { %v9702_v62 = vpop.eup %9701  ;;  %v3134_v37 = vmul.f32 0.5, %v9700_v1  ;;  %9711 = vtanh.f32 %v4380_v55  ;;  %v4871_v46 = vadd.f32 %v15155_v35, %v4837_v57  ;;  %v5099_v56 = vmul.f32 %v15156_v3, %v12966_v51 }
 0x5ea   : > { %v2445_v60 = vadd.f32 %v2413_v15, %v2183_v39  ;;  %v2937_v49 = vmul.f32 %v15157_v9, %v2904_v24  ;;  %v3396_v26 = vmul.f32 0.5, %v9702_v62  ;;  %9713 = vtanh.f32 %v4642_v2  ;;  %v13058_v15 = vld [vmem:[%s10393_s0 + $0xd0] sm:$0xff]  ;;  %v15161_v24 = vld [vmem:[#allocation46_spill] sm:$0xff] }
 0x5eb   : > { %v9704_v12 = vpop.eup %9703  ;;  %v3166_v29 = vadd.f32 0.5, %v3134_v37  ;;  %v4904_v17 = vmul.f32 0.5, %v4871_v46  ;;  %v5133_v10 = vadd.f32 %v15158_v63, %v5099_v56  ;;  %v5361_v1 = vmul.f32 %v15159_v34, %v12966_v51  ;;  %v15162_v46 = vld [vmem:[#allocation47_spill] sm:$0xff] }
 0x5ec   : > { %v9706_v55 = vpop.eup %9705  ;;  %v2707_v22 = vadd.f32 %v2675_v30, %v2445_v60  ;;  %v3428_v57 = vadd.f32 0.5, %v3396_v26  ;;  %v3658_v35 = vmul.f32 0.5, %v9704_v12  ;;  %v5623_v3 = vmul.f32 %v15160_v59, %v12966_v51  ;;  %v15164_v51 = vld [vmem:[#allocation14_spill] sm:$0xff] }
 0x5ed   : > { %v5980_v39 = vmul.f32 0.5, %v9706_v55  ;;  %v3199_v2 = vmul.f32 %v15161_v24, %v3166_v29  ;;  %9715 = vtanh.f32 %v4904_v17  ;;  %v5166_v62 = vmul.f32 0.5, %v5133_v10 }
 0x5ee   : > { %v2969_v37 = vadd.f32 %v2937_v49, %v2707_v22  ;;  %v3461_v56 = vmul.f32 %v15162_v46, %v3428_v57  ;;  %v3690_v63 = vadd.f32 0.5, %v3658_v35  ;;  %v5395_v9 = vadd.f32 %v15138_v19, %v5361_v1 }
 0x5ef   : > { %v13063_v34 = vadd.f32 0.5, %v5980_v39  ;;  %9717 = vtanh.f32 %v5166_v62  ;;  %v5657_v30 = vadd.f32 %v15116_v6, %v5623_v3  ;;  %v646_v60 = vmul.f32 %v15164_v51, %v13058_v15 }
 0x5f0   : > { %v3231_v26 = vadd.f32 %v3199_v2, %v2969_v37  ;;  %v3723_v12 = vmul.f32 %v15141_v41, %v3690_v63  ;;  %v5428_v29 = vmul.f32 0.5, %v5395_v9  ;;  %v908_v22 = vmul.f32 %v15142_v40, %v13058_v15 }
 0x5f1   : > { %15163 = vst [vmem:[#allocation64_spill] sm:$0xff] %v13063_v34  ;;  %v9708_v49 = vpop.eup %9707  ;;  %6068 = vadd.xlane.f32.xlu0 %v13063_v34  ;;  %v5690_v35 = vmul.f32 0.5, %v5657_v30  ;;  %v680_v17 = vadd.f32 %v15140_v48, %v646_v60  ;;  %v1170_v10 = vmul.f32 %v15119_v8, %v13058_v15  ;;  %v1432_v3 = vmul.f32 %v15096_v36, %v13058_v15 }
 0x5f2   : > { %v9710_v1 = vpop.eup %9709  ;;  %v3493_v55 = vadd.f32 %v3461_v56, %v3231_v26  ;;  %v3920_v57 = vmul.f32 0.5, %v9708_v49  ;;  %9719 = vtanh.f32 %v5428_v29  ;;  %v942_v9 = vadd.f32 %v15118_v43, %v908_v22 }
 0x5f3   : > { %v9712_v63 = vpop.eup %9711  ;;  %v4182_v39 = vmul.f32 0.5, %v9710_v1  ;;  %9721 = vtanh.f32 %v5690_v35  ;;  %v713_v2 = vmul.f32 0.5, %v680_v17  ;;  %v1204_v62 = vadd.f32 %v15049_v18, %v1170_v10 }
 0x5f4   : > { %v9714_v37 = vpop.eup %9713  ;;  %v3755_v30 = vadd.f32 %v3723_v12, %v3493_v55  ;;  %v3952_v60 = vadd.f32 0.5, %v3920_v57  ;;  %v4444_v34 = vmul.f32 0.5, %v9712_v63  ;;  %v975_v41 = vmul.f32 0.5, %v942_v9  ;;  %v15165_v12 = vld [vmem:[#allocation22_spill] sm:$0xff] }
 0x5f5   : > { %v4214_v8 = vadd.f32 0.5, %v4182_v39  ;;  %v4706_v40 = vmul.f32 0.5, %v9714_v37  ;;  %9723 = vtanh.f32 %v713_v2  ;;  %v1237_v36 = vmul.f32 0.5, %v1204_v62  ;;  %v15168_v37 = vld [vmem:[#allocation25_spill] sm:$0xff] }
 0x5f6   : > { %v3985_v56 = vmul.f32 %v15097_v20, %v3952_v60  ;;  %v4476_v26 = vadd.f32 0.5, %v4444_v34  ;;  %9725 = vtanh.f32 %v975_v41  ;;  %v1466_v29 = vadd.f32 %v15005_v14, %v1432_v3  ;;  %v15166_v34 = vld [vmem:[#allocation24_spill] sm:$0xff]  ;;  %v15169_v60 = vld [vmem:[#allocation27_spill] sm:$0xff] }
 0x5f7   : > { %v9716_v22 = vpop.eup %9715  ;;  %v4247_v49 = vmul.f32 %v15051_v52, %v4214_v8  ;;  %v4738_v35 = vadd.f32 0.5, %v4706_v40  ;;  %9727 = vtanh.f32 %v1237_v36  ;;  %v1694_v17 = vmul.f32 %v15165_v12, %v13058_v15  ;;  %v15167_v8 = vld [vmem:[#allocation26_spill] sm:$0xff] }
 0x5f8   : > { %v4017_v10 = vadd.f32 %v3985_v56, %v3755_v30  ;;  %v4509_v1 = vmul.f32 %v15144_v28, %v4476_v26  ;;  %v4968_v55 = vmul.f32 0.5, %v9716_v22  ;;  %v1499_v57 = vmul.f32 0.5, %v1466_v29  ;;  %v15170_v26 = vld [vmem:[#allocation28_spill] sm:$0xff]  ;;  %v15171_v28 = vld [vmem:[#allocation30_spill] sm:$0xff] }
 0x5f9   : > { %v9718_v9 = vpop.eup %9717  ;;  %v4771_v63 = vmul.f32 %v15122_v11, %v4738_v35  ;;  %v1728_v41 = vadd.f32 %v14982_v5, %v1694_v17  ;;  %v1956_v3 = vmul.f32 %v15166_v34, %v13058_v15  ;;  %v2218_v40 = vmul.f32 %v15167_v8, %v13058_v15 }
 0x5fa   : > { %v4279_v36 = vadd.f32 %v4247_v49, %v4017_v10  ;;  %v5000_v39 = vadd.f32 0.5, %v4968_v55  ;;  %v5230_v2 = vmul.f32 0.5, %v9718_v9  ;;  %9729 = vtanh.f32 %v1499_v57 }
 0x5fb   : > { %v1761_v62 = vmul.f32 0.5, %v1728_v41  ;;  %v1990_v30 = vadd.f32 %v15168_v37, %v1956_v3  ;;  %v2252_v56 = vadd.f32 %v15169_v60, %v2218_v40  ;;  %v2480_v29 = vmul.f32 %v15170_v26, %v13058_v15 }
 0x5fc   : > { %v9720_v22 = vpop.eup %9719  ;;  %v4541_v35 = vadd.f32 %v4509_v1, %v4279_v36  ;;  %v5033_v17 = vmul.f32 %v15146_v54, %v5000_v39  ;;  %v5262_v11 = vadd.f32 0.5, %v5230_v2  ;;  %v2742_v8 = vmul.f32 %v15171_v28, %v13058_v15 }
 0x5fd   : > { %v9722_v49 = vpop.eup %9721  ;;  %v5492_v10 = vmul.f32 0.5, %v9720_v22  ;;  %9731 = vtanh.f32 %v1761_v62  ;;  %v2023_v55 = vmul.f32 0.5, %v1990_v30  ;;  %v2285_v57 = vmul.f32 0.5, %v2252_v56 }
 0x5fe   : > { %v4803_v9 = vadd.f32 %v4771_v63, %v4541_v35  ;;  %v5295_v41 = vmul.f32 %v15148_v13, %v5262_v11  ;;  %v5754_v3 = vmul.f32 0.5, %v9722_v49  ;;  %v2514_v40 = vadd.f32 %v15147_v47, %v2480_v29  ;;  %v15172_v49 = vld [vmem:[#allocation73_spill] sm:$0xff] }
 0x5ff   : > { %v9724_v26 = vpop.eup %9723  ;;  %v5524_v60 = vadd.f32 0.5, %v5492_v10  ;;  %9733 = vtanh.f32 %v2023_v55  ;;  %v2776_v1 = vadd.f32 %v15126_v4, %v2742_v8  ;;  %v3004_v36 = vmul.f32 %v15150_v33, %v13058_v15 }
 0x600   : > { %v9726_v39 = vpop.eup %9725  ;;  %v5065_v2 = vadd.f32 %v5033_v17, %v4803_v9  ;;  %v5786_v22 = vadd.f32 0.5, %v5754_v3  ;;  %v777_v62 = vmul.f32 0.5, %v9724_v26  ;;  %9735 = vtanh.f32 %v2285_v57  ;;  %v15173_v17 = vld [vmem:[#allocation34_spill] sm:$0xff] }
 0x601   : > { %v9728_v30 = vpop.eup %9727  ;;  %v5557_v63 = vmul.f32 %v15149_v58, %v5524_v60  ;;  %v1039_v11 = vmul.f32 0.5, %v9726_v39  ;;  %v2547_v56 = vmul.f32 0.5, %v2514_v40  ;;  %v2809_v35 = vmul.f32 0.5, %v2776_v1 }
 0x602   : > { %v5327_v29 = vadd.f32 %v5295_v41, %v5065_v2  ;;  %v5819_v10 = vmul.f32 %v15172_v49, %v5786_v22  ;;  %v809_v55 = vadd.f32 0.5, %v777_v62  ;;  %v1301_v28 = vmul.f32 0.5, %v9728_v30 }
 0x603   : > { %v1071_v8 = vadd.f32 0.5, %v1039_v11  ;;  %9737 = vtanh.f32 %v2547_v56  ;;  %v3038_v4 = vadd.f32 %v15036_v53, %v3004_v36  ;;  %v3266_v9 = vmul.f32 %v15173_v17, %v13058_v15  ;;  %v15174_v36 = vld [vmem:[#allocation36_spill] sm:$0xff] }
 0x604   : > { %v9730_v26 = vpop.eup %9729  ;;  %v5589_v57 = vadd.f32 %v5557_v63, %v5327_v29  ;;  %v842_v3 = vmul.f32 %v15060_v27, %v809_v55  ;;  %v1333_v60 = vadd.f32 0.5, %v1301_v28  ;;  %9739 = vtanh.f32 %v2809_v35 }
 0x605   : > { %v1104_v40 = vmul.f32 %v15013_v42, %v1071_v8  ;;  %v1563_v41 = vmul.f32 0.5, %v9730_v26  ;;  %v3071_v1 = vmul.f32 0.5, %v3038_v4  ;;  %v3300_v39 = vadd.f32 %v15059_v21, %v3266_v9 }
 0x606   : > { %v5851_v2 = vadd.f32 %v5819_v10, %v5589_v57  ;;  %v1366_v22 = vmul.f32 %v14991_v7, %v1333_v60  ;;  %v3528_v62 = vmul.f32 %v15174_v36, %v13058_v15  ;;  %v3790_v30 = vmul.f32 %v15105_v0, %v13058_v15 }
 0x607   : > { %v9732_v63 = vpop.eup %9731  ;;  %v1136_v11 = vadd.f32 %v1104_v40, %v842_v3  ;;  %v1595_v56 = vadd.f32 0.5, %v1563_v41  ;;  %9741 = vtanh.f32 %v3071_v1  ;;  %v3333_v28 = vmul.f32 0.5, %v3300_v39 }
 0x608   : > { %v5885_v35 = vadd.f32 %v15083_v50, %v5851_v2  ;;  %v1825_v29 = vmul.f32 0.5, %v9732_v63  ;;  %v3562_v4 = vadd.f32 %v15015_v23, %v3528_v62  ;;  %v3824_v10 = vadd.f32 %v14992_v38, %v3790_v30  ;;  %v15175_v30 = vld [vmem:[#allocation41_spill] sm:$0xff] }
 0x609   : > { %v9734_v55 = vpop.eup %9733  ;;  %v1398_v8 = vadd.f32 %v1366_v22, %v1136_v11  ;;  %v1628_v9 = vmul.f32 %v15128_v61, %v1595_v56  ;;  %9743 = vtanh.f32 %v3333_v28  ;;  %v4052_v26 = vmul.f32 %v15106_v45, %v13058_v15  ;;  %v15176_v11 = vld [vmem:[#allocation56_spill] sm:$0xff] }
 0x60a   : > { %v9736_v57 = vpop.eup %9735  ;;  %v5917_v3 = vmul.f32 0.5, %v5885_v35  ;;  %v1857_v60 = vadd.f32 0.5, %v1825_v29  ;;  %v2087_v40 = vmul.f32 0.5, %v9734_v55  ;;  %v3595_v41 = vmul.f32 0.5, %v3562_v4  ;;  %v15177_v35 = vld [vmem:[#allocation59_spill] sm:$0xff] }
 0x60b   : > { %v1660_v1 = vadd.f32 %v1628_v9, %v1398_v8  ;;  %v2349_v39 = vmul.f32 0.5, %v9736_v57  ;;  %v3857_v2 = vmul.f32 0.5, %v3824_v10  ;;  %v4086_v62 = vadd.f32 %v15107_v44, %v4052_v26 }
 0x60c   : > { %9745 = vtanh.f32 %v5917_v3  ;;  %v1890_v63 = vmul.f32 %v15175_v30, %v1857_v60  ;;  %v2119_v22 = vadd.f32 0.5, %v2087_v40  ;;  %v4314_v56 = vmul.f32 %v15176_v11, %v13058_v15 }
 0x60d   : > { %v9738_v28 = vpop.eup %9737  ;;  %v2381_v38 = vadd.f32 0.5, %v2349_v39  ;;  %9747 = vtanh.f32 %v3595_v41  ;;  %v4119_v45 = vmul.f32 0.5, %v4086_v62  ;;  %v4576_v29 = vmul.f32 %v15177_v35, %v13058_v15  ;;  %v15178_v41 = vld [vmem:[#allocation62_spill] sm:$0xff] }
 0x60e   : > { %v9740_v4 = vpop.eup %9739  ;;  %v1922_v55 = vadd.f32 %v1890_v63, %v1660_v1  ;;  %v2152_v10 = vmul.f32 %v14949_v25, %v2119_v22  ;;  %v2611_v8 = vmul.f32 0.5, %v9738_v28  ;;  %9749 = vtanh.f32 %v3857_v2  ;;  %v15179_v22 = vld [vmem:[#allocation65_spill] sm:$0xff]  ;;  %v15184_v25 = vld [vmem:[#allocation66_spill] sm:$0xff] }
 0x60f   : > { %v2414_v9 = vmul.f32 %v15153_v16, %v2381_v38  ;;  %v2873_v26 = vmul.f32 0.5, %v9740_v4  ;;  %9751 = vtanh.f32 %v4119_v45  ;;  %v4348_v57 = vadd.f32 %v14972_v31, %v4314_v56  ;;  %v15180_v38 = vld [vmem:[#allocation68_spill] sm:$0xff] }
 0x610   : > { %v2184_v3 = vadd.f32 %v2152_v10, %v1922_v55  ;;  %v2643_v60 = vadd.f32 0.5, %v2611_v8  ;;  %v4610_v40 = vadd.f32 %v15130_v32, %v4576_v29  ;;  %v4838_v39 = vmul.f32 %v15178_v41, %v13058_v15  ;;  %v15181_v4 = vld [vmem:[#allocation44_spill] sm:$0xff]  ;;  %v15182_v29 = vld [vmem:[#allocation45_spill] sm:$0xff]  ;;  %v15183_v32 = vld [vmem:[#allocation63_spill] sm:$0xff] }
 0x611   : > { %v9742_v62 = vpop.eup %9741  ;;  %v2905_v1 = vadd.f32 0.5, %v2873_v26  ;;  %v4381_v63 = vmul.f32 0.5, %v4348_v57  ;;  %v5100_v2 = vmul.f32 %v15179_v22, %v13058_v15  ;;  %v5362_v28 = vmul.f32 %v15180_v38, %v13058_v15  ;;  %v13143_v57 = vld [vmem:[%s10393_s0 + $0xd8] sm:$0xff] }
 0x612   : > { %v2446_v45 = vadd.f32 %v2414_v9, %v2184_v3  ;;  %v2676_v56 = vmul.f32 %v15181_v4, %v2643_v60  ;;  %v3135_v55 = vmul.f32 0.5, %v9742_v62  ;;  %v4643_v10 = vmul.f32 0.5, %v4610_v40 }
 0x613   : > { %v9744_v8 = vpop.eup %9743  ;;  %v2938_v16 = vmul.f32 %v15182_v29, %v2905_v1  ;;  %9753 = vtanh.f32 %v4381_v63  ;;  %v4872_v41 = vadd.f32 %v15183_v32, %v4838_v39  ;;  %v5134_v26 = vadd.f32 %v15184_v25, %v5100_v2 }
 0x614   : > { %v2708_v35 = vadd.f32 %v2676_v56, %v2446_v45  ;;  %v3167_v22 = vadd.f32 0.5, %v3135_v55  ;;  %v3397_v31 = vmul.f32 0.5, %v9744_v8  ;;  %9755 = vtanh.f32 %v4643_v10 }
 0x615   : > { %v4905_v38 = vmul.f32 0.5, %v4872_v41  ;;  %v5167_v9 = vmul.f32 0.5, %v5134_v26  ;;  %v5396_v3 = vadd.f32 %v15138_v19, %v5362_v28  ;;  %v5624_v60 = vmul.f32 %v15160_v59, %v13058_v15 }
 0x616   : > { %v9746_v40 = vpop.eup %9745  ;;  %v2970_v62 = vadd.f32 %v2938_v16, %v2708_v35  ;;  %v3200_v1 = vmul.f32 %v15161_v24, %v3167_v22  ;;  %v3429_v39 = vadd.f32 0.5, %v3397_v31  ;;  %v647_v63 = vmul.f32 %v15164_v51, %v13143_v57 }
 0x617   : > { %v9748_v2 = vpop.eup %9747  ;;  %v5981_v45 = vmul.f32 0.5, %v9746_v40  ;;  %9757 = vtanh.f32 %v4905_v38  ;;  %v5429_v56 = vmul.f32 0.5, %v5396_v3  ;;  %v5658_v41 = vadd.f32 %v15116_v6, %v5624_v60  ;;  %v15186_v60 = vld [vmem:[#allocation15_spill] sm:$0xff] }
 0x618   : > { %v9750_v55 = vpop.eup %9749  ;;  %v3232_v10 = vadd.f32 %v3200_v1, %v2970_v62  ;;  %v3462_v28 = vmul.f32 %v15162_v46, %v3429_v39  ;;  %v3659_v8 = vmul.f32 0.5, %v9748_v2  ;;  %9759 = vtanh.f32 %v5167_v9  ;;  %v15187_v9 = vld [vmem:[#allocation18_spill] sm:$0xff]  ;;  %v15188_v1 = vld [vmem:[#allocation49_spill] sm:$0xff] }
 0x619   : > { %v9752_v15 = vpop.eup %9751  ;;  %v13153_v16 = vadd.f32 0.5, %v5981_v45  ;;  %v3921_v35 = vmul.f32 0.5, %v9750_v55  ;;  %9761 = vtanh.f32 %v5429_v56  ;;  %v5691_v31 = vmul.f32 0.5, %v5658_v41  ;;  %v15189_v56 = vld [vmem:[#allocation20_spill] sm:$0xff] }
 0x61a   : > { %v3494_v22 = vadd.f32 %v3462_v28, %v3232_v10  ;;  %v3691_v26 = vadd.f32 0.5, %v3659_v8  ;;  %v4183_v51 = vmul.f32 0.5, %v9752_v15  ;;  %v681_v38 = vadd.f32 %v15140_v48, %v647_v63 }
 0x61b   : > { %15185 = vst [vmem:[#allocation29_spill] sm:$0xff] %v13153_v16  ;;  %6070 = vadd.xlane.f32.xlu1 %v13153_v16  ;;  %v3953_v3 = vadd.f32 0.5, %v3921_v35  ;;  %9763 = vtanh.f32 %v5691_v31  ;;  %v909_v40 = vmul.f32 %v15186_v60, %v13143_v57  ;;  %v1171_v62 = vmul.f32 %v15187_v9, %v13143_v57 }
 0x61c   : > { %v3724_v39 = vmul.f32 %v15188_v1, %v3691_v26  ;;  %v4215_v2 = vadd.f32 0.5, %v4183_v51  ;;  %v714_v45 = vmul.f32 0.5, %v681_v38  ;;  %v1433_v41 = vmul.f32 %v15189_v56, %v13143_v57 }
 0x61d   : > { %v9754_v55 = vpop.eup %9753  ;;  %v3986_v63 = vmul.f32 %v15097_v20, %v3953_v3  ;;  %v943_v10 = vadd.f32 %v15118_v43, %v909_v40  ;;  %v1205_v28 = vadd.f32 %v15049_v18, %v1171_v62  ;;  %v1695_v8 = vmul.f32 %v15165_v12, %v13143_v57 }
 0x61e   : > { %v9756_v15 = vpop.eup %9755  ;;  %v3756_v35 = vadd.f32 %v3724_v39, %v3494_v22  ;;  %v4248_v31 = vmul.f32 %v15051_v52, %v4215_v2  ;;  %v4445_v26 = vmul.f32 0.5, %v9754_v55  ;;  %9765 = vtanh.f32 %v714_v45  ;;  %v15190_v39 = vld [vmem:[#allocation26_spill] sm:$0xff] }
 0x61f   : > { %v4707_v51 = vmul.f32 0.5, %v9756_v15  ;;  %v976_v38 = vmul.f32 0.5, %v943_v10  ;;  %v1238_v16 = vmul.f32 0.5, %v1205_v28  ;;  %v1467_v56 = vadd.f32 %v15005_v14, %v1433_v41  ;;  %v15191_v10 = vld [vmem:[#allocation58_spill] sm:$0xff] }
 0x620   : > { %v4018_v9 = vadd.f32 %v3986_v63, %v3756_v35  ;;  %v4477_v3 = vadd.f32 0.5, %v4445_v26  ;;  %v1729_v40 = vadd.f32 %v14982_v5, %v1695_v8  ;;  %v1957_v62 = vmul.f32 %v15166_v34, %v13143_v57  ;;  %v15192_v63 = vld [vmem:[#allocation61_spill] sm:$0xff] }
 0x621   : > { %v9758_v20 = vpop.eup %9757  ;;  %v4739_v12 = vadd.f32 0.5, %v4707_v51  ;;  %9767 = vtanh.f32 %v976_v38  ;;  %v1500_v22 = vmul.f32 0.5, %v1467_v56  ;;  %v2219_v2 = vmul.f32 %v15190_v39, %v13143_v57  ;;  %v15193_v39 = vld [vmem:[#allocation27_spill] sm:$0xff] }
 0x622   : > { %v9760_v45 = vpop.eup %9759  ;;  %v4280_v55 = vadd.f32 %v4248_v31, %v4018_v9  ;;  %v4510_v28 = vmul.f32 %v15191_v10, %v4477_v3  ;;  %v4969_v15 = vmul.f32 0.5, %v9758_v20  ;;  %9769 = vtanh.f32 %v1238_v16  ;;  %v15194_v31 = vld [vmem:[#allocation28_spill] sm:$0xff] }
 0x623   : > { %v9762_v41 = vpop.eup %9761  ;;  %v4772_v35 = vmul.f32 %v15192_v63, %v4739_v12  ;;  %v5231_v8 = vmul.f32 0.5, %v9760_v45  ;;  %9771 = vtanh.f32 %v1500_v22  ;;  %v1762_v26 = vmul.f32 0.5, %v1729_v40 }
 0x624   : > { %v4542_v5 = vadd.f32 %v4510_v28, %v4280_v55  ;;  %v5001_v14 = vadd.f32 0.5, %v4969_v15  ;;  %v5493_v51 = vmul.f32 0.5, %v9762_v41  ;;  %v1991_v56 = vadd.f32 %v15168_v37, %v1957_v62 }
 0x625   : > { %v9764_v38 = vpop.eup %9763  ;;  %v5263_v34 = vadd.f32 0.5, %v5231_v8  ;;  %9773 = vtanh.f32 %v1762_v26  ;;  %v2253_v9 = vadd.f32 %v15193_v39, %v2219_v2  ;;  %v2481_v20 = vmul.f32 %v15194_v31, %v13143_v57  ;;  %v15195_v2 = vld [vmem:[#allocation30_spill] sm:$0xff] }
 0x626   : > { %v4804_v16 = vadd.f32 %v4772_v35, %v4542_v5  ;;  %v5034_v3 = vmul.f32 %v15146_v54, %v5001_v14  ;;  %v5525_v12 = vadd.f32 0.5, %v5493_v51  ;;  %v5755_v45 = vmul.f32 0.5, %v9764_v38  ;;  %v15196_v51 = vld [vmem:[#allocation31_spill] sm:$0xff] }
 0x627   : > { %v5296_v40 = vmul.f32 %v15148_v13, %v5263_v34  ;;  %v2024_v22 = vmul.f32 0.5, %v1991_v56  ;;  %v2286_v55 = vmul.f32 0.5, %v2253_v9  ;;  %v2515_v28 = vadd.f32 %v15147_v47, %v2481_v20 }
 0x628   : > { %v9766_v62 = vpop.eup %9765  ;;  %v5066_v15 = vadd.f32 %v5034_v3, %v4804_v16  ;;  %v5558_v41 = vmul.f32 %v15149_v58, %v5525_v12  ;;  %v5787_v8 = vadd.f32 0.5, %v5755_v45  ;;  %v2743_v26 = vmul.f32 %v15195_v2, %v13143_v57 }
 0x629   : > { %v778_v31 = vmul.f32 0.5, %v9766_v62  ;;  %9775 = vtanh.f32 %v2024_v22  ;;  %v2548_v5 = vmul.f32 0.5, %v2515_v28  ;;  %v3005_v14 = vmul.f32 %v15150_v33, %v13143_v57 }
 0x62a   : > { %v5328_v35 = vadd.f32 %v5296_v40, %v5066_v15  ;;  %v5820_v34 = vmul.f32 %v15172_v49, %v5787_v8  ;;  %9777 = vtanh.f32 %v2286_v55  ;;  %v2777_v56 = vadd.f32 %v15196_v51, %v2743_v26 }
 0x62b   : > { %v9768_v38 = vpop.eup %9767  ;;  %v810_v9 = vadd.f32 0.5, %v778_v31  ;;  %9779 = vtanh.f32 %v2548_v5  ;;  %v3039_v20 = vadd.f32 %v15036_v53, %v3005_v14  ;;  %v3267_v16 = vmul.f32 %v15173_v17, %v13143_v57 }
 0x62c   : > { %v9770_v3 = vpop.eup %9769  ;;  %v5590_v12 = vadd.f32 %v5558_v41, %v5328_v35  ;;  %v1040_v45 = vmul.f32 0.5, %v9768_v38  ;;  %v2810_v22 = vmul.f32 0.5, %v2777_v56  ;;  %v3529_v40 = vmul.f32 %v15174_v36, %v13143_v57 }
 0x62d   : > { %v9772_v28 = vpop.eup %9771  ;;  %v843_v55 = vmul.f32 %v15060_v27, %v810_v9  ;;  %v1302_v62 = vmul.f32 0.5, %v9770_v3  ;;  %v3072_v15 = vmul.f32 0.5, %v3039_v20  ;;  %v3301_v31 = vadd.f32 %v15059_v21, %v3267_v16 }
 0x62e   : > { %v5852_v8 = vadd.f32 %v5820_v34, %v5590_v12  ;;  %v1072_v26 = vadd.f32 0.5, %v1040_v45  ;;  %v1564_v5 = vmul.f32 0.5, %v9772_v28  ;;  %9781 = vtanh.f32 %v2810_v22 }
 0x62f   : > { %v9774_v14 = vpop.eup %9773  ;;  %v1334_v53 = vadd.f32 0.5, %v1302_v62  ;;  %9783 = vtanh.f32 %v3072_v15  ;;  %v3334_v41 = vmul.f32 0.5, %v3301_v31  ;;  %v3563_v35 = vadd.f32 %v15015_v23, %v3529_v40  ;;  %v15197_v40 = vld [vmem:[#allocation51_spill] sm:$0xff]  ;;  %v15198_v15 = vld [vmem:[#allocation53_spill] sm:$0xff] }
 0x630   : > { %v5886_v56 = vadd.f32 %v15083_v50, %v5852_v8  ;;  %v1105_v38 = vmul.f32 %v15013_v42, %v1072_v26  ;;  %v1596_v36 = vadd.f32 0.5, %v1564_v5  ;;  %v1826_v9 = vmul.f32 0.5, %v9774_v14 }
 0x631   : > { %v1367_v20 = vmul.f32 %v14991_v7, %v1334_v53  ;;  %9785 = vtanh.f32 %v3334_v41  ;;  %v3596_v16 = vmul.f32 0.5, %v3563_v35  ;;  %v3791_v34 = vmul.f32 %v15105_v0, %v13143_v57 }
 0x632   : > { %v5918_v3 = vmul.f32 0.5, %v5886_v56  ;;  %v1137_v12 = vadd.f32 %v1105_v38, %v843_v55  ;;  %v1629_v45 = vmul.f32 %v15128_v61, %v1596_v36  ;;  %v1858_v22 = vadd.f32 0.5, %v1826_v9  ;;  %v15199_v56 = vld [vmem:[#allocation57_spill] sm:$0xff]  ;;  %v15200_v61 = vld [vmem:[#allocation59_spill] sm:$0xff] }
 0x633   : > { %v9776_v28 = vpop.eup %9775  ;;  %9787 = vtanh.f32 %v3596_v16  ;;  %v3825_v62 = vadd.f32 %v15197_v40, %v3791_v34  ;;  %v4053_v31 = vmul.f32 %v15198_v15, %v13143_v57  ;;  %v4315_v53 = vmul.f32 %v15176_v11, %v13143_v57 }
 0x634   : > { %v9778_v8 = vpop.eup %9777  ;;  %9789 = vtanh.f32 %v5918_v3  ;;  %v1399_v26 = vadd.f32 %v1367_v20, %v1137_v12  ;;  %v1891_v5 = vmul.f32 %v15175_v30, %v1858_v22  ;;  %v2088_v14 = vmul.f32 0.5, %v9776_v28  ;;  %v15201_v28 = vld [vmem:[#allocation42_spill] sm:$0xff] }
 0x635   : > { %v9780_v55 = vpop.eup %9779  ;;  %v2350_v41 = vmul.f32 0.5, %v9778_v8  ;;  %v3858_v36 = vmul.f32 0.5, %v3825_v62  ;;  %v4087_v35 = vadd.f32 %v15107_v44, %v4053_v31  ;;  %v4349_v38 = vadd.f32 %v15199_v56, %v4315_v53  ;;  %v15202_v62 = vld [vmem:[#allocation60_spill] sm:$0xff]  ;;  %v15203_v44 = vld [vmem:[#allocation43_spill] sm:$0xff] }
 0x636   : > { %v1661_v9 = vadd.f32 %v1629_v45, %v1399_v26  ;;  %v2120_v16 = vadd.f32 0.5, %v2088_v14  ;;  %v2612_v34 = vmul.f32 0.5, %v9780_v55  ;;  %v4577_v40 = vmul.f32 %v15200_v61, %v13143_v57  ;;  %v15204_v26 = vld [vmem:[#allocation62_spill] sm:$0xff] }
 0x637   : > { %v2382_v11 = vadd.f32 0.5, %v2350_v41  ;;  %9791 = vtanh.f32 %v3858_v36  ;;  %v4120_v3 = vmul.f32 0.5, %v4087_v35  ;;  %v4382_v20 = vmul.f32 0.5, %v4349_v38 }
 0x638   : > { %v9782_v12 = vpop.eup %9781  ;;  %v1923_v22 = vadd.f32 %v1891_v5, %v1661_v9  ;;  %v2153_v30 = vmul.f32 %v15201_v28, %v2120_v16  ;;  %v2644_v8 = vadd.f32 0.5, %v2612_v34  ;;  %v4611_v23 = vadd.f32 %v15202_v62, %v4577_v40  ;;  %v15205_v40 = vld [vmem:[#allocation65_spill] sm:$0xff] }
 0x639   : > { %v9784_v31 = vpop.eup %9783  ;;  %v2415_v53 = vmul.f32 %v15203_v44, %v2382_v11  ;;  %v2874_v45 = vmul.f32 0.5, %v9782_v12  ;;  %9793 = vtanh.f32 %v4120_v3  ;;  %v4839_v14 = vmul.f32 %v15204_v26, %v13143_v57  ;;  %v15206_v12 = vld [vmem:[#allocation68_spill] sm:$0xff] }
 0x63a   : > { %v2185_v55 = vadd.f32 %v2153_v30, %v1923_v22  ;;  %v2677_v41 = vmul.f32 %v15181_v4, %v2644_v8  ;;  %v3136_v36 = vmul.f32 0.5, %v9784_v31  ;;  %9795 = vtanh.f32 %v4382_v20  ;;  %v13231_v4 = vld [vmem:[%s10393_s0 + $0xe0] sm:$0xff] }
 0x63b   : > { %v9786_v35 = vpop.eup %9785  ;;  %v2906_v5 = vadd.f32 0.5, %v2874_v45  ;;  %v4644_v38 = vmul.f32 0.5, %v4611_v23  ;;  %v4873_v9 = vadd.f32 %v15183_v32, %v4839_v14  ;;  %v5101_v16 = vmul.f32 %v15205_v40, %v13143_v57 }
 0x63c   : > { %v2447_v11 = vadd.f32 %v2415_v53, %v2185_v55  ;;  %v3168_v34 = vadd.f32 0.5, %v3136_v36  ;;  %v3398_v3 = vmul.f32 0.5, %v9786_v35  ;;  %v5363_v26 = vmul.f32 %v15206_v12, %v13143_v57 }
 0x63d   : > { %v9788_v30 = vpop.eup %9787  ;;  %v2939_v22 = vmul.f32 %v15182_v29, %v2906_v5  ;;  %9797 = vtanh.f32 %v4644_v38  ;;  %v4906_v20 = vmul.f32 0.5, %v4873_v9  ;;  %v5135_v8 = vadd.f32 %v15184_v25, %v5101_v16 }
 0x63e   : > { %v9790_v23 = vpop.eup %9789  ;;  %v2709_v31 = vadd.f32 %v2677_v41, %v2447_v11  ;;  %v3201_v45 = vmul.f32 %v15161_v24, %v3168_v34  ;;  %v3430_v14 = vadd.f32 0.5, %v3398_v3  ;;  %v3660_v32 = vmul.f32 0.5, %v9788_v30  ;;  %v15208_v34 = vld [vmem:[#allocation14_spill] sm:$0xff] }
 0x63f   : > { %v5982_v53 = vmul.f32 0.5, %v9790_v23  ;;  %9799 = vtanh.f32 %v4906_v20  ;;  %v5168_v55 = vmul.f32 0.5, %v5135_v8  ;;  %v5397_v36 = vadd.f32 %v15138_v19, %v5363_v26  ;;  %v15209_v23 = vld [vmem:[#allocation18_spill] sm:$0xff] }
 0x640   : > { %v2971_v35 = vadd.f32 %v2939_v22, %v2709_v31  ;;  %v3463_v5 = vmul.f32 %v15162_v46, %v3430_v14  ;;  %v3692_v38 = vadd.f32 0.5, %v3660_v32  ;;  %v5625_v9 = vmul.f32 %v15160_v59, %v13143_v57 }
 0x641   : > { %v9792_v16 = vpop.eup %9791  ;;  %v13237_v41 = vadd.f32 0.5, %v5982_v53  ;;  %9801 = vtanh.f32 %v5168_v55  ;;  %v5430_v11 = vmul.f32 0.5, %v5397_v36  ;;  %v648_v3 = vmul.f32 %v15208_v34, %v13231_v4 }
 0x642   : > { %v3233_v30 = vadd.f32 %v3201_v45, %v2971_v35  ;;  %v3725_v20 = vmul.f32 %v15188_v1, %v3692_v38  ;;  %v3922_v8 = vmul.f32 0.5, %v9792_v16  ;;  %v5659_v26 = vadd.f32 %v15116_v6, %v5625_v9 }
 0x643   : > { %15207 = vst [vmem:[#allocation67_spill] sm:$0xff] %v13237_v41  ;;  %v9794_v22 = vpop.eup %9793  ;;  %6072 = vadd.xlane.f32.xlu0 %v13237_v41  ;;  %9803 = vtanh.f32 %v5430_v11  ;;  %v682_v32 = vadd.f32 %v15140_v48, %v648_v3  ;;  %v910_v57 = vmul.f32 %v15186_v60, %v13231_v4  ;;  %v1172_v31 = vmul.f32 %v15209_v23, %v13231_v4  ;;  %v15210_v41 = vld [vmem:[#allocation52_spill] sm:$0xff] }
 0x644   : > { %v9796_v14 = vpop.eup %9795  ;;  %v3495_v53 = vadd.f32 %v3463_v5, %v3233_v30  ;;  %v3954_v45 = vadd.f32 0.5, %v3922_v8  ;;  %v4184_v55 = vmul.f32 0.5, %v9794_v22  ;;  %v5692_v36 = vmul.f32 0.5, %v5659_v26  ;;  %v15211_v26 = vld [vmem:[#allocation20_spill] sm:$0xff] }
 0x645   : > { %v4446_v35 = vmul.f32 0.5, %v9796_v14  ;;  %v715_v38 = vmul.f32 0.5, %v682_v32  ;;  %v944_v9 = vadd.f32 %v15118_v43, %v910_v57  ;;  %v1206_v16 = vadd.f32 %v15049_v18, %v1172_v31  ;;  %v15213_v14 = vld [vmem:[#allocation24_spill] sm:$0xff] }
 0x646   : > { %v3757_v11 = vadd.f32 %v3725_v20, %v3495_v53  ;;  %v3987_v3 = vmul.f32 %v15210_v41, %v3954_v45  ;;  %v4216_v48 = vadd.f32 0.5, %v4184_v55  ;;  %9805 = vtanh.f32 %v5692_v36  ;;  %v15212_v20 = vld [vmem:[#allocation22_spill] sm:$0xff] }
 0x647   : > { %v9798_v1 = vpop.eup %9797  ;;  %v4478_v60 = vadd.f32 0.5, %v4446_v35  ;;  %9807 = vtanh.f32 %v715_v38  ;;  %v977_v23 = vmul.f32 0.5, %v944_v9  ;;  %v1239_v34 = vmul.f32 0.5, %v1206_v16  ;;  %v15215_v38 = vld [vmem:[#allocation23_spill] sm:$0xff] }
 0x648   : > { %v4019_v5 = vadd.f32 %v3987_v3, %v3757_v11  ;;  %v4249_v30 = vmul.f32 %v15051_v52, %v4216_v48  ;;  %v4708_v8 = vmul.f32 0.5, %v9798_v1  ;;  %v1434_v22 = vmul.f32 %v15211_v26, %v13231_v4  ;;  %v15214_v48 = vld [vmem:[#allocation21_spill] sm:$0xff] }
 0x649   : > { %v9800_v32 = vpop.eup %9799  ;;  %v4511_v57 = vmul.f32 %v15191_v10, %v4478_v60  ;;  %9809 = vtanh.f32 %v977_v23  ;;  %v1696_v31 = vmul.f32 %v15212_v20, %v13231_v4  ;;  %v1958_v53 = vmul.f32 %v15213_v14, %v13231_v4  ;;  %v15216_v60 = vld [vmem:[#allocation26_spill] sm:$0xff] }
 0x64a   : > { %v4281_v45 = vadd.f32 %v4249_v30, %v4019_v5  ;;  %v4740_v55 = vadd.f32 0.5, %v4708_v8  ;;  %v4970_v36 = vmul.f32 0.5, %v9800_v32  ;;  %9811 = vtanh.f32 %v1239_v34 }
 0x64b   : > { %v9802_v35 = vpop.eup %9801  ;;  %v1468_v1 = vadd.f32 %v15214_v48, %v1434_v22  ;;  %v1730_v9 = vadd.f32 %v15215_v38, %v1696_v31  ;;  %v1992_v16 = vadd.f32 %v15168_v37, %v1958_v53  ;;  %v2220_v23 = vmul.f32 %v15216_v60, %v13231_v4  ;;  %v15217_v60 = vld [vmem:[#allocation28_spill] sm:$0xff] }
 0x64c   : > { %v4543_v11 = vadd.f32 %v4511_v57, %v4281_v45  ;;  %v4773_v3 = vmul.f32 %v15192_v63, %v4740_v55  ;;  %v5002_v10 = vadd.f32 0.5, %v4970_v36  ;;  %v5232_v20 = vmul.f32 0.5, %v9802_v35 }
 0x64d   : > { %v9804_v14 = vpop.eup %9803  ;;  %v1501_v5 = vmul.f32 0.5, %v1468_v1  ;;  %v1763_v30 = vmul.f32 0.5, %v1730_v9  ;;  %v2025_v8 = vmul.f32 0.5, %v1992_v16  ;;  %v2254_v34 = vadd.f32 %v15193_v39, %v2220_v23 }
 0x64e   : > { %v4805_v32 = vadd.f32 %v4773_v3, %v4543_v11  ;;  %v5035_v22 = vmul.f32 %v15146_v54, %v5002_v10  ;;  %v5264_v31 = vadd.f32 0.5, %v5232_v20  ;;  %v5494_v38 = vmul.f32 0.5, %v9804_v14 }
 0x64f   : > { %9813 = vtanh.f32 %v1501_v5  ;;  %v2287_v53 = vmul.f32 0.5, %v2254_v34  ;;  %v2482_v57 = vmul.f32 %v15217_v60, %v13231_v4  ;;  %v2744_v45 = vmul.f32 %v15195_v2, %v13231_v4 }
 0x650   : > { %v9806_v55 = vpop.eup %9805  ;;  %v5067_v36 = vadd.f32 %v5035_v22, %v4805_v32  ;;  %v5297_v35 = vmul.f32 %v15148_v13, %v5264_v31  ;;  %v5526_v1 = vadd.f32 0.5, %v5494_v38  ;;  %9815 = vtanh.f32 %v1763_v30 }
 0x651   : > { %v9808_v9 = vpop.eup %9807  ;;  %v5756_v16 = vmul.f32 0.5, %v9806_v55  ;;  %9817 = vtanh.f32 %v2025_v8  ;;  %v2516_v10 = vadd.f32 %v15147_v47, %v2482_v57  ;;  %v2778_v20 = vadd.f32 %v15196_v51, %v2744_v45 }
 0x652   : > { %v5329_v14 = vadd.f32 %v5297_v35, %v5067_v36  ;;  %v5559_v23 = vmul.f32 %v15149_v58, %v5526_v1  ;;  %v779_v11 = vmul.f32 0.5, %v9808_v9  ;;  %9819 = vtanh.f32 %v2287_v53  ;;  %v15218_v36 = vld [vmem:[#allocation33_spill] sm:$0xff] }
 0x653   : > { %v9810_v3 = vpop.eup %9809  ;;  %v5788_v5 = vadd.f32 0.5, %v5756_v16  ;;  %v2549_v34 = vmul.f32 0.5, %v2516_v10  ;;  %v2811_v32 = vmul.f32 0.5, %v2778_v20  ;;  %v3006_v38 = vmul.f32 %v15150_v33, %v13231_v4 }
 0x654   : > { %v9812_v30 = vpop.eup %9811  ;;  %v5591_v22 = vadd.f32 %v5559_v23, %v5329_v14  ;;  %v811_v31 = vadd.f32 0.5, %v779_v11  ;;  %v1041_v8 = vmul.f32 0.5, %v9810_v3  ;;  %v3268_v57 = vmul.f32 %v15173_v17, %v13231_v4  ;;  %v15219_v14 = vld [vmem:[#allocation36_spill] sm:$0xff] }
 0x655   : > { %v5821_v45 = vmul.f32 %v15172_v49, %v5788_v5  ;;  %v1303_v55 = vmul.f32 0.5, %v9812_v30  ;;  %9821 = vtanh.f32 %v2549_v34  ;;  %v3040_v53 = vadd.f32 %v15218_v36, %v3006_v38 }
 0x656   : > { %v844_v35 = vmul.f32 %v15060_v27, %v811_v31  ;;  %v1073_v1 = vadd.f32 0.5, %v1041_v8  ;;  %9823 = vtanh.f32 %v2811_v32  ;;  %v3302_v9 = vadd.f32 %v15059_v21, %v3268_v57 }
 0x657   : > { %v5853_v16 = vadd.f32 %v5821_v45, %v5591_v22  ;;  %v1335_v10 = vadd.f32 0.5, %v1303_v55  ;;  %v3073_v20 = vmul.f32 0.5, %v3040_v53  ;;  %v3530_v23 = vmul.f32 %v15219_v14, %v13231_v4  ;;  %v15220_v22 = vld [vmem:[#allocation48_spill] sm:$0xff]  ;;  %v15221_v55 = vld [vmem:[#allocation51_spill] sm:$0xff] }
 0x658   : > { %v1106_v11 = vmul.f32 %v15013_v42, %v1073_v1  ;;  %v3335_v3 = vmul.f32 0.5, %v3302_v9  ;;  %v3792_v5 = vmul.f32 %v15105_v0, %v13231_v4  ;;  %v4054_v34 = vmul.f32 %v15198_v15, %v13231_v4  ;;  %v15222_v42 = vld [vmem:[#allocation54_spill] sm:$0xff] }
 0x659   : > { %v9814_v38 = vpop.eup %9813  ;;  %v5887_v32 = vadd.f32 %v15083_v50, %v5853_v16  ;;  %v1368_v30 = vmul.f32 %v14991_v7, %v1335_v10  ;;  %9825 = vtanh.f32 %v3073_v20  ;;  %v3564_v31 = vadd.f32 %v15220_v22, %v3530_v23 }
 0x65a   : > { %v9816_v8 = vpop.eup %9815  ;;  %v1138_v57 = vadd.f32 %v1106_v11, %v844_v35  ;;  %v1565_v45 = vmul.f32 0.5, %v9814_v38  ;;  %9827 = vtanh.f32 %v3335_v3  ;;  %v3826_v53 = vadd.f32 %v15221_v55, %v3792_v5  ;;  %v15223_v35 = vld [vmem:[#allocation40_spill] sm:$0xff] }
 0x65b   : > { %v9818_v1 = vpop.eup %9817  ;;  %v5919_v9 = vmul.f32 0.5, %v5887_v32  ;;  %v1827_v0 = vmul.f32 0.5, %v9816_v8  ;;  %v3597_v14 = vmul.f32 0.5, %v3564_v31  ;;  %v4088_v15 = vadd.f32 %v15222_v42, %v4054_v34  ;;  %v15224_v5 = vld [vmem:[#allocation56_spill] sm:$0xff]  ;;  %v15225_v31 = vld [vmem:[#allocation41_spill] sm:$0xff] }
 0x65c   : > { %v9820_v27 = vpop.eup %9819  ;;  %v1400_v21 = vadd.f32 %v1368_v30, %v1138_v57  ;;  %v1597_v16 = vadd.f32 0.5, %v1565_v45  ;;  %v2089_v50 = vmul.f32 0.5, %v9818_v1  ;;  %v3859_v10 = vmul.f32 0.5, %v3826_v53 }
 0x65d   : > { %9829 = vtanh.f32 %v5919_v9  ;;  %v1859_v20 = vadd.f32 0.5, %v1827_v0  ;;  %v2351_v23 = vmul.f32 0.5, %v9820_v27  ;;  %v4121_v22 = vmul.f32 0.5, %v4088_v15 }
 0x65e   : > { %v1630_v11 = vmul.f32 %v15223_v35, %v1597_v16  ;;  %v2121_v3 = vadd.f32 0.5, %v2089_v50  ;;  %9831 = vtanh.f32 %v3597_v14  ;;  %v4316_v38 = vmul.f32 %v15224_v5, %v13231_v4  ;;  %v15226_v16 = vld [vmem:[#allocation62_spill] sm:$0xff] }
 0x65f   : > { %v9822_v32 = vpop.eup %9821  ;;  %v1892_v8 = vmul.f32 %v15225_v31, %v1859_v20  ;;  %v2383_v34 = vadd.f32 0.5, %v2351_v23  ;;  %9833 = vtanh.f32 %v3859_v10  ;;  %v4578_v30 = vmul.f32 %v15200_v61, %v13231_v4 }
 0x660   : > { %v9824_v57 = vpop.eup %9823  ;;  %v1662_v45 = vadd.f32 %v1630_v11, %v1400_v21  ;;  %v2154_v27 = vmul.f32 %v15201_v28, %v2121_v3  ;;  %v2613_v0 = vmul.f32 0.5, %v9822_v32  ;;  %9835 = vtanh.f32 %v4121_v22 }
 0x661   : > { %v2416_v50 = vmul.f32 %v15203_v44, %v2383_v34  ;;  %v2875_v15 = vmul.f32 0.5, %v9824_v57  ;;  %v4350_v14 = vadd.f32 %v15199_v56, %v4316_v38  ;;  %v4612_v53 = vadd.f32 %v15202_v62, %v4578_v30  ;;  %v15227_v38 = vld [vmem:[#allocation44_spill] sm:$0xff] }
 0x662   : > { %v1924_v1 = vadd.f32 %v1892_v8, %v1662_v45  ;;  %v2645_v9 = vadd.f32 0.5, %v2613_v0  ;;  %v4840_v10 = vmul.f32 %v15226_v16, %v13231_v4  ;;  %v5102_v20 = vmul.f32 %v15205_v40, %v13231_v4  ;;  %v15228_v8 = vld [vmem:[#allocation63_spill] sm:$0xff] }
 0x663   : > { %v9826_v21 = vpop.eup %9825  ;;  %v2907_v23 = vadd.f32 0.5, %v2875_v15  ;;  %v4383_v11 = vmul.f32 0.5, %v4350_v14  ;;  %v4645_v3 = vmul.f32 0.5, %v4612_v53  ;;  %v5364_v22 = vmul.f32 %v15206_v12, %v13231_v4 }
 0x664   : > { %v9828_v32 = vpop.eup %9827  ;;  %v2186_v34 = vadd.f32 %v2154_v27, %v1924_v1  ;;  %v2678_v57 = vmul.f32 %v15227_v38, %v2645_v9  ;;  %v3137_v30 = vmul.f32 0.5, %v9826_v21  ;;  %v4874_v45 = vadd.f32 %v15228_v8, %v4840_v10 }
 0x665   : > { %v2940_v0 = vmul.f32 %v15182_v29, %v2907_v23  ;;  %v3399_v44 = vmul.f32 0.5, %v9828_v32  ;;  %9837 = vtanh.f32 %v4383_v11  ;;  %v5136_v40 = vadd.f32 %v15184_v25, %v5102_v20  ;;  %v13321_v11 = vld [vmem:[%s10393_s0 + $0xe8] sm:$0xff] }
 0x666   : > { %v2448_v15 = vadd.f32 %v2416_v50, %v2186_v34  ;;  %v3169_v14 = vadd.f32 0.5, %v3137_v30  ;;  %9839 = vtanh.f32 %v4645_v3  ;;  %v4907_v53 = vmul.f32 0.5, %v4874_v45  ;;  %v15230_v30 = vld [vmem:[#allocation14_spill] sm:$0xff] }
 0x667   : > { %v9830_v16 = vpop.eup %9829  ;;  %v3431_v12 = vadd.f32 0.5, %v3399_v44  ;;  %v5169_v62 = vmul.f32 0.5, %v5136_v40  ;;  %v5398_v27 = vadd.f32 %v15138_v19, %v5364_v22  ;;  %v5626_v1 = vmul.f32 %v15160_v59, %v13231_v4 }
 0x668   : > { %v9832_v9 = vpop.eup %9831  ;;  %v5983_v10 = vmul.f32 0.5, %v9830_v16  ;;  %v2710_v21 = vadd.f32 %v2678_v57, %v2448_v15  ;;  %v3202_v23 = vmul.f32 %v15161_v24, %v3169_v14  ;;  %9841 = vtanh.f32 %v4907_v53 }
 0x669   : > { %v9834_v50 = vpop.eup %9833  ;;  %v3464_v20 = vmul.f32 %v15162_v46, %v3431_v12  ;;  %v3661_v3 = vmul.f32 0.5, %v9832_v9  ;;  %9843 = vtanh.f32 %v5169_v62  ;;  %v5431_v44 = vmul.f32 0.5, %v5398_v27  ;;  %v15231_v62 = vld [vmem:[#allocation15_spill] sm:$0xff]  ;;  %v15232_v27 = vld [vmem:[#allocation49_spill] sm:$0xff] }
 0x66a   : > { %v9836_v40 = vpop.eup %9835  ;;  %v13324_v32 = vadd.f32 0.5, %v5983_v10  ;;  %v2972_v22 = vadd.f32 %v2940_v0, %v2710_v21  ;;  %v3923_v34 = vmul.f32 0.5, %v9834_v50  ;;  %v5660_v4 = vadd.f32 %v15116_v6, %v5626_v1  ;;  %v15233_v10 = vld [vmem:[#allocation16_spill] sm:$0xff]  ;;  %v15234_v1 = vld [vmem:[#allocation18_spill] sm:$0xff] }
 0x66b   : > { %v3693_v16 = vadd.f32 0.5, %v3661_v3  ;;  %v4185_v57 = vmul.f32 0.5, %v9836_v40  ;;  %9845 = vtanh.f32 %v5431_v44  ;;  %v649_v45 = vmul.f32 %v15230_v30, %v13321_v11 }
 0x66c   : > { %15229 = vst [vmem:[#allocation46_spill] sm:$0xff] %v13324_v32  ;;  %6074 = vadd.xlane.f32.xlu1 %v13324_v32  ;;  %v3234_v15 = vadd.f32 %v3202_v23, %v2972_v22  ;;  %v3955_v12 = vadd.f32 0.5, %v3923_v34  ;;  %v5693_v14 = vmul.f32 0.5, %v5660_v4  ;;  %v911_v53 = vmul.f32 %v15231_v62, %v13321_v11 }
 0x66d   : > { %v3726_v9 = vmul.f32 %v15232_v27, %v3693_v16  ;;  %v4217_v0 = vadd.f32 0.5, %v4185_v57  ;;  %v683_v21 = vadd.f32 %v15233_v10, %v649_v45  ;;  %v1173_v50 = vmul.f32 %v15234_v1, %v13321_v11 }
 0x66e   : > { %v3496_v3 = vadd.f32 %v3464_v20, %v3234_v15  ;;  %v3988_v44 = vmul.f32 %v15210_v41, %v3955_v12  ;;  %9847 = vtanh.f32 %v5693_v14  ;;  %v945_v40 = vadd.f32 %v15118_v43, %v911_v53  ;;  %v15235_v20 = vld [vmem:[#allocation22_spill] sm:$0xff] }
 0x66f   : > { %v9838_v23 = vpop.eup %9837  ;;  %v4250_v22 = vmul.f32 %v15051_v52, %v4217_v0  ;;  %v716_v34 = vmul.f32 0.5, %v683_v21  ;;  %v1207_v4 = vadd.f32 %v15049_v18, %v1173_v50  ;;  %v1435_v16 = vmul.f32 %v15211_v26, %v13321_v11  ;;  %v15236_v50 = vld [vmem:[#allocation23_spill] sm:$0xff] }
 0x670   : > { %v9840_v57 = vpop.eup %9839  ;;  %v3758_v45 = vadd.f32 %v3726_v9, %v3496_v3  ;;  %v4447_v32 = vmul.f32 0.5, %v9838_v23  ;;  %v978_v27 = vmul.f32 0.5, %v945_v40  ;;  %v1697_v15 = vmul.f32 %v15235_v20, %v13321_v11  ;;  %v15237_v40 = vld [vmem:[#allocation58_spill] sm:$0xff] }
 0x671   : > { %v4709_v12 = vmul.f32 0.5, %v9840_v57  ;;  %9849 = vtanh.f32 %v716_v34  ;;  %v1240_v14 = vmul.f32 0.5, %v1207_v4  ;;  %v1469_v53 = vadd.f32 %v15214_v48, %v1435_v16 }
 0x672   : > { %v9842_v1 = vpop.eup %9841  ;;  %v4020_v0 = vadd.f32 %v3988_v44, %v3758_v45  ;;  %v4479_v21 = vadd.f32 0.5, %v4447_v32  ;;  %9851 = vtanh.f32 %v978_v27  ;;  %v1731_v18 = vadd.f32 %v15236_v50, %v1697_v15  ;;  %v15238_v32 = vld [vmem:[#allocation24_spill] sm:$0xff] }
 0x673   : > { %v9844_v52 = vpop.eup %9843  ;;  %v4741_v26 = vadd.f32 0.5, %v4709_v12  ;;  %v4971_v41 = vmul.f32 0.5, %v9842_v1  ;;  %9853 = vtanh.f32 %v1240_v14  ;;  %v1502_v9 = vmul.f32 0.5, %v1469_v53  ;;  %v15239_v12 = vld [vmem:[#allocation26_spill] sm:$0xff] }
 0x674   : > { %v4282_v3 = vadd.f32 %v4250_v22, %v4020_v0  ;;  %v4512_v23 = vmul.f32 %v15237_v40, %v4479_v21  ;;  %v5233_v20 = vmul.f32 0.5, %v9844_v52  ;;  %v1764_v57 = vmul.f32 0.5, %v1731_v18 }
 0x675   : > { %v9846_v34 = vpop.eup %9845  ;;  %v4774_v4 = vmul.f32 %v15192_v63, %v4741_v26  ;;  %v5003_v16 = vadd.f32 0.5, %v4971_v41  ;;  %9855 = vtanh.f32 %v1502_v9  ;;  %v1959_v27 = vmul.f32 %v15238_v32, %v13321_v11 }
 0x676   : > { %v4544_v44 = vadd.f32 %v4512_v23, %v4282_v3  ;;  %v5265_v45 = vadd.f32 0.5, %v5233_v20  ;;  %v5495_v15 = vmul.f32 0.5, %v9846_v34  ;;  %9857 = vtanh.f32 %v1764_v57 }
 0x677   : > { %v5036_v1 = vmul.f32 %v15146_v54, %v5003_v16  ;;  %v1993_v22 = vadd.f32 %v15168_v37, %v1959_v27  ;;  %v2221_v52 = vmul.f32 %v15239_v12, %v13321_v11  ;;  %v2483_v18 = vmul.f32 %v15217_v60, %v13321_v11 }
 0x678   : > { %v9848_v26 = vpop.eup %9847  ;;  %v4806_v41 = vadd.f32 %v4774_v4, %v4544_v44  ;;  %v5298_v14 = vmul.f32 %v15148_v13, %v5265_v45  ;;  %v5527_v53 = vadd.f32 0.5, %v5495_v15  ;;  %v2745_v20 = vmul.f32 %v15195_v2, %v13321_v11 }
 0x679   : > { %v5757_v0 = vmul.f32 0.5, %v9848_v26  ;;  %v2026_v21 = vmul.f32 0.5, %v1993_v22  ;;  %v2255_v9 = vadd.f32 %v15193_v39, %v2221_v52  ;;  %v2517_v3 = vadd.f32 %v15147_v47, %v2483_v18 }
 0x67a   : > { %v5068_v23 = vadd.f32 %v5036_v1, %v4806_v41  ;;  %v5560_v57 = vmul.f32 %v15149_v58, %v5527_v53  ;;  %v2779_v34 = vadd.f32 %v15196_v51, %v2745_v20  ;;  %v3007_v4 = vmul.f32 %v15150_v33, %v13321_v11 }
 0x67b   : > { %v9850_v16 = vpop.eup %9849  ;;  %v5789_v27 = vadd.f32 0.5, %v5757_v0  ;;  %9859 = vtanh.f32 %v2026_v21  ;;  %v2288_v44 = vmul.f32 0.5, %v2255_v9  ;;  %v2550_v45 = vmul.f32 0.5, %v2517_v3  ;;  %v15240_v3 = vld [vmem:[#allocation35_spill] sm:$0xff] }
 0x67c   : > { %v9852_v15 = vpop.eup %9851  ;;  %v5330_v26 = vadd.f32 %v5298_v14, %v5068_v23  ;;  %v780_v22 = vmul.f32 0.5, %v9850_v16  ;;  %v2812_v2 = vmul.f32 0.5, %v2779_v34  ;;  %v3041_v52 = vadd.f32 %v15218_v36, %v3007_v4  ;;  %v15241_v16 = vld [vmem:[#allocation37_spill] sm:$0xff] }
 0x67d   : > { %v9854_v18 = vpop.eup %9853  ;;  %v5822_v1 = vmul.f32 %v15172_v49, %v5789_v27  ;;  %v1042_v41 = vmul.f32 0.5, %v9852_v15  ;;  %9861 = vtanh.f32 %v2288_v44  ;;  %v3269_v53 = vmul.f32 %v15173_v17, %v13321_v11  ;;  %v15242_v44 = vld [vmem:[#allocation38_spill] sm:$0xff] }
 0x67e   : > { %v5592_v20 = vadd.f32 %v5560_v57, %v5330_v26  ;;  %v812_v51 = vadd.f32 0.5, %v780_v22  ;;  %v1304_v0 = vmul.f32 0.5, %v9854_v18  ;;  %9863 = vtanh.f32 %v2550_v45  ;;  %v15243_v26 = vld [vmem:[#allocation74_spill] sm:$0xff] }
 0x67f   : > { %v9856_v21 = vpop.eup %9855  ;;  %v1074_v9 = vadd.f32 0.5, %v1042_v41  ;;  %9865 = vtanh.f32 %v2812_v2  ;;  %v3074_v14 = vmul.f32 0.5, %v3041_v52  ;;  %v3303_v23 = vadd.f32 %v15240_v3, %v3269_v53  ;;  %v15244_v2 = vld [vmem:[#allocation36_spill] sm:$0xff] }
 0x680   : > { %v9858_v34 = vpop.eup %9857  ;;  %v5854_v4 = vadd.f32 %v5822_v1, %v5592_v20  ;;  %v845_v36 = vmul.f32 %v15241_v16, %v812_v51  ;;  %v1336_v27 = vadd.f32 0.5, %v1304_v0  ;;  %v1566_v15 = vmul.f32 0.5, %v9856_v21  ;;  %v15245_v51 = vld [vmem:[#allocation50_spill] sm:$0xff]  ;;  %v15246_v21 = vld [vmem:[#allocation48_spill] sm:$0xff] }
 0x681   : > { %v1107_v49 = vmul.f32 %v15242_v44, %v1074_v9  ;;  %v1828_v33 = vmul.f32 0.5, %v9858_v34  ;;  %9867 = vtanh.f32 %v3074_v14  ;;  %v3336_v57 = vmul.f32 0.5, %v3303_v23  ;;  %v15247_v14 = vld [vmem:[#allocation53_spill] sm:$0xff] }
 0x682   : > { %v5888_v22 = vadd.f32 %v15243_v26, %v5854_v4  ;;  %v1369_v45 = vmul.f32 %v14991_v7, %v1336_v27  ;;  %v1598_v18 = vadd.f32 0.5, %v1566_v15  ;;  %v3531_v52 = vmul.f32 %v15244_v2, %v13321_v11 }
 0x683   : > { %v1139_v41 = vadd.f32 %v1107_v49, %v845_v36  ;;  %v1860_v53 = vadd.f32 0.5, %v1828_v33  ;;  %9869 = vtanh.f32 %v3336_v57  ;;  %v3793_v1 = vmul.f32 %v15245_v51, %v13321_v11 }
 0x684   : > { %v5920_v20 = vmul.f32 0.5, %v5888_v22  ;;  %v1631_v0 = vmul.f32 %v15223_v35, %v1598_v18  ;;  %v3565_v9 = vadd.f32 %v15246_v21, %v3531_v52  ;;  %v4055_v23 = vmul.f32 %v15247_v14, %v13321_v11 }
 0x685   : > { %v9860_v34 = vpop.eup %9859  ;;  %v1401_v4 = vadd.f32 %v1369_v45, %v1139_v41  ;;  %v1893_v27 = vmul.f32 %v15225_v31, %v1860_v53  ;;  %v3827_v15 = vadd.f32 %v15221_v55, %v3793_v1  ;;  %v4317_v33 = vmul.f32 %v15224_v5, %v13321_v11 }
 0x686   : > { %9871 = vtanh.f32 %v5920_v20  ;;  %v2090_v49 = vmul.f32 0.5, %v9860_v34  ;;  %v3598_v36 = vmul.f32 0.5, %v3565_v9  ;;  %v4089_v57 = vadd.f32 %v15222_v42, %v4055_v23 }
 0x687   : > { %v9862_v22 = vpop.eup %9861  ;;  %v1663_v18 = vadd.f32 %v1631_v0, %v1401_v4  ;;  %v3860_v52 = vmul.f32 0.5, %v3827_v15  ;;  %v4351_v35 = vadd.f32 %v15199_v56, %v4317_v33  ;;  %v4579_v45 = vmul.f32 %v15200_v61, %v13321_v11  ;;  %v15248_v33 = vld [vmem:[#allocation60_spill] sm:$0xff] }
 0x688   : > { %v9864_v41 = vpop.eup %9863  ;;  %v2122_v53 = vadd.f32 0.5, %v2090_v49  ;;  %v2352_v31 = vmul.f32 0.5, %v9862_v22  ;;  %9873 = vtanh.f32 %v3598_v36  ;;  %v4122_v1 = vmul.f32 0.5, %v4089_v57  ;;  %v15249_v49 = vld [vmem:[#allocation62_spill] sm:$0xff]  ;;  %v15250_v57 = vld [vmem:[#allocation43_spill] sm:$0xff] }
 0x689   : > { %v9866_v14 = vpop.eup %9865  ;;  %v1925_v5 = vadd.f32 %v1893_v27, %v1663_v18  ;;  %v2614_v20 = vmul.f32 0.5, %v9864_v41  ;;  %9875 = vtanh.f32 %v3860_v52  ;;  %v4384_v9 = vmul.f32 0.5, %v4351_v35  ;;  %v15251_v41 = vld [vmem:[#allocation65_spill] sm:$0xff] }
 0x68a   : > { %v2155_v23 = vmul.f32 %v15201_v28, %v2122_v53  ;;  %v2384_v34 = vadd.f32 0.5, %v2352_v31  ;;  %v2876_v0 = vmul.f32 0.5, %v9866_v14  ;;  %9877 = vtanh.f32 %v4122_v1 }
 0x68b   : > { %v9868_v4 = vpop.eup %9867  ;;  %v2646_v15 = vadd.f32 0.5, %v2614_v20  ;;  %9879 = vtanh.f32 %v4384_v9  ;;  %v4613_v56 = vadd.f32 %v15248_v33, %v4579_v45  ;;  %v4841_v22 = vmul.f32 %v15249_v49, %v13321_v11 }
 0x68c   : > { %v2187_v36 = vadd.f32 %v2155_v23, %v1925_v5  ;;  %v2417_v61 = vmul.f32 %v15250_v57, %v2384_v34  ;;  %v2908_v27 = vadd.f32 0.5, %v2876_v0  ;;  %v3138_v18 = vmul.f32 0.5, %v9868_v4  ;;  %v15252_v34 = vld [vmem:[#allocation68_spill] sm:$0xff] }
 0x68d   : > { %v9870_v35 = vpop.eup %9869  ;;  %v2679_v52 = vmul.f32 %v15227_v38, %v2646_v15  ;;  %v4646_v31 = vmul.f32 0.5, %v4613_v56  ;;  %v4875_v14 = vadd.f32 %v15228_v8, %v4841_v22  ;;  %v5103_v53 = vmul.f32 %v15251_v41, %v13321_v11  ;;  %v13404_v4 = vld [vmem:[%s10393_s0 + $0xf0] sm:$0xff] }
 0x68e   : > { %v2449_v1 = vadd.f32 %v2417_v61, %v2187_v36  ;;  %v2941_v45 = vmul.f32 %v15182_v29, %v2908_v27  ;;  %v3170_v20 = vadd.f32 0.5, %v3138_v18  ;;  %v3400_v9 = vmul.f32 0.5, %v9870_v35  ;;  %v13410_v35 = vpop.f32.mrb[16].mxu0 }
 0x68f   : > { %9881 = vtanh.f32 %v4646_v31  ;;  %v4908_v5 = vmul.f32 0.5, %v4875_v14  ;;  %v5137_v23 = vadd.f32 %v15184_v25, %v5103_v53  ;;  %v5365_v0 = vmul.f32 %v15252_v34, %v13321_v11  ;;  %15253 = vst [vmem:[#allocation34_spill] sm:$0xff] %v13410_v35 }
 0x690   : > { %v9872_v56 = vpop.eup %9871  ;;  %v2711_v15 = vadd.f32 %v2679_v52, %v2449_v1  ;;  %v3203_v22 = vmul.f32 %v15161_v24, %v3170_v20  ;;  %v3432_v38 = vadd.f32 0.5, %v3400_v9  ;;  %v5627_v61 = vmul.f32 %v15160_v59, %v13321_v11  ;;  %v13416_v1 = vpop.f32.mrb[17].mxu0 }
 0x691   : > { %v5984_v36 = vmul.f32 0.5, %v9872_v56  ;;  %9883 = vtanh.f32 %v4908_v5  ;;  %v5170_v27 = vmul.f32 0.5, %v5137_v23  ;;  %v5399_v18 = vadd.f32 %v15138_v19, %v5365_v0  ;;  %15254 = vst [vmem:[#allocation45_spill] sm:$0xff] %v13416_v1  ;;  %v13420_v23 = vpop.f32.mrb[18].mxu0 }
 0x692   : > { %v9874_v31 = vpop.eup %9873  ;;  %v2973_v14 = vadd.f32 %v2941_v45, %v2711_v15  ;;  %v3465_v53 = vmul.f32 %v15162_v46, %v3432_v38  ;;  %v5661_v34 = vadd.f32 %v15116_v6, %v5627_v61  ;;  %v650_v52 = vmul.f32 %v15230_v30, %v13404_v4  ;;  %15256 = vst [vmem:[#allocation61_spill] sm:$0xff] %v13420_v23  ;;  %v13423_v61 = vpop.f32.mrb[19].mxu0 }
 0x693   : > { %v9876_v20 = vpop.eup %9875  ;;  %v13418_v11 = vadd.f32 0.5, %v5984_v36  ;;  %v3662_v9 = vmul.f32 0.5, %v9874_v31  ;;  %9885 = vtanh.f32 %v5170_v27  ;;  %v5432_v5 = vmul.f32 0.5, %v5399_v18  ;;  %15257 = vst [vmem:[#allocation27_spill] sm:$0xff] %v13423_v61  ;;  %v13428_v27 = vpop.f32.mrb[20].mxu0 }
 0x694   : > { %v9878_v0 = vpop.eup %9877  ;;  %v3235_v56 = vadd.f32 %v3203_v22, %v2973_v14  ;;  %v3924_v45 = vmul.f32 0.5, %v9876_v20  ;;  %v5694_v15 = vmul.f32 0.5, %v5661_v34  ;;  %v684_v38 = vadd.f32 %v15233_v10, %v650_v52  ;;  %15258 = vst [vmem:[#allocation21_spill] sm:$0xff] %v13428_v27  ;;  %v13430_v34 = vpop.f32.mrb[21].mxu0  ;;  %v15260_v14 = vld [vmem:[#allocation49_spill] sm:$0xff] }
 0x695   : > { %15255 = vst [vmem:[#allocation66_spill] sm:$0xff] %v13418_v11  ;;  %v9880_v35 = vpop.eup %9879  ;;  %6076 = vadd.xlane.f32.xlu0 %v13418_v11  ;;  %v3694_v1 = vadd.f32 0.5, %v3662_v9  ;;  %v4186_v6 = vmul.f32 0.5, %v9878_v0  ;;  %9887 = vtanh.f32 %v5432_v5  ;;  %v912_v36 = vmul.f32 %v15231_v62, %v13404_v4  ;;  %15259 = vst [vmem:[#allocation28_spill] sm:$0xff] %v13430_v34  ;;  %v13434_v9 = vpop.f32.mrb[22].mxu0  ;;  %v15262_v5 = vld [vmem:[#allocation52_spill] sm:$0xff] }
 0x696   : > { %v3497_v18 = vadd.f32 %v3465_v53, %v3235_v56  ;;  %v3956_v31 = vadd.f32 0.5, %v3924_v45  ;;  %v4448_v22 = vmul.f32 0.5, %v9880_v35  ;;  %9889 = vtanh.f32 %v5694_v15  ;;  %15261 = vst [vmem:[#allocation54_spill] sm:$0xff] %v13434_v9  ;;  %v15263_v62 = vld [vmem:[#allocation18_spill] sm:$0xff]  ;;  %v15264_v53 = vld [vmem:[#allocation20_spill] sm:$0xff]  ;;  %v13441_v56 = vpop.f32.mrb[23].mxu0 }
 0x697   : > { %v3727_v52 = vmul.f32 %v15260_v14, %v3694_v1  ;;  %v4218_v20 = vadd.f32 0.5, %v4186_v6  ;;  %v717_v61 = vmul.f32 0.5, %v684_v38  ;;  %v946_v11 = vadd.f32 %v15118_v43, %v912_v36  ;;  %15265 = vst [vmem:[#allocation14_spill] sm:$0xff] %v13441_v56  ;;  %v15266_v1 = vld [vmem:[#allocation55_spill] sm:$0xff]  ;;  %v13444_v36 = vpop.f32.mrb[24].mxu0 }
 0x698   : > { %v3989_v0 = vmul.f32 %v15262_v5, %v3956_v31  ;;  %v4480_v23 = vadd.f32 0.5, %v4448_v22  ;;  %v1174_v27 = vmul.f32 %v15263_v62, %v13404_v4  ;;  %v1436_v35 = vmul.f32 %v15264_v53, %v13404_v4  ;;  %15267 = vst [vmem:[#allocation16_spill] sm:$0xff] %v13444_v36  ;;  %v15268_v22 = vld [vmem:[#allocation19_spill] sm:$0xff]  ;;  %v13449_v43 = vpop.f32.mrb[25].mxu0 }
 0x699   : > { %v9882_v45 = vpop.eup %9881  ;;  %v3759_v15 = vadd.f32 %v3727_v52, %v3497_v18  ;;  %v4251_v6 = vmul.f32 %v15266_v1, %v4218_v20  ;;  %9891 = vtanh.f32 %v717_v61  ;;  %v979_v38 = vmul.f32 0.5, %v946_v11  ;;  %15269 = vst [vmem:[#allocation23_spill] sm:$0xff] %v13449_v43  ;;  %v15270_v18 = vld [vmem:[#allocation22_spill] sm:$0xff]  ;;  %v13455_v61 = vpop.f32.mrb[26].mxu0 }
 0x69a   : > { %v4513_v9 = vmul.f32 %v15237_v40, %v4480_v23  ;;  %v4710_v31 = vmul.f32 0.5, %v9882_v45  ;;  %v1208_v34 = vadd.f32 %v15268_v22, %v1174_v27  ;;  %v1470_v5 = vadd.f32 %v15214_v48, %v1436_v35  ;;  %15271 = vst [vmem:[#allocation58_spill] sm:$0xff] %v13455_v61  ;;  %v13457_v27 = vpop.f32.mrb[27].mxu0 }
 0x69b   : > { %v9884_v53 = vpop.eup %9883  ;;  %v4021_v62 = vadd.f32 %v3989_v0, %v3759_v15  ;;  %9893 = vtanh.f32 %v979_v38  ;;  %v1698_v52 = vmul.f32 %v15270_v18, %v13404_v4  ;;  %v1960_v11 = vmul.f32 %v15238_v32, %v13404_v4  ;;  %15272 = vst [vmem:[#allocation35_spill] sm:$0xff] %v13457_v27  ;;  %v13463_v38 = vpop.f32.mrb[28].mxu0 }
 0x69c   : > { %v4742_v20 = vadd.f32 0.5, %v4710_v31  ;;  %v4972_v23 = vmul.f32 0.5, %v9884_v53  ;;  %v1241_v45 = vmul.f32 0.5, %v1208_v34  ;;  %v1503_v36 = vmul.f32 0.5, %v1470_v5  ;;  %15273 = vst [vmem:[#allocation37_spill] sm:$0xff] %v13463_v38  ;;  %v13466_v34 = vpop.f32.mrb[29].mxu0 }
 0x69d   : > { %v9886_v35 = vpop.eup %9885  ;;  %v4283_v56 = vadd.f32 %v4251_v6, %v4021_v62  ;;  %v1732_v43 = vadd.f32 %v15236_v50, %v1698_v52  ;;  %v1994_v0 = vadd.f32 %v15168_v37, %v1960_v11  ;;  %v2222_v15 = vmul.f32 %v15239_v12, %v13404_v4  ;;  %15274 = vst [vmem:[#allocation38_spill] sm:$0xff] %v13466_v34  ;;  %v13468_v52 = vpop.f32.mrb[30].mxu0 }
 0x69e   : > { %v4775_v32 = vmul.f32 %v15192_v63, %v4742_v20  ;;  %v5004_v61 = vadd.f32 0.5, %v4972_v23  ;;  %v5234_v31 = vmul.f32 0.5, %v9886_v35  ;;  %9895 = vtanh.f32 %v1241_v45  ;;  %15275 = vst [vmem:[#allocation50_spill] sm:$0xff] %v13468_v52  ;;  %v13472_v20 = vpop.f32.mrb[31].mxu0  ;;  %v15280_v52 = vld [vmem:[#allocation31_spill] sm:$0xff] }
 0x69f   : > { %v9888_v5 = vpop.eup %9887  ;;  %v4545_v53 = vadd.f32 %v4513_v9, %v4283_v56  ;;  %9897 = vtanh.f32 %v1503_v36  ;;  %v1765_v62 = vmul.f32 0.5, %v1732_v43  ;;  %v2027_v6 = vmul.f32 0.5, %v1994_v0  ;;  %15276 = vst [vmem:[#allocation48_spill] sm:$0xff] %v13472_v20 }
 0x6a0   : > { %v9890_v11 = vpop.eup %9889  ;;  %v5037_v27 = vmul.f32 %v15146_v54, %v5004_v61  ;;  %v5266_v37 = vadd.f32 0.5, %v5234_v31  ;;  %v5496_v12 = vmul.f32 0.5, %v9888_v5  ;;  %v2256_v38 = vadd.f32 %v15193_v39, %v2222_v15  ;;  %v15277_v15 = vld [vmem:[#allocation30_spill] sm:$0xff] }
 0x6a1   : > { %v4807_v23 = vadd.f32 %v4775_v32, %v4545_v53  ;;  %v5758_v45 = vmul.f32 0.5, %v9890_v11  ;;  %9899 = vtanh.f32 %v1765_v62  ;;  %v2484_v9 = vmul.f32 %v15217_v60, %v13404_v4  ;;  %v15278_v62 = vld [vmem:[#allocation32_spill] sm:$0xff] }
 0x6a2   : > { %v5299_v43 = vmul.f32 %v15148_v13, %v5266_v37  ;;  %v5528_v56 = vadd.f32 0.5, %v5496_v12  ;;  %9901 = vtanh.f32 %v2027_v6  ;;  %v2289_v36 = vmul.f32 0.5, %v2256_v38  ;;  %v15279_v12 = vld [vmem:[#allocation73_spill] sm:$0xff] }
 0x6a3   : > { %v9892_v35 = vpop.eup %9891  ;;  %v5069_v0 = vadd.f32 %v5037_v27, %v4807_v23  ;;  %v5790_v61 = vadd.f32 0.5, %v5758_v45  ;;  %v2518_v31 = vadd.f32 %v15147_v47, %v2484_v9  ;;  %v2746_v5 = vmul.f32 %v15277_v15, %v13404_v4  ;;  %v15281_v9 = vld [vmem:[#allocation33_spill] sm:$0xff] }
 0x6a4   : > { %v5561_v32 = vmul.f32 %v15149_v58, %v5528_v56  ;;  %v781_v53 = vmul.f32 0.5, %v9892_v35  ;;  %9903 = vtanh.f32 %v2289_v36  ;;  %v3008_v11 = vmul.f32 %v15278_v62, %v13404_v4 }
 0x6a5   : > { %v9894_v20 = vpop.eup %9893  ;;  %v5331_v37 = vadd.f32 %v5299_v43, %v5069_v0  ;;  %v5823_v6 = vmul.f32 %v15279_v12, %v5790_v61  ;;  %v2551_v38 = vmul.f32 0.5, %v2518_v31  ;;  %v2780_v27 = vadd.f32 %v15280_v52, %v2746_v5 }
 0x6a6   : > { %v813_v23 = vadd.f32 0.5, %v781_v53  ;;  %v1043_v45 = vmul.f32 0.5, %v9894_v20  ;;  %v3042_v34 = vadd.f32 %v15281_v9, %v3008_v11  ;;  %v3270_v15 = vmul.f32 %v15173_v17, %v13404_v4 }
 0x6a7   : > { %v5593_v56 = vadd.f32 %v5561_v32, %v5331_v37  ;;  %9905 = vtanh.f32 %v2551_v38  ;;  %v2813_v36 = vmul.f32 0.5, %v2780_v27  ;;  %v3532_v35 = vmul.f32 %v15244_v2, %v13404_v4 }
 0x6a8   : > { %v9896_v58 = vpop.eup %9895  ;;  %v846_v43 = vmul.f32 %v15241_v16, %v813_v23  ;;  %v1075_v0 = vadd.f32 0.5, %v1043_v45  ;;  %v3075_v61 = vmul.f32 0.5, %v3042_v34  ;;  %v3304_v31 = vadd.f32 %v15240_v3, %v3270_v15 }
 0x6a9   : > { %v9898_v5 = vpop.eup %9897  ;;  %v5855_v20 = vadd.f32 %v5823_v6, %v5593_v56  ;;  %v1305_v53 = vmul.f32 0.5, %v9896_v58  ;;  %9907 = vtanh.f32 %v2813_v36  ;;  %v3566_v11 = vadd.f32 %v15246_v21, %v3532_v35 }
 0x6aa   : > { %v1108_v32 = vmul.f32 %v15242_v44, %v1075_v0  ;;  %v1567_v37 = vmul.f32 0.5, %v9898_v5  ;;  %9909 = vtanh.f32 %v3075_v61  ;;  %v3337_v38 = vmul.f32 0.5, %v3304_v31  ;;  %v15282_v61 = vld [vmem:[#allocation40_spill] sm:$0xff] }
 0x6ab   : > { %v9900_v27 = vpop.eup %9899  ;;  %v5889_v2 = vadd.f32 %v15243_v26, %v5855_v20  ;;  %v1337_v12 = vadd.f32 0.5, %v1305_v53  ;;  %v3599_v23 = vmul.f32 0.5, %v3566_v11  ;;  %v3794_v34 = vmul.f32 %v15245_v51, %v13404_v4  ;;  %v15283_v53 = vld [vmem:[#allocation53_spill] sm:$0xff] }
 0x6ac   : > { %v9902_v15 = vpop.eup %9901  ;;  %v1140_v45 = vadd.f32 %v1108_v32, %v846_v43  ;;  %v1599_v6 = vadd.f32 0.5, %v1567_v37  ;;  %v1829_v58 = vmul.f32 0.5, %v9900_v27  ;;  %9911 = vtanh.f32 %v3337_v38  ;;  %v15284_v37 = vld [vmem:[#allocation41_spill] sm:$0xff]  ;;  %v15285_v27 = vld [vmem:[#allocation56_spill] sm:$0xff] }
 0x6ad   : > { %v5921_v56 = vmul.f32 0.5, %v5889_v2  ;;  %v1370_v36 = vmul.f32 %v14991_v7, %v1337_v12  ;;  %v2091_v35 = vmul.f32 0.5, %v9902_v15  ;;  %9913 = vtanh.f32 %v3599_v23 }
 0x6ae   : > { %v9904_v0 = vpop.eup %9903  ;;  %v1632_v31 = vmul.f32 %v15282_v61, %v1599_v6  ;;  %v1861_v5 = vadd.f32 0.5, %v1829_v58  ;;  %v3828_v20 = vadd.f32 %v15221_v55, %v3794_v34  ;;  %v4056_v11 = vmul.f32 %v15283_v53, %v13404_v4  ;;  %v15286_v61 = vld [vmem:[#allocation59_spill] sm:$0xff] }
 0x6af   : > { %9915 = vtanh.f32 %v5921_v56  ;;  %v1402_v26 = vadd.f32 %v1370_v36, %v1140_v45  ;;  %v2123_v43 = vadd.f32 0.5, %v2091_v35  ;;  %v2353_v32 = vmul.f32 0.5, %v9904_v0  ;;  %v15287_v36 = vld [vmem:[#allocation57_spill] sm:$0xff] }
 0x6b0   : > { %v1894_v38 = vmul.f32 %v15284_v37, %v1861_v5  ;;  %v3861_v2 = vmul.f32 0.5, %v3828_v20  ;;  %v4090_v12 = vadd.f32 %v15222_v42, %v4056_v11  ;;  %v4318_v23 = vmul.f32 %v15285_v27, %v13404_v4 }
 0x6b1   : > { %v9906_v15 = vpop.eup %9905  ;;  %v1664_v6 = vadd.f32 %v1632_v31, %v1402_v26  ;;  %v2156_v58 = vmul.f32 %v15201_v28, %v2123_v43  ;;  %v2385_v34 = vadd.f32 0.5, %v2353_v32  ;;  %v4580_v55 = vmul.f32 %v15286_v61, %v13404_v4 }
 0x6b2   : > { %v2615_v56 = vmul.f32 0.5, %v9906_v15  ;;  %9917 = vtanh.f32 %v3861_v2  ;;  %v4123_v45 = vmul.f32 0.5, %v4090_v12  ;;  %v4352_v35 = vadd.f32 %v15287_v36, %v4318_v23  ;;  %v15288_v36 = vld [vmem:[#allocation44_spill] sm:$0xff] }
 0x6b3   : > { %v9908_v0 = vpop.eup %9907  ;;  %v1926_v5 = vadd.f32 %v1894_v38, %v1664_v6  ;;  %v2418_v20 = vmul.f32 %v15250_v57, %v2385_v34  ;;  %v4614_v11 = vadd.f32 %v15248_v33, %v4580_v55  ;;  %v4842_v26 = vmul.f32 %v15249_v49, %v13404_v4 }
 0x6b4   : > { %v9910_v31 = vpop.eup %9909  ;;  %v2647_v43 = vadd.f32 0.5, %v2615_v56  ;;  %v2877_v32 = vmul.f32 0.5, %v9908_v0  ;;  %9919 = vtanh.f32 %v4123_v45  ;;  %v4385_v28 = vmul.f32 0.5, %v4352_v35 }
 0x6b5   : > { %v2188_v61 = vadd.f32 %v2156_v58, %v1926_v5  ;;  %v3139_v15 = vmul.f32 0.5, %v9910_v31  ;;  %v4647_v2 = vmul.f32 0.5, %v4614_v11  ;;  %v4876_v12 = vadd.f32 %v15228_v8, %v4842_v26  ;;  %v13524_v8 = vld [vmem:[%s10393_s0 + $0xf8] sm:$0xff]  ;;  %s13867_s0 = scalar_lea.vmem %s13994_s16, %s7879_s18 }
 0x6b6   : > { %v9912_v23 = vpop.eup %9911  ;;  %v2680_v38 = vmul.f32 %v15288_v36, %v2647_v43  ;;  %v2909_v6 = vadd.f32 0.5, %v2877_v32  ;;  %9921 = vtanh.f32 %v4385_v28  ;;  %v5104_v55 = vmul.f32 %v15251_v41, %v13404_v4  ;;  %v15289_v43 = vld [vmem:[#allocation68_spill] sm:$0xff] }
 0x6b7   : > { %v9914_v34 = vpop.eup %9913  ;;  %v2450_v49 = vadd.f32 %v2418_v20, %v2188_v61  ;;  %v3171_v56 = vadd.f32 0.5, %v3139_v15  ;;  %v3401_v0 = vmul.f32 0.5, %v9912_v23  ;;  %9923 = vtanh.f32 %v4647_v2 }
 0x6b8   : > { %v2942_v58 = vmul.f32 %v15182_v29, %v2909_v6  ;;  %v3663_v45 = vmul.f32 0.5, %v9914_v34  ;;  %v4909_v35 = vmul.f32 0.5, %v4876_v12  ;;  %v5138_v5 = vadd.f32 %v15184_v25, %v5104_v55 }
 0x6b9   : > { %v9916_v11 = vpop.eup %9915  ;;  %v2712_v26 = vadd.f32 %v2680_v38, %v2450_v49  ;;  %v3204_v31 = vmul.f32 %v15161_v24, %v3171_v56  ;;  %v3433_v28 = vadd.f32 0.5, %v3401_v0  ;;  %v5366_v32 = vmul.f32 %v15289_v43, %v13404_v4 }
 0x6ba   : > { %v5985_v61 = vmul.f32 0.5, %v9916_v11  ;;  %v3695_v20 = vadd.f32 0.5, %v3663_v45  ;;  %9925 = vtanh.f32 %v4909_v35  ;;  %v5171_v15 = vmul.f32 0.5, %v5138_v5 }
 0x6bb   : > { %v2974_v2 = vadd.f32 %v2942_v58, %v2712_v26  ;;  %v3466_v23 = vmul.f32 %v15162_v46, %v3433_v28  ;;  %v5400_v12 = vadd.f32 %v15138_v19, %v5366_v32  ;;  %v5628_v49 = vmul.f32 %v15160_v59, %v13404_v4  ;;  %v15291_v58 = vld [vmem:[#allocation72_spill] sm:$0xff]  ;;  %v15292_v4 = vld [vmem:[#allocation15_spill] sm:$0xff]  ;;  %v15293_v28 = vld [vmem:[#allocation18_spill] sm:$0xff] }
 0x6bc   : > { %v9918_v38 = vpop.eup %9917  ;;  %v13530_v6 = vadd.f32 0.5, %v5985_v61  ;;  %v3728_v55 = vmul.f32 %v15260_v14, %v3695_v20  ;;  %9927 = vtanh.f32 %v5171_v15  ;;  %v651_v34 = vmul.f32 %v15230_v30, %v13524_v8  ;;  %v15294_v61 = vld [vmem:[#allocation20_spill] sm:$0xff] }
 0x6bd   : > { %v3236_v56 = vadd.f32 %v3204_v31, %v2974_v2  ;;  %v3925_v0 = vmul.f32 0.5, %v9918_v38  ;;  %v5433_v45 = vmul.f32 0.5, %v5400_v12  ;;  %v5662_v35 = vadd.f32 %v15291_v58, %v5628_v49  ;;  %v15295_v38 = vld [vmem:[#allocation17_spill] sm:$0xff] }
 0x6be   : > { %15290 = vst [vmem:[#allocation60_spill] sm:$0xff] %v13530_v6  ;;  %v9920_v5 = vpop.eup %9919  ;;  %6078 = vadd.xlane.f32.xlu1 %v13530_v6  ;;  %v685_v11 = vadd.f32 %v15233_v10, %v651_v34  ;;  %v913_v26 = vmul.f32 %v15292_v4, %v13524_v8  ;;  %v1175_v32 = vmul.f32 %v15293_v28, %v13524_v8  ;;  %v15296_v4 = vld [vmem:[#allocation52_spill] sm:$0xff] }
 0x6bf   : > { %v1437_v20 = vmul.f32 %v15294_v61, %v13524_v8  ;;  %v3498_v30 = vadd.f32 %v3466_v23, %v3236_v56  ;;  %v3957_v31 = vadd.f32 0.5, %v3925_v0  ;;  %v4187_v15 = vmul.f32 0.5, %v9920_v5 }
 0x6c0   : > { %9929 = vtanh.f32 %v5433_v45  ;;  %v9922_v2 = vpop.eup %9921  ;;  %v5695_v12 = vmul.f32 0.5, %v5662_v35  ;;  %v718_v49 = vmul.f32 0.5, %v685_v11  ;;  %v947_v6 = vadd.f32 %v15295_v38, %v913_v26 }
 0x6c1   : > { %v1209_v10 = vadd.f32 %v15268_v22, %v1175_v32  ;;  %v9924_v34 = vpop.eup %9923  ;;  %v3760_v14 = vadd.f32 %v3728_v55, %v3498_v30  ;;  %v3990_v58 = vmul.f32 %v15296_v4, %v3957_v31  ;;  %v4219_v46 = vadd.f32 0.5, %v4187_v15  ;;  %v15297_v30 = vld [vmem:[#allocation24_spill] sm:$0xff] }
 0x6c2   : > { %v4449_v28 = vmul.f32 0.5, %v9922_v2  ;;  %v4711_v59 = vmul.f32 0.5, %v9924_v34  ;;  %9931 = vtanh.f32 %v5695_v12  ;;  %v980_v61 = vmul.f32 0.5, %v947_v6  ;;  %v15299_v12 = vld [vmem:[#allocation25_spill] sm:$0xff] }
 0x6c3   : > { %v1242_v23 = vmul.f32 0.5, %v1209_v10  ;;  %v4022_v56 = vadd.f32 %v3990_v58, %v3760_v14  ;;  %v4252_v0 = vmul.f32 %v15266_v1, %v4219_v46  ;;  %9933 = vtanh.f32 %v718_v49 }
 0x6c4   : > { %v4481_v45 = vadd.f32 0.5, %v4449_v28  ;;  %v9926_v35 = vpop.eup %9925  ;;  %v4743_v5 = vadd.f32 0.5, %v4711_v59  ;;  %9935 = vtanh.f32 %v980_v61  ;;  %v1471_v22 = vadd.f32 %v15214_v48, %v1437_v20  ;;  %v15298_v20 = vld [vmem:[#allocation26_spill] sm:$0xff] }
 0x6c5   : > { %v1699_v55 = vmul.f32 %v15270_v18, %v13524_v8  ;;  %v4284_v11 = vadd.f32 %v4252_v0, %v4022_v56  ;;  %v4973_v32 = vmul.f32 0.5, %v9926_v35  ;;  %9937 = vtanh.f32 %v1242_v23 }
 0x6c6   : > { %v4514_v26 = vmul.f32 %v15237_v40, %v4481_v45  ;;  %v9928_v6 = vpop.eup %9927  ;;  %v4776_v14 = vmul.f32 %v15192_v63, %v4743_v5  ;;  %v1504_v58 = vmul.f32 0.5, %v1471_v22  ;;  %v1961_v59 = vmul.f32 %v15297_v30, %v13524_v8  ;;  %v15300_v22 = vld [vmem:[#allocation30_spill] sm:$0xff] }
 0x6c7   : > { %v1733_v46 = vadd.f32 %v15236_v50, %v1699_v55  ;;  %v5005_v15 = vadd.f32 0.5, %v4973_v32  ;;  %v5235_v48 = vmul.f32 0.5, %v9928_v6  ;;  %v2223_v18 = vmul.f32 %v15298_v20, %v13524_v8 }
 0x6c8   : > { %v4546_v31 = vadd.f32 %v4514_v26, %v4284_v11  ;;  %9939 = vtanh.f32 %v1504_v58  ;;  %v1995_v49 = vadd.f32 %v15299_v12, %v1961_v59  ;;  %v2485_v38 = vmul.f32 %v15217_v60, %v13524_v8  ;;  %v15301_v59 = vld [vmem:[#allocation70_spill] sm:$0xff] }
 0x6c9   : > { %v1766_v2 = vmul.f32 0.5, %v1733_v46  ;;  %v5038_v50 = vmul.f32 %v15146_v54, %v5005_v15  ;;  %v5267_v28 = vadd.f32 0.5, %v5235_v48  ;;  %v2257_v61 = vadd.f32 %v15193_v39, %v2223_v18  ;;  %v13569_v39 = vpop.xlane.xlu0 %6020  ;;  %v13572_v46 = vpop.xlane.xlu1 %6024 }
 0x6ca   : > { %v9930_v10 = vpop.eup %9929  ;;  %v4808_v34 = vadd.f32 %v4776_v14, %v4546_v31  ;;  %v2028_v56 = vmul.f32 0.5, %v1995_v49  ;;  %v2519_v0 = vadd.f32 %v15147_v47, %v2485_v38  ;;  %v2747_v55 = vmul.f32 %v15300_v22, %v13524_v8 }
 0x6cb   : > { %v5497_v23 = vmul.f32 0.5, %v9930_v10  ;;  %9941 = vtanh.f32 %v1766_v2  ;;  %v5300_v35 = vmul.f32 %v15148_v13, %v5267_v28  ;;  %v2290_v5 = vmul.f32 0.5, %v2257_v61 }
 0x6cc   : > { %v5070_v45 = vadd.f32 %v5038_v50, %v4808_v34  ;;  %v9932_v60 = vpop.eup %9931  ;;  %9943 = vtanh.f32 %v2028_v56  ;;  %v2552_v26 = vmul.f32 0.5, %v2519_v0  ;;  %v3009_v32 = vmul.f32 %v15278_v62, %v13524_v8  ;;  %v15302_v34 = vld [vmem:[#allocation73_spill] sm:$0xff]  ;;  %v15303_v0 = vld [vmem:[#allocation36_spill] sm:$0xff] }
 0x6cd   : > { %v5529_v11 = vadd.f32 0.5, %v5497_v23  ;;  %v9934_v6 = vpop.eup %9933  ;;  %v5759_v58 = vmul.f32 0.5, %v9932_v60  ;;  %9945 = vtanh.f32 %v2290_v5  ;;  %v2781_v47 = vadd.f32 %v15280_v52, %v2747_v55  ;;  %v13586_v60 = vpop.xlane.xlu1 %6026 }
 0x6ce   : > { %v5332_v14 = vadd.f32 %v5300_v35, %v5070_v45  ;;  %v9936_v30 = vpop.eup %9935  ;;  %v782_v15 = vmul.f32 0.5, %v9934_v6  ;;  %9947 = vtanh.f32 %v2552_v26  ;;  %v3043_v48 = vadd.f32 %v15281_v9, %v3009_v32  ;;  %v13583_v35 = vpop.xlane.xlu0 %6022  ;;  %v15304_v6 = vld [vmem:[#allocation74_spill] sm:$0xff] }
 0x6cf   : > { %v5562_v31 = vmul.f32 %v15301_v59, %v5529_v11  ;;  %v9938_v20 = vpop.eup %9937  ;;  %v5791_v18 = vadd.f32 0.5, %v5759_v58  ;;  %v1044_v62 = vmul.f32 0.5, %v9936_v30  ;;  %v2814_v2 = vmul.f32 0.5, %v2781_v47 }
 0x6d0   : > { %v3271_v12 = vmul.f32 %v15173_v17, %v13524_v8  ;;  %v814_v38 = vadd.f32 0.5, %v782_v15  ;;  %v1306_v10 = vmul.f32 0.5, %v9938_v20  ;;  %v3076_v52 = vmul.f32 0.5, %v3043_v48  ;;  %v15305_v15 = vld [vmem:[#allocation51_spill] sm:$0xff] }
 0x6d1   : > { %v5594_v49 = vadd.f32 %v5562_v31, %v5332_v14  ;;  %v5824_v50 = vmul.f32 %v15302_v34, %v5791_v18  ;;  %v1076_v28 = vadd.f32 0.5, %v1044_v62  ;;  %9949 = vtanh.f32 %v2814_v2  ;;  %v15306_v62 = vld [vmem:[#allocation40_spill] sm:$0xff] }
 0x6d2   : > { %v3305_v61 = vadd.f32 %v15240_v3, %v3271_v12  ;;  %v9940_v23 = vpop.eup %9939  ;;  %v847_v9 = vmul.f32 %v15241_v16, %v814_v38  ;;  %v1338_v56 = vadd.f32 0.5, %v1306_v10  ;;  %9951 = vtanh.f32 %v3076_v52  ;;  %v13597_v20 = vpop.xlane.xlu0 %6028 }
 0x6d3   : > { %v3533_v45 = vmul.f32 %v15303_v0, %v13524_v8  ;;  %v5856_v17 = vadd.f32 %v5824_v50, %v5594_v49  ;;  %v1109_v5 = vmul.f32 %v15242_v44, %v1076_v28  ;;  %v1568_v22 = vmul.f32 0.5, %v9940_v23 }
 0x6d4   : > { %v3338_v55 = vmul.f32 0.5, %v3305_v61  ;;  %v1371_v3 = vmul.f32 %v14991_v7, %v1338_v56  ;;  %v3795_v16 = vmul.f32 %v15245_v51, %v13524_v8  ;;  %v4057_v32 = vmul.f32 %v15283_v53, %v13524_v8  ;;  %v13601_v61 = vpop.xlane.xlu1 %6030 }
 0x6d5   : > { %v9942_v11 = vpop.eup %9941  ;;  %v3567_v26 = vadd.f32 %v15246_v21, %v3533_v45  ;;  %v5890_v14 = vadd.f32 %v15304_v6, %v5856_v17  ;;  %v1141_v58 = vadd.f32 %v1109_v5, %v847_v9  ;;  %v1600_v47 = vadd.f32 0.5, %v1568_v22  ;;  %v15307_v5 = vld [vmem:[#allocation59_spill] sm:$0xff] }
 0x6d6   : > { %v1830_v44 = vmul.f32 0.5, %v9942_v11  ;;  %v9944_v30 = vpop.eup %9943  ;;  %9953 = vtanh.f32 %v3338_v55  ;;  %v3829_v48 = vadd.f32 %v15305_v15, %v3795_v16  ;;  %v4091_v7 = vadd.f32 %v15222_v42, %v4057_v32  ;;  %v15308_v11 = vld [vmem:[#allocation42_spill] sm:$0xff]  ;;  %v13609_v16 = vpop.xlane.xlu0 %6032 }
 0x6d7   : > { %v3600_v31 = vmul.f32 0.5, %v3567_v26  ;;  %v9946_v21 = vpop.eup %9945  ;;  %v5922_v18 = vmul.f32 0.5, %v5890_v14  ;;  %v1403_v51 = vadd.f32 %v1371_v3, %v1141_v58  ;;  %v1633_v2 = vmul.f32 %v15306_v62, %v1600_v47  ;;  %v15309_v58 = vld [vmem:[#allocation57_spill] sm:$0xff] }
 0x6d8   : > { %v1862_v53 = vadd.f32 0.5, %v1830_v44  ;;  %v9948_v12 = vpop.eup %9947  ;;  %v2092_v49 = vmul.f32 0.5, %v9944_v30  ;;  %v2354_v38 = vmul.f32 0.5, %v9946_v21  ;;  %v3862_v10 = vmul.f32 0.5, %v3829_v48 }
 0x6d9   : > { %9955 = vtanh.f32 %v3600_v31  ;;  %v1665_v52 = vadd.f32 %v1633_v2, %v1403_v51  ;;  %v2616_v28 = vmul.f32 0.5, %v9948_v12  ;;  %v4124_v9 = vmul.f32 0.5, %v4091_v7  ;;  %v15310_v31 = vld [vmem:[#allocation62_spill] sm:$0xff]  ;;  %v15311_v2 = vld [vmem:[#allocation63_spill] sm:$0xff] }
 0x6da   : > { %9957 = vtanh.f32 %v5922_v18  ;;  %v1895_v50 = vmul.f32 %v15284_v37, %v1862_v53  ;;  %v2124_v42 = vadd.f32 0.5, %v2092_v49  ;;  %v2386_v23 = vadd.f32 0.5, %v2354_v38 }
 0x6db   : > { %9959 = vtanh.f32 %v3862_v10  ;;  %v9950_v56 = vpop.eup %9949  ;;  %v2648_v45 = vadd.f32 0.5, %v2616_v28  ;;  %v4319_v17 = vmul.f32 %v15285_v27, %v13524_v8  ;;  %v4581_v22 = vmul.f32 %v15307_v5, %v13524_v8  ;;  %v13632_v28 = vpop.xlane.xlu0 %6036 }
 0x6dc   : > { %v1927_v0 = vadd.f32 %v1895_v50, %v1665_v52  ;;  %v9952_v55 = vpop.eup %9951  ;;  %v2157_v3 = vmul.f32 %v15308_v11, %v2124_v42  ;;  %v2419_v37 = vmul.f32 %v15250_v57, %v2386_v23  ;;  %v2878_v26 = vmul.f32 0.5, %v9950_v56 }
 0x6dd   : > { %9961 = vtanh.f32 %v4124_v9  ;;  %v2681_v32 = vmul.f32 %v15288_v36, %v2648_v45  ;;  %v3140_v14 = vmul.f32 0.5, %v9952_v55  ;;  %v4353_v47 = vadd.f32 %v15309_v58, %v4319_v17  ;;  %v13620_v36 = vpop.xlane.xlu1 %6034  ;;  %v15312_v9 = vld [vmem:[#allocation71_spill] sm:$0xff]  ;;  %v15313_v17 = vld [vmem:[#allocation34_spill] sm:$0xff] }
 0x6de   : > { %v4615_v44 = vadd.f32 %v15248_v33, %v4581_v22  ;;  %v2189_v27 = vadd.f32 %v2157_v3, %v1927_v0  ;;  %v2910_v30 = vadd.f32 0.5, %v2878_v26  ;;  %v4843_v15 = vmul.f32 %v15310_v31, %v13524_v8  ;;  %v15314_v22 = vld [vmem:[#allocation47_spill] sm:$0xff]  ;;  %v15317_v31 = vld [vmem:[#allocation45_spill] sm:$0xff] }
 0x6df   : > { %v5105_v48 = vmul.f32 %v15251_v41, %v13524_v8  ;;  %v3172_v57 = vadd.f32 0.5, %v3140_v14  ;;  %v4386_v7 = vmul.f32 0.5, %v4353_v47  ;;  %v5367_v18 = vmul.f32 %v15289_v43, %v13524_v8  ;;  %v13630_v43 = vld [vmem:[%s13989_s11] ss:$0 sm:$0xff] }
 0x6e0   : > { %v4648_v21 = vmul.f32 0.5, %v4615_v44  ;;  %v9954_v51 = vpop.eup %9953  ;;  %v2451_v62 = vadd.f32 %v2419_v37, %v2189_v27  ;;  %v2943_v33 = vmul.f32 %v15182_v29, %v2910_v30  ;;  %v4877_v53 = vadd.f32 %v15311_v2, %v4843_v15  ;;  %v15316_v47 = vld [vmem:[#allocation49_spill] sm:$0xff] }
 0x6e1   : > { %v5139_v12 = vadd.f32 %v15184_v25, %v5105_v48  ;;  %v3205_v49 = vmul.f32 %v15161_v24, %v3172_v57  ;;  %v3402_v38 = vmul.f32 0.5, %v9954_v51  ;;  %9963 = vtanh.f32 %v4386_v7  ;;  %v13639_v37 = vpop.xlane.xlu1 %6038  ;;  %v15318_v7 = vld [vmem:[#allocation61_spill] sm:$0xff] }
 0x6e2   : > { %v5401_v41 = vadd.f32 %v15138_v19, %v5367_v18  ;;  %v2713_v52 = vadd.f32 %v2681_v32, %v2451_v62  ;;  %9965 = vtanh.f32 %v4648_v21  ;;  %v4910_v50 = vmul.f32 0.5, %v4877_v53  ;;  %v15319_v18 = vld [vmem:[#allocation27_spill] sm:$0xff]  ;;  %v13652_v62 = vpop.xlane.xlu0 %6040 }
 0x6e3   : > { %v9956_v10 = vpop.eup %9955  ;;  %v5172_v29 = vmul.f32 0.5, %v5139_v12  ;;  %v3434_v25 = vadd.f32 0.5, %v3402_v38  ;;  %v5629_v56 = vmul.f32 %v15312_v9, %v13524_v8  ;;  %v6739_v5 = vadd.f32 %v15313_v17, %v13630_v43  ;;  %v15315_v8 = vld [vmem:[#allocation72_spill] sm:$0xff]  ;;  %v15320_v12 = vld [vmem:[#allocation21_spill] sm:$0xff] }
 0x6e4   : > { %v9958_v42 = vpop.eup %9957  ;;  %v3664_v23 = vmul.f32 0.5, %v9956_v10  ;;  %v5434_v24 = vmul.f32 0.5, %v5401_v41  ;;  %v2975_v45 = vadd.f32 %v2943_v33, %v2713_v52  ;;  %9967 = vtanh.f32 %v4910_v50  ;;  %v15321_v10 = vld [vmem:[#allocation28_spill] sm:$0xff] }
 0x6e5   : > { %v9960_v19 = vpop.eup %9959  ;;  %v5986_v0 = vmul.f32 0.5, %v9958_v42  ;;  %v3467_v55 = vmul.f32 %v15314_v22, %v3434_v25  ;;  %9969 = vtanh.f32 %v5172_v29  ;;  %v5663_v58 = vadd.f32 %v15315_v8, %v5629_v56  ;;  %v15322_v42 = vld [vmem:[#allocation54_spill] sm:$0xff]  ;;  %v15325_v22 = vld [vmem:[#allocation23_spill] sm:$0xff] }
 0x6e6   : > { %v3696_v11 = vadd.f32 0.5, %v3664_v23  ;;  %v3926_v3 = vmul.f32 0.5, %v9960_v19  ;;  %v3237_v14 = vadd.f32 %v3205_v49, %v2975_v45  ;;  %9971 = vtanh.f32 %v5434_v24  ;;  %v13665_v24 = vpop.xlane.xlu1 %6042  ;;  %v15327_v8 = vld [vmem:[#allocation35_spill] sm:$0xff] }
 0x6e7   : > { %v9962_v26 = vpop.eup %9961  ;;  %v13641_v32 = vadd.f32 0.5, %v5986_v0  ;;  %v6734_v15 = vadd.f32 %v13630_v43, %v15317_v31  ;;  %v5696_v57 = vmul.f32 0.5, %v5663_v58  ;;  %v6749_v21 = vadd.f32 %v15318_v7, %v13630_v43 }
 0x6e8   : > { %v3729_v44 = vmul.f32 %v15316_v47, %v3696_v11  ;;  %v3958_v27 = vadd.f32 0.5, %v3926_v3  ;;  %v4188_v30 = vmul.f32 0.5, %v9962_v26  ;;  %v3499_v48 = vadd.f32 %v3467_v55, %v3237_v14  ;;  %v13675_v47 = vpop.xlane.xlu0 %6044 }
 0x6e9   : > { %6080 = vadd.xlane.f32.xlu0 %v13641_v32  ;;  %v6744_v51 = vadd.f32 %v13630_v43, %v15319_v18  ;;  %v8509_v53 = vpack.c.bf16 %v6739_v5, %v6734_v15  ;;  %v6759_v49 = vadd.f32 %v15320_v12, %v13630_v43  ;;  %9973 = vtanh.f32 %v5696_v57  ;;  %v15328_v15 = vld [vmem:[#allocation37_spill] sm:$0xff] }
 0x6ea   : > { %v3991_v33 = vmul.f32 %v15296_v4, %v3958_v27  ;;  %v4220_v2 = vadd.f32 0.5, %v4188_v30  ;;  %v3761_v38 = vadd.f32 %v3729_v44, %v3499_v48  ;;  %v6754_v52 = vadd.f32 %v13630_v43, %v15321_v10  ;;  %v15323_v4 = vld [vmem:[#allocation14_spill] sm:$0xff] }
 0x6eb   : > { %v8513_v41 = vpack.c.bf16 %v6749_v21, %v6744_v51  ;;  %v9964_v50 = vpop.eup %9963  ;;  %8510 = vmatprep.subr.bf16.mxu0 %v8509_v53  ;;  %8545 = vmatprep.subr.bf16.mxu1 %v8509_v53  ;;  %v6769_v25 = vadd.f32 %v15322_v42, %v13630_v43  ;;  %v6764_v23 = vadd.f32 %v13630_v43, %v15323_v4  ;;  %9975 = vrcp.f32 %v13569_v39  ;;  %v15326_v39 = vld [vmem:[#allocation58_spill] sm:$0xff]  ;;  %v15331_v42 = vld [vmem:[#allocation48_spill] sm:$0xff] }
 0x6ec   : > { %v4253_v29 = vmul.f32 %v15266_v1, %v4220_v2  ;;  %v9966_v9 = vpop.eup %9965  ;;  %v4023_v56 = vadd.f32 %v3991_v33, %v3761_v38  ;;  %v4450_v19 = vmul.f32 0.5, %v9964_v50  ;;  %8512 = vmatpush3.bf16.msra.mxu0 %v8509_v53  ;;  %8553 = vmatpush3.bf16.msra.mxu1 %v8509_v53  ;;  %v8517_v0 = vpack.c.bf16 %v6759_v49, %v6754_v52  ;;  %v15324_v1 = vld [vmem:[#allocation16_spill] sm:$0xff]  ;;  %v15329_v53 = vld [vmem:[#allocation38_spill] sm:$0xff]  ;;  %v6047_v49 = vpop.xlane.xlu1 %6046 }
 0x6ed   : > { %v6779_v45 = vadd.f32 %v15324_v1, %v13630_v43  ;;  %v4712_v17 = vmul.f32 0.5, %v9966_v9  ;;  %8514 = vmatprep.subr.bf16.mxu0 %v8513_v41  ;;  %8546 = vmatprep.subr.bf16.mxu1 %v8513_v41  ;;  %v8521_v5 = vpack.c.bf16 %v6769_v25, %v6764_v23  ;;  %v6774_v55 = vadd.f32 %v13630_v43, %v15325_v22  ;;  %v15330_v52 = vld [vmem:[#allocation50_spill] sm:$0xff]  ;;  %v6049_v9 = vpop.xlane.xlu0 %6048 }
 0x6ee   : > { %v6789_v11 = vadd.f32 %v15326_v39, %v13630_v43  ;;  %v9968_v3 = vpop.eup %9967  ;;  %v4285_v26 = vadd.f32 %v4253_v29, %v4023_v56  ;;  %v4482_v14 = vadd.f32 0.5, %v4450_v19  ;;  %v6784_v58 = vadd.f32 %v13630_v43, %v15327_v8  ;;  %v15334_v8 = vld [vmem:[#allocation77_spill] sm:$0xff] }
 0x6ef   : > { %v9970_v44 = vpop.eup %9969  ;;  %v4744_v27 = vadd.f32 0.5, %v4712_v17  ;;  %v4974_v30 = vmul.f32 0.5, %v9968_v3  ;;  %v8525_v31 = vpack.c.bf16 %v6779_v45, %v6774_v55  ;;  %v6799_v48 = vadd.f32 %v15328_v15, %v13630_v43  ;;  %v15332_v17 = vld [vmem:[#allocation75_spill] sm:$0xff]  ;;  %v15337_v15 = vld [vmem:[#allocation85_spill] sm:$0xff] }
 0x6f0   : > { %v9972_v57 = vpop.eup %9971  ;;  %v4515_v7 = vmul.f32 %v15237_v40, %v4482_v14  ;;  %v5236_v21 = vmul.f32 0.5, %v9970_v44  ;;  %8516 = vmatpush3.bf16.msra.mxu0 %v8513_v41  ;;  %8554 = vmatpush3.bf16.msra.mxu1 %v8513_v41  ;;  %v8529_v18 = vpack.c.bf16 %v6789_v11, %v6784_v58  ;;  %v6794_v12 = vadd.f32 %v13630_v43, %v15329_v53 }
 0x6f1   : > { %v4777_v51 = vmul.f32 %v15192_v63, %v4744_v27  ;;  %v5006_v33 = vadd.f32 0.5, %v4974_v30  ;;  %v5498_v2 = vmul.f32 0.5, %v9972_v57  ;;  %8518 = vmatprep.subr.bf16.mxu0 %v8517_v0  ;;  %8547 = vmatprep.subr.bf16.mxu1 %v8517_v0  ;;  %v6809_v50 = vadd.f32 %v15330_v52, %v13630_v43  ;;  %v15336_v30 = vld [vmem:[#allocation76_spill] sm:$0xff] }
 0x6f2   : > { %v4547_v38 = vadd.f32 %v4515_v7, %v4285_v26  ;;  %v5268_v10 = vadd.f32 0.5, %v5236_v21  ;;  %v8533_v41 = vpack.c.bf16 %v6799_v48, %v6794_v12  ;;  %v6804_v63 = vadd.f32 %v13630_v43, %v15331_v42  ;;  %v15340_v12 = vld [vmem:[#allocation79_spill] sm:$0xff]  ;;  %v15342_v42 = vld [vmem:[#allocation80_spill] sm:$0xff] }
 0x6f3   : > { %v5039_v40 = vmul.f32 %v15146_v54, %v5006_v33  ;;  %v5530_v29 = vadd.f32 0.5, %v5498_v2  ;;  %v9974_v25 = vpop.eup %9973  ;;  %9977 = vrcp.f32 %v13572_v46  ;;  %v6053_v46 = vpop.xlane.xlu0 %6052  ;;  %v15339_v33 = vld [vmem:[#allocation86_spill] sm:$0xff] }
 0x6f4   : > { %v4809_v4 = vadd.f32 %v4777_v51, %v4547_v38  ;;  %v5301_v23 = vmul.f32 %v15148_v13, %v5268_v10  ;;  %8520 = vmatpush3.bf16.msra.mxu0 %v8517_v0  ;;  %8555 = vmatpush3.bf16.msra.mxu1 %v8517_v0  ;;  %v5760_v19 = vmul.f32 0.5, %v9974_v25  ;;  %v13689_v1 = vpack.c.bf16 %v6809_v50, %v6804_v63  ;;  %v6051_v13 = vpop.xlane.xlu1 %6050  ;;  %v15341_v38 = vld [vmem:[#allocation87_spill] sm:$0xff]  ;;  %v15343_v25 = vld [vmem:[#allocation88_spill] sm:$0xff] }
 0x6f5   : > { %v9976_v56 = vpop.eup %9975  ;;  %8522 = vmatprep.subr.bf16.mxu0 %v8521_v5  ;;  %8548 = vmatprep.subr.bf16.mxu1 %v8521_v5  ;;  %v5563_v54 = vmul.f32 %v15301_v59, %v5530_v29  ;;  %9979 = vrcp.f32 %v13583_v35 }
 0x6f6   : > { %v5071_v45 = vadd.f32 %v5039_v40, %v4809_v4  ;;  %v6085_v43 = vmul.f32 %v9976_v56, %v15332_v17  ;;  %v5792_v22 = vadd.f32 0.5, %v5760_v19  ;;  %9981 = vrcp.f32 %v13632_v28  ;;  %v15344_v56 = vld [vmem:[#allocation81_spill] sm:$0xff] }
 0x6f7   : > { %9983 = vrcp.f32 %v13586_v60 }
 0x6f8   : > { %v5333_v55 = vadd.f32 %v5301_v23, %v5071_v45  ;;  %8524 = vmatpush3.bf16.msra.mxu0 %v8521_v5  ;;  %8556 = vmatpush3.bf16.msra.mxu1 %v8521_v5  ;;  %v5825_v0 = vmul.f32 %v15302_v34, %v5792_v22  ;;  %9985 = vrcp.f32 %v13639_v37  ;;  %v6055_v34 = vpop.xlane.xlu1 %6054 }
 0x6f9   : > { %8526 = vmatprep.subr.bf16.mxu0 %v8525_v31  ;;  %8549 = vmatprep.subr.bf16.mxu1 %v8525_v31  ;;  %9987 = vrcp.f32 %v13652_v62  ;;  %v6057_v62 = vpop.xlane.xlu0 %6056 }
 0x6fa   : > { %v5595_v59 = vadd.f32 %v5563_v54, %v5333_v55  ;;  %8349 = vmatprep.mubr.f32.mxu0 %v6085_v43  ;;  %9989 = vrcp.f32 %v13597_v20  ;;  %v15346_v43 = vld [vmem:[#allocation82_spill] sm:$0xff] }
 0x6fb   : > { %9991 = vrcp.f32 %v13601_v61 }
 0x6fc   : > { %v5857_v35 = vadd.f32 %v5825_v0, %v5595_v59  ;;  %8528 = vmatpush3.bf16.msra.mxu0 %v8525_v31  ;;  %8557 = vmatpush3.bf16.msra.mxu1 %v8525_v31  ;;  %9993 = vrcp.f32 %v13665_v24  ;;  %v6059_v24 = vpop.xlane.xlu1 %6058  ;;  %v15348_v59 = vld [vmem:[#allocation91_spill] sm:$0xff] }
 0x6fd   : > { %8530 = vmatprep.subr.bf16.mxu0 %v8529_v18  ;;  %8550 = vmatprep.subr.bf16.mxu1 %v8529_v18  ;;  %9995 = vrcp.f32 %v13675_v47  ;;  %v9978_v60 = vpop.eup %9977  ;;  %v6061_v26 = vpop.xlane.xlu0 %6060  ;;  %v15335_v47 = vld [vmem:[#allocation84_spill] sm:$0xff] }
 0x6fe   : > { %v5891_v28 = vadd.f32 %v15304_v6, %v5857_v35  ;;  %9997 = vrcp.f32 %v13609_v16  ;;  %v15333_v6 = vld [vmem:[#allocation83_spill] sm:$0xff]  ;;  %v6089_v31 = vmul.f32 %v9978_v60, %v15336_v30 }
 0x6ff   : > { %v9980_v5 = vpop.eup %9979  ;;  %9999 = vrcp.f32 %v6047_v49 }
 0x700   : > { %v5923_v37 = vmul.f32 0.5, %v5891_v28  ;;  %8532 = vmatpush3.bf16.msra.mxu0 %v8529_v18  ;;  %8558 = vmatpush3.bf16.msra.mxu1 %v8529_v18  ;;  %v9982_v20 = vpop.eup %9981  ;;  %v6087_v58 = vmul.f32 %v9980_v5, %v15334_v8  ;;  %v6063_v57 = vpop.xlane.xlu1 %6062  ;;  %v15338_v18 = vld [vmem:[#allocation78_spill] sm:$0xff]  ;;  %v15349_v28 = vld [vmem:[#allocation39_spill] sm:$0xff] }
 0x701   : > { %8534 = vmatprep.subr.bf16.mxu0 %v8533_v41  ;;  %8551 = vmatprep.subr.bf16.mxu1 %v8533_v41  ;;  %v9984_v61 = vpop.eup %9983  ;;  %v6101_v39 = vmul.f32 %v9982_v20, %v15333_v6  ;;  %v6065_v52 = vpop.xlane.xlu0 %6064  ;;  %v15351_v6 = vld [vmem:[#allocation93_spill] sm:$0xff] }
 0x702   : > { %10001 = vtanh.f32 %v5923_v37  ;;  %v9986_v11 = vpop.eup %9985  ;;  %v6091_v51 = vmul.f32 %v9984_v61, %v15338_v18 }
 0x703   : > { %10003 = vrcp.f32 %v6049_v9  ;;  %v9988_v3 = vpop.eup %9987  ;;  %8361 = vmatprep.mubr.f32.mxu1 %v6101_v39  ;;  %v6103_v44 = vmul.f32 %v9986_v11, %v15335_v47  ;;  %v15354_v47 = vld [vmem:[#allocation96_spill] sm:$0xff] }
 0x704   : > { %8536 = vmatpush3.bf16.msra.mxu0 %v8533_v41  ;;  %8559 = vmatpush3.bf16.msra.mxu1 %v8533_v41  ;;  %10005 = vrcp.f32 %v13620_v36  ;;  %v9990_v16 = vpop.eup %9989  ;;  %v6105_v48 = vmul.f32 %v9988_v3, %v15337_v15  ;;  %v6067_v23 = vpop.xlane.xlu1 %6066  ;;  %v15352_v3 = vld [vmem:[#allocation94_spill] sm:$0xff] }
 0x705   : > { %8538 = vmatprep.subr.bf16.mxu0 %v13689_v1  ;;  %8552 = vmatprep.subr.bf16.mxu1 %v13689_v1  ;;  %10007 = vrcp.f32 %v6051_v13  ;;  %v9992_v14 = vpop.eup %9991  ;;  %v6093_v49 = vmul.f32 %v9990_v16, %v15340_v12  ;;  %v6069_v17 = vpop.xlane.xlu0 %6068  ;;  %v15347_v13 = vld [vmem:[#allocation90_spill] sm:$0xff] }
 0x706   : > { %10009 = vrcp.f32 %v6053_v46  ;;  %v9994_v27 = vpop.eup %9993  ;;  %v6095_v63 = vmul.f32 %v9992_v14, %v15342_v42  ;;  %v15353_v14 = vld [vmem:[#allocation95_spill] sm:$0xff] }
 0x707   : > { %v9996_v36 = vpop.eup %9995  ;;  %10011 = vrcp.f32 %v6055_v34  ;;  %v6107_v2 = vmul.f32 %v9994_v27, %v15339_v33  ;;  %v15358_v33 = vld [vmem:[#allocation67_spill] sm:$0xff] }
 0x708   : > { %8540 = vmatpush3.bf16.msra.mxu0 %v13689_v1  ;;  %8560 = vmatpush3.bf16.msra.mxu1 %v13689_v1  ;;  %v9998_v7 = vpop.eup %9997  ;;  %10013 = vrcp.f32 %v6057_v62  ;;  %v6109_v10 = vmul.f32 %v9996_v36, %v15341_v38  ;;  %v15345_v1 = vld [vmem:[#allocation89_spill] sm:$0xff]  ;;  %v6071_v34 = vpop.xlane.xlu1 %6070  ;;  %v15350_v62 = vld [vmem:[#allocation92_spill] sm:$0xff] }
 0x709   : > { %v10000_v21 = vpop.eup %9999  ;;  %10015 = vrcp.f32 %v6059_v24  ;;  %v6097_v19 = vmul.f32 %v9998_v7, %v15344_v56  ;;  %v6073_v20 = vpop.xlane.xlu0 %6072  ;;  %v15356_v36 = vld [vmem:[#allocation64_spill] sm:$0xff] }
 0x70a   : > { %v6111_v4 = vmul.f32 %v10000_v21, %v15343_v25  ;;  %10017 = vrcp.f32 %v6061_v26  ;;  %v15357_v21 = vld [vmem:[#allocation29_spill] sm:$0xff] }
 0x70b   : > { %8350 = vmatmul.mubr.f32.vlgmr.msra.gmra.mrb[32].mxu0 %v6087_v58  ;;  %8362 = vmatmul.mubr.f32.vlgmr.msra.gmra.mrb[16].mxu1 %v6103_v44  ;;  %10019 = vrcp.f32 %v6063_v57 }
 0x70c   : > { %v10002_v53 = vpop.eup %10001  ;;  %8352 = vmatprep.mubr.f32.mxu0 %v6089_v31  ;;  %8364 = vmatprep.mubr.f32.mxu1 %v6105_v48  ;;  %10021 = vrcp.f32 %v6065_v52  ;;  %v6075_v24 = vpop.xlane.xlu1 %6074  ;;  %v15355_v31 = vld [vmem:[#allocation69_spill] sm:$0xff] }
 0x70d   : > { %v10004_v50 = vpop.eup %10003  ;;  %v5987_v40 = vmul.f32 0.5, %v10002_v53  ;;  %10023 = vrcp.f32 %v6067_v23  ;;  %v15359_v53 = vld [vmem:[#allocation46_spill] sm:$0xff] }
 0x70e   : > { %v10006_v29 = vpop.eup %10005  ;;  %v6113_v45 = vmul.f32 %v10004_v50, %v15345_v1  ;;  %10025 = vrcp.f32 %v6069_v17 }
 0x70f   : > { %v13720_v41 = vadd.f32 0.5, %v5987_v40  ;;  %8353 = vmatmul.mubr.f32.gmra.mrb[34].mxu0 %v6091_v51  ;;  %8365 = vmatmul.mubr.f32.gmra.mrb[18].mxu1 %v6107_v2  ;;  %v10008_v9 = vpop.eup %10007  ;;  %v6099_v22 = vmul.f32 %v10006_v29, %v15346_v43  ;;  %10027 = vrcp.f32 %v6071_v34  ;;  %v15361_v29 = vld [vmem:[#allocation60_spill] sm:$0xff] }
 0x710   : > { %8355 = vmatprep.mubr.f32.mxu0 %v6093_v49  ;;  %8367 = vmatprep.mubr.f32.mxu1 %v6109_v10  ;;  %v10010_v54 = vpop.eup %10009  ;;  %v6115_v55 = vmul.f32 %v10008_v9, %v15347_v13  ;;  %10029 = vrcp.f32 %v6073_v20  ;;  %v7037_v49 = vld [vmem:[%s13990_s12] sm:$0xff] }
 0x711   : > { %6082 = vadd.xlane.f32.xlu1 %v13720_v41  ;;  %v10012_v0 = vpop.eup %10011  ;;  %v6117_v46 = vmul.f32 %v10010_v54, %v15348_v59  ;;  %10031 = vrcp.f32 %v6075_v24  ;;  %8397 = vmatprep.subr.mxu0 %v7037_v49  ;;  %v15360_v10 = vld [vmem:[#allocation66_spill] sm:$0xff] }
 0x712   : > { %v10014_v35 = vpop.eup %10013  ;;  %v6119_v60 = vmul.f32 %v10012_v0, %v15349_v28  ;;  %8398 = vmatpush3.msra.mxu0 %v7037_v49 }
 0x713   : > { %8356 = vmatmul.mubr.f32.gmra.mrb[36].mxu0 %v6095_v63  ;;  %8368 = vmatmul.mubr.f32.gmra.mrb[20].mxu1 %v6111_v4  ;;  %v10016_v37 = vpop.eup %10015  ;;  %v6121_v5 = vmul.f32 %v10014_v35, %v15350_v62 }
 0x714   : > { %8358 = vmatprep.mubr.f32.mxu0 %v6097_v19  ;;  %8370 = vmatprep.mubr.f32.mxu1 %v6113_v45  ;;  %v10018_v61 = vpop.eup %10017  ;;  %v6123_v39 = vmul.f32 %v10016_v37, %v15351_v6 }
 0x715   : > { %v10020_v11 = vpop.eup %10019  ;;  %v6125_v16 = vmul.f32 %v10018_v61, %v15352_v3  ;;  %v7398_v3 = vld [vmem:[%s13992_s14] sm:$0xff] }
 0x716   : > { %v10022_v26 = vpop.eup %10021  ;;  %v6127_v8 = vmul.f32 %v10020_v11, %v15353_v14 }
 0x717   : > { %8359 = vmatmul.mubr.f32.gmra.mrb[38].mxu0 %v6099_v22  ;;  %8371 = vmatmul.mubr.f32.gmra.mrb[22].mxu1 %v6115_v55  ;;  %v10024_v58 = vpop.eup %10023  ;;  %v6129_v44 = vmul.f32 %v10022_v26, %v15354_v47 }
 0x718   : > { %8373 = vmatprep.mubr.f32.mxu1 %v6117_v46  ;;  %v10026_v27 = vpop.eup %10025  ;;  %v6131_v15 = vmul.f32 %v10024_v58, %v15355_v31 }
 0x719   : > { %v10028_v48 = vpop.eup %10027  ;;  %v6133_v57 = vmul.f32 %v10026_v27, %v15356_v36 }
 0x71a   : > { %v10030_v7 = vpop.eup %10029  ;;  %v6135_v18 = vmul.f32 %v10028_v48, %v15357_v21 }
 0x71b   : > { %8374 = vmatmul.mubr.f32.gmra.mrb[24].mxu1 %v6119_v60  ;;  %v10032_v51 = vpop.eup %10031  ;;  %v6137_v2 = vmul.f32 %v10030_v7, %v15358_v33 }
 0x71c   : > { %8376 = vmatprep.mubr.f32.mxu1 %v6121_v5  ;;  %v6139_v12 = vmul.f32 %v10032_v51, %v15359_v53 }
 0x71f   : > { %8377 = vmatmul.mubr.f32.gmra.mrb[26].mxu1 %v6123_v39 }
 0x720   : > { %8379 = vmatprep.mubr.f32.mxu1 %v6125_v16  ;;  %v7399_v16 = vld [vmem:[%s13992_s14 + $0x8] sm:$0xff] }
 0x721   : > { %v8541_v14 = vpack.c.bf16 %v7399_v16, %v7398_v3 }
 0x722   : > { %v6077_v30 = vpop.xlane.xlu0 %6076 }
 0x723   : > { %8380 = vmatmul.mubr.f32.gmra.mrb[28].mxu1 %v6127_v8  ;;  %10033 = vrcp.f32 %v6077_v30  ;;  %v7400_v8 = vld [vmem:[%s13992_s14 + $0x10] sm:$0xf]  ;;  %8542 = vmatprep.subr.bf16.mxu1 %v8541_v14  ;;  %v13794_v30 = vld [vmem:[%s13991_s13] ss:$0 sm:$0xff] }
 0x724   : > { %8382 = vmatprep.mubr.f32.mxu1 %v6129_v44  ;;  %8544 = vmatpush3.bf16.msra.mxu1 %v8541_v14 }
 0x725   : > { %8451 = vmatprep.subr.msk.mxu1 %vm6441_vm1, %v7400_v8 }
 0x727   : > { %8383 = vmatmul.mubr.f32.gmra.mrb[30].mxu1 %v6131_v15 }
 0x728   : > { %8385 = vmatprep.mubr.f32.mxu1 %v6133_v57  ;;  %8452 = vmatpush3.msk.msra.mxu1 %vm6441_vm1, %v7400_v8 }
 0x72b   : > { %8386 = vmatmul.mubr.f32.gmra.mrb[32].mxu1 %v6135_v18 }
 0x72c   : > { %8388 = vmatprep.mubr.f32.mxu1 %v6137_v2 }
 0x72d   : > { %v10034_v38 = vpop.eup %10033 }
 0x72e   : > { %v6141_v52 = vmul.f32 %v10034_v38, %v15360_v10 }
 0x72f   : > { %8389 = vmatmul.mubr.f32.gmra.mrb[34].mxu1 %v6139_v12 }
 0x730   : > { %8391 = vmatprep.mubr.f32.mxu1 %v6141_v52 }
 0x74b   : > { %v6079_v50 = vpop.xlane.xlu1 %6078 }
 0x74c   : > { %10035 = vrcp.f32 %v6079_v50 }
 0x756   : > { %v10036_v40 = vpop.eup %10035 }
 0x757   : > { %v6143_v42 = vmul.f32 %v10036_v40, %v15361_v29 }
 0x759   : > { %8392 = vmatmul.mubr.f32.gmra.mrb[36].mxu1 %v6143_v42 }
 0x776   : > { %v6081_v63 = vpop.xlane.xlu0 %6080 }
 0x777   : > { %10037 = vrcp.f32 %v6081_v63 }
 0x781   : > { %v10038_v25 = vpop.eup %10037 }
 0x782   : > { %v6145_v4 = vmul.f32 %v10038_v25, %v13641_v32 }
 0x784   : > { %8394 = vmatprep.mubr.f32.mxu1 %v6145_v4 }
 0x79e   : > { %v6083_v23 = vpop.xlane.xlu1 %6082 }
 0x79f   : > { %10039 = vrcp.f32 %v6083_v23 }
 0x7a9   : > { %v10040_v9 = vpop.eup %10039 }
 0x7aa   : > { %v6147_v56 = vmul.f32 %v10040_v9, %v13720_v41 }
 0x7ac   : > { %8395 = vmatmul.mubr.f32.gmra.mrb[38].mxu1 %v6147_v56 }
 0x7de   : > { %v8351_v19 = vpop.f32.mrb[32].mxu0  ;;  %v8363_v1 = vpop.f32.mrb[16].mxu1 }
 0x7df   : > { %v6878_v45 = vpop.f32.mrb[33].mxu0  ;;  %v6918_v54 = vpop.f32.mrb[17].mxu1 }
 0x7e0   : > { %8399 = vmatprep.mubr.msk.f32.mxu0 %vm6172_vm0, %v6878_v45 }
 0x7e1   : > { %8400 = vmatmul.mubr.msk.f32.vlgmr.msra.gmra.mrb[40].mxu0 %vm6172_vm0, %v8351_v19 }
 0x7e2   : > { %v8354_v17 = vpop.f32.mrb[34].mxu0  ;;  %v8366_v43 = vpop.f32.mrb[18].mxu1 }
 0x7e3   : > { %v6888_v22 = vpop.f32.mrb[35].mxu0  ;;  %v6928_v13 = vpop.f32.mrb[19].mxu1 }
 0x7e4   : > { %8402 = vmatprep.mubr.msk.f32.mxu0 %vm6172_vm0, %v6888_v22 }
 0x7e5   : > { %8403 = vmatmul.mubr.msk.f32.gmra.mrb[42].mxu0 %vm6172_vm0, %v8354_v17 }
 0x7e6   : > { %v8357_v32 = vpop.f32.mrb[36].mxu0  ;;  %v8369_v55 = vpop.f32.mrb[20].mxu1 }
 0x7e7   : > { %v6898_v41 = vpop.f32.mrb[37].mxu0  ;;  %v6938_v0 = vpop.f32.mrb[21].mxu1 }
 0x7e8   : > { %8405 = vmatprep.mubr.msk.f32.mxu0 %vm6172_vm0, %v6898_v41 }
 0x7e9   : > { %8406 = vmatmul.mubr.msk.f32.gmra.mrb[44].mxu0 %vm6172_vm0, %v8357_v32 }
 0x7ea   : > { %v8360_v59 = vpop.f32.mrb[38].mxu0  ;;  %v8372_v46 = vpop.f32.mrb[22].mxu1 }
 0x7eb   : > { %v6908_v35 = vpop.f32.mrb[39].mxu0  ;;  %v6948_v34 = vpop.f32.mrb[23].mxu1 }
 0x7ec   : > { %8408 = vmatprep.mubr.msk.f32.mxu0 %vm6172_vm0, %v6908_v35 }
 0x7ed   : > { %8409 = vmatmul.mubr.msk.f32.gmra.mrb[46].mxu0 %vm6172_vm0, %v8360_v59 }
 0x7ee   : > { %8411 = vmatprep.mubr.msk.f32.mxu0 %vm6172_vm0, %v6918_v54  ;;  %v8375_v28 = vpop.f32.mrb[24].mxu1 }
 0x7ef   : > { %v6958_v60 = vpop.f32.mrb[25].mxu1 }
 0x7f1   : > { %8412 = vmatmul.mubr.msk.f32.gmra.mrb[48].mxu0 %vm6172_vm0, %v8363_v1 }
 0x7f2   : > { %8414 = vmatprep.mubr.msk.f32.mxu0 %vm6172_vm0, %v6928_v13  ;;  %v8378_v37 = vpop.f32.mrb[26].mxu1 }
 0x7f3   : > { %v6968_v62 = vpop.f32.mrb[27].mxu1 }
 0x7f5   : > { %8415 = vmatmul.mubr.msk.f32.gmra.mrb[50].mxu0 %vm6172_vm0, %v8366_v43 }
 0x7f6   : > { %8417 = vmatprep.mubr.msk.f32.mxu0 %vm6172_vm0, %v6938_v0  ;;  %v8381_v5 = vpop.f32.mrb[28].mxu1 }
 0x7f7   : > { %v6978_v20 = vpop.f32.mrb[29].mxu1 }
 0x7f9   : > { %8418 = vmatmul.mubr.msk.f32.gmra.mrb[52].mxu0 %vm6172_vm0, %v8369_v55 }
 0x7fa   : > { %8420 = vmatprep.mubr.msk.f32.mxu0 %vm6172_vm0, %v6948_v34  ;;  %v8384_v61 = vpop.f32.mrb[30].mxu1 }
 0x7fb   : > { %v6988_v6 = vpop.f32.mrb[31].mxu1 }
 0x7fd   : > { %8421 = vmatmul.mubr.msk.f32.gmra.mrb[54].mxu0 %vm6172_vm0, %v8372_v46 }
 0x7fe   : > { %8423 = vmatprep.mubr.msk.f32.mxu0 %vm6172_vm0, %v6958_v60  ;;  %v8387_v39 = vpop.f32.mrb[32].mxu1 }
 0x7ff   : > { %v6998_v24 = vpop.f32.mrb[33].mxu1 }
 0x801   : > { %8424 = vmatmul.mubr.msk.f32.gmra.mrb[56].mxu0 %vm6172_vm0, %v8375_v28 }
 0x802   : > { %8426 = vmatprep.mubr.msk.f32.mxu0 %vm6172_vm0, %v6968_v62  ;;  %v8390_v11 = vpop.f32.mrb[34].mxu1 }
 0x803   : > { %v7008_v26 = vpop.f32.mrb[35].mxu1 }
 0x805   : > { %8427 = vmatmul.mubr.msk.f32.gmra.mrb[58].mxu0 %vm6172_vm0, %v8378_v37 }
 0x806   : > { %8429 = vmatprep.mubr.msk.f32.mxu0 %vm6172_vm0, %v6978_v20 }
 0x809   : > { %8430 = vmatmul.mubr.msk.f32.gmra.mrb[60].mxu0 %vm6172_vm0, %v8381_v5 }
 0x80a   : > { %8432 = vmatprep.mubr.msk.f32.mxu0 %vm6172_vm0, %v6988_v6 }
 0x80d   : > { %8433 = vmatmul.mubr.msk.f32.gmra.mrb[62].mxu0 %vm6172_vm0, %v8384_v61 }
 0x80e   : > { %8435 = vmatprep.mubr.msk.f32.mxu0 %vm6172_vm0, %v6998_v24 }
 0x811   : > { %8436 = vmatmul.mubr.msk.f32.gmra.mrb[64].mxu0 %vm6172_vm0, %v8387_v39 }
 0x812   : > { %8438 = vmatprep.mubr.msk.f32.mxu0 %vm6172_vm0, %v7008_v26 }
 0x815   : > { %8439 = vmatmul.mubr.msk.f32.gmra.mrb[66].mxu0 %vm6172_vm0, %v8390_v11 }
 0x82c   : > { %v8393_v58 = vpop.f32.mrb[36].mxu1 }
 0x82d   : > { %v7018_v47 = vpop.f32.mrb[37].mxu1 }
 0x82e   : > { %8441 = vmatprep.mubr.msk.f32.mxu0 %vm6172_vm0, %v7018_v47 }
 0x82f   : > { %8442 = vmatmul.mubr.msk.f32.gmra.mrb[68].mxu0 %vm6172_vm0, %v8393_v58 }
 0x87f   : > { %v8396_v44 = vpop.f32.mrb[38].mxu1 }
 0x880   : > { %v7028_v27 = vpop.f32.mrb[39].mxu1 }
 0x881   : > { %8444 = vmatprep.mubr.msk.f32.mxu0 %vm6172_vm0, %v7028_v27 }
 0x882   : > { %8445 = vmatmul.mubr.msk.f32.gmra.mrb[70].mxu0 %vm6172_vm0, %v8396_v44 }
 0x8b4   : > { %v8401_v31 = vpop.f32.mrb[40].mxu0 }
 0x8b5   : > { %v7213_v15 = vadd.f32 %v8401_v31, %v13794_v30  ;;  %v7207_v48 = vpop.f32.mrb[41].mxu0 }
 0x8b6   : > { %v7208_v36 = vadd.f32 %v13794_v30, %v7207_v48 }
 0x8b7   : > { %v7367_v21 = vmax.f32 %v7213_v15, 0.0 }
 0x8b8   : > { %v7366_v57 = vmax.f32 %v7208_v36, 0.0  ;;  %v8404_v7 = vpop.f32.mrb[42].mxu0 }
 0x8b9   : > { %v7223_v18 = vadd.f32 %v8404_v7, %v13794_v30  ;;  %v7217_v51 = vpop.f32.mrb[43].mxu0 }
 0x8ba   : > { %v7218_v33 = vadd.f32 %v13794_v30, %v7217_v51  ;;  %8453 = vmatprep.mubr.msk.f32.mxu1 %vm6392_vm2, %v7366_v57 }
 0x8bb   : > { %8454 = vmatmul.mubr.msk.f32.vlgmr.msra.gmra.mrb[40].mxu1 %vm6392_vm2, %v7367_v21  ;;  %v7369_v12 = vmax.f32 %v7223_v18, 0.0 }
 0x8bc   : > { %v7368_v2 = vmax.f32 %v7218_v33, 0.0  ;;  %v8407_v53 = vpop.f32.mrb[44].mxu0 }
 0x8bd   : > { %v7233_v49 = vadd.f32 %v8407_v53, %v13794_v30  ;;  %v7227_v38 = vpop.f32.mrb[45].mxu0 }
 0x8be   : > { %v7228_v10 = vadd.f32 %v13794_v30, %v7227_v38  ;;  %8456 = vmatprep.mubr.msk.f32.mxu1 %vm6392_vm2, %v7368_v2 }
 0x8bf   : > { %8457 = vmatmul.mubr.msk.f32.gmra.mrb[42].mxu1 %vm6392_vm2, %v7369_v12  ;;  %v7371_v40 = vmax.f32 %v7233_v49, 0.0 }
 0x8c0   : > { %v7370_v52 = vmax.f32 %v7228_v10, 0.0  ;;  %v8410_v50 = vpop.f32.mrb[46].mxu0 }
 0x8c1   : > { %v7243_v29 = vadd.f32 %v8410_v50, %v13794_v30  ;;  %v7237_v42 = vpop.f32.mrb[47].mxu0 }
 0x8c2   : > { %v7238_v63 = vadd.f32 %v13794_v30, %v7237_v42  ;;  %8459 = vmatprep.mubr.msk.f32.mxu1 %vm6392_vm2, %v7370_v52 }
 0x8c3   : > { %8460 = vmatmul.mubr.msk.f32.gmra.mrb[44].mxu1 %vm6392_vm2, %v7371_v40  ;;  %v7373_v23 = vmax.f32 %v7243_v29, 0.0 }
 0x8c4   : > { %v7372_v25 = vmax.f32 %v7238_v63, 0.0  ;;  %v8413_v4 = vpop.f32.mrb[48].mxu0 }
 0x8c5   : > { %v7253_v9 = vadd.f32 %v8413_v4, %v13794_v30  ;;  %v7247_v56 = vpop.f32.mrb[49].mxu0 }
 0x8c6   : > { %v7248_v19 = vadd.f32 %v13794_v30, %v7247_v56  ;;  %8462 = vmatprep.mubr.msk.f32.mxu1 %vm6392_vm2, %v7372_v25 }
 0x8c7   : > { %8463 = vmatmul.mubr.msk.f32.gmra.mrb[46].mxu1 %vm6392_vm2, %v7373_v23  ;;  %v7375_v54 = vmax.f32 %v7253_v9, 0.0 }
 0x8c8   : > { %v7374_v1 = vmax.f32 %v7248_v19, 0.0  ;;  %v8416_v45 = vpop.f32.mrb[50].mxu0 }
 0x8c9   : > { %v7263_v17 = vadd.f32 %v8416_v45, %v13794_v30  ;;  %v7257_v43 = vpop.f32.mrb[51].mxu0 }
 0x8ca   : > { %v7258_v22 = vadd.f32 %v13794_v30, %v7257_v43  ;;  %8465 = vmatprep.mubr.msk.f32.mxu1 %vm6392_vm2, %v7374_v1 }
 0x8cb   : > { %8466 = vmatmul.mubr.msk.f32.gmra.mrb[48].mxu1 %vm6392_vm2, %v7375_v54  ;;  %v7377_v55 = vmax.f32 %v7263_v17, 0.0 }
 0x8cc   : > { %v7376_v13 = vmax.f32 %v7258_v22, 0.0  ;;  %v8419_v32 = vpop.f32.mrb[52].mxu0  ;;  %v13862_v22 = vld [vmem:[#allocation3] ss:$0 sm:$0xff] }
 0x8cd   : > { %v7273_v41 = vadd.f32 %v8419_v32, %v13794_v30  ;;  %v7267_v0 = vpop.f32.mrb[53].mxu0 }
 0x8ce   : > { %v7268_v59 = vadd.f32 %v13794_v30, %v7267_v0  ;;  %8468 = vmatprep.mubr.msk.f32.mxu1 %vm6392_vm2, %v7376_v13 }
 0x8cf   : > { %8469 = vmatmul.mubr.msk.f32.gmra.mrb[50].mxu1 %vm6392_vm2, %v7377_v55  ;;  %v7379_v34 = vmax.f32 %v7273_v41, 0.0 }
 0x8d0   : > { %v7378_v46 = vmax.f32 %v7268_v59, 0.0  ;;  %v8422_v35 = vpop.f32.mrb[54].mxu0 }
 0x8d1   : > { %v7283_v28 = vadd.f32 %v8422_v35, %v13794_v30  ;;  %v7277_v60 = vpop.f32.mrb[55].mxu0 }
 0x8d2   : > { %v7278_v37 = vadd.f32 %v13794_v30, %v7277_v60  ;;  %8471 = vmatprep.mubr.msk.f32.mxu1 %vm6392_vm2, %v7378_v46 }
 0x8d3   : > { %8472 = vmatmul.mubr.msk.f32.gmra.mrb[52].mxu1 %vm6392_vm2, %v7379_v34  ;;  %v7381_v20 = vmax.f32 %v7283_v28, 0.0 }
 0x8d4   : > { %v7380_v62 = vmax.f32 %v7278_v37, 0.0  ;;  %v8425_v5 = vpop.f32.mrb[56].mxu0 }
 0x8d5   : > { %v7293_v61 = vadd.f32 %v8425_v5, %v13794_v30  ;;  %v7287_v6 = vpop.f32.mrb[57].mxu0 }
 0x8d6   : > { %v7288_v39 = vadd.f32 %v13794_v30, %v7287_v6  ;;  %8474 = vmatprep.mubr.msk.f32.mxu1 %vm6392_vm2, %v7380_v62 }
 0x8d7   : > { %8475 = vmatmul.mubr.msk.f32.gmra.mrb[54].mxu1 %vm6392_vm2, %v7381_v20  ;;  %v7383_v3 = vmax.f32 %v7293_v61, 0.0 }
 0x8d8   : > { %v7382_v24 = vmax.f32 %v7288_v39, 0.0  ;;  %v8428_v11 = vpop.f32.mrb[58].mxu0 }
 0x8d9   : > { %v7303_v16 = vadd.f32 %v8428_v11, %v13794_v30  ;;  %v7297_v26 = vpop.f32.mrb[59].mxu0 }
 0x8da   : > { %v7298_v14 = vadd.f32 %v13794_v30, %v7297_v26  ;;  %8477 = vmatprep.mubr.msk.f32.mxu1 %vm6392_vm2, %v7382_v24 }
 0x8db   : > { %8478 = vmatmul.mubr.msk.f32.gmra.mrb[56].mxu1 %vm6392_vm2, %v7383_v3  ;;  %v7385_v47 = vmax.f32 %v7303_v16, 0.0 }
 0x8dc   : > { %v7384_v8 = vmax.f32 %v7298_v14, 0.0  ;;  %v8431_v58 = vpop.f32.mrb[60].mxu0 }
 0x8dd   : > { %v7313_v44 = vadd.f32 %v8431_v58, %v13794_v30  ;;  %v7307_v27 = vpop.f32.mrb[61].mxu0 }
 0x8de   : > { %v7308_v31 = vadd.f32 %v13794_v30, %v7307_v27  ;;  %8480 = vmatprep.mubr.msk.f32.mxu1 %vm6392_vm2, %v7384_v8 }
 0x8df   : > { %8481 = vmatmul.mubr.msk.f32.gmra.mrb[58].mxu1 %vm6392_vm2, %v7385_v47  ;;  %v7387_v36 = vmax.f32 %v7313_v44, 0.0 }
 0x8e0   : > { %v7386_v15 = vmax.f32 %v7308_v31, 0.0  ;;  %v8434_v48 = vpop.f32.mrb[62].mxu0 }
 0x8e1   : > { %v7323_v57 = vadd.f32 %v8434_v48, %v13794_v30  ;;  %v7317_v7 = vpop.f32.mrb[63].mxu0 }
 0x8e2   : > { %v7318_v21 = vadd.f32 %v13794_v30, %v7317_v7  ;;  %8483 = vmatprep.mubr.msk.f32.mxu1 %vm6392_vm2, %v7386_v15 }
 0x8e3   : > { %8484 = vmatmul.mubr.msk.f32.gmra.mrb[60].mxu1 %vm6392_vm2, %v7387_v36  ;;  %v7389_v33 = vmax.f32 %v7323_v57, 0.0 }
 0x8e4   : > { %v7388_v18 = vmax.f32 %v7318_v21, 0.0  ;;  %v8437_v51 = vpop.f32.mrb[64].mxu0 }
 0x8e5   : > { %v7333_v2 = vadd.f32 %v8437_v51, %v13794_v30  ;;  %v7327_v53 = vpop.f32.mrb[65].mxu0 }
 0x8e6   : > { %v7328_v12 = vadd.f32 %v13794_v30, %v7327_v53  ;;  %8486 = vmatprep.mubr.msk.f32.mxu1 %vm6392_vm2, %v7388_v18 }
 0x8e7   : > { %8487 = vmatmul.mubr.msk.f32.gmra.mrb[62].mxu1 %vm6392_vm2, %v7389_v33  ;;  %v7391_v10 = vmax.f32 %v7333_v2, 0.0 }
 0x8e8   : > { %v7390_v49 = vmax.f32 %v7328_v12, 0.0  ;;  %v8440_v38 = vpop.f32.mrb[66].mxu0 }
 0x8e9   : > { %v7343_v52 = vadd.f32 %v8440_v38, %v13794_v30  ;;  %v7337_v50 = vpop.f32.mrb[67].mxu0 }
 0x8ea   : > { %v7338_v40 = vadd.f32 %v13794_v30, %v7337_v50  ;;  %8489 = vmatprep.mubr.msk.f32.mxu1 %vm6392_vm2, %v7390_v49 }
 0x8eb   : > { %8490 = vmatmul.mubr.msk.f32.gmra.mrb[64].mxu1 %vm6392_vm2, %v7391_v10  ;;  %v7393_v42 = vmax.f32 %v7343_v52, 0.0 }
 0x8ec   : > { %v7392_v29 = vmax.f32 %v7338_v40, 0.0 }
 0x8ee   : > { %8492 = vmatprep.mubr.msk.f32.mxu1 %vm6392_vm2, %v7392_v29 }
 0x8ef   : > { %8493 = vmatmul.mubr.msk.f32.gmra.mrb[66].mxu1 %vm6392_vm2, %v7393_v42 }
 0x902   : > { %v8443_v63 = vpop.f32.mrb[68].mxu0 }
 0x903   : > { %v7353_v25 = vadd.f32 %v8443_v63, %v13794_v30  ;;  %v7347_v4 = vpop.f32.mrb[69].mxu0 }
 0x904   : > { %v7348_v23 = vadd.f32 %v13794_v30, %v7347_v4 }
 0x905   : > { %v7395_v56 = vmax.f32 %v7353_v25, 0.0 }
 0x906   : > { %v7394_v9 = vmax.f32 %v7348_v23, 0.0 }
 0x908   : > { %8495 = vmatprep.mubr.msk.f32.mxu1 %vm6392_vm2, %v7394_v9 }
 0x909   : > { %8496 = vmatmul.mubr.msk.f32.gmra.mrb[68].mxu1 %vm6392_vm2, %v7395_v56 }
 0x955   : > { %v8446_v19 = vpop.f32.mrb[70].mxu0 }
 0x956   : > { %v7363_v1 = vadd.f32 %v8446_v19, %v13794_v30  ;;  %v7357_v45 = vpop.f32.mrb[71].mxu0 }
 0x957   : > { %v7358_v54 = vadd.f32 %v13794_v30, %v7357_v45 }
 0x958   : > { %v7397_v43 = vmax.f32 %v7363_v1, 0.0 }
 0x959   : > { %v7396_v17 = vmax.f32 %v7358_v54, 0.0 }
 0x95b   : > { %8498 = vmatprep.mubr.msk.f32.mxu1 %vm6392_vm2, %v7396_v17 }
 0x95c   : > { %8499 = vmatmul.mubr.msk.f32.gmra.mrb[70].mxu1 %vm6392_vm2, %v7397_v43 }
 0x98e   : > { %v8455_v30 = vpop.f32.mrb[40].mxu1 }
 0x98f   : > { %v7579_v13 = vadd.f32 %v8455_v30, %v13862_v22  ;;  %v7573_v32 = vpop.f32.mrb[41].mxu1 }
 0x990   : > { %v7574_v55 = vadd.f32 %v13862_v22, %v7573_v32 }
 0x991   : > { %7734 = vst.msk [vmem:[%s13867_s0 + $0x8] sm:$0xff] %vm7732_vm3, %v7579_v13 }
 0x992   : > { %7733 = vst.msk [vmem:[%s13867_s0] sm:$0xff] %vm7732_vm3, %v7574_v55  ;;  %v8458_v41 = vpop.f32.mrb[42].mxu1 }
 0x993   : > { %v7589_v0 = vadd.f32 %v8458_v41, %v13862_v22  ;;  %v7583_v59 = vpop.f32.mrb[43].mxu1 }
 0x994   : > { %v7584_v46 = vadd.f32 %v13862_v22, %v7583_v59 }
 0x995   : > { %7736 = vst.msk [vmem:[%s13867_s0 + $0x18] sm:$0xff] %vm7732_vm3, %v7589_v0 }
 0x996   : > { %7735 = vst.msk [vmem:[%s13867_s0 + $0x10] sm:$0xff] %vm7732_vm3, %v7584_v46  ;;  %v8461_v35 = vpop.f32.mrb[44].mxu1 }
 0x997   : > { %v7599_v34 = vadd.f32 %v8461_v35, %v13862_v22  ;;  %v7593_v28 = vpop.f32.mrb[45].mxu1 }
 0x998   : > { %v7594_v60 = vadd.f32 %v13862_v22, %v7593_v28 }
 0x999   : > { %7738 = vst.msk [vmem:[%s13867_s0 + $0x28] sm:$0xff] %vm7732_vm3, %v7599_v34 }
 0x99a   : > { %7737 = vst.msk [vmem:[%s13867_s0 + $0x20] sm:$0xff] %vm7732_vm3, %v7594_v60  ;;  %v8464_v37 = vpop.f32.mrb[46].mxu1 }
 0x99b   : > { %v7609_v62 = vadd.f32 %v8464_v37, %v13862_v22  ;;  %v7603_v5 = vpop.f32.mrb[47].mxu1 }
 0x99c   : > { %v7604_v20 = vadd.f32 %v13862_v22, %v7603_v5 }
 0x99d   : > { %7740 = vst.msk [vmem:[%s13867_s0 + $0x38] sm:$0xff] %vm7732_vm3, %v7609_v62 }
 0x99e   : > { %7739 = vst.msk [vmem:[%s13867_s0 + $0x30] sm:$0xff] %vm7732_vm3, %v7604_v20  ;;  %v8467_v61 = vpop.f32.mrb[48].mxu1 }
 0x99f   : > { %v7619_v6 = vadd.f32 %v8467_v61, %v13862_v22  ;;  %v7613_v39 = vpop.f32.mrb[49].mxu1 }
 0x9a0   : > { %v7614_v24 = vadd.f32 %v13862_v22, %v7613_v39 }
 0x9a1   : > { %7742 = vst.msk [vmem:[%s13867_s0 + $0x48] sm:$0xff] %vm7732_vm3, %v7619_v6 }
 0x9a2   : > { %7741 = vst.msk [vmem:[%s13867_s0 + $0x40] sm:$0xff] %vm7732_vm3, %v7614_v24  ;;  %v8470_v11 = vpop.f32.mrb[50].mxu1 }
 0x9a3   : > { %v7629_v3 = vadd.f32 %v8470_v11, %v13862_v22  ;;  %v7623_v16 = vpop.f32.mrb[51].mxu1 }
 0x9a4   : > { %v7624_v26 = vadd.f32 %v13862_v22, %v7623_v16 }
 0x9a5   : > { %7744 = vst.msk [vmem:[%s13867_s0 + $0x58] sm:$0xff] %vm7732_vm3, %v7629_v3 }
 0x9a6   : > { %7743 = vst.msk [vmem:[%s13867_s0 + $0x50] sm:$0xff] %vm7732_vm3, %v7624_v26  ;;  %v8473_v14 = vpop.f32.mrb[52].mxu1 }
 0x9a7   : > { %v7639_v8 = vadd.f32 %v8473_v14, %v13862_v22  ;;  %v7633_v58 = vpop.f32.mrb[53].mxu1 }
 0x9a8   : > { %v7634_v47 = vadd.f32 %v13862_v22, %v7633_v58 }
 0x9a9   : > { %7746 = vst.msk [vmem:[%s13867_s0 + $0x68] sm:$0xff] %vm7732_vm3, %v7639_v8 }
 0x9aa   : > { %7745 = vst.msk [vmem:[%s13867_s0 + $0x60] sm:$0xff] %vm7732_vm3, %v7634_v47  ;;  %v8476_v44 = vpop.f32.mrb[54].mxu1 }
 0x9ab   : > { %v7649_v27 = vadd.f32 %v8476_v44, %v13862_v22  ;;  %v7643_v31 = vpop.f32.mrb[55].mxu1 }
 0x9ac   : > { %v7644_v15 = vadd.f32 %v13862_v22, %v7643_v31 }
 0x9ad   : > { %7748 = vst.msk [vmem:[%s13867_s0 + $0x78] sm:$0xff] %vm7732_vm3, %v7649_v27 }
 0x9ae   : > { %7747 = vst.msk [vmem:[%s13867_s0 + $0x70] sm:$0xff] %vm7732_vm3, %v7644_v15  ;;  %v8479_v48 = vpop.f32.mrb[56].mxu1 }
 0x9af   : > { %v7659_v36 = vadd.f32 %v8479_v48, %v13862_v22  ;;  %v7653_v57 = vpop.f32.mrb[57].mxu1 }
 0x9b0   : > { %v7654_v7 = vadd.f32 %v13862_v22, %v7653_v57 }
 0x9b1   : > { %7750 = vst.msk [vmem:[%s13867_s0 + $0x88] sm:$0xff] %vm7732_vm3, %v7659_v36 }
 0x9b2   : > { %7749 = vst.msk [vmem:[%s13867_s0 + $0x80] sm:$0xff] %vm7732_vm3, %v7654_v7  ;;  %v8482_v21 = vpop.f32.mrb[58].mxu1 }
 0x9b3   : > { %v7669_v18 = vadd.f32 %v8482_v21, %v13862_v22  ;;  %v7663_v51 = vpop.f32.mrb[59].mxu1 }
 0x9b4   : > { %v7664_v33 = vadd.f32 %v13862_v22, %v7663_v51 }
 0x9b5   : > { %7752 = vst.msk [vmem:[%s13867_s0 + $0x98] sm:$0xff] %vm7732_vm3, %v7669_v18 }
 0x9b6   : > { %7751 = vst.msk [vmem:[%s13867_s0 + $0x90] sm:$0xff] %vm7732_vm3, %v7664_v33  ;;  %v8485_v2 = vpop.f32.mrb[60].mxu1 }
 0x9b7   : > { %v7679_v53 = vadd.f32 %v8485_v2, %v13862_v22  ;;  %v7673_v12 = vpop.f32.mrb[61].mxu1 }
 0x9b8   : > { %v7674_v49 = vadd.f32 %v13862_v22, %v7673_v12 }
 0x9b9   : > { %7754 = vst.msk [vmem:[%s13867_s0 + $0xa8] sm:$0xff] %vm7732_vm3, %v7679_v53 }
 0x9ba   : > { %7753 = vst.msk [vmem:[%s13867_s0 + $0xa0] sm:$0xff] %vm7732_vm3, %v7674_v49  ;;  %v8488_v38 = vpop.f32.mrb[62].mxu1 }
 0x9bb   : > { %v7689_v10 = vadd.f32 %v8488_v38, %v13862_v22  ;;  %v7683_v52 = vpop.f32.mrb[63].mxu1 }
 0x9bc   : > { %v7684_v50 = vadd.f32 %v13862_v22, %v7683_v52 }
 0x9bd   : > { %7756 = vst.msk [vmem:[%s13867_s0 + $0xb8] sm:$0xff] %vm7732_vm3, %v7689_v10 }
 0x9be   : > { %7755 = vst.msk [vmem:[%s13867_s0 + $0xb0] sm:$0xff] %vm7732_vm3, %v7684_v50  ;;  %v8491_v40 = vpop.f32.mrb[64].mxu1 }
 0x9bf   : > { %v7699_v29 = vadd.f32 %v8491_v40, %v13862_v22  ;;  %v7693_v42 = vpop.f32.mrb[65].mxu1 }
 0x9c0   : > { %v7694_v63 = vadd.f32 %v13862_v22, %v7693_v42 }
 0x9c1   : > { %7758 = vst.msk [vmem:[%s13867_s0 + $0xc8] sm:$0xff] %vm7732_vm3, %v7699_v29 }
 0x9c2   : > { %7757 = vst.msk [vmem:[%s13867_s0 + $0xc0] sm:$0xff] %vm7732_vm3, %v7694_v63  ;;  %v8494_v25 = vpop.f32.mrb[66].mxu1 }
 0x9c3   : > { %v7709_v4 = vadd.f32 %v8494_v25, %v13862_v22  ;;  %v7703_v23 = vpop.f32.mrb[67].mxu1 }
 0x9c4   : > { %v7704_v9 = vadd.f32 %v13862_v22, %v7703_v23 }
 0x9c5   : > { %7760 = vst.msk [vmem:[%s13867_s0 + $0xd8] sm:$0xff] %vm7732_vm3, %v7709_v4 }
 0x9c6   : > { %7759 = vst.msk [vmem:[%s13867_s0 + $0xd0] sm:$0xff] %vm7732_vm3, %v7704_v9 }
 0x9dc   : > { %v8497_v56 = vpop.f32.mrb[68].mxu1 }
 0x9dd   : > { %v7719_v19 = vadd.f32 %v8497_v56, %v13862_v22  ;;  %v7713_v1 = vpop.f32.mrb[69].mxu1 }
 0x9de   : > { %v7714_v45 = vadd.f32 %v13862_v22, %v7713_v1 }
 0x9df   : > { %7762 = vst.msk [vmem:[%s13867_s0 + $0xe8] sm:$0xff] %vm7732_vm3, %v7719_v19 }
 0x9e0   : > { %7761 = vst.msk [vmem:[%s13867_s0 + $0xe0] sm:$0xff] %vm7732_vm3, %v7714_v45 }
 0xa2f   : > { %v8500_v54 = vpop.f32.mrb[70].mxu1 }
 0xa30   : > { %v7729_v17 = vadd.f32 %v8500_v54, %v13862_v22  ;;  %v7723_v43 = vpop.f32.mrb[71].mxu1 }
 0xa31   : > { %v7724_v30 = vadd.f32 %v13862_v22, %v7723_v43 }
 0xa32   : > { %7764 = vst.msk [vmem:[%s13867_s0 + $0xf8] sm:$0xff] %vm7732_vm3, %v7729_v17 }
 0xa33   : > { %7763 = vst.msk [vmem:[%s13867_s0 + $0xf0] sm:$0xff] %vm7732_vm3, %v7724_v30 }
 0xa34 PF: > { %p31_p1 = scmp.ge.s32.totalorder %s10337_s21, 4   ;;  %s15363_s25 = smov %s10150_s26 }
 0xa35   : > { %s15364_s26 = smov %s10154_s27  ;;  %s15365_s27 = smov %s10347_s22 }
 0xa36   : > { %s15366_s28 = smov %s10337_s21  ;;  %33 = sbr.rel (!%p31_p1) target bundleno = 13 (0xd), region = 137 }
 0xa3d   :  { %7787 = vsyncpa [#allocation5], 1 }
 0xa3e   :  { %7789 = vsyncpa [#allocation5 + $0x1], 1 }
 0xa3f   :  { %7790 = vsyncpa [#allocation6], 1 }
 0xa40   :  { %7792 = vsyncpa [#allocation6 + $0x1], 1 }
 0xa41   :  { %7793 = vsyncpa [#allocation9], 1 }

</bundles_post_ra>
